<compile_context>
chip_gen: v7x
topology: tpu7x:2x2x1
jax: 0.10.0
libtpu: 0.0.40
codegen_flags: <defaults>
</compile_context>

<pallas_src>
import numpy as np
import jax
import jax.numpy as jnp
from jax import lax
from jax.experimental import pallas as pl
from jax.experimental.pallas import tpu as pltpu

# ---------------- configuration (OverfitterParameter) ----------------
IMG_H, IMG_W = 16, 16
N_LATENTS = 2                        # latents: [1,1,16,16], [1,1,8,8]
ARM_HIDDEN = 16                      # layers_arm = [16, 16]
SYNTH_HIDDEN = 8                     # layers_synthesis ~ ['8-1-linear-relu', '9-1-linear-none']
UPS_K = 8
IMG_BITDEPTH = 8
LATENT_BITDEPTH = 6
FREQ_PRECISION = 15
LATENT_FREQ_PRECISION = 12
LATENT_MAX_VAL = 2 ** (LATENT_BITDEPTH - 1) - 1
IMG_SIZE = IMG_H * IMG_W * 3
N_PIX = IMG_H * IMG_W + (IMG_H // 2) * (IMG_W // 2)          # 320 latent pixels

PHASES = ((0, 0), (0, 1), (1, 0), (1, 1))                    # 2x2 sub-pixel phases
_OFFS = {0: (0, 1, 2, 3), 1: (1, 2, 3, 4)}                   # polyphase row/col offsets

# plane-slab layout [77, 8, 8]
PL_Q0 = 0          # 4  : q0 phase planes
PL_PRIOR = 4       # 36 : scaled prior, channel-major x phase
PL_IMG = 40        # 12 : image channels x phase
PL_VIEW = 52       # 25 : shifted 8x8 views of the padded 8x8 latent
N_PLANES = 77

# SMEM scalar-vector layout (f32)
OFF_SW0 = 0        # 16 : synthesis layer0 weights  (k*2 + {0:q0, 1:up})
OFF_SB0 = 16       # 8
OFF_SW1 = 24       # 72 : synthesis layer1 weights  (j*8 + k)
OFF_SB1 = 96       # 9
OFF_B2 = 105       # 2  : ARM head bias
OFF_TAP = 107      # 64 : ConvT taps (phase*16 + iy*4 + ix)
SMEM_LEN = 171


# ------------------------- Laplace entropy model ----------------------------
def _laplace_rate(sym, mu, inv_scale, min_proba):
    """-log2 P(sym) under a discretized Laplace (bin width 1); one exp per CDF bound."""
    d_hi = sym + 0.5 - mu
    d_lo = sym - 0.5 - mu
    e_hi = 0.5 * jnp.exp(-jnp.abs(d_hi) * inv_scale)
    e_lo = 0.5 * jnp.exp(-jnp.abs(d_lo) * inv_scale)
    cdf_hi = jnp.where(d_hi <= 0.0, e_hi, 1.0 - e_hi)
    cdf_lo = jnp.where(d_lo <= 0.0, e_lo, 1.0 - e_lo)
    proba = jnp.maximum(cdf_hi - cdf_lo, min_proba)
    return -jnp.log2(proba)


def _laplace_rate_np(sym, mu, inv_scale, min_proba):
    d_hi = sym + 0.5 - mu
    d_lo = sym - 0.5 - mu
    e_hi = 0.5 * np.exp(-np.abs(d_hi) * inv_scale)
    e_lo = 0.5 * np.exp(-np.abs(d_lo) * inv_scale)
    cdf_hi = np.where(d_hi <= 0.0, e_hi, 1.0 - e_hi)
    cdf_lo = np.where(d_lo <= 0.0, e_lo, 1.0 - e_lo)
    return -np.log2(np.maximum(cdf_hi - cdf_lo, min_proba))


# ------------------------- fused Pallas kernel ----------------------------
def overfitter_kernel(ac_ref, slab_ref, sm_ref, out_ref):
    # ---------------- ARM MLP (2->16->16->2) + latent rate -----------------------
    # pixels-on-lanes: ctx rows = (above, left, ones, latent), all [*, 320].
    ctx = ac_ref[0:4, :]
    # 2->16 with bias folded via the ones row (latent row gets a zero weight column).
    h = jnp.maximum(jnp.dot(ac_ref[4:20, 0:4], ctx,
                            preferred_element_type=jnp.float32), 0.0)          # [16, 320]
    # 16->16 on the MXU (v7x: keep; v5e/v6e: VPU broadcast-FMA variant is an option).
    h = jnp.maximum(jnp.dot(ac_ref[4:20, 4:20], h,
                            preferred_element_type=jnp.float32)
                    + ac_ref[4:20, 20:21], 0.0)                                 # [16, 320]
    # 16->2 head as a second zero-padded MXU dot (replaces 16 sublane-extract FMAs).
    head = jnp.dot(ac_ref[4:20, 21:37], h, preferred_element_type=jnp.float32)  # [16, 320]
    mu = head[0:1, :] + sm_ref[OFF_B2 + 0]
    log_s = jnp.clip(head[1:2, :] + sm_ref[OFF_B2 + 1], -10.0, 10.0)
    lat = ctx[3:4, :]
    lat_total = jnp.sum(
        _laplace_rate(lat, mu, jnp.exp(-log_s), 2.0 ** (-LATENT_FREQ_PRECISION)))

    # -------- polyphase 2x upsample + synthesis + weak color-AR image rate --------
    min_p = 2.0 ** (-FREQ_PRECISION)
    img_plane_acc = None
    for ph, (py, px) in enumerate(PHASES):
        # ConvTranspose2d(k=8, s=2, p=3), phase (py, px): 4x4 taps on the padded 8x8
        # latent; shifted views are pre-packed planes, taps are SMEM scalars.
        up = None
        for iy, oy in enumerate(_OFFS[py]):
            for ix, ox in enumerate(_OFFS[px]):
                v = slab_ref[PL_VIEW + oy * 5 + ox]                              # [8, 8]
                t = sm_ref[OFF_TAP + ph * 16 + iy * 4 + ix]
                term = v * t
                up = term if up is None else up + term

        q0p = slab_ref[PL_Q0 + ph]                                               # [8, 8]
        hs = []
        for k in range(SYNTH_HIDDEN):                                            # 2 -> 8, ReLU
            t = (sm_ref[OFF_SW0 + 2 * k] * q0p
                 + sm_ref[OFF_SW0 + 2 * k + 1] * up
                 + sm_ref[OFF_SB0 + k])
            hs.append(jnp.maximum(t, 0.0))

        def synth_param(j):                                                      # 8 -> 9 + prior
            t = sm_ref[OFF_SB1 + j] + slab_ref[PL_PRIOR + j * 4 + ph]
            for k in range(SYNTH_HIDDEN):
                t = t + sm_ref[OFF_SW1 + j * SYNTH_HIDDEN + k] * hs[k]
            return t

        x0 = slab_ref[PL_IMG + 0 * 4 + ph]
        x1 = slab_ref[PL_IMG + 1 * 4 + ph]
        x2 = slab_ref[PL_IMG + 2 * 4 + ph]
        # params computed interleaved with their consumption (keeps vreg liveness low).
        pred0 = synth_param(0)
        r = _laplace_rate(x0, pred0,
                          jnp.exp(-jnp.clip(synth_param(3), -10.0, 10.0)), min_p)
        pred1 = synth_param(1) + synth_param(7) * (x0 - pred0)
        r = r + _laplace_rate(x1, pred1,
                              jnp.exp(-jnp.clip(synth_param(4), -10.0, 10.0)), min_p)
        pred2 = synth_param(2) + synth_param(8) * (x1 - pred1)
        r = r + _laplace_rate(x2, pred2,
                              jnp.exp(-jnp.clip(synth_param(5), -10.0, 10.0)), min_p)
        img_plane_acc = r if img_plane_acc is None else img_plane_acc + r
    img_total = jnp.sum(img_plane_acc)                       # single reduction tree

    lane = lax.broadcasted_iota(jnp.int32, (1, 2), 1)
    out_ref[...] = jnp.where(lane == 0, lat_total, img_total)   # one store, one output DMA


# ------------------------- host-side input packing ----------------------------
def _pack_inputs(img_t, prior, latents, coefficients, encoder_gains,
                 arm_params, synth_params, ups_kernel):
    # quantizer (eval/STE path: round + clamp)
    q0 = jnp.clip(jnp.round(latents[0][0, 0] * encoder_gains[0]),
                  -LATENT_MAX_VAL, LATENT_MAX_VAL)
    q1 = jnp.clip(jnp.round(latents[1][0, 0] * encoder_gains[1]),
                  -LATENT_MAX_VAL, LATENT_MAX_VAL)

    # causal (above, left) context, pixels-on-lanes
    def rows(x):
        above = jnp.concatenate([jnp.zeros((1, x.shape[1]), x.dtype), x[:-1, :]], 0)
        left = jnp.concatenate([jnp.zeros((x.shape[0], 1), x.dtype), x[:, :-1]], 1)
        return above.reshape(-1), left.reshape(-1), x.reshape(-1)

    a0, l0, f0 = rows(q0)
    a1, l1, f1 = rows(q1)
    ctx_lat = jnp.stack([jnp.concatenate([a0, a1]),
                         jnp.concatenate([l0, l1]),
                         jnp.ones((N_PIX,), jnp.float32),
                         jnp.concatenate([f0, f1])], 0)                          # [4, 320]

    # ARM weights column-packed and appended below the context rows
    w0, b0, w1, b1, w2, b2 = arm_params
    w2pad = jnp.zeros((ARM_HIDDEN, ARM_HIDDEN), jnp.float32).at[0:2, :].set(w2)
    arm_block = jnp.concatenate(
        [w0, b0.reshape(-1, 1), jnp.zeros((ARM_HIDDEN, 1), jnp.float32),
         w1, b1.reshape(-1, 1), w2pad], axis=1)                                   # [16, 37]
    arm_block = jnp.pad(arm_block, ((0, 0), (0, N_PIX - arm_block.shape[1])))
    arm_ctx = jnp.concatenate([ctx_lat, arm_block], 0)                            # [20, 320]

    # plane slab: q0 / scaled prior / image in 2x2-phase layout + shifted latent views
    def phases(p):
        return [p[py::2, px::2] for (py, px) in PHASES]

    coeff = jnp.stack([c.reshape(9) for c in coefficients], 0)   # [phase, channel]
    planes = list(phases(q0))
    for c in range(9):
        pc = prior[0, c]
        for ph, (py, px) in enumerate(PHASES):
            planes.append(pc[py::2, px::2] * coeff[ph, c])
    for c in range(3):
        planes += phases(img_t[0, c])
    q1p = jnp.pad(q1, ((2, 2), (2, 2)))                          # [12, 12]
    for oy in range(5):
        for ox in range(5):
            planes.append(q1p[oy:oy + 8, ox:ox + 8])
    slab = jnp.stack(planes, 0)                                  # [77, 8, 8]

    # SMEM scalar vector: synthesis weights + ARM head bias + per-phase ConvT taps
    sw0, sb0, sw1, sb1 = synth_params
    taps = []
    for (py, px) in PHASES:
        for oy in _OFFS[py]:
            for ox in _OFFS[px]:
                ry = 7 - 2 * oy if py == 0 else 8 - 2 * oy
                rx = 7 - 2 * ox if px == 0 else 8 - 2 * ox
                taps.append(ups_kernel[ry, rx])
    smem_vec = jnp.concatenate([sw0.reshape(-1), sb0.reshape(-1),
                                sw1.reshape(-1), sb1.reshape(-1),
                                b2.reshape(-1), jnp.stack(taps)])                 # [171]
    return arm_ctx, slab, smem_vec


# ------------------------------ forward (jitted) ----------------------------
@jax.jit
def overfitter_forward(img_t, prior, latents, coefficients, encoder_gains,
                       arm_params, synth_params, ups_kernel):
    arm_ctx, slab, smem_vec = _pack_inputs(
        img_t, prior, latents, coefficients, encoder_gains,
        arm_params, synth_params, ups_kernel)

    rates = pl.pallas_call(
        overfitter_kernel,
        out_shape=jax.ShapeDtypeStruct((1, 2), jnp.float32),
        in_specs=[pl.BlockSpec(memory_space=pltpu.MemorySpace.VMEM),
                  pl.BlockSpec(memory_space=pltpu.MemorySpace.VMEM),
                  pl.BlockSpec(memory_space=pltpu.MemorySpace.SMEM)],
        out_specs=pl.BlockSpec(memory_space=pltpu.MemorySpace.VMEM),
    )(arm_ctx, slab, smem_vec)

    latent_bpd = rates[0, 0] / IMG_SIZE
    img_bpd = rates[0, 1] / IMG_SIZE
    return dict(latent_bpd=latent_bpd, img_bpd=img_bpd, loss=latent_bpd + img_bpd)


# --------------------- pure-numpy reference (for the self-check) ---------------------
def reference_forward_np(img_t, prior, latents, coefficients, encoder_gains,
                         arm_params, synth_params, ups_kernel):
    f32 = np.float32
    g = np.asarray(encoder_gains, f32)
    q = [np.clip(np.round(np.asarray(latents[i][0, 0], f32) * g[i]),
                 -LATENT_MAX_VAL, LATENT_MAX_VAL).astype(f32) for i in range(2)]
    q0, q1 = q

    # ARM / latent rate
    ctx_list, lat_list = [], []
    for x in (q0, q1):
        above = np.zeros_like(x); above[1:, :] = x[:-1, :]
        left = np.zeros_like(x); left[:, 1:] = x[:, :-1]
        ctx_list.append(np.stack([above.reshape(-1), left.reshape(-1)], 1))
        lat_list.append(x.reshape(-1))
    C = np.concatenate(ctx_list, 0).astype(f32)
    L = np.concatenate(lat_list, 0).astype(f32)
    w0, b0, w1, b1, w2, b2 = [np.asarray(a, f32) for a in arm_params]
    h = np.maximum(C @ w0.T + b0, 0.0)
    h = np.maximum(h @ w1.T + b1, 0.0)
    p = h @ w2.T + b2
    mu, log_s = p[:, 0], np.clip(p[:, 1], -10.0, 10.0)
    lat_rate = _laplace_rate_np(L, mu, np.exp(-log_s),
                                2.0 ** (-LATENT_FREQ_PRECISION)).sum()

    # ConvTranspose2d(k=8, s=2, p=3) as zero-insert + correlation with flipped kernel
    W = np.asarray(ups_kernel, f32)
    z = np.zeros((23, 23), f32)
    z[4:19:2, 4:19:2] = q1
    Wf = W[::-1, ::-1]
    up = np.zeros((16, 16), f32)
    for a in range(8):
        for b in range(8):
            up += z[a:a + 16, b:b + 16] * Wf[a, b]

    # synthesis + prior (per-(channel, 2x2-phase) coefficient scaling)
    sw0, sb0, sw1, sb1 = [np.asarray(a, f32) for a in synth_params]
    S = np.stack([q0, up], 0)
    hsy = np.maximum(np.einsum('oc,chw->ohw', sw0, S) + sb0[:, None, None], 0.0)
    params = np.einsum('ok,khw->ohw', sw1, hsy) + sb1[:, None, None]
    prior_np = np.asarray(prior[0], f32)
    coeff = np.stack([np.asarray(c, f32).reshape(9) for c in coefficients], 0)
    scale = np.zeros((9, 16, 16), f32)
    for ph, (py, px) in enumerate(PHASES):
        for c in range(9):
            scale[c, py::2, px::2] = coeff[ph, c]
    params = params + prior_np * scale

    # weak color-AR image rate
    img_np = np.asarray(img_t[0], f32)
    x0, x1, x2 = img_np[0], img_np[1], img_np[2]
    min_p = 2.0 ** (-FREQ_PRECISION)
    pred0 = params[0]
    r = _laplace_rate_np(x0, pred0, np.exp(-np.clip(params[3], -10, 10)), min_p)
    pred1 = params[1] + params[7] * (x0 - pred0)
    r = r + _laplace_rate_np(x1, pred1, np.exp(-np.clip(params[4], -10, 10)), min_p)
    pred2 = params[2] + params[8] * (x1 - pred1)
    r = r + _laplace_rate_np(x2, pred2, np.exp(-np.clip(params[5], -10, 10)), min_p)
    img_rate = r.sum()
    return lat_rate / IMG_SIZE, img_rate / IMG_SIZE


def bicubic_2x_kernel(K=8, a=-0.75):
    t = np.abs((np.arange(K) - (K - 1) / 2.0) / 2.0)
    w = np.where(t <= 1, (a + 2) * t ** 3 - (a + 3) * t ** 2 + 1,
                 np.where(t < 2, a * t ** 3 - 5 * a * t ** 2 + 8 * a * t - 4 * a, 0.0))
    return np.outer(w, w).astype(np.float32)


# ------------------------------ main -----------------------------------
if __name__ == "__main__":
    key = jax.random.PRNGKey(0)
    ks = jax.random.split(key, 16)

    latents = [0.15 * jax.random.normal(ks[i], (1, 1, IMG_H // 2 ** i, IMG_W // 2 ** i),
                                        dtype=jnp.float32) for i in range(N_LATENTS)]
    encoder_gains = jnp.full((N_LATENTS,), 64.0, jnp.float32)
    coefficients = [jnp.full((1, 9, 1, 1), v, jnp.float32) for v in (0.9, 1.1, 1.0, 0.95)]

    def lin(k, fan_in, fan_out, scale):
        return (scale / np.sqrt(fan_in)) * jax.random.normal(k, (fan_out, fan_in), jnp.float32)

    arm_params = (lin(ks[2], 2, ARM_HIDDEN, 0.6),
                  0.1 * jax.random.normal(ks[3], (ARM_HIDDEN,), jnp.float32),
                  lin(ks[4], ARM_HIDDEN, ARM_HIDDEN, 0.5),
                  0.1 * jax.random.normal(ks[5], (ARM_HIDDEN,), jnp.float32),
                  lin(ks[6], ARM_HIDDEN, 2, 0.2),
                  0.1 * jax.random.normal(ks[7], (2,), jnp.float32))

    sb1 = (jnp.asarray([128., 128., 128., 4., 4., 4., 0., 0., 0.], jnp.float32)
           + 0.1 * jax.random.normal(ks[8], (9,), jnp.float32))
    synth_params = (lin(ks[9], 2, SYNTH_HIDDEN, 0.6),
                    0.1 * jax.random.normal(ks[10], (SYNTH_HIDDEN,), jnp.float32),
                    lin(ks[11], SYNTH_HIDDEN, 9, 0.4),
                    sb1)

    # bicubic-initialised transposed-conv kernel + small asymmetric perturbation
    ups_kernel = (jnp.asarray(bicubic_2x_kernel(UPS_K))
                  + 0.02 * jax.random.normal(ks[12], (UPS_K, UPS_K), jnp.float32))

    img_t = jnp.round(jax.random.uniform(ks[13], (1, 3, IMG_H, IMG_W), jnp.float32) * 255.0)
    prior = 0.5 * jax.random.normal(ks[14], (1, 9, IMG_H, IMG_W), jnp.float32)

    out = overfitter_forward(img_t, prior, latents, coefficients, encoder_gains,
                             arm_params, synth_params, ups_kernel)
    out = jax.block_until_ready(out)

    ref_lat_bpd, ref_img_bpd = reference_forward_np(
        img_t, prior, latents, coefficients, encoder_gains,
        arm_params, synth_params, ups_kernel)
    np.testing.assert_allclose(float(out["latent_bpd"]), ref_lat_bpd, rtol=5e-2, atol=5e-2)
    np.testing.assert_allclose(float(out["img_bpd"]), ref_img_bpd, rtol=5e-2, atol=5e-2)
    assert all(bool(jnp.isfinite(v)) for v in out.values())
    print("KERNEL_OK")
</pallas_src>

<mosaic_0001>
module attributes {stable_mosaic.version = 11 : i64} {
  func.func @overfitter_kernel(%arg0: memref<20x320xf32, #tpu.memory_space<vmem>>, %arg1: memref<77x8x8xf32, #tpu.memory_space<vmem>>, %arg2: memref<171xf32, #tpu.memory_space<smem>>, %arg3: memref<1x2xf32, #tpu.memory_space<vmem>>) attributes {dimension_semantics = [], scalar_prefetch = 0 : i64, scratch_operands = 0 : i64, tpu.core_type = #tpu.core_type<tc>} {
    %c0 = arith.constant 0 : index
    %c0_0 = arith.constant 0 : index
    %0 = vector.load %arg0[%c0, %c0_0] : memref<20x320xf32, #tpu.memory_space<vmem>>, vector<4x320xf32>
    %c4 = arith.constant 4 : index
    %c0_1 = arith.constant 0 : index
    %1 = vector.load %arg0[%c4, %c0_1] : memref<20x320xf32, #tpu.memory_space<vmem>>, vector<16x4xf32>
    %cst = arith.constant dense<0.000000e+00> : vector<16x320xf32>
    %2 = tpu.matmul %1, %0, %cst {dimension_numbers = #tpu.dot_dimension_numbers<[1], [0], [0], [1], [0, 0, 1, 1], [], []>} : vector<16x4xf32>, vector<4x320xf32>, vector<16x320xf32> -> vector<16x320xf32>
    %cst_2 = arith.constant 0.000000e+00 : f32
    %3 = vector.broadcast %cst_2 : f32 to vector<16x320xf32>
    %4 = arith.maximumf %2, %3 : vector<16x320xf32>
    %c4_3 = arith.constant 4 : index
    %c4_4 = arith.constant 4 : index
    %5 = vector.load %arg0[%c4_3, %c4_4] : memref<20x320xf32, #tpu.memory_space<vmem>>, vector<16x16xf32>
    %cst_5 = arith.constant dense<0.000000e+00> : vector<16x320xf32>
    %6 = tpu.matmul %5, %4, %cst_5 {dimension_numbers = #tpu.dot_dimension_numbers<[1], [0], [0], [1], [0, 0, 1, 1], [], []>} : vector<16x16xf32>, vector<16x320xf32>, vector<16x320xf32> -> vector<16x320xf32>
    %c4_6 = arith.constant 4 : index
    %c20 = arith.constant 20 : index
    %7 = vector.load %arg0[%c4_6, %c20] : memref<20x320xf32, #tpu.memory_space<vmem>>, vector<16x1xf32>
    %8 = vector.broadcast %7 : vector<16x1xf32> to vector<16x320xf32>
    %9 = arith.addf %6, %8 : vector<16x320xf32>
    %cst_7 = arith.constant 0.000000e+00 : f32
    %10 = vector.broadcast %cst_7 : f32 to vector<16x320xf32>
    %11 = arith.maximumf %9, %10 : vector<16x320xf32>
    %c4_8 = arith.constant 4 : index
    %c21 = arith.constant 21 : index
    %12 = vector.load %arg0[%c4_8, %c21] : memref<20x320xf32, #tpu.memory_space<vmem>>, vector<16x16xf32>
    %cst_9 = arith.constant dense<0.000000e+00> : vector<16x320xf32>
    %13 = tpu.matmul %12, %11, %cst_9 {dimension_numbers = #tpu.dot_dimension_numbers<[1], [0], [0], [1], [0, 0, 1, 1], [], []>} : vector<16x16xf32>, vector<16x320xf32>, vector<16x320xf32> -> vector<16x320xf32>
    %14 = vector.extract_strided_slice %13 {offsets = [0, 0], sizes = [1, 320], strides = [1, 1]} : vector<16x320xf32> to vector<1x320xf32>
    %c105 = arith.constant 105 : index
    %15 = memref.load %arg2[%c105] : memref<171xf32, #tpu.memory_space<smem>>
    %16 = vector.broadcast %15 : f32 to vector<1x320xf32>
    %17 = arith.addf %14, %16 : vector<1x320xf32>
    %18 = vector.extract_strided_slice %13 {offsets = [1, 0], sizes = [1, 320], strides = [1, 1]} : vector<16x320xf32> to vector<1x320xf32>
    %c106 = arith.constant 106 : index
    %19 = memref.load %arg2[%c106] : memref<171xf32, #tpu.memory_space<smem>>
    %20 = vector.broadcast %19 : f32 to vector<1x320xf32>
    %21 = arith.addf %18, %20 : vector<1x320xf32>
    %cst_10 = arith.constant -1.000000e+01 : f32
    %cst_11 = arith.constant 1.000000e+01 : f32
    %22 = vector.broadcast %cst_10 : f32 to vector<1x320xf32>
    %23 = arith.maximumf %22, %21 : vector<1x320xf32>
    %24 = vector.broadcast %cst_11 : f32 to vector<1x320xf32>
    %25 = arith.minimumf %24, %23 : vector<1x320xf32>
    %26 = vector.extract_strided_slice %0 {offsets = [3, 0], sizes = [1, 320], strides = [1, 1]} : vector<4x320xf32> to vector<1x320xf32>
    %cst_12 = arith.constant 0.000000e+00 : f32
    %27 = vector.broadcast %cst_12 : f32 to vector<1x320xf32>
    %28 = arith.subf %27, %25 : vector<1x320xf32>
    %29 = math.exp %28 : vector<1x320xf32>
    %cst_13 = arith.constant 5.000000e-01 : f32
    %30 = vector.broadcast %cst_13 : f32 to vector<1x320xf32>
    %31 = arith.addf %26, %30 : vector<1x320xf32>
    %32 = arith.subf %31, %17 : vector<1x320xf32>
    %cst_14 = arith.constant 5.000000e-01 : f32
    %33 = vector.broadcast %cst_14 : f32 to vector<1x320xf32>
    %34 = arith.subf %26, %33 : vector<1x320xf32>
    %35 = arith.subf %34, %17 : vector<1x320xf32>
    %36 = math.absf %32 : vector<1x320xf32>
    %cst_15 = arith.constant 0.000000e+00 : f32
    %37 = vector.broadcast %cst_15 : f32 to vector<1x320xf32>
    %38 = arith.subf %37, %36 : vector<1x320xf32>
    %39 = arith.mulf %38, %29 : vector<1x320xf32>
    %40 = math.exp %39 : vector<1x320xf32>
    %cst_16 = arith.constant 5.000000e-01 : f32
    %41 = vector.broadcast %cst_16 : f32 to vector<1x320xf32>
    %42 = arith.mulf %41, %40 : vector<1x320xf32>
    %43 = math.absf %35 : vector<1x320xf32>
    %cst_17 = arith.constant 0.000000e+00 : f32
    %44 = vector.broadcast %cst_17 : f32 to vector<1x320xf32>
    %45 = arith.subf %44, %43 : vector<1x320xf32>
    %46 = arith.mulf %45, %29 : vector<1x320xf32>
    %47 = math.exp %46 : vector<1x320xf32>
    %cst_18 = arith.constant 5.000000e-01 : f32
    %48 = vector.broadcast %cst_18 : f32 to vector<1x320xf32>
    %49 = arith.mulf %48, %47 : vector<1x320xf32>
    %cst_19 = arith.constant 0.000000e+00 : f32
    %50 = vector.broadcast %cst_19 : f32 to vector<1x320xf32>
    %51 = arith.cmpf ole, %32, %50 : vector<1x320xf32>
    %cst_20 = arith.constant 1.000000e+00 : f32
    %52 = vector.broadcast %cst_20 : f32 to vector<1x320xf32>
    %53 = arith.subf %52, %42 : vector<1x320xf32>
    %54 = arith.select %51, %42, %53 : vector<1x320xi1>, vector<1x320xf32>
    %cst_21 = arith.constant 0.000000e+00 : f32
    %55 = vector.broadcast %cst_21 : f32 to vector<1x320xf32>
    %56 = arith.cmpf ole, %35, %55 : vector<1x320xf32>
    %cst_22 = arith.constant 1.000000e+00 : f32
    %57 = vector.broadcast %cst_22 : f32 to vector<1x320xf32>
    %58 = arith.subf %57, %49 : vector<1x320xf32>
    %59 = arith.select %56, %49, %58 : vector<1x320xi1>, vector<1x320xf32>
    %60 = arith.subf %54, %59 : vector<1x320xf32>
    %cst_23 = arith.constant 2.44140625E-4 : f32
    %61 = vector.broadcast %cst_23 : f32 to vector<1x320xf32>
    %62 = arith.maximumf %60, %61 : vector<1x320xf32>
    %63 = math.log %62 : vector<1x320xf32>
    %cst_24 = arith.constant 2.000000e+00 : f32
    %64 = math.log %cst_24 : f32
    %65 = vector.broadcast %64 : f32 to vector<1x320xf32>
    %66 = arith.divf %63, %65 : vector<1x320xf32>
    %cst_25 = arith.constant 0.000000e+00 : f32
    %67 = vector.broadcast %cst_25 : f32 to vector<1x320xf32>
    %68 = arith.subf %67, %66 : vector<1x320xf32>
    %69 = vector.shape_cast %68 : vector<1x320xf32> to vector<1x1x320xf32>
    %cst_26 = arith.constant dense<0.000000e+00> : vector<1xf32>
    %70 = vector.multi_reduction <add>, %69, %cst_26 [1, 2] : vector<1x1x320xf32> to vector<1xf32>
    %71 = vector.shape_cast %70 : vector<1xf32> to vector<1x1x1xf32>
    %72 = vector.extract %71[0, 0, 0] : f32 from vector<1x1x1xf32>
    %c52 = arith.constant 52 : index
    %c0_27 = arith.constant 0 : index
    %c0_28 = arith.constant 0 : index
    %73 = vector.load %arg1[%c52, %c0_27, %c0_28] : memref<77x8x8xf32, #tpu.memory_space<vmem>>, vector<1x8x8xf32>
    %74 = vector.shape_cast %73 : vector<1x8x8xf32> to vector<8x8xf32>
    %c107 = arith.constant 107 : index
    %75 = memref.load %arg2[%c107] : memref<171xf32, #tpu.memory_space<smem>>
    %76 = vector.broadcast %75 : f32 to vector<8x8xf32>
    %77 = arith.mulf %74, %76 : vector<8x8xf32>
    %c53 = arith.constant 53 : index
    %c0_29 = arith.constant 0 : index
    %c0_30 = arith.constant 0 : index
    %78 = vector.load %arg1[%c53, %c0_29, %c0_30] : memref<77x8x8xf32, #tpu.memory_space<vmem>>, vector<1x8x8xf32>
    %79 = vector.shape_cast %78 : vector<1x8x8xf32> to vector<8x8xf32>
    %c108 = arith.constant 108 : index
    %80 = memref.load %arg2[%c108] : memref<171xf32, #tpu.memory_space<smem>>
    %81 = vector.broadcast %80 : f32 to vector<8x8xf32>
    %82 = arith.mulf %79, %81 : vector<8x8xf32>
    %83 = arith.addf %77, %82 : vector<8x8xf32>
    %c54 = arith.constant 54 : index
    %c0_31 = arith.constant 0 : index
    %c0_32 = arith.constant 0 : index
    %84 = vector.load %arg1[%c54, %c0_31, %c0_32] : memref<77x8x8xf32, #tpu.memory_space<vmem>>, vector<1x8x8xf32>
    %85 = vector.shape_cast %84 : vector<1x8x8xf32> to vector<8x8xf32>
    %c109 = arith.constant 109 : index
    %86 = memref.load %arg2[%c109] : memref<171xf32, #tpu.memory_space<smem>>
    %87 = vector.broadcast %86 : f32 to vector<8x8xf32>
    %88 = arith.mulf %85, %87 : vector<8x8xf32>
    %89 = arith.addf %83, %88 : vector<8x8xf32>
    %c55 = arith.constant 55 : index
    %c0_33 = arith.constant 0 : index
    %c0_34 = arith.constant 0 : index
    %90 = vector.load %arg1[%c55, %c0_33, %c0_34] : memref<77x8x8xf32, #tpu.memory_space<vmem>>, vector<1x8x8xf32>
    %91 = vector.shape_cast %90 : vector<1x8x8xf32> to vector<8x8xf32>
    %c110 = arith.constant 110 : index
    %92 = memref.load %arg2[%c110] : memref<171xf32, #tpu.memory_space<smem>>
    %93 = vector.broadcast %92 : f32 to vector<8x8xf32>
    %94 = arith.mulf %91, %93 : vector<8x8xf32>
    %95 = arith.addf %89, %94 : vector<8x8xf32>
    %c57 = arith.constant 57 : index
    %c0_35 = arith.constant 0 : index
    %c0_36 = arith.constant 0 : index
    %96 = vector.load %arg1[%c57, %c0_35, %c0_36] : memref<77x8x8xf32, #tpu.memory_space<vmem>>, vector<1x8x8xf32>
    %97 = vector.shape_cast %96 : vector<1x8x8xf32> to vector<8x8xf32>
    %c111 = arith.constant 111 : index
    %98 = memref.load %arg2[%c111] : memref<171xf32, #tpu.memory_space<smem>>
    %99 = vector.broadcast %98 : f32 to vector<8x8xf32>
    %100 = arith.mulf %97, %99 : vector<8x8xf32>
    %101 = arith.addf %95, %100 : vector<8x8xf32>
    %c58 = arith.constant 58 : index
    %c0_37 = arith.constant 0 : index
    %c0_38 = arith.constant 0 : index
    %102 = vector.load %arg1[%c58, %c0_37, %c0_38] : memref<77x8x8xf32, #tpu.memory_space<vmem>>, vector<1x8x8xf32>
    %103 = vector.shape_cast %102 : vector<1x8x8xf32> to vector<8x8xf32>
    %c112 = arith.constant 112 : index
    %104 = memref.load %arg2[%c112] : memref<171xf32, #tpu.memory_space<smem>>
    %105 = vector.broadcast %104 : f32 to vector<8x8xf32>
    %106 = arith.mulf %103, %105 : vector<8x8xf32>
    %107 = arith.addf %101, %106 : vector<8x8xf32>
    %c59 = arith.constant 59 : index
    %c0_39 = arith.constant 0 : index
    %c0_40 = arith.constant 0 : index
    %108 = vector.load %arg1[%c59, %c0_39, %c0_40] : memref<77x8x8xf32, #tpu.memory_space<vmem>>, vector<1x8x8xf32>
    %109 = vector.shape_cast %108 : vector<1x8x8xf32> to vector<8x8xf32>
    %c113 = arith.constant 113 : index
    %110 = memref.load %arg2[%c113] : memref<171xf32, #tpu.memory_space<smem>>
    %111 = vector.broadcast %110 : f32 to vector<8x8xf32>
    %112 = arith.mulf %109, %111 : vector<8x8xf32>
    %113 = arith.addf %107, %112 : vector<8x8xf32>
    %c60 = arith.constant 60 : index
    %c0_41 = arith.constant 0 : index
    %c0_42 = arith.constant 0 : index
    %114 = vector.load %arg1[%c60, %c0_41, %c0_42] : memref<77x8x8xf32, #tpu.memory_space<vmem>>, vector<1x8x8xf32>
    %115 = vector.shape_cast %114 : vector<1x8x8xf32> to vector<8x8xf32>
    %c114 = arith.constant 114 : index
    %116 = memref.load %arg2[%c114] : memref<171xf32, #tpu.memory_space<smem>>
    %117 = vector.broadcast %116 : f32 to vector<8x8xf32>
    %118 = arith.mulf %115, %117 : vector<8x8xf32>
    %119 = arith.addf %113, %118 : vector<8x8xf32>
    %c62 = arith.constant 62 : index
    %c0_43 = arith.constant 0 : index
    %c0_44 = arith.constant 0 : index
    %120 = vector.load %arg1[%c62, %c0_43, %c0_44] : memref<77x8x8xf32, #tpu.memory_space<vmem>>, vector<1x8x8xf32>
    %121 = vector.shape_cast %120 : vector<1x8x8xf32> to vector<8x8xf32>
    %c115 = arith.constant 115 : index
    %122 = memref.load %arg2[%c115] : memref<171xf32, #tpu.memory_space<smem>>
    %123 = vector.broadcast %122 : f32 to vector<8x8xf32>
    %124 = arith.mulf %121, %123 : vector<8x8xf32>
    %125 = arith.addf %119, %124 : vector<8x8xf32>
    %c63 = arith.constant 63 : index
    %c0_45 = arith.constant 0 : index
    %c0_46 = arith.constant 0 : index
    %126 = vector.load %arg1[%c63, %c0_45, %c0_46] : memref<77x8x8xf32, #tpu.memory_space<vmem>>, vector<1x8x8xf32>
    %127 = vector.shape_cast %126 : vector<1x8x8xf32> to vector<8x8xf32>
    %c116 = arith.constant 116 : index
    %128 = memref.load %arg2[%c116] : memref<171xf32, #tpu.memory_space<smem>>
    %129 = vector.broadcast %128 : f32 to vector<8x8xf32>
    %130 = arith.mulf %127, %129 : vector<8x8xf32>
    %131 = arith.addf %125, %130 : vector<8x8xf32>
    %c64 = arith.constant 64 : index
    %c0_47 = arith.constant 0 : index
    %c0_48 = arith.constant 0 : index
    %132 = vector.load %arg1[%c64, %c0_47, %c0_48] : memref<77x8x8xf32, #tpu.memory_space<vmem>>, vector<1x8x8xf32>
    %133 = vector.shape_cast %132 : vector<1x8x8xf32> to vector<8x8xf32>
    %c117 = arith.constant 117 : index
    %134 = memref.load %arg2[%c117] : memref<171xf32, #tpu.memory_space<smem>>
    %135 = vector.broadcast %134 : f32 to vector<8x8xf32>
    %136 = arith.mulf %133, %135 : vector<8x8xf32>
    %137 = arith.addf %131, %136 : vector<8x8xf32>
    %c65 = arith.constant 65 : index
    %c0_49 = arith.constant 0 : index
    %c0_50 = arith.constant 0 : index
    %138 = vector.load %arg1[%c65, %c0_49, %c0_50] : memref<77x8x8xf32, #tpu.memory_space<vmem>>, vector<1x8x8xf32>
    %139 = vector.shape_cast %138 : vector<1x8x8xf32> to vector<8x8xf32>
    %c118 = arith.constant 118 : index
    %140 = memref.load %arg2[%c118] : memref<171xf32, #tpu.memory_space<smem>>
    %141 = vector.broadcast %140 : f32 to vector<8x8xf32>
    %142 = arith.mulf %139, %141 : vector<8x8xf32>
    %143 = arith.addf %137, %142 : vector<8x8xf32>
    %c67 = arith.constant 67 : index
    %c0_51 = arith.constant 0 : index
    %c0_52 = arith.constant 0 : index
    %144 = vector.load %arg1[%c67, %c0_51, %c0_52] : memref<77x8x8xf32, #tpu.memory_space<vmem>>, vector<1x8x8xf32>
    %145 = vector.shape_cast %144 : vector<1x8x8xf32> to vector<8x8xf32>
    %c119 = arith.constant 119 : index
    %146 = memref.load %arg2[%c119] : memref<171xf32, #tpu.memory_space<smem>>
    %147 = vector.broadcast %146 : f32 to vector<8x8xf32>
    %148 = arith.mulf %145, %147 : vector<8x8xf32>
    %149 = arith.addf %143, %148 : vector<8x8xf32>
    %c68 = arith.constant 68 : index
    %c0_53 = arith.constant 0 : index
    %c0_54 = arith.constant 0 : index
    %150 = vector.load %arg1[%c68, %c0_53, %c0_54] : memref<77x8x8xf32, #tpu.memory_space<vmem>>, vector<1x8x8xf32>
    %151 = vector.shape_cast %150 : vector<1x8x8xf32> to vector<8x8xf32>
    %c120 = arith.constant 120 : index
    %152 = memref.load %arg2[%c120] : memref<171xf32, #tpu.memory_space<smem>>
    %153 = vector.broadcast %152 : f32 to vector<8x8xf32>
    %154 = arith.mulf %151, %153 : vector<8x8xf32>
    %155 = arith.addf %149, %154 : vector<8x8xf32>
    %c69 = arith.constant 69 : index
    %c0_55 = arith.constant 0 : index
    %c0_56 = arith.constant 0 : index
    %156 = vector.load %arg1[%c69, %c0_55, %c0_56] : memref<77x8x8xf32, #tpu.memory_space<vmem>>, vector<1x8x8xf32>
    %157 = vector.shape_cast %156 : vector<1x8x8xf32> to vector<8x8xf32>
    %c121 = arith.constant 121 : index
    %158 = memref.load %arg2[%c121] : memref<171xf32, #tpu.memory_space<smem>>
    %159 = vector.broadcast %158 : f32 to vector<8x8xf32>
    %160 = arith.mulf %157, %159 : vector<8x8xf32>
    %161 = arith.addf %155, %160 : vector<8x8xf32>
    %c70 = arith.constant 70 : index
    %c0_57 = arith.constant 0 : index
    %c0_58 = arith.constant 0 : index
    %162 = vector.load %arg1[%c70, %c0_57, %c0_58] : memref<77x8x8xf32, #tpu.memory_space<vmem>>, vector<1x8x8xf32>
    %163 = vector.shape_cast %162 : vector<1x8x8xf32> to vector<8x8xf32>
    %c122 = arith.constant 122 : index
    %164 = memref.load %arg2[%c122] : memref<171xf32, #tpu.memory_space<smem>>
    %165 = vector.broadcast %164 : f32 to vector<8x8xf32>
    %166 = arith.mulf %163, %165 : vector<8x8xf32>
    %167 = arith.addf %161, %166 : vector<8x8xf32>
    %c0_59 = arith.constant 0 : index
    %c0_60 = arith.constant 0 : index
    %c0_61 = arith.constant 0 : index
    %168 = vector.load %arg1[%c0_59, %c0_60, %c0_61] : memref<77x8x8xf32, #tpu.memory_space<vmem>>, vector<1x8x8xf32>
    %169 = vector.shape_cast %168 : vector<1x8x8xf32> to vector<8x8xf32>
    %c0_62 = arith.constant 0 : index
    %170 = memref.load %arg2[%c0_62] : memref<171xf32, #tpu.memory_space<smem>>
    %171 = vector.broadcast %170 : f32 to vector<8x8xf32>
    %172 = arith.mulf %171, %169 : vector<8x8xf32>
    %c1 = arith.constant 1 : index
    %173 = memref.load %arg2[%c1] : memref<171xf32, #tpu.memory_space<smem>>
    %174 = vector.broadcast %173 : f32 to vector<8x8xf32>
    %175 = arith.mulf %174, %167 : vector<8x8xf32>
    %176 = arith.addf %172, %175 : vector<8x8xf32>
    %c16 = arith.constant 16 : index
    %177 = memref.load %arg2[%c16] : memref<171xf32, #tpu.memory_space<smem>>
    %178 = vector.broadcast %177 : f32 to vector<8x8xf32>
    %179 = arith.addf %176, %178 : vector<8x8xf32>
    %cst_63 = arith.constant 0.000000e+00 : f32
    %180 = vector.broadcast %cst_63 : f32 to vector<8x8xf32>
    %181 = arith.maximumf %179, %180 : vector<8x8xf32>
    %c2 = arith.constant 2 : index
    %182 = memref.load %arg2[%c2] : memref<171xf32, #tpu.memory_space<smem>>
    %183 = vector.broadcast %182 : f32 to vector<8x8xf32>
    %184 = arith.mulf %183, %169 : vector<8x8xf32>
    %c3 = arith.constant 3 : index
    %185 = memref.load %arg2[%c3] : memref<171xf32, #tpu.memory_space<smem>>
    %186 = vector.broadcast %185 : f32 to vector<8x8xf32>
    %187 = arith.mulf %186, %167 : vector<8x8xf32>
    %188 = arith.addf %184, %187 : vector<8x8xf32>
    %c17 = arith.constant 17 : index
    %189 = memref.load %arg2[%c17] : memref<171xf32, #tpu.memory_space<smem>>
    %190 = vector.broadcast %189 : f32 to vector<8x8xf32>
    %191 = arith.addf %188, %190 : vector<8x8xf32>
    %cst_64 = arith.constant 0.000000e+00 : f32
    %192 = vector.broadcast %cst_64 : f32 to vector<8x8xf32>
    %193 = arith.maximumf %191, %192 : vector<8x8xf32>
    %c4_65 = arith.constant 4 : index
    %194 = memref.load %arg2[%c4_65] : memref<171xf32, #tpu.memory_space<smem>>
    %195 = vector.broadcast %194 : f32 to vector<8x8xf32>
    %196 = arith.mulf %195, %169 : vector<8x8xf32>
    %c5 = arith.constant 5 : index
    %197 = memref.load %arg2[%c5] : memref<171xf32, #tpu.memory_space<smem>>
    %198 = vector.broadcast %197 : f32 to vector<8x8xf32>
    %199 = arith.mulf %198, %167 : vector<8x8xf32>
    %200 = arith.addf %196, %199 : vector<8x8xf32>
    %c18 = arith.constant 18 : index
    %201 = memref.load %arg2[%c18] : memref<171xf32, #tpu.memory_space<smem>>
    %202 = vector.broadcast %201 : f32 to vector<8x8xf32>
    %203 = arith.addf %200, %202 : vector<8x8xf32>
    %cst_66 = arith.constant 0.000000e+00 : f32
    %204 = vector.broadcast %cst_66 : f32 to vector<8x8xf32>
    %205 = arith.maximumf %203, %204 : vector<8x8xf32>
    %c6 = arith.constant 6 : index
    %206 = memref.load %arg2[%c6] : memref<171xf32, #tpu.memory_space<smem>>
    %207 = vector.broadcast %206 : f32 to vector<8x8xf32>
    %208 = arith.mulf %207, %169 : vector<8x8xf32>
    %c7 = arith.constant 7 : index
    %209 = memref.load %arg2[%c7] : memref<171xf32, #tpu.memory_space<smem>>
    %210 = vector.broadcast %209 : f32 to vector<8x8xf32>
    %211 = arith.mulf %210, %167 : vector<8x8xf32>
    %212 = arith.addf %208, %211 : vector<8x8xf32>
    %c19 = arith.constant 19 : index
    %213 = memref.load %arg2[%c19] : memref<171xf32, #tpu.memory_space<smem>>
    %214 = vector.broadcast %213 : f32 to vector<8x8xf32>
    %215 = arith.addf %212, %214 : vector<8x8xf32>
    %cst_67 = arith.constant 0.000000e+00 : f32
    %216 = vector.broadcast %cst_67 : f32 to vector<8x8xf32>
    %217 = arith.maximumf %215, %216 : vector<8x8xf32>
    %c8 = arith.constant 8 : index
    %218 = memref.load %arg2[%c8] : memref<171xf32, #tpu.memory_space<smem>>
    %219 = vector.broadcast %218 : f32 to vector<8x8xf32>
    %220 = arith.mulf %219, %169 : vector<8x8xf32>
    %c9 = arith.constant 9 : index
    %221 = memref.load %arg2[%c9] : memref<171xf32, #tpu.memory_space<smem>>
    %222 = vector.broadcast %221 : f32 to vector<8x8xf32>
    %223 = arith.mulf %222, %167 : vector<8x8xf32>
    %224 = arith.addf %220, %223 : vector<8x8xf32>
    %c20_68 = arith.constant 20 : index
    %225 = memref.load %arg2[%c20_68] : memref<171xf32, #tpu.memory_space<smem>>
    %226 = vector.broadcast %225 : f32 to vector<8x8xf32>
    %227 = arith.addf %224, %226 : vector<8x8xf32>
    %cst_69 = arith.constant 0.000000e+00 : f32
    %228 = vector.broadcast %cst_69 : f32 to vector<8x8xf32>
    %229 = arith.maximumf %227, %228 : vector<8x8xf32>
    %c10 = arith.constant 10 : index
    %230 = memref.load %arg2[%c10] : memref<171xf32, #tpu.memory_space<smem>>
    %231 = vector.broadcast %230 : f32 to vector<8x8xf32>
    %232 = arith.mulf %231, %169 : vector<8x8xf32>
    %c11 = arith.constant 11 : index
    %233 = memref.load %arg2[%c11] : memref<171xf32, #tpu.memory_space<smem>>
    %234 = vector.broadcast %233 : f32 to vector<8x8xf32>
    %235 = arith.mulf %234, %167 : vector<8x8xf32>
    %236 = arith.addf %232, %235 : vector<8x8xf32>
    %c21_70 = arith.constant 21 : index
    %237 = memref.load %arg2[%c21_70] : memref<171xf32, #tpu.memory_space<smem>>
    %238 = vector.broadcast %237 : f32 to vector<8x8xf32>
    %239 = arith.addf %236, %238 : vector<8x8xf32>
    %cst_71 = arith.constant 0.000000e+00 : f32
    %240 = vector.broadcast %cst_71 : f32 to vector<8x8xf32>
    %241 = arith.maximumf %239, %240 : vector<8x8xf32>
    %c12 = arith.constant 12 : index
    %242 = memref.load %arg2[%c12] : memref<171xf32, #tpu.memory_space<smem>>
    %243 = vector.broadcast %242 : f32 to vector<8x8xf32>
    %244 = arith.mulf %243, %169 : vector<8x8xf32>
    %c13 = arith.constant 13 : index
    %245 = memref.load %arg2[%c13] : memref<171xf32, #tpu.memory_space<smem>>
    %246 = vector.broadcast %245 : f32 to vector<8x8xf32>
    %247 = arith.mulf %246, %167 : vector<8x8xf32>
    %248 = arith.addf %244, %247 : vector<8x8xf32>
    %c22 = arith.constant 22 : index
    %249 = memref.load %arg2[%c22] : memref<171xf32, #tpu.memory_space<smem>>
    %250 = vector.broadcast %249 : f32 to vector<8x8xf32>
    %251 = arith.addf %248, %250 : vector<8x8xf32>
    %cst_72 = arith.constant 0.000000e+00 : f32
    %252 = vector.broadcast %cst_72 : f32 to vector<8x8xf32>
    %253 = arith.maximumf %251, %252 : vector<8x8xf32>
    %c14 = arith.constant 14 : index
    %254 = memref.load %arg2[%c14] : memref<171xf32, #tpu.memory_space<smem>>
    %255 = vector.broadcast %254 : f32 to vector<8x8xf32>
    %256 = arith.mulf %255, %169 : vector<8x8xf32>
    %c15 = arith.constant 15 : index
    %257 = memref.load %arg2[%c15] : memref<171xf32, #tpu.memory_space<smem>>
    %258 = vector.broadcast %257 : f32 to vector<8x8xf32>
    %259 = arith.mulf %258, %167 : vector<8x8xf32>
    %260 = arith.addf %256, %259 : vector<8x8xf32>
    %c23 = arith.constant 23 : index
    %261 = memref.load %arg2[%c23] : memref<171xf32, #tpu.memory_space<smem>>
    %262 = vector.broadcast %261 : f32 to vector<8x8xf32>
    %263 = arith.addf %260, %262 : vector<8x8xf32>
    %cst_73 = arith.constant 0.000000e+00 : f32
    %264 = vector.broadcast %cst_73 : f32 to vector<8x8xf32>
    %265 = arith.maximumf %263, %264 : vector<8x8xf32>
    %c40 = arith.constant 40 : index
    %c0_74 = arith.constant 0 : index
    %c0_75 = arith.constant 0 : index
    %266 = vector.load %arg1[%c40, %c0_74, %c0_75] : memref<77x8x8xf32, #tpu.memory_space<vmem>>, vector<1x8x8xf32>
    %267 = vector.shape_cast %266 : vector<1x8x8xf32> to vector<8x8xf32>
    %c44 = arith.constant 44 : index
    %c0_76 = arith.constant 0 : index
    %c0_77 = arith.constant 0 : index
    %268 = vector.load %arg1[%c44, %c0_76, %c0_77] : memref<77x8x8xf32, #tpu.memory_space<vmem>>, vector<1x8x8xf32>
    %269 = vector.shape_cast %268 : vector<1x8x8xf32> to vector<8x8xf32>
    %c48 = arith.constant 48 : index
    %c0_78 = arith.constant 0 : index
    %c0_79 = arith.constant 0 : index
    %270 = vector.load %arg1[%c48, %c0_78, %c0_79] : memref<77x8x8xf32, #tpu.memory_space<vmem>>, vector<1x8x8xf32>
    %271 = vector.shape_cast %270 : vector<1x8x8xf32> to vector<8x8xf32>
    %c96 = arith.constant 96 : index
    %272 = memref.load %arg2[%c96] : memref<171xf32, #tpu.memory_space<smem>>
    %c4_80 = arith.constant 4 : index
    %c0_81 = arith.constant 0 : index
    %c0_82 = arith.constant 0 : index
    %273 = vector.load %arg1[%c4_80, %c0_81, %c0_82] : memref<77x8x8xf32, #tpu.memory_space<vmem>>, vector<1x8x8xf32>
    %274 = vector.shape_cast %273 : vector<1x8x8xf32> to vector<8x8xf32>
    %275 = vector.broadcast %272 : f32 to vector<8x8xf32>
    %276 = arith.addf %275, %274 : vector<8x8xf32>
    %c24 = arith.constant 24 : index
    %277 = memref.load %arg2[%c24] : memref<171xf32, #tpu.memory_space<smem>>
    %278 = vector.broadcast %277 : f32 to vector<8x8xf32>
    %279 = arith.mulf %278, %181 : vector<8x8xf32>
    %280 = arith.addf %276, %279 : vector<8x8xf32>
    %c25 = arith.constant 25 : index
    %281 = memref.load %arg2[%c25] : memref<171xf32, #tpu.memory_space<smem>>
    %282 = vector.broadcast %281 : f32 to vector<8x8xf32>
    %283 = arith.mulf %282, %193 : vector<8x8xf32>
    %284 = arith.addf %280, %283 : vector<8x8xf32>
    %c26 = arith.constant 26 : index
    %285 = memref.load %arg2[%c26] : memref<171xf32, #tpu.memory_space<smem>>
    %286 = vector.broadcast %285 : f32 to vector<8x8xf32>
    %287 = arith.mulf %286, %205 : vector<8x8xf32>
    %288 = arith.addf %284, %287 : vector<8x8xf32>
    %c27 = arith.constant 27 : index
    %289 = memref.load %arg2[%c27] : memref<171xf32, #tpu.memory_space<smem>>
    %290 = vector.broadcast %289 : f32 to vector<8x8xf32>
    %291 = arith.mulf %290, %217 : vector<8x8xf32>
    %292 = arith.addf %288, %291 : vector<8x8xf32>
    %c28 = arith.constant 28 : index
    %293 = memref.load %arg2[%c28] : memref<171xf32, #tpu.memory_space<smem>>
    %294 = vector.broadcast %293 : f32 to vector<8x8xf32>
    %295 = arith.mulf %294, %229 : vector<8x8xf32>
    %296 = arith.addf %292, %295 : vector<8x8xf32>
    %c29 = arith.constant 29 : index
    %297 = memref.load %arg2[%c29] : memref<171xf32, #tpu.memory_space<smem>>
    %298 = vector.broadcast %297 : f32 to vector<8x8xf32>
    %299 = arith.mulf %298, %241 : vector<8x8xf32>
    %300 = arith.addf %296, %299 : vector<8x8xf32>
    %c30 = arith.constant 30 : index
    %301 = memref.load %arg2[%c30] : memref<171xf32, #tpu.memory_space<smem>>
    %302 = vector.broadcast %301 : f32 to vector<8x8xf32>
    %303 = arith.mulf %302, %253 : vector<8x8xf32>
    %304 = arith.addf %300, %303 : vector<8x8xf32>
    %c31 = arith.constant 31 : index
    %305 = memref.load %arg2[%c31] : memref<171xf32, #tpu.memory_space<smem>>
    %306 = vector.broadcast %305 : f32 to vector<8x8xf32>
    %307 = arith.mulf %306, %265 : vector<8x8xf32>
    %308 = arith.addf %304, %307 : vector<8x8xf32>
    %c99 = arith.constant 99 : index
    %309 = memref.load %arg2[%c99] : memref<171xf32, #tpu.memory_space<smem>>
    %c16_83 = arith.constant 16 : index
    %c0_84 = arith.constant 0 : index
    %c0_85 = arith.constant 0 : index
    %310 = vector.load %arg1[%c16_83, %c0_84, %c0_85] : memref<77x8x8xf32, #tpu.memory_space<vmem>>, vector<1x8x8xf32>
    %311 = vector.shape_cast %310 : vector<1x8x8xf32> to vector<8x8xf32>
    %312 = vector.broadcast %309 : f32 to vector<8x8xf32>
    %313 = arith.addf %312, %311 : vector<8x8xf32>
    %c48_86 = arith.constant 48 : index
    %314 = memref.load %arg2[%c48_86] : memref<171xf32, #tpu.memory_space<smem>>
    %315 = vector.broadcast %314 : f32 to vector<8x8xf32>
    %316 = arith.mulf %315, %181 : vector<8x8xf32>
    %317 = arith.addf %313, %316 : vector<8x8xf32>
    %c49 = arith.constant 49 : index
    %318 = memref.load %arg2[%c49] : memref<171xf32, #tpu.memory_space<smem>>
    %319 = vector.broadcast %318 : f32 to vector<8x8xf32>
    %320 = arith.mulf %319, %193 : vector<8x8xf32>
    %321 = arith.addf %317, %320 : vector<8x8xf32>
    %c50 = arith.constant 50 : index
    %322 = memref.load %arg2[%c50] : memref<171xf32, #tpu.memory_space<smem>>
    %323 = vector.broadcast %322 : f32 to vector<8x8xf32>
    %324 = arith.mulf %323, %205 : vector<8x8xf32>
    %325 = arith.addf %321, %324 : vector<8x8xf32>
    %c51 = arith.constant 51 : index
    %326 = memref.load %arg2[%c51] : memref<171xf32, #tpu.memory_space<smem>>
    %327 = vector.broadcast %326 : f32 to vector<8x8xf32>
    %328 = arith.mulf %327, %217 : vector<8x8xf32>
    %329 = arith.addf %325, %328 : vector<8x8xf32>
    %c52_87 = arith.constant 52 : index
    %330 = memref.load %arg2[%c52_87] : memref<171xf32, #tpu.memory_space<smem>>
    %331 = vector.broadcast %330 : f32 to vector<8x8xf32>
    %332 = arith.mulf %331, %229 : vector<8x8xf32>
    %333 = arith.addf %329, %332 : vector<8x8xf32>
    %c53_88 = arith.constant 53 : index
    %334 = memref.load %arg2[%c53_88] : memref<171xf32, #tpu.memory_space<smem>>
    %335 = vector.broadcast %334 : f32 to vector<8x8xf32>
    %336 = arith.mulf %335, %241 : vector<8x8xf32>
    %337 = arith.addf %333, %336 : vector<8x8xf32>
    %c54_89 = arith.constant 54 : index
    %338 = memref.load %arg2[%c54_89] : memref<171xf32, #tpu.memory_space<smem>>
    %339 = vector.broadcast %338 : f32 to vector<8x8xf32>
    %340 = arith.mulf %339, %253 : vector<8x8xf32>
    %341 = arith.addf %337, %340 : vector<8x8xf32>
    %c55_90 = arith.constant 55 : index
    %342 = memref.load %arg2[%c55_90] : memref<171xf32, #tpu.memory_space<smem>>
    %343 = vector.broadcast %342 : f32 to vector<8x8xf32>
    %344 = arith.mulf %343, %265 : vector<8x8xf32>
    %345 = arith.addf %341, %344 : vector<8x8xf32>
    %cst_91 = arith.constant -1.000000e+01 : f32
    %cst_92 = arith.constant 1.000000e+01 : f32
    %346 = vector.broadcast %cst_91 : f32 to vector<8x8xf32>
    %347 = arith.maximumf %346, %345 : vector<8x8xf32>
    %348 = vector.broadcast %cst_92 : f32 to vector<8x8xf32>
    %349 = arith.minimumf %348, %347 : vector<8x8xf32>
    %cst_93 = arith.constant 0.000000e+00 : f32
    %350 = vector.broadcast %cst_93 : f32 to vector<8x8xf32>
    %351 = arith.subf %350, %349 : vector<8x8xf32>
    %352 = math.exp %351 : vector<8x8xf32>
    %cst_94 = arith.constant 5.000000e-01 : f32
    %353 = vector.broadcast %cst_94 : f32 to vector<8x8xf32>
    %354 = arith.addf %267, %353 : vector<8x8xf32>
    %355 = arith.subf %354, %308 : vector<8x8xf32>
    %cst_95 = arith.constant 5.000000e-01 : f32
    %356 = vector.broadcast %cst_95 : f32 to vector<8x8xf32>
    %357 = arith.subf %267, %356 : vector<8x8xf32>
    %358 = arith.subf %357, %308 : vector<8x8xf32>
    %359 = math.absf %355 : vector<8x8xf32>
    %cst_96 = arith.constant 0.000000e+00 : f32
    %360 = vector.broadcast %cst_96 : f32 to vector<8x8xf32>
    %361 = arith.subf %360, %359 : vector<8x8xf32>
    %362 = arith.mulf %361, %352 : vector<8x8xf32>
    %363 = math.exp %362 : vector<8x8xf32>
    %cst_97 = arith.constant 5.000000e-01 : f32
    %364 = vector.broadcast %cst_97 : f32 to vector<8x8xf32>
    %365 = arith.mulf %364, %363 : vector<8x8xf32>
    %366 = math.absf %358 : vector<8x8xf32>
    %cst_98 = arith.constant 0.000000e+00 : f32
    %367 = vector.broadcast %cst_98 : f32 to vector<8x8xf32>
    %368 = arith.subf %367, %366 : vector<8x8xf32>
    %369 = arith.mulf %368, %352 : vector<8x8xf32>
    %370 = math.exp %369 : vector<8x8xf32>
    %cst_99 = arith.constant 5.000000e-01 : f32
    %371 = vector.broadcast %cst_99 : f32 to vector<8x8xf32>
    %372 = arith.mulf %371, %370 : vector<8x8xf32>
    %cst_100 = arith.constant 0.000000e+00 : f32
    %373 = vector.broadcast %cst_100 : f32 to vector<8x8xf32>
    %374 = arith.cmpf ole, %355, %373 : vector<8x8xf32>
    %cst_101 = arith.constant 1.000000e+00 : f32
    %375 = vector.broadcast %cst_101 : f32 to vector<8x8xf32>
    %376 = arith.subf %375, %365 : vector<8x8xf32>
    %377 = arith.select %374, %365, %376 : vector<8x8xi1>, vector<8x8xf32>
    %cst_102 = arith.constant 0.000000e+00 : f32
    %378 = vector.broadcast %cst_102 : f32 to vector<8x8xf32>
    %379 = arith.cmpf ole, %358, %378 : vector<8x8xf32>
    %cst_103 = arith.constant 1.000000e+00 : f32
    %380 = vector.broadcast %cst_103 : f32 to vector<8x8xf32>
    %381 = arith.subf %380, %372 : vector<8x8xf32>
    %382 = arith.select %379, %372, %381 : vector<8x8xi1>, vector<8x8xf32>
    %383 = arith.subf %377, %382 : vector<8x8xf32>
    %cst_104 = arith.constant 3.05175781E-5 : f32
    %384 = vector.broadcast %cst_104 : f32 to vector<8x8xf32>
    %385 = arith.maximumf %383, %384 : vector<8x8xf32>
    %386 = math.log %385 : vector<8x8xf32>
    %cst_105 = arith.constant 2.000000e+00 : f32
    %387 = math.log %cst_105 : f32
    %388 = vector.broadcast %387 : f32 to vector<8x8xf32>
    %389 = arith.divf %386, %388 : vector<8x8xf32>
    %cst_106 = arith.constant 0.000000e+00 : f32
    %390 = vector.broadcast %cst_106 : f32 to vector<8x8xf32>
    %391 = arith.subf %390, %389 : vector<8x8xf32>
    %c97 = arith.constant 97 : index
    %392 = memref.load %arg2[%c97] : memref<171xf32, #tpu.memory_space<smem>>
    %c8_107 = arith.constant 8 : index
    %c0_108 = arith.constant 0 : index
    %c0_109 = arith.constant 0 : index
    %393 = vector.load %arg1[%c8_107, %c0_108, %c0_109] : memref<77x8x8xf32, #tpu.memory_space<vmem>>, vector<1x8x8xf32>
    %394 = vector.shape_cast %393 : vector<1x8x8xf32> to vector<8x8xf32>
    %395 = vector.broadcast %392 : f32 to vector<8x8xf32>
    %396 = arith.addf %395, %394 : vector<8x8xf32>
    %c32 = arith.constant 32 : index
    %397 = memref.load %arg2[%c32] : memref<171xf32, #tpu.memory_space<smem>>
    %398 = vector.broadcast %397 : f32 to vector<8x8xf32>
    %399 = arith.mulf %398, %181 : vector<8x8xf32>
    %400 = arith.addf %396, %399 : vector<8x8xf32>
    %c33 = arith.constant 33 : index
    %401 = memref.load %arg2[%c33] : memref<171xf32, #tpu.memory_space<smem>>
    %402 = vector.broadcast %401 : f32 to vector<8x8xf32>
    %403 = arith.mulf %402, %193 : vector<8x8xf32>
    %404 = arith.addf %400, %403 : vector<8x8xf32>
    %c34 = arith.constant 34 : index
    %405 = memref.load %arg2[%c34] : memref<171xf32, #tpu.memory_space<smem>>
    %406 = vector.broadcast %405 : f32 to vector<8x8xf32>
    %407 = arith.mulf %406, %205 : vector<8x8xf32>
    %408 = arith.addf %404, %407 : vector<8x8xf32>
    %c35 = arith.constant 35 : index
    %409 = memref.load %arg2[%c35] : memref<171xf32, #tpu.memory_space<smem>>
    %410 = vector.broadcast %409 : f32 to vector<8x8xf32>
    %411 = arith.mulf %410, %217 : vector<8x8xf32>
    %412 = arith.addf %408, %411 : vector<8x8xf32>
    %c36 = arith.constant 36 : index
    %413 = memref.load %arg2[%c36] : memref<171xf32, #tpu.memory_space<smem>>
    %414 = vector.broadcast %413 : f32 to vector<8x8xf32>
    %415 = arith.mulf %414, %229 : vector<8x8xf32>
    %416 = arith.addf %412, %415 : vector<8x8xf32>
    %c37 = arith.constant 37 : index
    %417 = memref.load %arg2[%c37] : memref<171xf32, #tpu.memory_space<smem>>
    %418 = vector.broadcast %417 : f32 to vector<8x8xf32>
    %419 = arith.mulf %418, %241 : vector<8x8xf32>
    %420 = arith.addf %416, %419 : vector<8x8xf32>
    %c38 = arith.constant 38 : index
    %421 = memref.load %arg2[%c38] : memref<171xf32, #tpu.memory_space<smem>>
    %422 = vector.broadcast %421 : f32 to vector<8x8xf32>
    %423 = arith.mulf %422, %253 : vector<8x8xf32>
    %424 = arith.addf %420, %423 : vector<8x8xf32>
    %c39 = arith.constant 39 : index
    %425 = memref.load %arg2[%c39] : memref<171xf32, #tpu.memory_space<smem>>
    %426 = vector.broadcast %425 : f32 to vector<8x8xf32>
    %427 = arith.mulf %426, %265 : vector<8x8xf32>
    %428 = arith.addf %424, %427 : vector<8x8xf32>
    %c103 = arith.constant 103 : index
    %429 = memref.load %arg2[%c103] : memref<171xf32, #tpu.memory_space<smem>>
    %c32_110 = arith.constant 32 : index
    %c0_111 = arith.constant 0 : index
    %c0_112 = arith.constant 0 : index
    %430 = vector.load %arg1[%c32_110, %c0_111, %c0_112] : memref<77x8x8xf32, #tpu.memory_space<vmem>>, vector<1x8x8xf32>
    %431 = vector.shape_cast %430 : vector<1x8x8xf32> to vector<8x8xf32>
    %432 = vector.broadcast %429 : f32 to vector<8x8xf32>
    %433 = arith.addf %432, %431 : vector<8x8xf32>
    %c80 = arith.constant 80 : index
    %434 = memref.load %arg2[%c80] : memref<171xf32, #tpu.memory_space<smem>>
    %435 = vector.broadcast %434 : f32 to vector<8x8xf32>
    %436 = arith.mulf %435, %181 : vector<8x8xf32>
    %437 = arith.addf %433, %436 : vector<8x8xf32>
    %c81 = arith.constant 81 : index
    %438 = memref.load %arg2[%c81] : memref<171xf32, #tpu.memory_space<smem>>
    %439 = vector.broadcast %438 : f32 to vector<8x8xf32>
    %440 = arith.mulf %439, %193 : vector<8x8xf32>
    %441 = arith.addf %437, %440 : vector<8x8xf32>
    %c82 = arith.constant 82 : index
    %442 = memref.load %arg2[%c82] : memref<171xf32, #tpu.memory_space<smem>>
    %443 = vector.broadcast %442 : f32 to vector<8x8xf32>
    %444 = arith.mulf %443, %205 : vector<8x8xf32>
    %445 = arith.addf %441, %444 : vector<8x8xf32>
    %c83 = arith.constant 83 : index
    %446 = memref.load %arg2[%c83] : memref<171xf32, #tpu.memory_space<smem>>
    %447 = vector.broadcast %446 : f32 to vector<8x8xf32>
    %448 = arith.mulf %447, %217 : vector<8x8xf32>
    %449 = arith.addf %445, %448 : vector<8x8xf32>
    %c84 = arith.constant 84 : index
    %450 = memref.load %arg2[%c84] : memref<171xf32, #tpu.memory_space<smem>>
    %451 = vector.broadcast %450 : f32 to vector<8x8xf32>
    %452 = arith.mulf %451, %229 : vector<8x8xf32>
    %453 = arith.addf %449, %452 : vector<8x8xf32>
    %c85 = arith.constant 85 : index
    %454 = memref.load %arg2[%c85] : memref<171xf32, #tpu.memory_space<smem>>
    %455 = vector.broadcast %454 : f32 to vector<8x8xf32>
    %456 = arith.mulf %455, %241 : vector<8x8xf32>
    %457 = arith.addf %453, %456 : vector<8x8xf32>
    %c86 = arith.constant 86 : index
    %458 = memref.load %arg2[%c86] : memref<171xf32, #tpu.memory_space<smem>>
    %459 = vector.broadcast %458 : f32 to vector<8x8xf32>
    %460 = arith.mulf %459, %253 : vector<8x8xf32>
    %461 = arith.addf %457, %460 : vector<8x8xf32>
    %c87 = arith.constant 87 : index
    %462 = memref.load %arg2[%c87] : memref<171xf32, #tpu.memory_space<smem>>
    %463 = vector.broadcast %462 : f32 to vector<8x8xf32>
    %464 = arith.mulf %463, %265 : vector<8x8xf32>
    %465 = arith.addf %461, %464 : vector<8x8xf32>
    %466 = arith.subf %267, %308 : vector<8x8xf32>
    %467 = arith.mulf %465, %466 : vector<8x8xf32>
    %468 = arith.addf %428, %467 : vector<8x8xf32>
    %c100 = arith.constant 100 : index
    %469 = memref.load %arg2[%c100] : memref<171xf32, #tpu.memory_space<smem>>
    %c20_113 = arith.constant 20 : index
    %c0_114 = arith.constant 0 : index
    %c0_115 = arith.constant 0 : index
    %470 = vector.load %arg1[%c20_113, %c0_114, %c0_115] : memref<77x8x8xf32, #tpu.memory_space<vmem>>, vector<1x8x8xf32>
    %471 = vector.shape_cast %470 : vector<1x8x8xf32> to vector<8x8xf32>
    %472 = vector.broadcast %469 : f32 to vector<8x8xf32>
    %473 = arith.addf %472, %471 : vector<8x8xf32>
    %c56 = arith.constant 56 : index
    %474 = memref.load %arg2[%c56] : memref<171xf32, #tpu.memory_space<smem>>
    %475 = vector.broadcast %474 : f32 to vector<8x8xf32>
    %476 = arith.mulf %475, %181 : vector<8x8xf32>
    %477 = arith.addf %473, %476 : vector<8x8xf32>
    %c57_116 = arith.constant 57 : index
    %478 = memref.load %arg2[%c57_116] : memref<171xf32, #tpu.memory_space<smem>>
    %479 = vector.broadcast %478 : f32 to vector<8x8xf32>
    %480 = arith.mulf %479, %193 : vector<8x8xf32>
    %481 = arith.addf %477, %480 : vector<8x8xf32>
    %c58_117 = arith.constant 58 : index
    %482 = memref.load %arg2[%c58_117] : memref<171xf32, #tpu.memory_space<smem>>
    %483 = vector.broadcast %482 : f32 to vector<8x8xf32>
    %484 = arith.mulf %483, %205 : vector<8x8xf32>
    %485 = arith.addf %481, %484 : vector<8x8xf32>
    %c59_118 = arith.constant 59 : index
    %486 = memref.load %arg2[%c59_118] : memref<171xf32, #tpu.memory_space<smem>>
    %487 = vector.broadcast %486 : f32 to vector<8x8xf32>
    %488 = arith.mulf %487, %217 : vector<8x8xf32>
    %489 = arith.addf %485, %488 : vector<8x8xf32>
    %c60_119 = arith.constant 60 : index
    %490 = memref.load %arg2[%c60_119] : memref<171xf32, #tpu.memory_space<smem>>
    %491 = vector.broadcast %490 : f32 to vector<8x8xf32>
    %492 = arith.mulf %491, %229 : vector<8x8xf32>
    %493 = arith.addf %489, %492 : vector<8x8xf32>
    %c61 = arith.constant 61 : index
    %494 = memref.load %arg2[%c61] : memref<171xf32, #tpu.memory_space<smem>>
    %495 = vector.broadcast %494 : f32 to vector<8x8xf32>
    %496 = arith.mulf %495, %241 : vector<8x8xf32>
    %497 = arith.addf %493, %496 : vector<8x8xf32>
    %c62_120 = arith.constant 62 : index
    %498 = memref.load %arg2[%c62_120] : memref<171xf32, #tpu.memory_space<smem>>
    %499 = vector.broadcast %498 : f32 to vector<8x8xf32>
    %500 = arith.mulf %499, %253 : vector<8x8xf32>
    %501 = arith.addf %497, %500 : vector<8x8xf32>
    %c63_121 = arith.constant 63 : index
    %502 = memref.load %arg2[%c63_121] : memref<171xf32, #tpu.memory_space<smem>>
    %503 = vector.broadcast %502 : f32 to vector<8x8xf32>
    %504 = arith.mulf %503, %265 : vector<8x8xf32>
    %505 = arith.addf %501, %504 : vector<8x8xf32>
    %cst_122 = arith.constant -1.000000e+01 : f32
    %cst_123 = arith.constant 1.000000e+01 : f32
    %506 = vector.broadcast %cst_122 : f32 to vector<8x8xf32>
    %507 = arith.maximumf %506, %505 : vector<8x8xf32>
    %508 = vector.broadcast %cst_123 : f32 to vector<8x8xf32>
    %509 = arith.minimumf %508, %507 : vector<8x8xf32>
    %cst_124 = arith.constant 0.000000e+00 : f32
    %510 = vector.broadcast %cst_124 : f32 to vector<8x8xf32>
    %511 = arith.subf %510, %509 : vector<8x8xf32>
    %512 = math.exp %511 : vector<8x8xf32>
    %cst_125 = arith.constant 5.000000e-01 : f32
    %513 = vector.broadcast %cst_125 : f32 to vector<8x8xf32>
    %514 = arith.addf %269, %513 : vector<8x8xf32>
    %515 = arith.subf %514, %468 : vector<8x8xf32>
    %cst_126 = arith.constant 5.000000e-01 : f32
    %516 = vector.broadcast %cst_126 : f32 to vector<8x8xf32>
    %517 = arith.subf %269, %516 : vector<8x8xf32>
    %518 = arith.subf %517, %468 : vector<8x8xf32>
    %519 = math.absf %515 : vector<8x8xf32>
    %cst_127 = arith.constant 0.000000e+00 : f32
    %520 = vector.broadcast %cst_127 : f32 to vector<8x8xf32>
    %521 = arith.subf %520, %519 : vector<8x8xf32>
    %522 = arith.mulf %521, %512 : vector<8x8xf32>
    %523 = math.exp %522 : vector<8x8xf32>
    %cst_128 = arith.constant 5.000000e-01 : f32
    %524 = vector.broadcast %cst_128 : f32 to vector<8x8xf32>
    %525 = arith.mulf %524, %523 : vector<8x8xf32>
    %526 = math.absf %518 : vector<8x8xf32>
    %cst_129 = arith.constant 0.000000e+00 : f32
    %527 = vector.broadcast %cst_129 : f32 to vector<8x8xf32>
    %528 = arith.subf %527, %526 : vector<8x8xf32>
    %529 = arith.mulf %528, %512 : vector<8x8xf32>
    %530 = math.exp %529 : vector<8x8xf32>
    %cst_130 = arith.constant 5.000000e-01 : f32
    %531 = vector.broadcast %cst_130 : f32 to vector<8x8xf32>
    %532 = arith.mulf %531, %530 : vector<8x8xf32>
    %cst_131 = arith.constant 0.000000e+00 : f32
    %533 = vector.broadcast %cst_131 : f32 to vector<8x8xf32>
    %534 = arith.cmpf ole, %515, %533 : vector<8x8xf32>
    %cst_132 = arith.constant 1.000000e+00 : f32
    %535 = vector.broadcast %cst_132 : f32 to vector<8x8xf32>
    %536 = arith.subf %535, %525 : vector<8x8xf32>
    %537 = arith.select %534, %525, %536 : vector<8x8xi1>, vector<8x8xf32>
    %cst_133 = arith.constant 0.000000e+00 : f32
    %538 = vector.broadcast %cst_133 : f32 to vector<8x8xf32>
    %539 = arith.cmpf ole, %518, %538 : vector<8x8xf32>
    %cst_134 = arith.constant 1.000000e+00 : f32
    %540 = vector.broadcast %cst_134 : f32 to vector<8x8xf32>
    %541 = arith.subf %540, %532 : vector<8x8xf32>
    %542 = arith.select %539, %532, %541 : vector<8x8xi1>, vector<8x8xf32>
    %543 = arith.subf %537, %542 : vector<8x8xf32>
    %cst_135 = arith.constant 3.05175781E-5 : f32
    %544 = vector.broadcast %cst_135 : f32 to vector<8x8xf32>
    %545 = arith.maximumf %543, %544 : vector<8x8xf32>
    %546 = math.log %545 : vector<8x8xf32>
    %cst_136 = arith.constant 2.000000e+00 : f32
    %547 = math.log %cst_136 : f32
    %548 = vector.broadcast %547 : f32 to vector<8x8xf32>
    %549 = arith.divf %546, %548 : vector<8x8xf32>
    %cst_137 = arith.constant 0.000000e+00 : f32
    %550 = vector.broadcast %cst_137 : f32 to vector<8x8xf32>
    %551 = arith.subf %550, %549 : vector<8x8xf32>
    %552 = arith.addf %391, %551 : vector<8x8xf32>
    %c98 = arith.constant 98 : index
    %553 = memref.load %arg2[%c98] : memref<171xf32, #tpu.memory_space<smem>>
    %c12_138 = arith.constant 12 : index
    %c0_139 = arith.constant 0 : index
    %c0_140 = arith.constant 0 : index
    %554 = vector.load %arg1[%c12_138, %c0_139, %c0_140] : memref<77x8x8xf32, #tpu.memory_space<vmem>>, vector<1x8x8xf32>
    %555 = vector.shape_cast %554 : vector<1x8x8xf32> to vector<8x8xf32>
    %556 = vector.broadcast %553 : f32 to vector<8x8xf32>
    %557 = arith.addf %556, %555 : vector<8x8xf32>
    %c40_141 = arith.constant 40 : index
    %558 = memref.load %arg2[%c40_141] : memref<171xf32, #tpu.memory_space<smem>>
    %559 = vector.broadcast %558 : f32 to vector<8x8xf32>
    %560 = arith.mulf %559, %181 : vector<8x8xf32>
    %561 = arith.addf %557, %560 : vector<8x8xf32>
    %c41 = arith.constant 41 : index
    %562 = memref.load %arg2[%c41] : memref<171xf32, #tpu.memory_space<smem>>
    %563 = vector.broadcast %562 : f32 to vector<8x8xf32>
    %564 = arith.mulf %563, %193 : vector<8x8xf32>
    %565 = arith.addf %561, %564 : vector<8x8xf32>
    %c42 = arith.constant 42 : index
    %566 = memref.load %arg2[%c42] : memref<171xf32, #tpu.memory_space<smem>>
    %567 = vector.broadcast %566 : f32 to vector<8x8xf32>
    %568 = arith.mulf %567, %205 : vector<8x8xf32>
    %569 = arith.addf %565, %568 : vector<8x8xf32>
    %c43 = arith.constant 43 : index
    %570 = memref.load %arg2[%c43] : memref<171xf32, #tpu.memory_space<smem>>
    %571 = vector.broadcast %570 : f32 to vector<8x8xf32>
    %572 = arith.mulf %571, %217 : vector<8x8xf32>
    %573 = arith.addf %569, %572 : vector<8x8xf32>
    %c44_142 = arith.constant 44 : index
    %574 = memref.load %arg2[%c44_142] : memref<171xf32, #tpu.memory_space<smem>>
    %575 = vector.broadcast %574 : f32 to vector<8x8xf32>
    %576 = arith.mulf %575, %229 : vector<8x8xf32>
    %577 = arith.addf %573, %576 : vector<8x8xf32>
    %c45 = arith.constant 45 : index
    %578 = memref.load %arg2[%c45] : memref<171xf32, #tpu.memory_space<smem>>
    %579 = vector.broadcast %578 : f32 to vector<8x8xf32>
    %580 = arith.mulf %579, %241 : vector<8x8xf32>
    %581 = arith.addf %577, %580 : vector<8x8xf32>
    %c46 = arith.constant 46 : index
    %582 = memref.load %arg2[%c46] : memref<171xf32, #tpu.memory_space<smem>>
    %583 = vector.broadcast %582 : f32 to vector<8x8xf32>
    %584 = arith.mulf %583, %253 : vector<8x8xf32>
    %585 = arith.addf %581, %584 : vector<8x8xf32>
    %c47 = arith.constant 47 : index
    %586 = memref.load %arg2[%c47] : memref<171xf32, #tpu.memory_space<smem>>
    %587 = vector.broadcast %586 : f32 to vector<8x8xf32>
    %588 = arith.mulf %587, %265 : vector<8x8xf32>
    %589 = arith.addf %585, %588 : vector<8x8xf32>
    %c104 = arith.constant 104 : index
    %590 = memref.load %arg2[%c104] : memref<171xf32, #tpu.memory_space<smem>>
    %c36_143 = arith.constant 36 : index
    %c0_144 = arith.constant 0 : index
    %c0_145 = arith.constant 0 : index
    %591 = vector.load %arg1[%c36_143, %c0_144, %c0_145] : memref<77x8x8xf32, #tpu.memory_space<vmem>>, vector<1x8x8xf32>
    %592 = vector.shape_cast %591 : vector<1x8x8xf32> to vector<8x8xf32>
    %593 = vector.broadcast %590 : f32 to vector<8x8xf32>
    %594 = arith.addf %593, %592 : vector<8x8xf32>
    %c88 = arith.constant 88 : index
    %595 = memref.load %arg2[%c88] : memref<171xf32, #tpu.memory_space<smem>>
    %596 = vector.broadcast %595 : f32 to vector<8x8xf32>
    %597 = arith.mulf %596, %181 : vector<8x8xf32>
    %598 = arith.addf %594, %597 : vector<8x8xf32>
    %c89 = arith.constant 89 : index
    %599 = memref.load %arg2[%c89] : memref<171xf32, #tpu.memory_space<smem>>
    %600 = vector.broadcast %599 : f32 to vector<8x8xf32>
    %601 = arith.mulf %600, %193 : vector<8x8xf32>
    %602 = arith.addf %598, %601 : vector<8x8xf32>
    %c90 = arith.constant 90 : index
    %603 = memref.load %arg2[%c90] : memref<171xf32, #tpu.memory_space<smem>>
    %604 = vector.broadcast %603 : f32 to vector<8x8xf32>
    %605 = arith.mulf %604, %205 : vector<8x8xf32>
    %606 = arith.addf %602, %605 : vector<8x8xf32>
    %c91 = arith.constant 91 : index
    %607 = memref.load %arg2[%c91] : memref<171xf32, #tpu.memory_space<smem>>
    %608 = vector.broadcast %607 : f32 to vector<8x8xf32>
    %609 = arith.mulf %608, %217 : vector<8x8xf32>
    %610 = arith.addf %606, %609 : vector<8x8xf32>
    %c92 = arith.constant 92 : index
    %611 = memref.load %arg2[%c92] : memref<171xf32, #tpu.memory_space<smem>>
    %612 = vector.broadcast %611 : f32 to vector<8x8xf32>
    %613 = arith.mulf %612, %229 : vector<8x8xf32>
    %614 = arith.addf %610, %613 : vector<8x8xf32>
    %c93 = arith.constant 93 : index
    %615 = memref.load %arg2[%c93] : memref<171xf32, #tpu.memory_space<smem>>
    %616 = vector.broadcast %615 : f32 to vector<8x8xf32>
    %617 = arith.mulf %616, %241 : vector<8x8xf32>
    %618 = arith.addf %614, %617 : vector<8x8xf32>
    %c94 = arith.constant 94 : index
    %619 = memref.load %arg2[%c94] : memref<171xf32, #tpu.memory_space<smem>>
    %620 = vector.broadcast %619 : f32 to vector<8x8xf32>
    %621 = arith.mulf %620, %253 : vector<8x8xf32>
    %622 = arith.addf %618, %621 : vector<8x8xf32>
    %c95 = arith.constant 95 : index
    %623 = memref.load %arg2[%c95] : memref<171xf32, #tpu.memory_space<smem>>
    %624 = vector.broadcast %623 : f32 to vector<8x8xf32>
    %625 = arith.mulf %624, %265 : vector<8x8xf32>
    %626 = arith.addf %622, %625 : vector<8x8xf32>
    %627 = arith.subf %269, %468 : vector<8x8xf32>
    %628 = arith.mulf %626, %627 : vector<8x8xf32>
    %629 = arith.addf %589, %628 : vector<8x8xf32>
    %c101 = arith.constant 101 : index
    %630 = memref.load %arg2[%c101] : memref<171xf32, #tpu.memory_space<smem>>
    %c24_146 = arith.constant 24 : index
    %c0_147 = arith.constant 0 : index
    %c0_148 = arith.constant 0 : index
    %631 = vector.load %arg1[%c24_146, %c0_147, %c0_148] : memref<77x8x8xf32, #tpu.memory_space<vmem>>, vector<1x8x8xf32>
    %632 = vector.shape_cast %631 : vector<1x8x8xf32> to vector<8x8xf32>
    %633 = vector.broadcast %630 : f32 to vector<8x8xf32>
    %634 = arith.addf %633, %632 : vector<8x8xf32>
    %c64_149 = arith.constant 64 : index
    %635 = memref.load %arg2[%c64_149] : memref<171xf32, #tpu.memory_space<smem>>
    %636 = vector.broadcast %635 : f32 to vector<8x8xf32>
    %637 = arith.mulf %636, %181 : vector<8x8xf32>
    %638 = arith.addf %634, %637 : vector<8x8xf32>
    %c65_150 = arith.constant 65 : index
    %639 = memref.load %arg2[%c65_150] : memref<171xf32, #tpu.memory_space<smem>>
    %640 = vector.broadcast %639 : f32 to vector<8x8xf32>
    %641 = arith.mulf %640, %193 : vector<8x8xf32>
    %642 = arith.addf %638, %641 : vector<8x8xf32>
    %c66 = arith.constant 66 : index
    %643 = memref.load %arg2[%c66] : memref<171xf32, #tpu.memory_space<smem>>
    %644 = vector.broadcast %643 : f32 to vector<8x8xf32>
    %645 = arith.mulf %644, %205 : vector<8x8xf32>
    %646 = arith.addf %642, %645 : vector<8x8xf32>
    %c67_151 = arith.constant 67 : index
    %647 = memref.load %arg2[%c67_151] : memref<171xf32, #tpu.memory_space<smem>>
    %648 = vector.broadcast %647 : f32 to vector<8x8xf32>
    %649 = arith.mulf %648, %217 : vector<8x8xf32>
    %650 = arith.addf %646, %649 : vector<8x8xf32>
    %c68_152 = arith.constant 68 : index
    %651 = memref.load %arg2[%c68_152] : memref<171xf32, #tpu.memory_space<smem>>
    %652 = vector.broadcast %651 : f32 to vector<8x8xf32>
    %653 = arith.mulf %652, %229 : vector<8x8xf32>
    %654 = arith.addf %650, %653 : vector<8x8xf32>
    %c69_153 = arith.constant 69 : index
    %655 = memref.load %arg2[%c69_153] : memref<171xf32, #tpu.memory_space<smem>>
    %656 = vector.broadcast %655 : f32 to vector<8x8xf32>
    %657 = arith.mulf %656, %241 : vector<8x8xf32>
    %658 = arith.addf %654, %657 : vector<8x8xf32>
    %c70_154 = arith.constant 70 : index
    %659 = memref.load %arg2[%c70_154] : memref<171xf32, #tpu.memory_space<smem>>
    %660 = vector.broadcast %659 : f32 to vector<8x8xf32>
    %661 = arith.mulf %660, %253 : vector<8x8xf32>
    %662 = arith.addf %658, %661 : vector<8x8xf32>
    %c71 = arith.constant 71 : index
    %663 = memref.load %arg2[%c71] : memref<171xf32, #tpu.memory_space<smem>>
    %664 = vector.broadcast %663 : f32 to vector<8x8xf32>
    %665 = arith.mulf %664, %265 : vector<8x8xf32>
    %666 = arith.addf %662, %665 : vector<8x8xf32>
    %cst_155 = arith.constant -1.000000e+01 : f32
    %cst_156 = arith.constant 1.000000e+01 : f32
    %667 = vector.broadcast %cst_155 : f32 to vector<8x8xf32>
    %668 = arith.maximumf %667, %666 : vector<8x8xf32>
    %669 = vector.broadcast %cst_156 : f32 to vector<8x8xf32>
    %670 = arith.minimumf %669, %668 : vector<8x8xf32>
    %cst_157 = arith.constant 0.000000e+00 : f32
    %671 = vector.broadcast %cst_157 : f32 to vector<8x8xf32>
    %672 = arith.subf %671, %670 : vector<8x8xf32>
    %673 = math.exp %672 : vector<8x8xf32>
    %cst_158 = arith.constant 5.000000e-01 : f32
    %674 = vector.broadcast %cst_158 : f32 to vector<8x8xf32>
    %675 = arith.addf %271, %674 : vector<8x8xf32>
    %676 = arith.subf %675, %629 : vector<8x8xf32>
    %cst_159 = arith.constant 5.000000e-01 : f32
    %677 = vector.broadcast %cst_159 : f32 to vector<8x8xf32>
    %678 = arith.subf %271, %677 : vector<8x8xf32>
    %679 = arith.subf %678, %629 : vector<8x8xf32>
    %680 = math.absf %676 : vector<8x8xf32>
    %cst_160 = arith.constant 0.000000e+00 : f32
    %681 = vector.broadcast %cst_160 : f32 to vector<8x8xf32>
    %682 = arith.subf %681, %680 : vector<8x8xf32>
    %683 = arith.mulf %682, %673 : vector<8x8xf32>
    %684 = math.exp %683 : vector<8x8xf32>
    %cst_161 = arith.constant 5.000000e-01 : f32
    %685 = vector.broadcast %cst_161 : f32 to vector<8x8xf32>
    %686 = arith.mulf %685, %684 : vector<8x8xf32>
    %687 = math.absf %679 : vector<8x8xf32>
    %cst_162 = arith.constant 0.000000e+00 : f32
    %688 = vector.broadcast %cst_162 : f32 to vector<8x8xf32>
    %689 = arith.subf %688, %687 : vector<8x8xf32>
    %690 = arith.mulf %689, %673 : vector<8x8xf32>
    %691 = math.exp %690 : vector<8x8xf32>
    %cst_163 = arith.constant 5.000000e-01 : f32
    %692 = vector.broadcast %cst_163 : f32 to vector<8x8xf32>
    %693 = arith.mulf %692, %691 : vector<8x8xf32>
    %cst_164 = arith.constant 0.000000e+00 : f32
    %694 = vector.broadcast %cst_164 : f32 to vector<8x8xf32>
    %695 = arith.cmpf ole, %676, %694 : vector<8x8xf32>
    %cst_165 = arith.constant 1.000000e+00 : f32
    %696 = vector.broadcast %cst_165 : f32 to vector<8x8xf32>
    %697 = arith.subf %696, %686 : vector<8x8xf32>
    %698 = arith.select %695, %686, %697 : vector<8x8xi1>, vector<8x8xf32>
    %cst_166 = arith.constant 0.000000e+00 : f32
    %699 = vector.broadcast %cst_166 : f32 to vector<8x8xf32>
    %700 = arith.cmpf ole, %679, %699 : vector<8x8xf32>
    %cst_167 = arith.constant 1.000000e+00 : f32
    %701 = vector.broadcast %cst_167 : f32 to vector<8x8xf32>
    %702 = arith.subf %701, %693 : vector<8x8xf32>
    %703 = arith.select %700, %693, %702 : vector<8x8xi1>, vector<8x8xf32>
    %704 = arith.subf %698, %703 : vector<8x8xf32>
    %cst_168 = arith.constant 3.05175781E-5 : f32
    %705 = vector.broadcast %cst_168 : f32 to vector<8x8xf32>
    %706 = arith.maximumf %704, %705 : vector<8x8xf32>
    %707 = math.log %706 : vector<8x8xf32>
    %cst_169 = arith.constant 2.000000e+00 : f32
    %708 = math.log %cst_169 : f32
    %709 = vector.broadcast %708 : f32 to vector<8x8xf32>
    %710 = arith.divf %707, %709 : vector<8x8xf32>
    %cst_170 = arith.constant 0.000000e+00 : f32
    %711 = vector.broadcast %cst_170 : f32 to vector<8x8xf32>
    %712 = arith.subf %711, %710 : vector<8x8xf32>
    %713 = arith.addf %552, %712 : vector<8x8xf32>
    %c53_171 = arith.constant 53 : index
    %c0_172 = arith.constant 0 : index
    %c0_173 = arith.constant 0 : index
    %714 = vector.load %arg1[%c53_171, %c0_172, %c0_173] : memref<77x8x8xf32, #tpu.memory_space<vmem>>, vector<1x8x8xf32>
    %715 = vector.shape_cast %714 : vector<1x8x8xf32> to vector<8x8xf32>
    %c123 = arith.constant 123 : index
    %716 = memref.load %arg2[%c123] : memref<171xf32, #tpu.memory_space<smem>>
    %717 = vector.broadcast %716 : f32 to vector<8x8xf32>
    %718 = arith.mulf %715, %717 : vector<8x8xf32>
    %c54_174 = arith.constant 54 : index
    %c0_175 = arith.constant 0 : index
    %c0_176 = arith.constant 0 : index
    %719 = vector.load %arg1[%c54_174, %c0_175, %c0_176] : memref<77x8x8xf32, #tpu.memory_space<vmem>>, vector<1x8x8xf32>
    %720 = vector.shape_cast %719 : vector<1x8x8xf32> to vector<8x8xf32>
    %c124 = arith.constant 124 : index
    %721 = memref.load %arg2[%c124] : memref<171xf32, #tpu.memory_space<smem>>
    %722 = vector.broadcast %721 : f32 to vector<8x8xf32>
    %723 = arith.mulf %720, %722 : vector<8x8xf32>
    %724 = arith.addf %718, %723 : vector<8x8xf32>
    %c55_177 = arith.constant 55 : index
    %c0_178 = arith.constant 0 : index
    %c0_179 = arith.constant 0 : index
    %725 = vector.load %arg1[%c55_177, %c0_178, %c0_179] : memref<77x8x8xf32, #tpu.memory_space<vmem>>, vector<1x8x8xf32>
    %726 = vector.shape_cast %725 : vector<1x8x8xf32> to vector<8x8xf32>
    %c125 = arith.constant 125 : index
    %727 = memref.load %arg2[%c125] : memref<171xf32, #tpu.memory_space<smem>>
    %728 = vector.broadcast %727 : f32 to vector<8x8xf32>
    %729 = arith.mulf %726, %728 : vector<8x8xf32>
    %730 = arith.addf %724, %729 : vector<8x8xf32>
    %c56_180 = arith.constant 56 : index
    %c0_181 = arith.constant 0 : index
    %c0_182 = arith.constant 0 : index
    %731 = vector.load %arg1[%c56_180, %c0_181, %c0_182] : memref<77x8x8xf32, #tpu.memory_space<vmem>>, vector<1x8x8xf32>
    %732 = vector.shape_cast %731 : vector<1x8x8xf32> to vector<8x8xf32>
    %c126 = arith.constant 126 : index
    %733 = memref.load %arg2[%c126] : memref<171xf32, #tpu.memory_space<smem>>
    %734 = vector.broadcast %733 : f32 to vector<8x8xf32>
    %735 = arith.mulf %732, %734 : vector<8x8xf32>
    %736 = arith.addf %730, %735 : vector<8x8xf32>
    %c58_183 = arith.constant 58 : index
    %c0_184 = arith.constant 0 : index
    %c0_185 = arith.constant 0 : index
    %737 = vector.load %arg1[%c58_183, %c0_184, %c0_185] : memref<77x8x8xf32, #tpu.memory_space<vmem>>, vector<1x8x8xf32>
    %738 = vector.shape_cast %737 : vector<1x8x8xf32> to vector<8x8xf32>
    %c127 = arith.constant 127 : index
    %739 = memref.load %arg2[%c127] : memref<171xf32, #tpu.memory_space<smem>>
    %740 = vector.broadcast %739 : f32 to vector<8x8xf32>
    %741 = arith.mulf %738, %740 : vector<8x8xf32>
    %742 = arith.addf %736, %741 : vector<8x8xf32>
    %c59_186 = arith.constant 59 : index
    %c0_187 = arith.constant 0 : index
    %c0_188 = arith.constant 0 : index
    %743 = vector.load %arg1[%c59_186, %c0_187, %c0_188] : memref<77x8x8xf32, #tpu.memory_space<vmem>>, vector<1x8x8xf32>
    %744 = vector.shape_cast %743 : vector<1x8x8xf32> to vector<8x8xf32>
    %c128 = arith.constant 128 : index
    %745 = memref.load %arg2[%c128] : memref<171xf32, #tpu.memory_space<smem>>
    %746 = vector.broadcast %745 : f32 to vector<8x8xf32>
    %747 = arith.mulf %744, %746 : vector<8x8xf32>
    %748 = arith.addf %742, %747 : vector<8x8xf32>
    %c60_189 = arith.constant 60 : index
    %c0_190 = arith.constant 0 : index
    %c0_191 = arith.constant 0 : index
    %749 = vector.load %arg1[%c60_189, %c0_190, %c0_191] : memref<77x8x8xf32, #tpu.memory_space<vmem>>, vector<1x8x8xf32>
    %750 = vector.shape_cast %749 : vector<1x8x8xf32> to vector<8x8xf32>
    %c129 = arith.constant 129 : index
    %751 = memref.load %arg2[%c129] : memref<171xf32, #tpu.memory_space<smem>>
    %752 = vector.broadcast %751 : f32 to vector<8x8xf32>
    %753 = arith.mulf %750, %752 : vector<8x8xf32>
    %754 = arith.addf %748, %753 : vector<8x8xf32>
    %c61_192 = arith.constant 61 : index
    %c0_193 = arith.constant 0 : index
    %c0_194 = arith.constant 0 : index
    %755 = vector.load %arg1[%c61_192, %c0_193, %c0_194] : memref<77x8x8xf32, #tpu.memory_space<vmem>>, vector<1x8x8xf32>
    %756 = vector.shape_cast %755 : vector<1x8x8xf32> to vector<8x8xf32>
    %c130 = arith.constant 130 : index
    %757 = memref.load %arg2[%c130] : memref<171xf32, #tpu.memory_space<smem>>
    %758 = vector.broadcast %757 : f32 to vector<8x8xf32>
    %759 = arith.mulf %756, %758 : vector<8x8xf32>
    %760 = arith.addf %754, %759 : vector<8x8xf32>
    %c63_195 = arith.constant 63 : index
    %c0_196 = arith.constant 0 : index
    %c0_197 = arith.constant 0 : index
    %761 = vector.load %arg1[%c63_195, %c0_196, %c0_197] : memref<77x8x8xf32, #tpu.memory_space<vmem>>, vector<1x8x8xf32>
    %762 = vector.shape_cast %761 : vector<1x8x8xf32> to vector<8x8xf32>
    %c131 = arith.constant 131 : index
    %763 = memref.load %arg2[%c131] : memref<171xf32, #tpu.memory_space<smem>>
    %764 = vector.broadcast %763 : f32 to vector<8x8xf32>
    %765 = arith.mulf %762, %764 : vector<8x8xf32>
    %766 = arith.addf %760, %765 : vector<8x8xf32>
    %c64_198 = arith.constant 64 : index
    %c0_199 = arith.constant 0 : index
    %c0_200 = arith.constant 0 : index
    %767 = vector.load %arg1[%c64_198, %c0_199, %c0_200] : memref<77x8x8xf32, #tpu.memory_space<vmem>>, vector<1x8x8xf32>
    %768 = vector.shape_cast %767 : vector<1x8x8xf32> to vector<8x8xf32>
    %c132 = arith.constant 132 : index
    %769 = memref.load %arg2[%c132] : memref<171xf32, #tpu.memory_space<smem>>
    %770 = vector.broadcast %769 : f32 to vector<8x8xf32>
    %771 = arith.mulf %768, %770 : vector<8x8xf32>
    %772 = arith.addf %766, %771 : vector<8x8xf32>
    %c65_201 = arith.constant 65 : index
    %c0_202 = arith.constant 0 : index
    %c0_203 = arith.constant 0 : index
    %773 = vector.load %arg1[%c65_201, %c0_202, %c0_203] : memref<77x8x8xf32, #tpu.memory_space<vmem>>, vector<1x8x8xf32>
    %774 = vector.shape_cast %773 : vector<1x8x8xf32> to vector<8x8xf32>
    %c133 = arith.constant 133 : index
    %775 = memref.load %arg2[%c133] : memref<171xf32, #tpu.memory_space<smem>>
    %776 = vector.broadcast %775 : f32 to vector<8x8xf32>
    %777 = arith.mulf %774, %776 : vector<8x8xf32>
    %778 = arith.addf %772, %777 : vector<8x8xf32>
    %c66_204 = arith.constant 66 : index
    %c0_205 = arith.constant 0 : index
    %c0_206 = arith.constant 0 : index
    %779 = vector.load %arg1[%c66_204, %c0_205, %c0_206] : memref<77x8x8xf32, #tpu.memory_space<vmem>>, vector<1x8x8xf32>
    %780 = vector.shape_cast %779 : vector<1x8x8xf32> to vector<8x8xf32>
    %c134 = arith.constant 134 : index
    %781 = memref.load %arg2[%c134] : memref<171xf32, #tpu.memory_space<smem>>
    %782 = vector.broadcast %781 : f32 to vector<8x8xf32>
    %783 = arith.mulf %780, %782 : vector<8x8xf32>
    %784 = arith.addf %778, %783 : vector<8x8xf32>
    %c68_207 = arith.constant 68 : index
    %c0_208 = arith.constant 0 : index
    %c0_209 = arith.constant 0 : index
    %785 = vector.load %arg1[%c68_207, %c0_208, %c0_209] : memref<77x8x8xf32, #tpu.memory_space<vmem>>, vector<1x8x8xf32>
    %786 = vector.shape_cast %785 : vector<1x8x8xf32> to vector<8x8xf32>
    %c135 = arith.constant 135 : index
    %787 = memref.load %arg2[%c135] : memref<171xf32, #tpu.memory_space<smem>>
    %788 = vector.broadcast %787 : f32 to vector<8x8xf32>
    %789 = arith.mulf %786, %788 : vector<8x8xf32>
    %790 = arith.addf %784, %789 : vector<8x8xf32>
    %c69_210 = arith.constant 69 : index
    %c0_211 = arith.constant 0 : index
    %c0_212 = arith.constant 0 : index
    %791 = vector.load %arg1[%c69_210, %c0_211, %c0_212] : memref<77x8x8xf32, #tpu.memory_space<vmem>>, vector<1x8x8xf32>
    %792 = vector.shape_cast %791 : vector<1x8x8xf32> to vector<8x8xf32>
    %c136 = arith.constant 136 : index
    %793 = memref.load %arg2[%c136] : memref<171xf32, #tpu.memory_space<smem>>
    %794 = vector.broadcast %793 : f32 to vector<8x8xf32>
    %795 = arith.mulf %792, %794 : vector<8x8xf32>
    %796 = arith.addf %790, %795 : vector<8x8xf32>
    %c70_213 = arith.constant 70 : index
    %c0_214 = arith.constant 0 : index
    %c0_215 = arith.constant 0 : index
    %797 = vector.load %arg1[%c70_213, %c0_214, %c0_215] : memref<77x8x8xf32, #tpu.memory_space<vmem>>, vector<1x8x8xf32>
    %798 = vector.shape_cast %797 : vector<1x8x8xf32> to vector<8x8xf32>
    %c137 = arith.constant 137 : index
    %799 = memref.load %arg2[%c137] : memref<171xf32, #tpu.memory_space<smem>>
    %800 = vector.broadcast %799 : f32 to vector<8x8xf32>
    %801 = arith.mulf %798, %800 : vector<8x8xf32>
    %802 = arith.addf %796, %801 : vector<8x8xf32>
    %c71_216 = arith.constant 71 : index
    %c0_217 = arith.constant 0 : index
    %c0_218 = arith.constant 0 : index
    %803 = vector.load %arg1[%c71_216, %c0_217, %c0_218] : memref<77x8x8xf32, #tpu.memory_space<vmem>>, vector<1x8x8xf32>
    %804 = vector.shape_cast %803 : vector<1x8x8xf32> to vector<8x8xf32>
    %c138 = arith.constant 138 : index
    %805 = memref.load %arg2[%c138] : memref<171xf32, #tpu.memory_space<smem>>
    %806 = vector.broadcast %805 : f32 to vector<8x8xf32>
    %807 = arith.mulf %804, %806 : vector<8x8xf32>
    %808 = arith.addf %802, %807 : vector<8x8xf32>
    %c1_219 = arith.constant 1 : index
    %c0_220 = arith.constant 0 : index
    %c0_221 = arith.constant 0 : index
    %809 = vector.load %arg1[%c1_219, %c0_220, %c0_221] : memref<77x8x8xf32, #tpu.memory_space<vmem>>, vector<1x8x8xf32>
    %810 = vector.shape_cast %809 : vector<1x8x8xf32> to vector<8x8xf32>
    %c0_222 = arith.constant 0 : index
    %811 = memref.load %arg2[%c0_222] : memref<171xf32, #tpu.memory_space<smem>>
    %812 = vector.broadcast %811 : f32 to vector<8x8xf32>
    %813 = arith.mulf %812, %810 : vector<8x8xf32>
    %c1_223 = arith.constant 1 : index
    %814 = memref.load %arg2[%c1_223] : memref<171xf32, #tpu.memory_space<smem>>
    %815 = vector.broadcast %814 : f32 to vector<8x8xf32>
    %816 = arith.mulf %815, %808 : vector<8x8xf32>
    %817 = arith.addf %813, %816 : vector<8x8xf32>
    %c16_224 = arith.constant 16 : index
    %818 = memref.load %arg2[%c16_224] : memref<171xf32, #tpu.memory_space<smem>>
    %819 = vector.broadcast %818 : f32 to vector<8x8xf32>
    %820 = arith.addf %817, %819 : vector<8x8xf32>
    %cst_225 = arith.constant 0.000000e+00 : f32
    %821 = vector.broadcast %cst_225 : f32 to vector<8x8xf32>
    %822 = arith.maximumf %820, %821 : vector<8x8xf32>
    %c2_226 = arith.constant 2 : index
    %823 = memref.load %arg2[%c2_226] : memref<171xf32, #tpu.memory_space<smem>>
    %824 = vector.broadcast %823 : f32 to vector<8x8xf32>
    %825 = arith.mulf %824, %810 : vector<8x8xf32>
    %c3_227 = arith.constant 3 : index
    %826 = memref.load %arg2[%c3_227] : memref<171xf32, #tpu.memory_space<smem>>
    %827 = vector.broadcast %826 : f32 to vector<8x8xf32>
    %828 = arith.mulf %827, %808 : vector<8x8xf32>
    %829 = arith.addf %825, %828 : vector<8x8xf32>
    %c17_228 = arith.constant 17 : index
    %830 = memref.load %arg2[%c17_228] : memref<171xf32, #tpu.memory_space<smem>>
    %831 = vector.broadcast %830 : f32 to vector<8x8xf32>
    %832 = arith.addf %829, %831 : vector<8x8xf32>
    %cst_229 = arith.constant 0.000000e+00 : f32
    %833 = vector.broadcast %cst_229 : f32 to vector<8x8xf32>
    %834 = arith.maximumf %832, %833 : vector<8x8xf32>
    %c4_230 = arith.constant 4 : index
    %835 = memref.load %arg2[%c4_230] : memref<171xf32, #tpu.memory_space<smem>>
    %836 = vector.broadcast %835 : f32 to vector<8x8xf32>
    %837 = arith.mulf %836, %810 : vector<8x8xf32>
    %c5_231 = arith.constant 5 : index
    %838 = memref.load %arg2[%c5_231] : memref<171xf32, #tpu.memory_space<smem>>
    %839 = vector.broadcast %838 : f32 to vector<8x8xf32>
    %840 = arith.mulf %839, %808 : vector<8x8xf32>
    %841 = arith.addf %837, %840 : vector<8x8xf32>
    %c18_232 = arith.constant 18 : index
    %842 = memref.load %arg2[%c18_232] : memref<171xf32, #tpu.memory_space<smem>>
    %843 = vector.broadcast %842 : f32 to vector<8x8xf32>
    %844 = arith.addf %841, %843 : vector<8x8xf32>
    %cst_233 = arith.constant 0.000000e+00 : f32
    %845 = vector.broadcast %cst_233 : f32 to vector<8x8xf32>
    %846 = arith.maximumf %844, %845 : vector<8x8xf32>
    %c6_234 = arith.constant 6 : index
    %847 = memref.load %arg2[%c6_234] : memref<171xf32, #tpu.memory_space<smem>>
    %848 = vector.broadcast %847 : f32 to vector<8x8xf32>
    %849 = arith.mulf %848, %810 : vector<8x8xf32>
    %c7_235 = arith.constant 7 : index
    %850 = memref.load %arg2[%c7_235] : memref<171xf32, #tpu.memory_space<smem>>
    %851 = vector.broadcast %850 : f32 to vector<8x8xf32>
    %852 = arith.mulf %851, %808 : vector<8x8xf32>
    %853 = arith.addf %849, %852 : vector<8x8xf32>
    %c19_236 = arith.constant 19 : index
    %854 = memref.load %arg2[%c19_236] : memref<171xf32, #tpu.memory_space<smem>>
    %855 = vector.broadcast %854 : f32 to vector<8x8xf32>
    %856 = arith.addf %853, %855 : vector<8x8xf32>
    %cst_237 = arith.constant 0.000000e+00 : f32
    %857 = vector.broadcast %cst_237 : f32 to vector<8x8xf32>
    %858 = arith.maximumf %856, %857 : vector<8x8xf32>
    %c8_238 = arith.constant 8 : index
    %859 = memref.load %arg2[%c8_238] : memref<171xf32, #tpu.memory_space<smem>>
    %860 = vector.broadcast %859 : f32 to vector<8x8xf32>
    %861 = arith.mulf %860, %810 : vector<8x8xf32>
    %c9_239 = arith.constant 9 : index
    %862 = memref.load %arg2[%c9_239] : memref<171xf32, #tpu.memory_space<smem>>
    %863 = vector.broadcast %862 : f32 to vector<8x8xf32>
    %864 = arith.mulf %863, %808 : vector<8x8xf32>
    %865 = arith.addf %861, %864 : vector<8x8xf32>
    %c20_240 = arith.constant 20 : index
    %866 = memref.load %arg2[%c20_240] : memref<171xf32, #tpu.memory_space<smem>>
    %867 = vector.broadcast %866 : f32 to vector<8x8xf32>
    %868 = arith.addf %865, %867 : vector<8x8xf32>
    %cst_241 = arith.constant 0.000000e+00 : f32
    %869 = vector.broadcast %cst_241 : f32 to vector<8x8xf32>
    %870 = arith.maximumf %868, %869 : vector<8x8xf32>
    %c10_242 = arith.constant 10 : index
    %871 = memref.load %arg2[%c10_242] : memref<171xf32, #tpu.memory_space<smem>>
    %872 = vector.broadcast %871 : f32 to vector<8x8xf32>
    %873 = arith.mulf %872, %810 : vector<8x8xf32>
    %c11_243 = arith.constant 11 : index
    %874 = memref.load %arg2[%c11_243] : memref<171xf32, #tpu.memory_space<smem>>
    %875 = vector.broadcast %874 : f32 to vector<8x8xf32>
    %876 = arith.mulf %875, %808 : vector<8x8xf32>
    %877 = arith.addf %873, %876 : vector<8x8xf32>
    %c21_244 = arith.constant 21 : index
    %878 = memref.load %arg2[%c21_244] : memref<171xf32, #tpu.memory_space<smem>>
    %879 = vector.broadcast %878 : f32 to vector<8x8xf32>
    %880 = arith.addf %877, %879 : vector<8x8xf32>
    %cst_245 = arith.constant 0.000000e+00 : f32
    %881 = vector.broadcast %cst_245 : f32 to vector<8x8xf32>
    %882 = arith.maximumf %880, %881 : vector<8x8xf32>
    %c12_246 = arith.constant 12 : index
    %883 = memref.load %arg2[%c12_246] : memref<171xf32, #tpu.memory_space<smem>>
    %884 = vector.broadcast %883 : f32 to vector<8x8xf32>
    %885 = arith.mulf %884, %810 : vector<8x8xf32>
    %c13_247 = arith.constant 13 : index
    %886 = memref.load %arg2[%c13_247] : memref<171xf32, #tpu.memory_space<smem>>
    %887 = vector.broadcast %886 : f32 to vector<8x8xf32>
    %888 = arith.mulf %887, %808 : vector<8x8xf32>
    %889 = arith.addf %885, %888 : vector<8x8xf32>
    %c22_248 = arith.constant 22 : index
    %890 = memref.load %arg2[%c22_248] : memref<171xf32, #tpu.memory_space<smem>>
    %891 = vector.broadcast %890 : f32 to vector<8x8xf32>
    %892 = arith.addf %889, %891 : vector<8x8xf32>
    %cst_249 = arith.constant 0.000000e+00 : f32
    %893 = vector.broadcast %cst_249 : f32 to vector<8x8xf32>
    %894 = arith.maximumf %892, %893 : vector<8x8xf32>
    %c14_250 = arith.constant 14 : index
    %895 = memref.load %arg2[%c14_250] : memref<171xf32, #tpu.memory_space<smem>>
    %896 = vector.broadcast %895 : f32 to vector<8x8xf32>
    %897 = arith.mulf %896, %810 : vector<8x8xf32>
    %c15_251 = arith.constant 15 : index
    %898 = memref.load %arg2[%c15_251] : memref<171xf32, #tpu.memory_space<smem>>
    %899 = vector.broadcast %898 : f32 to vector<8x8xf32>
    %900 = arith.mulf %899, %808 : vector<8x8xf32>
    %901 = arith.addf %897, %900 : vector<8x8xf32>
    %c23_252 = arith.constant 23 : index
    %902 = memref.load %arg2[%c23_252] : memref<171xf32, #tpu.memory_space<smem>>
    %903 = vector.broadcast %902 : f32 to vector<8x8xf32>
    %904 = arith.addf %901, %903 : vector<8x8xf32>
    %cst_253 = arith.constant 0.000000e+00 : f32
    %905 = vector.broadcast %cst_253 : f32 to vector<8x8xf32>
    %906 = arith.maximumf %904, %905 : vector<8x8xf32>
    %c41_254 = arith.constant 41 : index
    %c0_255 = arith.constant 0 : index
    %c0_256 = arith.constant 0 : index
    %907 = vector.load %arg1[%c41_254, %c0_255, %c0_256] : memref<77x8x8xf32, #tpu.memory_space<vmem>>, vector<1x8x8xf32>
    %908 = vector.shape_cast %907 : vector<1x8x8xf32> to vector<8x8xf32>
    %c45_257 = arith.constant 45 : index
    %c0_258 = arith.constant 0 : index
    %c0_259 = arith.constant 0 : index
    %909 = vector.load %arg1[%c45_257, %c0_258, %c0_259] : memref<77x8x8xf32, #tpu.memory_space<vmem>>, vector<1x8x8xf32>
    %910 = vector.shape_cast %909 : vector<1x8x8xf32> to vector<8x8xf32>
    %c49_260 = arith.constant 49 : index
    %c0_261 = arith.constant 0 : index
    %c0_262 = arith.constant 0 : index
    %911 = vector.load %arg1[%c49_260, %c0_261, %c0_262] : memref<77x8x8xf32, #tpu.memory_space<vmem>>, vector<1x8x8xf32>
    %912 = vector.shape_cast %911 : vector<1x8x8xf32> to vector<8x8xf32>
    %c96_263 = arith.constant 96 : index
    %913 = memref.load %arg2[%c96_263] : memref<171xf32, #tpu.memory_space<smem>>
    %c5_264 = arith.constant 5 : index
    %c0_265 = arith.constant 0 : index
    %c0_266 = arith.constant 0 : index
    %914 = vector.load %arg1[%c5_264, %c0_265, %c0_266] : memref<77x8x8xf32, #tpu.memory_space<vmem>>, vector<1x8x8xf32>
    %915 = vector.shape_cast %914 : vector<1x8x8xf32> to vector<8x8xf32>
    %916 = vector.broadcast %913 : f32 to vector<8x8xf32>
    %917 = arith.addf %916, %915 : vector<8x8xf32>
    %c24_267 = arith.constant 24 : index
    %918 = memref.load %arg2[%c24_267] : memref<171xf32, #tpu.memory_space<smem>>
    %919 = vector.broadcast %918 : f32 to vector<8x8xf32>
    %920 = arith.mulf %919, %822 : vector<8x8xf32>
    %921 = arith.addf %917, %920 : vector<8x8xf32>
    %c25_268 = arith.constant 25 : index
    %922 = memref.load %arg2[%c25_268] : memref<171xf32, #tpu.memory_space<smem>>
    %923 = vector.broadcast %922 : f32 to vector<8x8xf32>
    %924 = arith.mulf %923, %834 : vector<8x8xf32>
    %925 = arith.addf %921, %924 : vector<8x8xf32>
    %c26_269 = arith.constant 26 : index
    %926 = memref.load %arg2[%c26_269] : memref<171xf32, #tpu.memory_space<smem>>
    %927 = vector.broadcast %926 : f32 to vector<8x8xf32>
    %928 = arith.mulf %927, %846 : vector<8x8xf32>
    %929 = arith.addf %925, %928 : vector<8x8xf32>
    %c27_270 = arith.constant 27 : index
    %930 = memref.load %arg2[%c27_270] : memref<171xf32, #tpu.memory_space<smem>>
    %931 = vector.broadcast %930 : f32 to vector<8x8xf32>
    %932 = arith.mulf %931, %858 : vector<8x8xf32>
    %933 = arith.addf %929, %932 : vector<8x8xf32>
    %c28_271 = arith.constant 28 : index
    %934 = memref.load %arg2[%c28_271] : memref<171xf32, #tpu.memory_space<smem>>
    %935 = vector.broadcast %934 : f32 to vector<8x8xf32>
    %936 = arith.mulf %935, %870 : vector<8x8xf32>
    %937 = arith.addf %933, %936 : vector<8x8xf32>
    %c29_272 = arith.constant 29 : index
    %938 = memref.load %arg2[%c29_272] : memref<171xf32, #tpu.memory_space<smem>>
    %939 = vector.broadcast %938 : f32 to vector<8x8xf32>
    %940 = arith.mulf %939, %882 : vector<8x8xf32>
    %941 = arith.addf %937, %940 : vector<8x8xf32>
    %c30_273 = arith.constant 30 : index
    %942 = memref.load %arg2[%c30_273] : memref<171xf32, #tpu.memory_space<smem>>
    %943 = vector.broadcast %942 : f32 to vector<8x8xf32>
    %944 = arith.mulf %943, %894 : vector<8x8xf32>
    %945 = arith.addf %941, %944 : vector<8x8xf32>
    %c31_274 = arith.constant 31 : index
    %946 = memref.load %arg2[%c31_274] : memref<171xf32, #tpu.memory_space<smem>>
    %947 = vector.broadcast %946 : f32 to vector<8x8xf32>
    %948 = arith.mulf %947, %906 : vector<8x8xf32>
    %949 = arith.addf %945, %948 : vector<8x8xf32>
    %c99_275 = arith.constant 99 : index
    %950 = memref.load %arg2[%c99_275] : memref<171xf32, #tpu.memory_space<smem>>
    %c17_276 = arith.constant 17 : index
    %c0_277 = arith.constant 0 : index
    %c0_278 = arith.constant 0 : index
    %951 = vector.load %arg1[%c17_276, %c0_277, %c0_278] : memref<77x8x8xf32, #tpu.memory_space<vmem>>, vector<1x8x8xf32>
    %952 = vector.shape_cast %951 : vector<1x8x8xf32> to vector<8x8xf32>
    %953 = vector.broadcast %950 : f32 to vector<8x8xf32>
    %954 = arith.addf %953, %952 : vector<8x8xf32>
    %c48_279 = arith.constant 48 : index
    %955 = memref.load %arg2[%c48_279] : memref<171xf32, #tpu.memory_space<smem>>
    %956 = vector.broadcast %955 : f32 to vector<8x8xf32>
    %957 = arith.mulf %956, %822 : vector<8x8xf32>
    %958 = arith.addf %954, %957 : vector<8x8xf32>
    %c49_280 = arith.constant 49 : index
    %959 = memref.load %arg2[%c49_280] : memref<171xf32, #tpu.memory_space<smem>>
    %960 = vector.broadcast %959 : f32 to vector<8x8xf32>
    %961 = arith.mulf %960, %834 : vector<8x8xf32>
    %962 = arith.addf %958, %961 : vector<8x8xf32>
    %c50_281 = arith.constant 50 : index
    %963 = memref.load %arg2[%c50_281] : memref<171xf32, #tpu.memory_space<smem>>
    %964 = vector.broadcast %963 : f32 to vector<8x8xf32>
    %965 = arith.mulf %964, %846 : vector<8x8xf32>
    %966 = arith.addf %962, %965 : vector<8x8xf32>
    %c51_282 = arith.constant 51 : index
    %967 = memref.load %arg2[%c51_282] : memref<171xf32, #tpu.memory_space<smem>>
    %968 = vector.broadcast %967 : f32 to vector<8x8xf32>
    %969 = arith.mulf %968, %858 : vector<8x8xf32>
    %970 = arith.addf %966, %969 : vector<8x8xf32>
    %c52_283 = arith.constant 52 : index
    %971 = memref.load %arg2[%c52_283] : memref<171xf32, #tpu.memory_space<smem>>
    %972 = vector.broadcast %971 : f32 to vector<8x8xf32>
    %973 = arith.mulf %972, %870 : vector<8x8xf32>
    %974 = arith.addf %970, %973 : vector<8x8xf32>
    %c53_284 = arith.constant 53 : index
    %975 = memref.load %arg2[%c53_284] : memref<171xf32, #tpu.memory_space<smem>>
    %976 = vector.broadcast %975 : f32 to vector<8x8xf32>
    %977 = arith.mulf %976, %882 : vector<8x8xf32>
    %978 = arith.addf %974, %977 : vector<8x8xf32>
    %c54_285 = arith.constant 54 : index
    %979 = memref.load %arg2[%c54_285] : memref<171xf32, #tpu.memory_space<smem>>
    %980 = vector.broadcast %979 : f32 to vector<8x8xf32>
    %981 = arith.mulf %980, %894 : vector<8x8xf32>
    %982 = arith.addf %978, %981 : vector<8x8xf32>
    %c55_286 = arith.constant 55 : index
    %983 = memref.load %arg2[%c55_286] : memref<171xf32, #tpu.memory_space<smem>>
    %984 = vector.broadcast %983 : f32 to vector<8x8xf32>
    %985 = arith.mulf %984, %906 : vector<8x8xf32>
    %986 = arith.addf %982, %985 : vector<8x8xf32>
    %cst_287 = arith.constant -1.000000e+01 : f32
    %cst_288 = arith.constant 1.000000e+01 : f32
    %987 = vector.broadcast %cst_287 : f32 to vector<8x8xf32>
    %988 = arith.maximumf %987, %986 : vector<8x8xf32>
    %989 = vector.broadcast %cst_288 : f32 to vector<8x8xf32>
    %990 = arith.minimumf %989, %988 : vector<8x8xf32>
    %cst_289 = arith.constant 0.000000e+00 : f32
    %991 = vector.broadcast %cst_289 : f32 to vector<8x8xf32>
    %992 = arith.subf %991, %990 : vector<8x8xf32>
    %993 = math.exp %992 : vector<8x8xf32>
    %cst_290 = arith.constant 5.000000e-01 : f32
    %994 = vector.broadcast %cst_290 : f32 to vector<8x8xf32>
    %995 = arith.addf %908, %994 : vector<8x8xf32>
    %996 = arith.subf %995, %949 : vector<8x8xf32>
    %cst_291 = arith.constant 5.000000e-01 : f32
    %997 = vector.broadcast %cst_291 : f32 to vector<8x8xf32>
    %998 = arith.subf %908, %997 : vector<8x8xf32>
    %999 = arith.subf %998, %949 : vector<8x8xf32>
    %1000 = math.absf %996 : vector<8x8xf32>
    %cst_292 = arith.constant 0.000000e+00 : f32
    %1001 = vector.broadcast %cst_292 : f32 to vector<8x8xf32>
    %1002 = arith.subf %1001, %1000 : vector<8x8xf32>
    %1003 = arith.mulf %1002, %993 : vector<8x8xf32>
    %1004 = math.exp %1003 : vector<8x8xf32>
    %cst_293 = arith.constant 5.000000e-01 : f32
    %1005 = vector.broadcast %cst_293 : f32 to vector<8x8xf32>
    %1006 = arith.mulf %1005, %1004 : vector<8x8xf32>
    %1007 = math.absf %999 : vector<8x8xf32>
    %cst_294 = arith.constant 0.000000e+00 : f32
    %1008 = vector.broadcast %cst_294 : f32 to vector<8x8xf32>
    %1009 = arith.subf %1008, %1007 : vector<8x8xf32>
    %1010 = arith.mulf %1009, %993 : vector<8x8xf32>
    %1011 = math.exp %1010 : vector<8x8xf32>
    %cst_295 = arith.constant 5.000000e-01 : f32
    %1012 = vector.broadcast %cst_295 : f32 to vector<8x8xf32>
    %1013 = arith.mulf %1012, %1011 : vector<8x8xf32>
    %cst_296 = arith.constant 0.000000e+00 : f32
    %1014 = vector.broadcast %cst_296 : f32 to vector<8x8xf32>
    %1015 = arith.cmpf ole, %996, %1014 : vector<8x8xf32>
    %cst_297 = arith.constant 1.000000e+00 : f32
    %1016 = vector.broadcast %cst_297 : f32 to vector<8x8xf32>
    %1017 = arith.subf %1016, %1006 : vector<8x8xf32>
    %1018 = arith.select %1015, %1006, %1017 : vector<8x8xi1>, vector<8x8xf32>
    %cst_298 = arith.constant 0.000000e+00 : f32
    %1019 = vector.broadcast %cst_298 : f32 to vector<8x8xf32>
    %1020 = arith.cmpf ole, %999, %1019 : vector<8x8xf32>
    %cst_299 = arith.constant 1.000000e+00 : f32
    %1021 = vector.broadcast %cst_299 : f32 to vector<8x8xf32>
    %1022 = arith.subf %1021, %1013 : vector<8x8xf32>
    %1023 = arith.select %1020, %1013, %1022 : vector<8x8xi1>, vector<8x8xf32>
    %1024 = arith.subf %1018, %1023 : vector<8x8xf32>
    %cst_300 = arith.constant 3.05175781E-5 : f32
    %1025 = vector.broadcast %cst_300 : f32 to vector<8x8xf32>
    %1026 = arith.maximumf %1024, %1025 : vector<8x8xf32>
    %1027 = math.log %1026 : vector<8x8xf32>
    %cst_301 = arith.constant 2.000000e+00 : f32
    %1028 = math.log %cst_301 : f32
    %1029 = vector.broadcast %1028 : f32 to vector<8x8xf32>
    %1030 = arith.divf %1027, %1029 : vector<8x8xf32>
    %cst_302 = arith.constant 0.000000e+00 : f32
    %1031 = vector.broadcast %cst_302 : f32 to vector<8x8xf32>
    %1032 = arith.subf %1031, %1030 : vector<8x8xf32>
    %c97_303 = arith.constant 97 : index
    %1033 = memref.load %arg2[%c97_303] : memref<171xf32, #tpu.memory_space<smem>>
    %c9_304 = arith.constant 9 : index
    %c0_305 = arith.constant 0 : index
    %c0_306 = arith.constant 0 : index
    %1034 = vector.load %arg1[%c9_304, %c0_305, %c0_306] : memref<77x8x8xf32, #tpu.memory_space<vmem>>, vector<1x8x8xf32>
    %1035 = vector.shape_cast %1034 : vector<1x8x8xf32> to vector<8x8xf32>
    %1036 = vector.broadcast %1033 : f32 to vector<8x8xf32>
    %1037 = arith.addf %1036, %1035 : vector<8x8xf32>
    %c32_307 = arith.constant 32 : index
    %1038 = memref.load %arg2[%c32_307] : memref<171xf32, #tpu.memory_space<smem>>
    %1039 = vector.broadcast %1038 : f32 to vector<8x8xf32>
    %1040 = arith.mulf %1039, %822 : vector<8x8xf32>
    %1041 = arith.addf %1037, %1040 : vector<8x8xf32>
    %c33_308 = arith.constant 33 : index
    %1042 = memref.load %arg2[%c33_308] : memref<171xf32, #tpu.memory_space<smem>>
    %1043 = vector.broadcast %1042 : f32 to vector<8x8xf32>
    %1044 = arith.mulf %1043, %834 : vector<8x8xf32>
    %1045 = arith.addf %1041, %1044 : vector<8x8xf32>
    %c34_309 = arith.constant 34 : index
    %1046 = memref.load %arg2[%c34_309] : memref<171xf32, #tpu.memory_space<smem>>
    %1047 = vector.broadcast %1046 : f32 to vector<8x8xf32>
    %1048 = arith.mulf %1047, %846 : vector<8x8xf32>
    %1049 = arith.addf %1045, %1048 : vector<8x8xf32>
    %c35_310 = arith.constant 35 : index
    %1050 = memref.load %arg2[%c35_310] : memref<171xf32, #tpu.memory_space<smem>>
    %1051 = vector.broadcast %1050 : f32 to vector<8x8xf32>
    %1052 = arith.mulf %1051, %858 : vector<8x8xf32>
    %1053 = arith.addf %1049, %1052 : vector<8x8xf32>
    %c36_311 = arith.constant 36 : index
    %1054 = memref.load %arg2[%c36_311] : memref<171xf32, #tpu.memory_space<smem>>
    %1055 = vector.broadcast %1054 : f32 to vector<8x8xf32>
    %1056 = arith.mulf %1055, %870 : vector<8x8xf32>
    %1057 = arith.addf %1053, %1056 : vector<8x8xf32>
    %c37_312 = arith.constant 37 : index
    %1058 = memref.load %arg2[%c37_312] : memref<171xf32, #tpu.memory_space<smem>>
    %1059 = vector.broadcast %1058 : f32 to vector<8x8xf32>
    %1060 = arith.mulf %1059, %882 : vector<8x8xf32>
    %1061 = arith.addf %1057, %1060 : vector<8x8xf32>
    %c38_313 = arith.constant 38 : index
    %1062 = memref.load %arg2[%c38_313] : memref<171xf32, #tpu.memory_space<smem>>
    %1063 = vector.broadcast %1062 : f32 to vector<8x8xf32>
    %1064 = arith.mulf %1063, %894 : vector<8x8xf32>
    %1065 = arith.addf %1061, %1064 : vector<8x8xf32>
    %c39_314 = arith.constant 39 : index
    %1066 = memref.load %arg2[%c39_314] : memref<171xf32, #tpu.memory_space<smem>>
    %1067 = vector.broadcast %1066 : f32 to vector<8x8xf32>
    %1068 = arith.mulf %1067, %906 : vector<8x8xf32>
    %1069 = arith.addf %1065, %1068 : vector<8x8xf32>
    %c103_315 = arith.constant 103 : index
    %1070 = memref.load %arg2[%c103_315] : memref<171xf32, #tpu.memory_space<smem>>
    %c33_316 = arith.constant 33 : index
    %c0_317 = arith.constant 0 : index
    %c0_318 = arith.constant 0 : index
    %1071 = vector.load %arg1[%c33_316, %c0_317, %c0_318] : memref<77x8x8xf32, #tpu.memory_space<vmem>>, vector<1x8x8xf32>
    %1072 = vector.shape_cast %1071 : vector<1x8x8xf32> to vector<8x8xf32>
    %1073 = vector.broadcast %1070 : f32 to vector<8x8xf32>
    %1074 = arith.addf %1073, %1072 : vector<8x8xf32>
    %c80_319 = arith.constant 80 : index
    %1075 = memref.load %arg2[%c80_319] : memref<171xf32, #tpu.memory_space<smem>>
    %1076 = vector.broadcast %1075 : f32 to vector<8x8xf32>
    %1077 = arith.mulf %1076, %822 : vector<8x8xf32>
    %1078 = arith.addf %1074, %1077 : vector<8x8xf32>
    %c81_320 = arith.constant 81 : index
    %1079 = memref.load %arg2[%c81_320] : memref<171xf32, #tpu.memory_space<smem>>
    %1080 = vector.broadcast %1079 : f32 to vector<8x8xf32>
    %1081 = arith.mulf %1080, %834 : vector<8x8xf32>
    %1082 = arith.addf %1078, %1081 : vector<8x8xf32>
    %c82_321 = arith.constant 82 : index
    %1083 = memref.load %arg2[%c82_321] : memref<171xf32, #tpu.memory_space<smem>>
    %1084 = vector.broadcast %1083 : f32 to vector<8x8xf32>
    %1085 = arith.mulf %1084, %846 : vector<8x8xf32>
    %1086 = arith.addf %1082, %1085 : vector<8x8xf32>
    %c83_322 = arith.constant 83 : index
    %1087 = memref.load %arg2[%c83_322] : memref<171xf32, #tpu.memory_space<smem>>
    %1088 = vector.broadcast %1087 : f32 to vector<8x8xf32>
    %1089 = arith.mulf %1088, %858 : vector<8x8xf32>
    %1090 = arith.addf %1086, %1089 : vector<8x8xf32>
    %c84_323 = arith.constant 84 : index
    %1091 = memref.load %arg2[%c84_323] : memref<171xf32, #tpu.memory_space<smem>>
    %1092 = vector.broadcast %1091 : f32 to vector<8x8xf32>
    %1093 = arith.mulf %1092, %870 : vector<8x8xf32>
    %1094 = arith.addf %1090, %1093 : vector<8x8xf32>
    %c85_324 = arith.constant 85 : index
    %1095 = memref.load %arg2[%c85_324] : memref<171xf32, #tpu.memory_space<smem>>
    %1096 = vector.broadcast %1095 : f32 to vector<8x8xf32>
    %1097 = arith.mulf %1096, %882 : vector<8x8xf32>
    %1098 = arith.addf %1094, %1097 : vector<8x8xf32>
    %c86_325 = arith.constant 86 : index
    %1099 = memref.load %arg2[%c86_325] : memref<171xf32, #tpu.memory_space<smem>>
    %1100 = vector.broadcast %1099 : f32 to vector<8x8xf32>
    %1101 = arith.mulf %1100, %894 : vector<8x8xf32>
    %1102 = arith.addf %1098, %1101 : vector<8x8xf32>
    %c87_326 = arith.constant 87 : index
    %1103 = memref.load %arg2[%c87_326] : memref<171xf32, #tpu.memory_space<smem>>
    %1104 = vector.broadcast %1103 : f32 to vector<8x8xf32>
    %1105 = arith.mulf %1104, %906 : vector<8x8xf32>
    %1106 = arith.addf %1102, %1105 : vector<8x8xf32>
    %1107 = arith.subf %908, %949 : vector<8x8xf32>
    %1108 = arith.mulf %1106, %1107 : vector<8x8xf32>
    %1109 = arith.addf %1069, %1108 : vector<8x8xf32>
    %c100_327 = arith.constant 100 : index
    %1110 = memref.load %arg2[%c100_327] : memref<171xf32, #tpu.memory_space<smem>>
    %c21_328 = arith.constant 21 : index
    %c0_329 = arith.constant 0 : index
    %c0_330 = arith.constant 0 : index
    %1111 = vector.load %arg1[%c21_328, %c0_329, %c0_330] : memref<77x8x8xf32, #tpu.memory_space<vmem>>, vector<1x8x8xf32>
    %1112 = vector.shape_cast %1111 : vector<1x8x8xf32> to vector<8x8xf32>
    %1113 = vector.broadcast %1110 : f32 to vector<8x8xf32>
    %1114 = arith.addf %1113, %1112 : vector<8x8xf32>
    %c56_331 = arith.constant 56 : index
    %1115 = memref.load %arg2[%c56_331] : memref<171xf32, #tpu.memory_space<smem>>
    %1116 = vector.broadcast %1115 : f32 to vector<8x8xf32>
    %1117 = arith.mulf %1116, %822 : vector<8x8xf32>
    %1118 = arith.addf %1114, %1117 : vector<8x8xf32>
    %c57_332 = arith.constant 57 : index
    %1119 = memref.load %arg2[%c57_332] : memref<171xf32, #tpu.memory_space<smem>>
    %1120 = vector.broadcast %1119 : f32 to vector<8x8xf32>
    %1121 = arith.mulf %1120, %834 : vector<8x8xf32>
    %1122 = arith.addf %1118, %1121 : vector<8x8xf32>
    %c58_333 = arith.constant 58 : index
    %1123 = memref.load %arg2[%c58_333] : memref<171xf32, #tpu.memory_space<smem>>
    %1124 = vector.broadcast %1123 : f32 to vector<8x8xf32>
    %1125 = arith.mulf %1124, %846 : vector<8x8xf32>
    %1126 = arith.addf %1122, %1125 : vector<8x8xf32>
    %c59_334 = arith.constant 59 : index
    %1127 = memref.load %arg2[%c59_334] : memref<171xf32, #tpu.memory_space<smem>>
    %1128 = vector.broadcast %1127 : f32 to vector<8x8xf32>
    %1129 = arith.mulf %1128, %858 : vector<8x8xf32>
    %1130 = arith.addf %1126, %1129 : vector<8x8xf32>
    %c60_335 = arith.constant 60 : index
    %1131 = memref.load %arg2[%c60_335] : memref<171xf32, #tpu.memory_space<smem>>
    %1132 = vector.broadcast %1131 : f32 to vector<8x8xf32>
    %1133 = arith.mulf %1132, %870 : vector<8x8xf32>
    %1134 = arith.addf %1130, %1133 : vector<8x8xf32>
    %c61_336 = arith.constant 61 : index
    %1135 = memref.load %arg2[%c61_336] : memref<171xf32, #tpu.memory_space<smem>>
    %1136 = vector.broadcast %1135 : f32 to vector<8x8xf32>
    %1137 = arith.mulf %1136, %882 : vector<8x8xf32>
    %1138 = arith.addf %1134, %1137 : vector<8x8xf32>
    %c62_337 = arith.constant 62 : index
    %1139 = memref.load %arg2[%c62_337] : memref<171xf32, #tpu.memory_space<smem>>
    %1140 = vector.broadcast %1139 : f32 to vector<8x8xf32>
    %1141 = arith.mulf %1140, %894 : vector<8x8xf32>
    %1142 = arith.addf %1138, %1141 : vector<8x8xf32>
    %c63_338 = arith.constant 63 : index
    %1143 = memref.load %arg2[%c63_338] : memref<171xf32, #tpu.memory_space<smem>>
    %1144 = vector.broadcast %1143 : f32 to vector<8x8xf32>
    %1145 = arith.mulf %1144, %906 : vector<8x8xf32>
    %1146 = arith.addf %1142, %1145 : vector<8x8xf32>
    %cst_339 = arith.constant -1.000000e+01 : f32
    %cst_340 = arith.constant 1.000000e+01 : f32
    %1147 = vector.broadcast %cst_339 : f32 to vector<8x8xf32>
    %1148 = arith.maximumf %1147, %1146 : vector<8x8xf32>
    %1149 = vector.broadcast %cst_340 : f32 to vector<8x8xf32>
    %1150 = arith.minimumf %1149, %1148 : vector<8x8xf32>
    %cst_341 = arith.constant 0.000000e+00 : f32
    %1151 = vector.broadcast %cst_341 : f32 to vector<8x8xf32>
    %1152 = arith.subf %1151, %1150 : vector<8x8xf32>
    %1153 = math.exp %1152 : vector<8x8xf32>
    %cst_342 = arith.constant 5.000000e-01 : f32
    %1154 = vector.broadcast %cst_342 : f32 to vector<8x8xf32>
    %1155 = arith.addf %910, %1154 : vector<8x8xf32>
    %1156 = arith.subf %1155, %1109 : vector<8x8xf32>
    %cst_343 = arith.constant 5.000000e-01 : f32
    %1157 = vector.broadcast %cst_343 : f32 to vector<8x8xf32>
    %1158 = arith.subf %910, %1157 : vector<8x8xf32>
    %1159 = arith.subf %1158, %1109 : vector<8x8xf32>
    %1160 = math.absf %1156 : vector<8x8xf32>
    %cst_344 = arith.constant 0.000000e+00 : f32
    %1161 = vector.broadcast %cst_344 : f32 to vector<8x8xf32>
    %1162 = arith.subf %1161, %1160 : vector<8x8xf32>
    %1163 = arith.mulf %1162, %1153 : vector<8x8xf32>
    %1164 = math.exp %1163 : vector<8x8xf32>
    %cst_345 = arith.constant 5.000000e-01 : f32
    %1165 = vector.broadcast %cst_345 : f32 to vector<8x8xf32>
    %1166 = arith.mulf %1165, %1164 : vector<8x8xf32>
    %1167 = math.absf %1159 : vector<8x8xf32>
    %cst_346 = arith.constant 0.000000e+00 : f32
    %1168 = vector.broadcast %cst_346 : f32 to vector<8x8xf32>
    %1169 = arith.subf %1168, %1167 : vector<8x8xf32>
    %1170 = arith.mulf %1169, %1153 : vector<8x8xf32>
    %1171 = math.exp %1170 : vector<8x8xf32>
    %cst_347 = arith.constant 5.000000e-01 : f32
    %1172 = vector.broadcast %cst_347 : f32 to vector<8x8xf32>
    %1173 = arith.mulf %1172, %1171 : vector<8x8xf32>
    %cst_348 = arith.constant 0.000000e+00 : f32
    %1174 = vector.broadcast %cst_348 : f32 to vector<8x8xf32>
    %1175 = arith.cmpf ole, %1156, %1174 : vector<8x8xf32>
    %cst_349 = arith.constant 1.000000e+00 : f32
    %1176 = vector.broadcast %cst_349 : f32 to vector<8x8xf32>
    %1177 = arith.subf %1176, %1166 : vector<8x8xf32>
    %1178 = arith.select %1175, %1166, %1177 : vector<8x8xi1>, vector<8x8xf32>
    %cst_350 = arith.constant 0.000000e+00 : f32
    %1179 = vector.broadcast %cst_350 : f32 to vector<8x8xf32>
    %1180 = arith.cmpf ole, %1159, %1179 : vector<8x8xf32>
    %cst_351 = arith.constant 1.000000e+00 : f32
    %1181 = vector.broadcast %cst_351 : f32 to vector<8x8xf32>
    %1182 = arith.subf %1181, %1173 : vector<8x8xf32>
    %1183 = arith.select %1180, %1173, %1182 : vector<8x8xi1>, vector<8x8xf32>
    %1184 = arith.subf %1178, %1183 : vector<8x8xf32>
    %cst_352 = arith.constant 3.05175781E-5 : f32
    %1185 = vector.broadcast %cst_352 : f32 to vector<8x8xf32>
    %1186 = arith.maximumf %1184, %1185 : vector<8x8xf32>
    %1187 = math.log %1186 : vector<8x8xf32>
    %cst_353 = arith.constant 2.000000e+00 : f32
    %1188 = math.log %cst_353 : f32
    %1189 = vector.broadcast %1188 : f32 to vector<8x8xf32>
    %1190 = arith.divf %1187, %1189 : vector<8x8xf32>
    %cst_354 = arith.constant 0.000000e+00 : f32
    %1191 = vector.broadcast %cst_354 : f32 to vector<8x8xf32>
    %1192 = arith.subf %1191, %1190 : vector<8x8xf32>
    %1193 = arith.addf %1032, %1192 : vector<8x8xf32>
    %c98_355 = arith.constant 98 : index
    %1194 = memref.load %arg2[%c98_355] : memref<171xf32, #tpu.memory_space<smem>>
    %c13_356 = arith.constant 13 : index
    %c0_357 = arith.constant 0 : index
    %c0_358 = arith.constant 0 : index
    %1195 = vector.load %arg1[%c13_356, %c0_357, %c0_358] : memref<77x8x8xf32, #tpu.memory_space<vmem>>, vector<1x8x8xf32>
    %1196 = vector.shape_cast %1195 : vector<1x8x8xf32> to vector<8x8xf32>
    %1197 = vector.broadcast %1194 : f32 to vector<8x8xf32>
    %1198 = arith.addf %1197, %1196 : vector<8x8xf32>
    %c40_359 = arith.constant 40 : index
    %1199 = memref.load %arg2[%c40_359] : memref<171xf32, #tpu.memory_space<smem>>
    %1200 = vector.broadcast %1199 : f32 to vector<8x8xf32>
    %1201 = arith.mulf %1200, %822 : vector<8x8xf32>
    %1202 = arith.addf %1198, %1201 : vector<8x8xf32>
    %c41_360 = arith.constant 41 : index
    %1203 = memref.load %arg2[%c41_360] : memref<171xf32, #tpu.memory_space<smem>>
    %1204 = vector.broadcast %1203 : f32 to vector<8x8xf32>
    %1205 = arith.mulf %1204, %834 : vector<8x8xf32>
    %1206 = arith.addf %1202, %1205 : vector<8x8xf32>
    %c42_361 = arith.constant 42 : index
    %1207 = memref.load %arg2[%c42_361] : memref<171xf32, #tpu.memory_space<smem>>
    %1208 = vector.broadcast %1207 : f32 to vector<8x8xf32>
    %1209 = arith.mulf %1208, %846 : vector<8x8xf32>
    %1210 = arith.addf %1206, %1209 : vector<8x8xf32>
    %c43_362 = arith.constant 43 : index
    %1211 = memref.load %arg2[%c43_362] : memref<171xf32, #tpu.memory_space<smem>>
    %1212 = vector.broadcast %1211 : f32 to vector<8x8xf32>
    %1213 = arith.mulf %1212, %858 : vector<8x8xf32>
    %1214 = arith.addf %1210, %1213 : vector<8x8xf32>
    %c44_363 = arith.constant 44 : index
    %1215 = memref.load %arg2[%c44_363] : memref<171xf32, #tpu.memory_space<smem>>
    %1216 = vector.broadcast %1215 : f32 to vector<8x8xf32>
    %1217 = arith.mulf %1216, %870 : vector<8x8xf32>
    %1218 = arith.addf %1214, %1217 : vector<8x8xf32>
    %c45_364 = arith.constant 45 : index
    %1219 = memref.load %arg2[%c45_364] : memref<171xf32, #tpu.memory_space<smem>>
    %1220 = vector.broadcast %1219 : f32 to vector<8x8xf32>
    %1221 = arith.mulf %1220, %882 : vector<8x8xf32>
    %1222 = arith.addf %1218, %1221 : vector<8x8xf32>
    %c46_365 = arith.constant 46 : index
    %1223 = memref.load %arg2[%c46_365] : memref<171xf32, #tpu.memory_space<smem>>
    %1224 = vector.broadcast %1223 : f32 to vector<8x8xf32>
    %1225 = arith.mulf %1224, %894 : vector<8x8xf32>
    %1226 = arith.addf %1222, %1225 : vector<8x8xf32>
    %c47_366 = arith.constant 47 : index
    %1227 = memref.load %arg2[%c47_366] : memref<171xf32, #tpu.memory_space<smem>>
    %1228 = vector.broadcast %1227 : f32 to vector<8x8xf32>
    %1229 = arith.mulf %1228, %906 : vector<8x8xf32>
    %1230 = arith.addf %1226, %1229 : vector<8x8xf32>
    %c104_367 = arith.constant 104 : index
    %1231 = memref.load %arg2[%c104_367] : memref<171xf32, #tpu.memory_space<smem>>
    %c37_368 = arith.constant 37 : index
    %c0_369 = arith.constant 0 : index
    %c0_370 = arith.constant 0 : index
    %1232 = vector.load %arg1[%c37_368, %c0_369, %c0_370] : memref<77x8x8xf32, #tpu.memory_space<vmem>>, vector<1x8x8xf32>
    %1233 = vector.shape_cast %1232 : vector<1x8x8xf32> to vector<8x8xf32>
    %1234 = vector.broadcast %1231 : f32 to vector<8x8xf32>
    %1235 = arith.addf %1234, %1233 : vector<8x8xf32>
    %c88_371 = arith.constant 88 : index
    %1236 = memref.load %arg2[%c88_371] : memref<171xf32, #tpu.memory_space<smem>>
    %1237 = vector.broadcast %1236 : f32 to vector<8x8xf32>
    %1238 = arith.mulf %1237, %822 : vector<8x8xf32>
    %1239 = arith.addf %1235, %1238 : vector<8x8xf32>
    %c89_372 = arith.constant 89 : index
    %1240 = memref.load %arg2[%c89_372] : memref<171xf32, #tpu.memory_space<smem>>
    %1241 = vector.broadcast %1240 : f32 to vector<8x8xf32>
    %1242 = arith.mulf %1241, %834 : vector<8x8xf32>
    %1243 = arith.addf %1239, %1242 : vector<8x8xf32>
    %c90_373 = arith.constant 90 : index
    %1244 = memref.load %arg2[%c90_373] : memref<171xf32, #tpu.memory_space<smem>>
    %1245 = vector.broadcast %1244 : f32 to vector<8x8xf32>
    %1246 = arith.mulf %1245, %846 : vector<8x8xf32>
    %1247 = arith.addf %1243, %1246 : vector<8x8xf32>
    %c91_374 = arith.constant 91 : index
    %1248 = memref.load %arg2[%c91_374] : memref<171xf32, #tpu.memory_space<smem>>
    %1249 = vector.broadcast %1248 : f32 to vector<8x8xf32>
    %1250 = arith.mulf %1249, %858 : vector<8x8xf32>
    %1251 = arith.addf %1247, %1250 : vector<8x8xf32>
    %c92_375 = arith.constant 92 : index
    %1252 = memref.load %arg2[%c92_375] : memref<171xf32, #tpu.memory_space<smem>>
    %1253 = vector.broadcast %1252 : f32 to vector<8x8xf32>
    %1254 = arith.mulf %1253, %870 : vector<8x8xf32>
    %1255 = arith.addf %1251, %1254 : vector<8x8xf32>
    %c93_376 = arith.constant 93 : index
    %1256 = memref.load %arg2[%c93_376] : memref<171xf32, #tpu.memory_space<smem>>
    %1257 = vector.broadcast %1256 : f32 to vector<8x8xf32>
    %1258 = arith.mulf %1257, %882 : vector<8x8xf32>
    %1259 = arith.addf %1255, %1258 : vector<8x8xf32>
    %c94_377 = arith.constant 94 : index
    %1260 = memref.load %arg2[%c94_377] : memref<171xf32, #tpu.memory_space<smem>>
    %1261 = vector.broadcast %1260 : f32 to vector<8x8xf32>
    %1262 = arith.mulf %1261, %894 : vector<8x8xf32>
    %1263 = arith.addf %1259, %1262 : vector<8x8xf32>
    %c95_378 = arith.constant 95 : index
    %1264 = memref.load %arg2[%c95_378] : memref<171xf32, #tpu.memory_space<smem>>
    %1265 = vector.broadcast %1264 : f32 to vector<8x8xf32>
    %1266 = arith.mulf %1265, %906 : vector<8x8xf32>
    %1267 = arith.addf %1263, %1266 : vector<8x8xf32>
    %1268 = arith.subf %910, %1109 : vector<8x8xf32>
    %1269 = arith.mulf %1267, %1268 : vector<8x8xf32>
    %1270 = arith.addf %1230, %1269 : vector<8x8xf32>
    %c101_379 = arith.constant 101 : index
    %1271 = memref.load %arg2[%c101_379] : memref<171xf32, #tpu.memory_space<smem>>
    %c25_380 = arith.constant 25 : index
    %c0_381 = arith.constant 0 : index
    %c0_382 = arith.constant 0 : index
    %1272 = vector.load %arg1[%c25_380, %c0_381, %c0_382] : memref<77x8x8xf32, #tpu.memory_space<vmem>>, vector<1x8x8xf32>
    %1273 = vector.shape_cast %1272 : vector<1x8x8xf32> to vector<8x8xf32>
    %1274 = vector.broadcast %1271 : f32 to vector<8x8xf32>
    %1275 = arith.addf %1274, %1273 : vector<8x8xf32>
    %c64_383 = arith.constant 64 : index
    %1276 = memref.load %arg2[%c64_383] : memref<171xf32, #tpu.memory_space<smem>>
    %1277 = vector.broadcast %1276 : f32 to vector<8x8xf32>
    %1278 = arith.mulf %1277, %822 : vector<8x8xf32>
    %1279 = arith.addf %1275, %1278 : vector<8x8xf32>
    %c65_384 = arith.constant 65 : index
    %1280 = memref.load %arg2[%c65_384] : memref<171xf32, #tpu.memory_space<smem>>
    %1281 = vector.broadcast %1280 : f32 to vector<8x8xf32>
    %1282 = arith.mulf %1281, %834 : vector<8x8xf32>
    %1283 = arith.addf %1279, %1282 : vector<8x8xf32>
    %c66_385 = arith.constant 66 : index
    %1284 = memref.load %arg2[%c66_385] : memref<171xf32, #tpu.memory_space<smem>>
    %1285 = vector.broadcast %1284 : f32 to vector<8x8xf32>
    %1286 = arith.mulf %1285, %846 : vector<8x8xf32>
    %1287 = arith.addf %1283, %1286 : vector<8x8xf32>
    %c67_386 = arith.constant 67 : index
    %1288 = memref.load %arg2[%c67_386] : memref<171xf32, #tpu.memory_space<smem>>
    %1289 = vector.broadcast %1288 : f32 to vector<8x8xf32>
    %1290 = arith.mulf %1289, %858 : vector<8x8xf32>
    %1291 = arith.addf %1287, %1290 : vector<8x8xf32>
    %c68_387 = arith.constant 68 : index
    %1292 = memref.load %arg2[%c68_387] : memref<171xf32, #tpu.memory_space<smem>>
    %1293 = vector.broadcast %1292 : f32 to vector<8x8xf32>
    %1294 = arith.mulf %1293, %870 : vector<8x8xf32>
    %1295 = arith.addf %1291, %1294 : vector<8x8xf32>
    %c69_388 = arith.constant 69 : index
    %1296 = memref.load %arg2[%c69_388] : memref<171xf32, #tpu.memory_space<smem>>
    %1297 = vector.broadcast %1296 : f32 to vector<8x8xf32>
    %1298 = arith.mulf %1297, %882 : vector<8x8xf32>
    %1299 = arith.addf %1295, %1298 : vector<8x8xf32>
    %c70_389 = arith.constant 70 : index
    %1300 = memref.load %arg2[%c70_389] : memref<171xf32, #tpu.memory_space<smem>>
    %1301 = vector.broadcast %1300 : f32 to vector<8x8xf32>
    %1302 = arith.mulf %1301, %894 : vector<8x8xf32>
    %1303 = arith.addf %1299, %1302 : vector<8x8xf32>
    %c71_390 = arith.constant 71 : index
    %1304 = memref.load %arg2[%c71_390] : memref<171xf32, #tpu.memory_space<smem>>
    %1305 = vector.broadcast %1304 : f32 to vector<8x8xf32>
    %1306 = arith.mulf %1305, %906 : vector<8x8xf32>
    %1307 = arith.addf %1303, %1306 : vector<8x8xf32>
    %cst_391 = arith.constant -1.000000e+01 : f32
    %cst_392 = arith.constant 1.000000e+01 : f32
    %1308 = vector.broadcast %cst_391 : f32 to vector<8x8xf32>
    %1309 = arith.maximumf %1308, %1307 : vector<8x8xf32>
    %1310 = vector.broadcast %cst_392 : f32 to vector<8x8xf32>
    %1311 = arith.minimumf %1310, %1309 : vector<8x8xf32>
    %cst_393 = arith.constant 0.000000e+00 : f32
    %1312 = vector.broadcast %cst_393 : f32 to vector<8x8xf32>
    %1313 = arith.subf %1312, %1311 : vector<8x8xf32>
    %1314 = math.exp %1313 : vector<8x8xf32>
    %cst_394 = arith.constant 5.000000e-01 : f32
    %1315 = vector.broadcast %cst_394 : f32 to vector<8x8xf32>
    %1316 = arith.addf %912, %1315 : vector<8x8xf32>
    %1317 = arith.subf %1316, %1270 : vector<8x8xf32>
    %cst_395 = arith.constant 5.000000e-01 : f32
    %1318 = vector.broadcast %cst_395 : f32 to vector<8x8xf32>
    %1319 = arith.subf %912, %1318 : vector<8x8xf32>
    %1320 = arith.subf %1319, %1270 : vector<8x8xf32>
    %1321 = math.absf %1317 : vector<8x8xf32>
    %cst_396 = arith.constant 0.000000e+00 : f32
    %1322 = vector.broadcast %cst_396 : f32 to vector<8x8xf32>
    %1323 = arith.subf %1322, %1321 : vector<8x8xf32>
    %1324 = arith.mulf %1323, %1314 : vector<8x8xf32>
    %1325 = math.exp %1324 : vector<8x8xf32>
    %cst_397 = arith.constant 5.000000e-01 : f32
    %1326 = vector.broadcast %cst_397 : f32 to vector<8x8xf32>
    %1327 = arith.mulf %1326, %1325 : vector<8x8xf32>
    %1328 = math.absf %1320 : vector<8x8xf32>
    %cst_398 = arith.constant 0.000000e+00 : f32
    %1329 = vector.broadcast %cst_398 : f32 to vector<8x8xf32>
    %1330 = arith.subf %1329, %1328 : vector<8x8xf32>
    %1331 = arith.mulf %1330, %1314 : vector<8x8xf32>
    %1332 = math.exp %1331 : vector<8x8xf32>
    %cst_399 = arith.constant 5.000000e-01 : f32
    %1333 = vector.broadcast %cst_399 : f32 to vector<8x8xf32>
    %1334 = arith.mulf %1333, %1332 : vector<8x8xf32>
    %cst_400 = arith.constant 0.000000e+00 : f32
    %1335 = vector.broadcast %cst_400 : f32 to vector<8x8xf32>
    %1336 = arith.cmpf ole, %1317, %1335 : vector<8x8xf32>
    %cst_401 = arith.constant 1.000000e+00 : f32
    %1337 = vector.broadcast %cst_401 : f32 to vector<8x8xf32>
    %1338 = arith.subf %1337, %1327 : vector<8x8xf32>
    %1339 = arith.select %1336, %1327, %1338 : vector<8x8xi1>, vector<8x8xf32>
    %cst_402 = arith.constant 0.000000e+00 : f32
    %1340 = vector.broadcast %cst_402 : f32 to vector<8x8xf32>
    %1341 = arith.cmpf ole, %1320, %1340 : vector<8x8xf32>
    %cst_403 = arith.constant 1.000000e+00 : f32
    %1342 = vector.broadcast %cst_403 : f32 to vector<8x8xf32>
    %1343 = arith.subf %1342, %1334 : vector<8x8xf32>
    %1344 = arith.select %1341, %1334, %1343 : vector<8x8xi1>, vector<8x8xf32>
    %1345 = arith.subf %1339, %1344 : vector<8x8xf32>
    %cst_404 = arith.constant 3.05175781E-5 : f32
    %1346 = vector.broadcast %cst_404 : f32 to vector<8x8xf32>
    %1347 = arith.maximumf %1345, %1346 : vector<8x8xf32>
    %1348 = math.log %1347 : vector<8x8xf32>
    %cst_405 = arith.constant 2.000000e+00 : f32
    %1349 = math.log %cst_405 : f32
    %1350 = vector.broadcast %1349 : f32 to vector<8x8xf32>
    %1351 = arith.divf %1348, %1350 : vector<8x8xf32>
    %cst_406 = arith.constant 0.000000e+00 : f32
    %1352 = vector.broadcast %cst_406 : f32 to vector<8x8xf32>
    %1353 = arith.subf %1352, %1351 : vector<8x8xf32>
    %1354 = arith.addf %1193, %1353 : vector<8x8xf32>
    %1355 = arith.addf %713, %1354 : vector<8x8xf32>
    %c57_407 = arith.constant 57 : index
    %c0_408 = arith.constant 0 : index
    %c0_409 = arith.constant 0 : index
    %1356 = vector.load %arg1[%c57_407, %c0_408, %c0_409] : memref<77x8x8xf32, #tpu.memory_space<vmem>>, vector<1x8x8xf32>
    %1357 = vector.shape_cast %1356 : vector<1x8x8xf32> to vector<8x8xf32>
    %c139 = arith.constant 139 : index
    %1358 = memref.load %arg2[%c139] : memref<171xf32, #tpu.memory_space<smem>>
    %1359 = vector.broadcast %1358 : f32 to vector<8x8xf32>
    %1360 = arith.mulf %1357, %1359 : vector<8x8xf32>
    %c58_410 = arith.constant 58 : index
    %c0_411 = arith.constant 0 : index
    %c0_412 = arith.constant 0 : index
    %1361 = vector.load %arg1[%c58_410, %c0_411, %c0_412] : memref<77x8x8xf32, #tpu.memory_space<vmem>>, vector<1x8x8xf32>
    %1362 = vector.shape_cast %1361 : vector<1x8x8xf32> to vector<8x8xf32>
    %c140 = arith.constant 140 : index
    %1363 = memref.load %arg2[%c140] : memref<171xf32, #tpu.memory_space<smem>>
    %1364 = vector.broadcast %1363 : f32 to vector<8x8xf32>
    %1365 = arith.mulf %1362, %1364 : vector<8x8xf32>
    %1366 = arith.addf %1360, %1365 : vector<8x8xf32>
    %c59_413 = arith.constant 59 : index
    %c0_414 = arith.constant 0 : index
    %c0_415 = arith.constant 0 : index
    %1367 = vector.load %arg1[%c59_413, %c0_414, %c0_415] : memref<77x8x8xf32, #tpu.memory_space<vmem>>, vector<1x8x8xf32>
    %1368 = vector.shape_cast %1367 : vector<1x8x8xf32> to vector<8x8xf32>
    %c141 = arith.constant 141 : index
    %1369 = memref.load %arg2[%c141] : memref<171xf32, #tpu.memory_space<smem>>
    %1370 = vector.broadcast %1369 : f32 to vector<8x8xf32>
    %1371 = arith.mulf %1368, %1370 : vector<8x8xf32>
    %1372 = arith.addf %1366, %1371 : vector<8x8xf32>
    %c60_416 = arith.constant 60 : index
    %c0_417 = arith.constant 0 : index
    %c0_418 = arith.constant 0 : index
    %1373 = vector.load %arg1[%c60_416, %c0_417, %c0_418] : memref<77x8x8xf32, #tpu.memory_space<vmem>>, vector<1x8x8xf32>
    %1374 = vector.shape_cast %1373 : vector<1x8x8xf32> to vector<8x8xf32>
    %c142 = arith.constant 142 : index
    %1375 = memref.load %arg2[%c142] : memref<171xf32, #tpu.memory_space<smem>>
    %1376 = vector.broadcast %1375 : f32 to vector<8x8xf32>
    %1377 = arith.mulf %1374, %1376 : vector<8x8xf32>
    %1378 = arith.addf %1372, %1377 : vector<8x8xf32>
    %c62_419 = arith.constant 62 : index
    %c0_420 = arith.constant 0 : index
    %c0_421 = arith.constant 0 : index
    %1379 = vector.load %arg1[%c62_419, %c0_420, %c0_421] : memref<77x8x8xf32, #tpu.memory_space<vmem>>, vector<1x8x8xf32>
    %1380 = vector.shape_cast %1379 : vector<1x8x8xf32> to vector<8x8xf32>
    %c143 = arith.constant 143 : index
    %1381 = memref.load %arg2[%c143] : memref<171xf32, #tpu.memory_space<smem>>
    %1382 = vector.broadcast %1381 : f32 to vector<8x8xf32>
    %1383 = arith.mulf %1380, %1382 : vector<8x8xf32>
    %1384 = arith.addf %1378, %1383 : vector<8x8xf32>
    %c63_422 = arith.constant 63 : index
    %c0_423 = arith.constant 0 : index
    %c0_424 = arith.constant 0 : index
    %1385 = vector.load %arg1[%c63_422, %c0_423, %c0_424] : memref<77x8x8xf32, #tpu.memory_space<vmem>>, vector<1x8x8xf32>
    %1386 = vector.shape_cast %1385 : vector<1x8x8xf32> to vector<8x8xf32>
    %c144 = arith.constant 144 : index
    %1387 = memref.load %arg2[%c144] : memref<171xf32, #tpu.memory_space<smem>>
    %1388 = vector.broadcast %1387 : f32 to vector<8x8xf32>
    %1389 = arith.mulf %1386, %1388 : vector<8x8xf32>
    %1390 = arith.addf %1384, %1389 : vector<8x8xf32>
    %c64_425 = arith.constant 64 : index
    %c0_426 = arith.constant 0 : index
    %c0_427 = arith.constant 0 : index
    %1391 = vector.load %arg1[%c64_425, %c0_426, %c0_427] : memref<77x8x8xf32, #tpu.memory_space<vmem>>, vector<1x8x8xf32>
    %1392 = vector.shape_cast %1391 : vector<1x8x8xf32> to vector<8x8xf32>
    %c145 = arith.constant 145 : index
    %1393 = memref.load %arg2[%c145] : memref<171xf32, #tpu.memory_space<smem>>
    %1394 = vector.broadcast %1393 : f32 to vector<8x8xf32>
    %1395 = arith.mulf %1392, %1394 : vector<8x8xf32>
    %1396 = arith.addf %1390, %1395 : vector<8x8xf32>
    %c65_428 = arith.constant 65 : index
    %c0_429 = arith.constant 0 : index
    %c0_430 = arith.constant 0 : index
    %1397 = vector.load %arg1[%c65_428, %c0_429, %c0_430] : memref<77x8x8xf32, #tpu.memory_space<vmem>>, vector<1x8x8xf32>
    %1398 = vector.shape_cast %1397 : vector<1x8x8xf32> to vector<8x8xf32>
    %c146 = arith.constant 146 : index
    %1399 = memref.load %arg2[%c146] : memref<171xf32, #tpu.memory_space<smem>>
    %1400 = vector.broadcast %1399 : f32 to vector<8x8xf32>
    %1401 = arith.mulf %1398, %1400 : vector<8x8xf32>
    %1402 = arith.addf %1396, %1401 : vector<8x8xf32>
    %c67_431 = arith.constant 67 : index
    %c0_432 = arith.constant 0 : index
    %c0_433 = arith.constant 0 : index
    %1403 = vector.load %arg1[%c67_431, %c0_432, %c0_433] : memref<77x8x8xf32, #tpu.memory_space<vmem>>, vector<1x8x8xf32>
    %1404 = vector.shape_cast %1403 : vector<1x8x8xf32> to vector<8x8xf32>
    %c147 = arith.constant 147 : index
    %1405 = memref.load %arg2[%c147] : memref<171xf32, #tpu.memory_space<smem>>
    %1406 = vector.broadcast %1405 : f32 to vector<8x8xf32>
    %1407 = arith.mulf %1404, %1406 : vector<8x8xf32>
    %1408 = arith.addf %1402, %1407 : vector<8x8xf32>
    %c68_434 = arith.constant 68 : index
    %c0_435 = arith.constant 0 : index
    %c0_436 = arith.constant 0 : index
    %1409 = vector.load %arg1[%c68_434, %c0_435, %c0_436] : memref<77x8x8xf32, #tpu.memory_space<vmem>>, vector<1x8x8xf32>
    %1410 = vector.shape_cast %1409 : vector<1x8x8xf32> to vector<8x8xf32>
    %c148 = arith.constant 148 : index
    %1411 = memref.load %arg2[%c148] : memref<171xf32, #tpu.memory_space<smem>>
    %1412 = vector.broadcast %1411 : f32 to vector<8x8xf32>
    %1413 = arith.mulf %1410, %1412 : vector<8x8xf32>
    %1414 = arith.addf %1408, %1413 : vector<8x8xf32>
    %c69_437 = arith.constant 69 : index
    %c0_438 = arith.constant 0 : index
    %c0_439 = arith.constant 0 : index
    %1415 = vector.load %arg1[%c69_437, %c0_438, %c0_439] : memref<77x8x8xf32, #tpu.memory_space<vmem>>, vector<1x8x8xf32>
    %1416 = vector.shape_cast %1415 : vector<1x8x8xf32> to vector<8x8xf32>
    %c149 = arith.constant 149 : index
    %1417 = memref.load %arg2[%c149] : memref<171xf32, #tpu.memory_space<smem>>
    %1418 = vector.broadcast %1417 : f32 to vector<8x8xf32>
    %1419 = arith.mulf %1416, %1418 : vector<8x8xf32>
    %1420 = arith.addf %1414, %1419 : vector<8x8xf32>
    %c70_440 = arith.constant 70 : index
    %c0_441 = arith.constant 0 : index
    %c0_442 = arith.constant 0 : index
    %1421 = vector.load %arg1[%c70_440, %c0_441, %c0_442] : memref<77x8x8xf32, #tpu.memory_space<vmem>>, vector<1x8x8xf32>
    %1422 = vector.shape_cast %1421 : vector<1x8x8xf32> to vector<8x8xf32>
    %c150 = arith.constant 150 : index
    %1423 = memref.load %arg2[%c150] : memref<171xf32, #tpu.memory_space<smem>>
    %1424 = vector.broadcast %1423 : f32 to vector<8x8xf32>
    %1425 = arith.mulf %1422, %1424 : vector<8x8xf32>
    %1426 = arith.addf %1420, %1425 : vector<8x8xf32>
    %c72 = arith.constant 72 : index
    %c0_443 = arith.constant 0 : index
    %c0_444 = arith.constant 0 : index
    %1427 = vector.load %arg1[%c72, %c0_443, %c0_444] : memref<77x8x8xf32, #tpu.memory_space<vmem>>, vector<1x8x8xf32>
    %1428 = vector.shape_cast %1427 : vector<1x8x8xf32> to vector<8x8xf32>
    %c151 = arith.constant 151 : index
    %1429 = memref.load %arg2[%c151] : memref<171xf32, #tpu.memory_space<smem>>
    %1430 = vector.broadcast %1429 : f32 to vector<8x8xf32>
    %1431 = arith.mulf %1428, %1430 : vector<8x8xf32>
    %1432 = arith.addf %1426, %1431 : vector<8x8xf32>
    %c73 = arith.constant 73 : index
    %c0_445 = arith.constant 0 : index
    %c0_446 = arith.constant 0 : index
    %1433 = vector.load %arg1[%c73, %c0_445, %c0_446] : memref<77x8x8xf32, #tpu.memory_space<vmem>>, vector<1x8x8xf32>
    %1434 = vector.shape_cast %1433 : vector<1x8x8xf32> to vector<8x8xf32>
    %c152 = arith.constant 152 : index
    %1435 = memref.load %arg2[%c152] : memref<171xf32, #tpu.memory_space<smem>>
    %1436 = vector.broadcast %1435 : f32 to vector<8x8xf32>
    %1437 = arith.mulf %1434, %1436 : vector<8x8xf32>
    %1438 = arith.addf %1432, %1437 : vector<8x8xf32>
    %c74 = arith.constant 74 : index
    %c0_447 = arith.constant 0 : index
    %c0_448 = arith.constant 0 : index
    %1439 = vector.load %arg1[%c74, %c0_447, %c0_448] : memref<77x8x8xf32, #tpu.memory_space<vmem>>, vector<1x8x8xf32>
    %1440 = vector.shape_cast %1439 : vector<1x8x8xf32> to vector<8x8xf32>
    %c153 = arith.constant 153 : index
    %1441 = memref.load %arg2[%c153] : memref<171xf32, #tpu.memory_space<smem>>
    %1442 = vector.broadcast %1441 : f32 to vector<8x8xf32>
    %1443 = arith.mulf %1440, %1442 : vector<8x8xf32>
    %1444 = arith.addf %1438, %1443 : vector<8x8xf32>
    %c75 = arith.constant 75 : index
    %c0_449 = arith.constant 0 : index
    %c0_450 = arith.constant 0 : index
    %1445 = vector.load %arg1[%c75, %c0_449, %c0_450] : memref<77x8x8xf32, #tpu.memory_space<vmem>>, vector<1x8x8xf32>
    %1446 = vector.shape_cast %1445 : vector<1x8x8xf32> to vector<8x8xf32>
    %c154 = arith.constant 154 : index
    %1447 = memref.load %arg2[%c154] : memref<171xf32, #tpu.memory_space<smem>>
    %1448 = vector.broadcast %1447 : f32 to vector<8x8xf32>
    %1449 = arith.mulf %1446, %1448 : vector<8x8xf32>
    %1450 = arith.addf %1444, %1449 : vector<8x8xf32>
    %c2_451 = arith.constant 2 : index
    %c0_452 = arith.constant 0 : index
    %c0_453 = arith.constant 0 : index
    %1451 = vector.load %arg1[%c2_451, %c0_452, %c0_453] : memref<77x8x8xf32, #tpu.memory_space<vmem>>, vector<1x8x8xf32>
    %1452 = vector.shape_cast %1451 : vector<1x8x8xf32> to vector<8x8xf32>
    %c0_454 = arith.constant 0 : index
    %1453 = memref.load %arg2[%c0_454] : memref<171xf32, #tpu.memory_space<smem>>
    %1454 = vector.broadcast %1453 : f32 to vector<8x8xf32>
    %1455 = arith.mulf %1454, %1452 : vector<8x8xf32>
    %c1_455 = arith.constant 1 : index
    %1456 = memref.load %arg2[%c1_455] : memref<171xf32, #tpu.memory_space<smem>>
    %1457 = vector.broadcast %1456 : f32 to vector<8x8xf32>
    %1458 = arith.mulf %1457, %1450 : vector<8x8xf32>
    %1459 = arith.addf %1455, %1458 : vector<8x8xf32>
    %c16_456 = arith.constant 16 : index
    %1460 = memref.load %arg2[%c16_456] : memref<171xf32, #tpu.memory_space<smem>>
    %1461 = vector.broadcast %1460 : f32 to vector<8x8xf32>
    %1462 = arith.addf %1459, %1461 : vector<8x8xf32>
    %cst_457 = arith.constant 0.000000e+00 : f32
    %1463 = vector.broadcast %cst_457 : f32 to vector<8x8xf32>
    %1464 = arith.maximumf %1462, %1463 : vector<8x8xf32>
    %c2_458 = arith.constant 2 : index
    %1465 = memref.load %arg2[%c2_458] : memref<171xf32, #tpu.memory_space<smem>>
    %1466 = vector.broadcast %1465 : f32 to vector<8x8xf32>
    %1467 = arith.mulf %1466, %1452 : vector<8x8xf32>
    %c3_459 = arith.constant 3 : index
    %1468 = memref.load %arg2[%c3_459] : memref<171xf32, #tpu.memory_space<smem>>
    %1469 = vector.broadcast %1468 : f32 to vector<8x8xf32>
    %1470 = arith.mulf %1469, %1450 : vector<8x8xf32>
    %1471 = arith.addf %1467, %1470 : vector<8x8xf32>
    %c17_460 = arith.constant 17 : index
    %1472 = memref.load %arg2[%c17_460] : memref<171xf32, #tpu.memory_space<smem>>
    %1473 = vector.broadcast %1472 : f32 to vector<8x8xf32>
    %1474 = arith.addf %1471, %1473 : vector<8x8xf32>
    %cst_461 = arith.constant 0.000000e+00 : f32
    %1475 = vector.broadcast %cst_461 : f32 to vector<8x8xf32>
    %1476 = arith.maximumf %1474, %1475 : vector<8x8xf32>
    %c4_462 = arith.constant 4 : index
    %1477 = memref.load %arg2[%c4_462] : memref<171xf32, #tpu.memory_space<smem>>
    %1478 = vector.broadcast %1477 : f32 to vector<8x8xf32>
    %1479 = arith.mulf %1478, %1452 : vector<8x8xf32>
    %c5_463 = arith.constant 5 : index
    %1480 = memref.load %arg2[%c5_463] : memref<171xf32, #tpu.memory_space<smem>>
    %1481 = vector.broadcast %1480 : f32 to vector<8x8xf32>
    %1482 = arith.mulf %1481, %1450 : vector<8x8xf32>
    %1483 = arith.addf %1479, %1482 : vector<8x8xf32>
    %c18_464 = arith.constant 18 : index
    %1484 = memref.load %arg2[%c18_464] : memref<171xf32, #tpu.memory_space<smem>>
    %1485 = vector.broadcast %1484 : f32 to vector<8x8xf32>
    %1486 = arith.addf %1483, %1485 : vector<8x8xf32>
    %cst_465 = arith.constant 0.000000e+00 : f32
    %1487 = vector.broadcast %cst_465 : f32 to vector<8x8xf32>
    %1488 = arith.maximumf %1486, %1487 : vector<8x8xf32>
    %c6_466 = arith.constant 6 : index
    %1489 = memref.load %arg2[%c6_466] : memref<171xf32, #tpu.memory_space<smem>>
    %1490 = vector.broadcast %1489 : f32 to vector<8x8xf32>
    %1491 = arith.mulf %1490, %1452 : vector<8x8xf32>
    %c7_467 = arith.constant 7 : index
    %1492 = memref.load %arg2[%c7_467] : memref<171xf32, #tpu.memory_space<smem>>
    %1493 = vector.broadcast %1492 : f32 to vector<8x8xf32>
    %1494 = arith.mulf %1493, %1450 : vector<8x8xf32>
    %1495 = arith.addf %1491, %1494 : vector<8x8xf32>
    %c19_468 = arith.constant 19 : index
    %1496 = memref.load %arg2[%c19_468] : memref<171xf32, #tpu.memory_space<smem>>
    %1497 = vector.broadcast %1496 : f32 to vector<8x8xf32>
    %1498 = arith.addf %1495, %1497 : vector<8x8xf32>
    %cst_469 = arith.constant 0.000000e+00 : f32
    %1499 = vector.broadcast %cst_469 : f32 to vector<8x8xf32>
    %1500 = arith.maximumf %1498, %1499 : vector<8x8xf32>
    %c8_470 = arith.constant 8 : index
    %1501 = memref.load %arg2[%c8_470] : memref<171xf32, #tpu.memory_space<smem>>
    %1502 = vector.broadcast %1501 : f32 to vector<8x8xf32>
    %1503 = arith.mulf %1502, %1452 : vector<8x8xf32>
    %c9_471 = arith.constant 9 : index
    %1504 = memref.load %arg2[%c9_471] : memref<171xf32, #tpu.memory_space<smem>>
    %1505 = vector.broadcast %1504 : f32 to vector<8x8xf32>
    %1506 = arith.mulf %1505, %1450 : vector<8x8xf32>
    %1507 = arith.addf %1503, %1506 : vector<8x8xf32>
    %c20_472 = arith.constant 20 : index
    %1508 = memref.load %arg2[%c20_472] : memref<171xf32, #tpu.memory_space<smem>>
    %1509 = vector.broadcast %1508 : f32 to vector<8x8xf32>
    %1510 = arith.addf %1507, %1509 : vector<8x8xf32>
    %cst_473 = arith.constant 0.000000e+00 : f32
    %1511 = vector.broadcast %cst_473 : f32 to vector<8x8xf32>
    %1512 = arith.maximumf %1510, %1511 : vector<8x8xf32>
    %c10_474 = arith.constant 10 : index
    %1513 = memref.load %arg2[%c10_474] : memref<171xf32, #tpu.memory_space<smem>>
    %1514 = vector.broadcast %1513 : f32 to vector<8x8xf32>
    %1515 = arith.mulf %1514, %1452 : vector<8x8xf32>
    %c11_475 = arith.constant 11 : index
    %1516 = memref.load %arg2[%c11_475] : memref<171xf32, #tpu.memory_space<smem>>
    %1517 = vector.broadcast %1516 : f32 to vector<8x8xf32>
    %1518 = arith.mulf %1517, %1450 : vector<8x8xf32>
    %1519 = arith.addf %1515, %1518 : vector<8x8xf32>
    %c21_476 = arith.constant 21 : index
    %1520 = memref.load %arg2[%c21_476] : memref<171xf32, #tpu.memory_space<smem>>
    %1521 = vector.broadcast %1520 : f32 to vector<8x8xf32>
    %1522 = arith.addf %1519, %1521 : vector<8x8xf32>
    %cst_477 = arith.constant 0.000000e+00 : f32
    %1523 = vector.broadcast %cst_477 : f32 to vector<8x8xf32>
    %1524 = arith.maximumf %1522, %1523 : vector<8x8xf32>
    %c12_478 = arith.constant 12 : index
    %1525 = memref.load %arg2[%c12_478] : memref<171xf32, #tpu.memory_space<smem>>
    %1526 = vector.broadcast %1525 : f32 to vector<8x8xf32>
    %1527 = arith.mulf %1526, %1452 : vector<8x8xf32>
    %c13_479 = arith.constant 13 : index
    %1528 = memref.load %arg2[%c13_479] : memref<171xf32, #tpu.memory_space<smem>>
    %1529 = vector.broadcast %1528 : f32 to vector<8x8xf32>
    %1530 = arith.mulf %1529, %1450 : vector<8x8xf32>
    %1531 = arith.addf %1527, %1530 : vector<8x8xf32>
    %c22_480 = arith.constant 22 : index
    %1532 = memref.load %arg2[%c22_480] : memref<171xf32, #tpu.memory_space<smem>>
    %1533 = vector.broadcast %1532 : f32 to vector<8x8xf32>
    %1534 = arith.addf %1531, %1533 : vector<8x8xf32>
    %cst_481 = arith.constant 0.000000e+00 : f32
    %1535 = vector.broadcast %cst_481 : f32 to vector<8x8xf32>
    %1536 = arith.maximumf %1534, %1535 : vector<8x8xf32>
    %c14_482 = arith.constant 14 : index
    %1537 = memref.load %arg2[%c14_482] : memref<171xf32, #tpu.memory_space<smem>>
    %1538 = vector.broadcast %1537 : f32 to vector<8x8xf32>
    %1539 = arith.mulf %1538, %1452 : vector<8x8xf32>
    %c15_483 = arith.constant 15 : index
    %1540 = memref.load %arg2[%c15_483] : memref<171xf32, #tpu.memory_space<smem>>
    %1541 = vector.broadcast %1540 : f32 to vector<8x8xf32>
    %1542 = arith.mulf %1541, %1450 : vector<8x8xf32>
    %1543 = arith.addf %1539, %1542 : vector<8x8xf32>
    %c23_484 = arith.constant 23 : index
    %1544 = memref.load %arg2[%c23_484] : memref<171xf32, #tpu.memory_space<smem>>
    %1545 = vector.broadcast %1544 : f32 to vector<8x8xf32>
    %1546 = arith.addf %1543, %1545 : vector<8x8xf32>
    %cst_485 = arith.constant 0.000000e+00 : f32
    %1547 = vector.broadcast %cst_485 : f32 to vector<8x8xf32>
    %1548 = arith.maximumf %1546, %1547 : vector<8x8xf32>
    %c42_486 = arith.constant 42 : index
    %c0_487 = arith.constant 0 : index
    %c0_488 = arith.constant 0 : index
    %1549 = vector.load %arg1[%c42_486, %c0_487, %c0_488] : memref<77x8x8xf32, #tpu.memory_space<vmem>>, vector<1x8x8xf32>
    %1550 = vector.shape_cast %1549 : vector<1x8x8xf32> to vector<8x8xf32>
    %c46_489 = arith.constant 46 : index
    %c0_490 = arith.constant 0 : index
    %c0_491 = arith.constant 0 : index
    %1551 = vector.load %arg1[%c46_489, %c0_490, %c0_491] : memref<77x8x8xf32, #tpu.memory_space<vmem>>, vector<1x8x8xf32>
    %1552 = vector.shape_cast %1551 : vector<1x8x8xf32> to vector<8x8xf32>
    %c50_492 = arith.constant 50 : index
    %c0_493 = arith.constant 0 : index
    %c0_494 = arith.constant 0 : index
    %1553 = vector.load %arg1[%c50_492, %c0_493, %c0_494] : memref<77x8x8xf32, #tpu.memory_space<vmem>>, vector<1x8x8xf32>
    %1554 = vector.shape_cast %1553 : vector<1x8x8xf32> to vector<8x8xf32>
    %c96_495 = arith.constant 96 : index
    %1555 = memref.load %arg2[%c96_495] : memref<171xf32, #tpu.memory_space<smem>>
    %c6_496 = arith.constant 6 : index
    %c0_497 = arith.constant 0 : index
    %c0_498 = arith.constant 0 : index
    %1556 = vector.load %arg1[%c6_496, %c0_497, %c0_498] : memref<77x8x8xf32, #tpu.memory_space<vmem>>, vector<1x8x8xf32>
    %1557 = vector.shape_cast %1556 : vector<1x8x8xf32> to vector<8x8xf32>
    %1558 = vector.broadcast %1555 : f32 to vector<8x8xf32>
    %1559 = arith.addf %1558, %1557 : vector<8x8xf32>
    %c24_499 = arith.constant 24 : index
    %1560 = memref.load %arg2[%c24_499] : memref<171xf32, #tpu.memory_space<smem>>
    %1561 = vector.broadcast %1560 : f32 to vector<8x8xf32>
    %1562 = arith.mulf %1561, %1464 : vector<8x8xf32>
    %1563 = arith.addf %1559, %1562 : vector<8x8xf32>
    %c25_500 = arith.constant 25 : index
    %1564 = memref.load %arg2[%c25_500] : memref<171xf32, #tpu.memory_space<smem>>
    %1565 = vector.broadcast %1564 : f32 to vector<8x8xf32>
    %1566 = arith.mulf %1565, %1476 : vector<8x8xf32>
    %1567 = arith.addf %1563, %1566 : vector<8x8xf32>
    %c26_501 = arith.constant 26 : index
    %1568 = memref.load %arg2[%c26_501] : memref<171xf32, #tpu.memory_space<smem>>
    %1569 = vector.broadcast %1568 : f32 to vector<8x8xf32>
    %1570 = arith.mulf %1569, %1488 : vector<8x8xf32>
    %1571 = arith.addf %1567, %1570 : vector<8x8xf32>
    %c27_502 = arith.constant 27 : index
    %1572 = memref.load %arg2[%c27_502] : memref<171xf32, #tpu.memory_space<smem>>
    %1573 = vector.broadcast %1572 : f32 to vector<8x8xf32>
    %1574 = arith.mulf %1573, %1500 : vector<8x8xf32>
    %1575 = arith.addf %1571, %1574 : vector<8x8xf32>
    %c28_503 = arith.constant 28 : index
    %1576 = memref.load %arg2[%c28_503] : memref<171xf32, #tpu.memory_space<smem>>
    %1577 = vector.broadcast %1576 : f32 to vector<8x8xf32>
    %1578 = arith.mulf %1577, %1512 : vector<8x8xf32>
    %1579 = arith.addf %1575, %1578 : vector<8x8xf32>
    %c29_504 = arith.constant 29 : index
    %1580 = memref.load %arg2[%c29_504] : memref<171xf32, #tpu.memory_space<smem>>
    %1581 = vector.broadcast %1580 : f32 to vector<8x8xf32>
    %1582 = arith.mulf %1581, %1524 : vector<8x8xf32>
    %1583 = arith.addf %1579, %1582 : vector<8x8xf32>
    %c30_505 = arith.constant 30 : index
    %1584 = memref.load %arg2[%c30_505] : memref<171xf32, #tpu.memory_space<smem>>
    %1585 = vector.broadcast %1584 : f32 to vector<8x8xf32>
    %1586 = arith.mulf %1585, %1536 : vector<8x8xf32>
    %1587 = arith.addf %1583, %1586 : vector<8x8xf32>
    %c31_506 = arith.constant 31 : index
    %1588 = memref.load %arg2[%c31_506] : memref<171xf32, #tpu.memory_space<smem>>
    %1589 = vector.broadcast %1588 : f32 to vector<8x8xf32>
    %1590 = arith.mulf %1589, %1548 : vector<8x8xf32>
    %1591 = arith.addf %1587, %1590 : vector<8x8xf32>
    %c99_507 = arith.constant 99 : index
    %1592 = memref.load %arg2[%c99_507] : memref<171xf32, #tpu.memory_space<smem>>
    %c18_508 = arith.constant 18 : index
    %c0_509 = arith.constant 0 : index
    %c0_510 = arith.constant 0 : index
    %1593 = vector.load %arg1[%c18_508, %c0_509, %c0_510] : memref<77x8x8xf32, #tpu.memory_space<vmem>>, vector<1x8x8xf32>
    %1594 = vector.shape_cast %1593 : vector<1x8x8xf32> to vector<8x8xf32>
    %1595 = vector.broadcast %1592 : f32 to vector<8x8xf32>
    %1596 = arith.addf %1595, %1594 : vector<8x8xf32>
    %c48_511 = arith.constant 48 : index
    %1597 = memref.load %arg2[%c48_511] : memref<171xf32, #tpu.memory_space<smem>>
    %1598 = vector.broadcast %1597 : f32 to vector<8x8xf32>
    %1599 = arith.mulf %1598, %1464 : vector<8x8xf32>
    %1600 = arith.addf %1596, %1599 : vector<8x8xf32>
    %c49_512 = arith.constant 49 : index
    %1601 = memref.load %arg2[%c49_512] : memref<171xf32, #tpu.memory_space<smem>>
    %1602 = vector.broadcast %1601 : f32 to vector<8x8xf32>
    %1603 = arith.mulf %1602, %1476 : vector<8x8xf32>
    %1604 = arith.addf %1600, %1603 : vector<8x8xf32>
    %c50_513 = arith.constant 50 : index
    %1605 = memref.load %arg2[%c50_513] : memref<171xf32, #tpu.memory_space<smem>>
    %1606 = vector.broadcast %1605 : f32 to vector<8x8xf32>
    %1607 = arith.mulf %1606, %1488 : vector<8x8xf32>
    %1608 = arith.addf %1604, %1607 : vector<8x8xf32>
    %c51_514 = arith.constant 51 : index
    %1609 = memref.load %arg2[%c51_514] : memref<171xf32, #tpu.memory_space<smem>>
    %1610 = vector.broadcast %1609 : f32 to vector<8x8xf32>
    %1611 = arith.mulf %1610, %1500 : vector<8x8xf32>
    %1612 = arith.addf %1608, %1611 : vector<8x8xf32>
    %c52_515 = arith.constant 52 : index
    %1613 = memref.load %arg2[%c52_515] : memref<171xf32, #tpu.memory_space<smem>>
    %1614 = vector.broadcast %1613 : f32 to vector<8x8xf32>
    %1615 = arith.mulf %1614, %1512 : vector<8x8xf32>
    %1616 = arith.addf %1612, %1615 : vector<8x8xf32>
    %c53_516 = arith.constant 53 : index
    %1617 = memref.load %arg2[%c53_516] : memref<171xf32, #tpu.memory_space<smem>>
    %1618 = vector.broadcast %1617 : f32 to vector<8x8xf32>
    %1619 = arith.mulf %1618, %1524 : vector<8x8xf32>
    %1620 = arith.addf %1616, %1619 : vector<8x8xf32>
    %c54_517 = arith.constant 54 : index
    %1621 = memref.load %arg2[%c54_517] : memref<171xf32, #tpu.memory_space<smem>>
    %1622 = vector.broadcast %1621 : f32 to vector<8x8xf32>
    %1623 = arith.mulf %1622, %1536 : vector<8x8xf32>
    %1624 = arith.addf %1620, %1623 : vector<8x8xf32>
    %c55_518 = arith.constant 55 : index
    %1625 = memref.load %arg2[%c55_518] : memref<171xf32, #tpu.memory_space<smem>>
    %1626 = vector.broadcast %1625 : f32 to vector<8x8xf32>
    %1627 = arith.mulf %1626, %1548 : vector<8x8xf32>
    %1628 = arith.addf %1624, %1627 : vector<8x8xf32>
    %cst_519 = arith.constant -1.000000e+01 : f32
    %cst_520 = arith.constant 1.000000e+01 : f32
    %1629 = vector.broadcast %cst_519 : f32 to vector<8x8xf32>
    %1630 = arith.maximumf %1629, %1628 : vector<8x8xf32>
    %1631 = vector.broadcast %cst_520 : f32 to vector<8x8xf32>
    %1632 = arith.minimumf %1631, %1630 : vector<8x8xf32>
    %cst_521 = arith.constant 0.000000e+00 : f32
    %1633 = vector.broadcast %cst_521 : f32 to vector<8x8xf32>
    %1634 = arith.subf %1633, %1632 : vector<8x8xf32>
    %1635 = math.exp %1634 : vector<8x8xf32>
    %cst_522 = arith.constant 5.000000e-01 : f32
    %1636 = vector.broadcast %cst_522 : f32 to vector<8x8xf32>
    %1637 = arith.addf %1550, %1636 : vector<8x8xf32>
    %1638 = arith.subf %1637, %1591 : vector<8x8xf32>
    %cst_523 = arith.constant 5.000000e-01 : f32
    %1639 = vector.broadcast %cst_523 : f32 to vector<8x8xf32>
    %1640 = arith.subf %1550, %1639 : vector<8x8xf32>
    %1641 = arith.subf %1640, %1591 : vector<8x8xf32>
    %1642 = math.absf %1638 : vector<8x8xf32>
    %cst_524 = arith.constant 0.000000e+00 : f32
    %1643 = vector.broadcast %cst_524 : f32 to vector<8x8xf32>
    %1644 = arith.subf %1643, %1642 : vector<8x8xf32>
    %1645 = arith.mulf %1644, %1635 : vector<8x8xf32>
    %1646 = math.exp %1645 : vector<8x8xf32>
    %cst_525 = arith.constant 5.000000e-01 : f32
    %1647 = vector.broadcast %cst_525 : f32 to vector<8x8xf32>
    %1648 = arith.mulf %1647, %1646 : vector<8x8xf32>
    %1649 = math.absf %1641 : vector<8x8xf32>
    %cst_526 = arith.constant 0.000000e+00 : f32
    %1650 = vector.broadcast %cst_526 : f32 to vector<8x8xf32>
    %1651 = arith.subf %1650, %1649 : vector<8x8xf32>
    %1652 = arith.mulf %1651, %1635 : vector<8x8xf32>
    %1653 = math.exp %1652 : vector<8x8xf32>
    %cst_527 = arith.constant 5.000000e-01 : f32
    %1654 = vector.broadcast %cst_527 : f32 to vector<8x8xf32>
    %1655 = arith.mulf %1654, %1653 : vector<8x8xf32>
    %cst_528 = arith.constant 0.000000e+00 : f32
    %1656 = vector.broadcast %cst_528 : f32 to vector<8x8xf32>
    %1657 = arith.cmpf ole, %1638, %1656 : vector<8x8xf32>
    %cst_529 = arith.constant 1.000000e+00 : f32
    %1658 = vector.broadcast %cst_529 : f32 to vector<8x8xf32>
    %1659 = arith.subf %1658, %1648 : vector<8x8xf32>
    %1660 = arith.select %1657, %1648, %1659 : vector<8x8xi1>, vector<8x8xf32>
    %cst_530 = arith.constant 0.000000e+00 : f32
    %1661 = vector.broadcast %cst_530 : f32 to vector<8x8xf32>
    %1662 = arith.cmpf ole, %1641, %1661 : vector<8x8xf32>
    %cst_531 = arith.constant 1.000000e+00 : f32
    %1663 = vector.broadcast %cst_531 : f32 to vector<8x8xf32>
    %1664 = arith.subf %1663, %1655 : vector<8x8xf32>
    %1665 = arith.select %1662, %1655, %1664 : vector<8x8xi1>, vector<8x8xf32>
    %1666 = arith.subf %1660, %1665 : vector<8x8xf32>
    %cst_532 = arith.constant 3.05175781E-5 : f32
    %1667 = vector.broadcast %cst_532 : f32 to vector<8x8xf32>
    %1668 = arith.maximumf %1666, %1667 : vector<8x8xf32>
    %1669 = math.log %1668 : vector<8x8xf32>
    %cst_533 = arith.constant 2.000000e+00 : f32
    %1670 = math.log %cst_533 : f32
    %1671 = vector.broadcast %1670 : f32 to vector<8x8xf32>
    %1672 = arith.divf %1669, %1671 : vector<8x8xf32>
    %cst_534 = arith.constant 0.000000e+00 : f32
    %1673 = vector.broadcast %cst_534 : f32 to vector<8x8xf32>
    %1674 = arith.subf %1673, %1672 : vector<8x8xf32>
    %c97_535 = arith.constant 97 : index
    %1675 = memref.load %arg2[%c97_535] : memref<171xf32, #tpu.memory_space<smem>>
    %c10_536 = arith.constant 10 : index
    %c0_537 = arith.constant 0 : index
    %c0_538 = arith.constant 0 : index
    %1676 = vector.load %arg1[%c10_536, %c0_537, %c0_538] : memref<77x8x8xf32, #tpu.memory_space<vmem>>, vector<1x8x8xf32>
    %1677 = vector.shape_cast %1676 : vector<1x8x8xf32> to vector<8x8xf32>
    %1678 = vector.broadcast %1675 : f32 to vector<8x8xf32>
    %1679 = arith.addf %1678, %1677 : vector<8x8xf32>
    %c32_539 = arith.constant 32 : index
    %1680 = memref.load %arg2[%c32_539] : memref<171xf32, #tpu.memory_space<smem>>
    %1681 = vector.broadcast %1680 : f32 to vector<8x8xf32>
    %1682 = arith.mulf %1681, %1464 : vector<8x8xf32>
    %1683 = arith.addf %1679, %1682 : vector<8x8xf32>
    %c33_540 = arith.constant 33 : index
    %1684 = memref.load %arg2[%c33_540] : memref<171xf32, #tpu.memory_space<smem>>
    %1685 = vector.broadcast %1684 : f32 to vector<8x8xf32>
    %1686 = arith.mulf %1685, %1476 : vector<8x8xf32>
    %1687 = arith.addf %1683, %1686 : vector<8x8xf32>
    %c34_541 = arith.constant 34 : index
    %1688 = memref.load %arg2[%c34_541] : memref<171xf32, #tpu.memory_space<smem>>
    %1689 = vector.broadcast %1688 : f32 to vector<8x8xf32>
    %1690 = arith.mulf %1689, %1488 : vector<8x8xf32>
    %1691 = arith.addf %1687, %1690 : vector<8x8xf32>
    %c35_542 = arith.constant 35 : index
    %1692 = memref.load %arg2[%c35_542] : memref<171xf32, #tpu.memory_space<smem>>
    %1693 = vector.broadcast %1692 : f32 to vector<8x8xf32>
    %1694 = arith.mulf %1693, %1500 : vector<8x8xf32>
    %1695 = arith.addf %1691, %1694 : vector<8x8xf32>
    %c36_543 = arith.constant 36 : index
    %1696 = memref.load %arg2[%c36_543] : memref<171xf32, #tpu.memory_space<smem>>
    %1697 = vector.broadcast %1696 : f32 to vector<8x8xf32>
    %1698 = arith.mulf %1697, %1512 : vector<8x8xf32>
    %1699 = arith.addf %1695, %1698 : vector<8x8xf32>
    %c37_544 = arith.constant 37 : index
    %1700 = memref.load %arg2[%c37_544] : memref<171xf32, #tpu.memory_space<smem>>
    %1701 = vector.broadcast %1700 : f32 to vector<8x8xf32>
    %1702 = arith.mulf %1701, %1524 : vector<8x8xf32>
    %1703 = arith.addf %1699, %1702 : vector<8x8xf32>
    %c38_545 = arith.constant 38 : index
    %1704 = memref.load %arg2[%c38_545] : memref<171xf32, #tpu.memory_space<smem>>
    %1705 = vector.broadcast %1704 : f32 to vector<8x8xf32>
    %1706 = arith.mulf %1705, %1536 : vector<8x8xf32>
    %1707 = arith.addf %1703, %1706 : vector<8x8xf32>
    %c39_546 = arith.constant 39 : index
    %1708 = memref.load %arg2[%c39_546] : memref<171xf32, #tpu.memory_space<smem>>
    %1709 = vector.broadcast %1708 : f32 to vector<8x8xf32>
    %1710 = arith.mulf %1709, %1548 : vector<8x8xf32>
    %1711 = arith.addf %1707, %1710 : vector<8x8xf32>
    %c103_547 = arith.constant 103 : index
    %1712 = memref.load %arg2[%c103_547] : memref<171xf32, #tpu.memory_space<smem>>
    %c34_548 = arith.constant 34 : index
    %c0_549 = arith.constant 0 : index
    %c0_550 = arith.constant 0 : index
    %1713 = vector.load %arg1[%c34_548, %c0_549, %c0_550] : memref<77x8x8xf32, #tpu.memory_space<vmem>>, vector<1x8x8xf32>
    %1714 = vector.shape_cast %1713 : vector<1x8x8xf32> to vector<8x8xf32>
    %1715 = vector.broadcast %1712 : f32 to vector<8x8xf32>
    %1716 = arith.addf %1715, %1714 : vector<8x8xf32>
    %c80_551 = arith.constant 80 : index
    %1717 = memref.load %arg2[%c80_551] : memref<171xf32, #tpu.memory_space<smem>>
    %1718 = vector.broadcast %1717 : f32 to vector<8x8xf32>
    %1719 = arith.mulf %1718, %1464 : vector<8x8xf32>
    %1720 = arith.addf %1716, %1719 : vector<8x8xf32>
    %c81_552 = arith.constant 81 : index
    %1721 = memref.load %arg2[%c81_552] : memref<171xf32, #tpu.memory_space<smem>>
    %1722 = vector.broadcast %1721 : f32 to vector<8x8xf32>
    %1723 = arith.mulf %1722, %1476 : vector<8x8xf32>
    %1724 = arith.addf %1720, %1723 : vector<8x8xf32>
    %c82_553 = arith.constant 82 : index
    %1725 = memref.load %arg2[%c82_553] : memref<171xf32, #tpu.memory_space<smem>>
    %1726 = vector.broadcast %1725 : f32 to vector<8x8xf32>
    %1727 = arith.mulf %1726, %1488 : vector<8x8xf32>
    %1728 = arith.addf %1724, %1727 : vector<8x8xf32>
    %c83_554 = arith.constant 83 : index
    %1729 = memref.load %arg2[%c83_554] : memref<171xf32, #tpu.memory_space<smem>>
    %1730 = vector.broadcast %1729 : f32 to vector<8x8xf32>
    %1731 = arith.mulf %1730, %1500 : vector<8x8xf32>
    %1732 = arith.addf %1728, %1731 : vector<8x8xf32>
    %c84_555 = arith.constant 84 : index
    %1733 = memref.load %arg2[%c84_555] : memref<171xf32, #tpu.memory_space<smem>>
    %1734 = vector.broadcast %1733 : f32 to vector<8x8xf32>
    %1735 = arith.mulf %1734, %1512 : vector<8x8xf32>
    %1736 = arith.addf %1732, %1735 : vector<8x8xf32>
    %c85_556 = arith.constant 85 : index
    %1737 = memref.load %arg2[%c85_556] : memref<171xf32, #tpu.memory_space<smem>>
    %1738 = vector.broadcast %1737 : f32 to vector<8x8xf32>
    %1739 = arith.mulf %1738, %1524 : vector<8x8xf32>
    %1740 = arith.addf %1736, %1739 : vector<8x8xf32>
    %c86_557 = arith.constant 86 : index
    %1741 = memref.load %arg2[%c86_557] : memref<171xf32, #tpu.memory_space<smem>>
    %1742 = vector.broadcast %1741 : f32 to vector<8x8xf32>
    %1743 = arith.mulf %1742, %1536 : vector<8x8xf32>
    %1744 = arith.addf %1740, %1743 : vector<8x8xf32>
    %c87_558 = arith.constant 87 : index
    %1745 = memref.load %arg2[%c87_558] : memref<171xf32, #tpu.memory_space<smem>>
    %1746 = vector.broadcast %1745 : f32 to vector<8x8xf32>
    %1747 = arith.mulf %1746, %1548 : vector<8x8xf32>
    %1748 = arith.addf %1744, %1747 : vector<8x8xf32>
    %1749 = arith.subf %1550, %1591 : vector<8x8xf32>
    %1750 = arith.mulf %1748, %1749 : vector<8x8xf32>
    %1751 = arith.addf %1711, %1750 : vector<8x8xf32>
    %c100_559 = arith.constant 100 : index
    %1752 = memref.load %arg2[%c100_559] : memref<171xf32, #tpu.memory_space<smem>>
    %c22_560 = arith.constant 22 : index
    %c0_561 = arith.constant 0 : index
    %c0_562 = arith.constant 0 : index
    %1753 = vector.load %arg1[%c22_560, %c0_561, %c0_562] : memref<77x8x8xf32, #tpu.memory_space<vmem>>, vector<1x8x8xf32>
    %1754 = vector.shape_cast %1753 : vector<1x8x8xf32> to vector<8x8xf32>
    %1755 = vector.broadcast %1752 : f32 to vector<8x8xf32>
    %1756 = arith.addf %1755, %1754 : vector<8x8xf32>
    %c56_563 = arith.constant 56 : index
    %1757 = memref.load %arg2[%c56_563] : memref<171xf32, #tpu.memory_space<smem>>
    %1758 = vector.broadcast %1757 : f32 to vector<8x8xf32>
    %1759 = arith.mulf %1758, %1464 : vector<8x8xf32>
    %1760 = arith.addf %1756, %1759 : vector<8x8xf32>
    %c57_564 = arith.constant 57 : index
    %1761 = memref.load %arg2[%c57_564] : memref<171xf32, #tpu.memory_space<smem>>
    %1762 = vector.broadcast %1761 : f32 to vector<8x8xf32>
    %1763 = arith.mulf %1762, %1476 : vector<8x8xf32>
    %1764 = arith.addf %1760, %1763 : vector<8x8xf32>
    %c58_565 = arith.constant 58 : index
    %1765 = memref.load %arg2[%c58_565] : memref<171xf32, #tpu.memory_space<smem>>
    %1766 = vector.broadcast %1765 : f32 to vector<8x8xf32>
    %1767 = arith.mulf %1766, %1488 : vector<8x8xf32>
    %1768 = arith.addf %1764, %1767 : vector<8x8xf32>
    %c59_566 = arith.constant 59 : index
    %1769 = memref.load %arg2[%c59_566] : memref<171xf32, #tpu.memory_space<smem>>
    %1770 = vector.broadcast %1769 : f32 to vector<8x8xf32>
    %1771 = arith.mulf %1770, %1500 : vector<8x8xf32>
    %1772 = arith.addf %1768, %1771 : vector<8x8xf32>
    %c60_567 = arith.constant 60 : index
    %1773 = memref.load %arg2[%c60_567] : memref<171xf32, #tpu.memory_space<smem>>
    %1774 = vector.broadcast %1773 : f32 to vector<8x8xf32>
    %1775 = arith.mulf %1774, %1512 : vector<8x8xf32>
    %1776 = arith.addf %1772, %1775 : vector<8x8xf32>
    %c61_568 = arith.constant 61 : index
    %1777 = memref.load %arg2[%c61_568] : memref<171xf32, #tpu.memory_space<smem>>
    %1778 = vector.broadcast %1777 : f32 to vector<8x8xf32>
    %1779 = arith.mulf %1778, %1524 : vector<8x8xf32>
    %1780 = arith.addf %1776, %1779 : vector<8x8xf32>
    %c62_569 = arith.constant 62 : index
    %1781 = memref.load %arg2[%c62_569] : memref<171xf32, #tpu.memory_space<smem>>
    %1782 = vector.broadcast %1781 : f32 to vector<8x8xf32>
    %1783 = arith.mulf %1782, %1536 : vector<8x8xf32>
    %1784 = arith.addf %1780, %1783 : vector<8x8xf32>
    %c63_570 = arith.constant 63 : index
    %1785 = memref.load %arg2[%c63_570] : memref<171xf32, #tpu.memory_space<smem>>
    %1786 = vector.broadcast %1785 : f32 to vector<8x8xf32>
    %1787 = arith.mulf %1786, %1548 : vector<8x8xf32>
    %1788 = arith.addf %1784, %1787 : vector<8x8xf32>
    %cst_571 = arith.constant -1.000000e+01 : f32
    %cst_572 = arith.constant 1.000000e+01 : f32
    %1789 = vector.broadcast %cst_571 : f32 to vector<8x8xf32>
    %1790 = arith.maximumf %1789, %1788 : vector<8x8xf32>
    %1791 = vector.broadcast %cst_572 : f32 to vector<8x8xf32>
    %1792 = arith.minimumf %1791, %1790 : vector<8x8xf32>
    %cst_573 = arith.constant 0.000000e+00 : f32
    %1793 = vector.broadcast %cst_573 : f32 to vector<8x8xf32>
    %1794 = arith.subf %1793, %1792 : vector<8x8xf32>
    %1795 = math.exp %1794 : vector<8x8xf32>
    %cst_574 = arith.constant 5.000000e-01 : f32
    %1796 = vector.broadcast %cst_574 : f32 to vector<8x8xf32>
    %1797 = arith.addf %1552, %1796 : vector<8x8xf32>
    %1798 = arith.subf %1797, %1751 : vector<8x8xf32>
    %cst_575 = arith.constant 5.000000e-01 : f32
    %1799 = vector.broadcast %cst_575 : f32 to vector<8x8xf32>
    %1800 = arith.subf %1552, %1799 : vector<8x8xf32>
    %1801 = arith.subf %1800, %1751 : vector<8x8xf32>
    %1802 = math.absf %1798 : vector<8x8xf32>
    %cst_576 = arith.constant 0.000000e+00 : f32
    %1803 = vector.broadcast %cst_576 : f32 to vector<8x8xf32>
    %1804 = arith.subf %1803, %1802 : vector<8x8xf32>
    %1805 = arith.mulf %1804, %1795 : vector<8x8xf32>
    %1806 = math.exp %1805 : vector<8x8xf32>
    %cst_577 = arith.constant 5.000000e-01 : f32
    %1807 = vector.broadcast %cst_577 : f32 to vector<8x8xf32>
    %1808 = arith.mulf %1807, %1806 : vector<8x8xf32>
    %1809 = math.absf %1801 : vector<8x8xf32>
    %cst_578 = arith.constant 0.000000e+00 : f32
    %1810 = vector.broadcast %cst_578 : f32 to vector<8x8xf32>
    %1811 = arith.subf %1810, %1809 : vector<8x8xf32>
    %1812 = arith.mulf %1811, %1795 : vector<8x8xf32>
    %1813 = math.exp %1812 : vector<8x8xf32>
    %cst_579 = arith.constant 5.000000e-01 : f32
    %1814 = vector.broadcast %cst_579 : f32 to vector<8x8xf32>
    %1815 = arith.mulf %1814, %1813 : vector<8x8xf32>
    %cst_580 = arith.constant 0.000000e+00 : f32
    %1816 = vector.broadcast %cst_580 : f32 to vector<8x8xf32>
    %1817 = arith.cmpf ole, %1798, %1816 : vector<8x8xf32>
    %cst_581 = arith.constant 1.000000e+00 : f32
    %1818 = vector.broadcast %cst_581 : f32 to vector<8x8xf32>
    %1819 = arith.subf %1818, %1808 : vector<8x8xf32>
    %1820 = arith.select %1817, %1808, %1819 : vector<8x8xi1>, vector<8x8xf32>
    %cst_582 = arith.constant 0.000000e+00 : f32
    %1821 = vector.broadcast %cst_582 : f32 to vector<8x8xf32>
    %1822 = arith.cmpf ole, %1801, %1821 : vector<8x8xf32>
    %cst_583 = arith.constant 1.000000e+00 : f32
    %1823 = vector.broadcast %cst_583 : f32 to vector<8x8xf32>
    %1824 = arith.subf %1823, %1815 : vector<8x8xf32>
    %1825 = arith.select %1822, %1815, %1824 : vector<8x8xi1>, vector<8x8xf32>
    %1826 = arith.subf %1820, %1825 : vector<8x8xf32>
    %cst_584 = arith.constant 3.05175781E-5 : f32
    %1827 = vector.broadcast %cst_584 : f32 to vector<8x8xf32>
    %1828 = arith.maximumf %1826, %1827 : vector<8x8xf32>
    %1829 = math.log %1828 : vector<8x8xf32>
    %cst_585 = arith.constant 2.000000e+00 : f32
    %1830 = math.log %cst_585 : f32
    %1831 = vector.broadcast %1830 : f32 to vector<8x8xf32>
    %1832 = arith.divf %1829, %1831 : vector<8x8xf32>
    %cst_586 = arith.constant 0.000000e+00 : f32
    %1833 = vector.broadcast %cst_586 : f32 to vector<8x8xf32>
    %1834 = arith.subf %1833, %1832 : vector<8x8xf32>
    %1835 = arith.addf %1674, %1834 : vector<8x8xf32>
    %c98_587 = arith.constant 98 : index
    %1836 = memref.load %arg2[%c98_587] : memref<171xf32, #tpu.memory_space<smem>>
    %c14_588 = arith.constant 14 : index
    %c0_589 = arith.constant 0 : index
    %c0_590 = arith.constant 0 : index
    %1837 = vector.load %arg1[%c14_588, %c0_589, %c0_590] : memref<77x8x8xf32, #tpu.memory_space<vmem>>, vector<1x8x8xf32>
    %1838 = vector.shape_cast %1837 : vector<1x8x8xf32> to vector<8x8xf32>
    %1839 = vector.broadcast %1836 : f32 to vector<8x8xf32>
    %1840 = arith.addf %1839, %1838 : vector<8x8xf32>
    %c40_591 = arith.constant 40 : index
    %1841 = memref.load %arg2[%c40_591] : memref<171xf32, #tpu.memory_space<smem>>
    %1842 = vector.broadcast %1841 : f32 to vector<8x8xf32>
    %1843 = arith.mulf %1842, %1464 : vector<8x8xf32>
    %1844 = arith.addf %1840, %1843 : vector<8x8xf32>
    %c41_592 = arith.constant 41 : index
    %1845 = memref.load %arg2[%c41_592] : memref<171xf32, #tpu.memory_space<smem>>
    %1846 = vector.broadcast %1845 : f32 to vector<8x8xf32>
    %1847 = arith.mulf %1846, %1476 : vector<8x8xf32>
    %1848 = arith.addf %1844, %1847 : vector<8x8xf32>
    %c42_593 = arith.constant 42 : index
    %1849 = memref.load %arg2[%c42_593] : memref<171xf32, #tpu.memory_space<smem>>
    %1850 = vector.broadcast %1849 : f32 to vector<8x8xf32>
    %1851 = arith.mulf %1850, %1488 : vector<8x8xf32>
    %1852 = arith.addf %1848, %1851 : vector<8x8xf32>
    %c43_594 = arith.constant 43 : index
    %1853 = memref.load %arg2[%c43_594] : memref<171xf32, #tpu.memory_space<smem>>
    %1854 = vector.broadcast %1853 : f32 to vector<8x8xf32>
    %1855 = arith.mulf %1854, %1500 : vector<8x8xf32>
    %1856 = arith.addf %1852, %1855 : vector<8x8xf32>
    %c44_595 = arith.constant 44 : index
    %1857 = memref.load %arg2[%c44_595] : memref<171xf32, #tpu.memory_space<smem>>
    %1858 = vector.broadcast %1857 : f32 to vector<8x8xf32>
    %1859 = arith.mulf %1858, %1512 : vector<8x8xf32>
    %1860 = arith.addf %1856, %1859 : vector<8x8xf32>
    %c45_596 = arith.constant 45 : index
    %1861 = memref.load %arg2[%c45_596] : memref<171xf32, #tpu.memory_space<smem>>
    %1862 = vector.broadcast %1861 : f32 to vector<8x8xf32>
    %1863 = arith.mulf %1862, %1524 : vector<8x8xf32>
    %1864 = arith.addf %1860, %1863 : vector<8x8xf32>
    %c46_597 = arith.constant 46 : index
    %1865 = memref.load %arg2[%c46_597] : memref<171xf32, #tpu.memory_space<smem>>
    %1866 = vector.broadcast %1865 : f32 to vector<8x8xf32>
    %1867 = arith.mulf %1866, %1536 : vector<8x8xf32>
    %1868 = arith.addf %1864, %1867 : vector<8x8xf32>
    %c47_598 = arith.constant 47 : index
    %1869 = memref.load %arg2[%c47_598] : memref<171xf32, #tpu.memory_space<smem>>
    %1870 = vector.broadcast %1869 : f32 to vector<8x8xf32>
    %1871 = arith.mulf %1870, %1548 : vector<8x8xf32>
    %1872 = arith.addf %1868, %1871 : vector<8x8xf32>
    %c104_599 = arith.constant 104 : index
    %1873 = memref.load %arg2[%c104_599] : memref<171xf32, #tpu.memory_space<smem>>
    %c38_600 = arith.constant 38 : index
    %c0_601 = arith.constant 0 : index
    %c0_602 = arith.constant 0 : index
    %1874 = vector.load %arg1[%c38_600, %c0_601, %c0_602] : memref<77x8x8xf32, #tpu.memory_space<vmem>>, vector<1x8x8xf32>
    %1875 = vector.shape_cast %1874 : vector<1x8x8xf32> to vector<8x8xf32>
    %1876 = vector.broadcast %1873 : f32 to vector<8x8xf32>
    %1877 = arith.addf %1876, %1875 : vector<8x8xf32>
    %c88_603 = arith.constant 88 : index
    %1878 = memref.load %arg2[%c88_603] : memref<171xf32, #tpu.memory_space<smem>>
    %1879 = vector.broadcast %1878 : f32 to vector<8x8xf32>
    %1880 = arith.mulf %1879, %1464 : vector<8x8xf32>
    %1881 = arith.addf %1877, %1880 : vector<8x8xf32>
    %c89_604 = arith.constant 89 : index
    %1882 = memref.load %arg2[%c89_604] : memref<171xf32, #tpu.memory_space<smem>>
    %1883 = vector.broadcast %1882 : f32 to vector<8x8xf32>
    %1884 = arith.mulf %1883, %1476 : vector<8x8xf32>
    %1885 = arith.addf %1881, %1884 : vector<8x8xf32>
    %c90_605 = arith.constant 90 : index
    %1886 = memref.load %arg2[%c90_605] : memref<171xf32, #tpu.memory_space<smem>>
    %1887 = vector.broadcast %1886 : f32 to vector<8x8xf32>
    %1888 = arith.mulf %1887, %1488 : vector<8x8xf32>
    %1889 = arith.addf %1885, %1888 : vector<8x8xf32>
    %c91_606 = arith.constant 91 : index
    %1890 = memref.load %arg2[%c91_606] : memref<171xf32, #tpu.memory_space<smem>>
    %1891 = vector.broadcast %1890 : f32 to vector<8x8xf32>
    %1892 = arith.mulf %1891, %1500 : vector<8x8xf32>
    %1893 = arith.addf %1889, %1892 : vector<8x8xf32>
    %c92_607 = arith.constant 92 : index
    %1894 = memref.load %arg2[%c92_607] : memref<171xf32, #tpu.memory_space<smem>>
    %1895 = vector.broadcast %1894 : f32 to vector<8x8xf32>
    %1896 = arith.mulf %1895, %1512 : vector<8x8xf32>
    %1897 = arith.addf %1893, %1896 : vector<8x8xf32>
    %c93_608 = arith.constant 93 : index
    %1898 = memref.load %arg2[%c93_608] : memref<171xf32, #tpu.memory_space<smem>>
    %1899 = vector.broadcast %1898 : f32 to vector<8x8xf32>
    %1900 = arith.mulf %1899, %1524 : vector<8x8xf32>
    %1901 = arith.addf %1897, %1900 : vector<8x8xf32>
    %c94_609 = arith.constant 94 : index
    %1902 = memref.load %arg2[%c94_609] : memref<171xf32, #tpu.memory_space<smem>>
    %1903 = vector.broadcast %1902 : f32 to vector<8x8xf32>
    %1904 = arith.mulf %1903, %1536 : vector<8x8xf32>
    %1905 = arith.addf %1901, %1904 : vector<8x8xf32>
    %c95_610 = arith.constant 95 : index
    %1906 = memref.load %arg2[%c95_610] : memref<171xf32, #tpu.memory_space<smem>>
    %1907 = vector.broadcast %1906 : f32 to vector<8x8xf32>
    %1908 = arith.mulf %1907, %1548 : vector<8x8xf32>
    %1909 = arith.addf %1905, %1908 : vector<8x8xf32>
    %1910 = arith.subf %1552, %1751 : vector<8x8xf32>
    %1911 = arith.mulf %1909, %1910 : vector<8x8xf32>
    %1912 = arith.addf %1872, %1911 : vector<8x8xf32>
    %c101_611 = arith.constant 101 : index
    %1913 = memref.load %arg2[%c101_611] : memref<171xf32, #tpu.memory_space<smem>>
    %c26_612 = arith.constant 26 : index
    %c0_613 = arith.constant 0 : index
    %c0_614 = arith.constant 0 : index
    %1914 = vector.load %arg1[%c26_612, %c0_613, %c0_614] : memref<77x8x8xf32, #tpu.memory_space<vmem>>, vector<1x8x8xf32>
    %1915 = vector.shape_cast %1914 : vector<1x8x8xf32> to vector<8x8xf32>
    %1916 = vector.broadcast %1913 : f32 to vector<8x8xf32>
    %1917 = arith.addf %1916, %1915 : vector<8x8xf32>
    %c64_615 = arith.constant 64 : index
    %1918 = memref.load %arg2[%c64_615] : memref<171xf32, #tpu.memory_space<smem>>
    %1919 = vector.broadcast %1918 : f32 to vector<8x8xf32>
    %1920 = arith.mulf %1919, %1464 : vector<8x8xf32>
    %1921 = arith.addf %1917, %1920 : vector<8x8xf32>
    %c65_616 = arith.constant 65 : index
    %1922 = memref.load %arg2[%c65_616] : memref<171xf32, #tpu.memory_space<smem>>
    %1923 = vector.broadcast %1922 : f32 to vector<8x8xf32>
    %1924 = arith.mulf %1923, %1476 : vector<8x8xf32>
    %1925 = arith.addf %1921, %1924 : vector<8x8xf32>
    %c66_617 = arith.constant 66 : index
    %1926 = memref.load %arg2[%c66_617] : memref<171xf32, #tpu.memory_space<smem>>
    %1927 = vector.broadcast %1926 : f32 to vector<8x8xf32>
    %1928 = arith.mulf %1927, %1488 : vector<8x8xf32>
    %1929 = arith.addf %1925, %1928 : vector<8x8xf32>
    %c67_618 = arith.constant 67 : index
    %1930 = memref.load %arg2[%c67_618] : memref<171xf32, #tpu.memory_space<smem>>
    %1931 = vector.broadcast %1930 : f32 to vector<8x8xf32>
    %1932 = arith.mulf %1931, %1500 : vector<8x8xf32>
    %1933 = arith.addf %1929, %1932 : vector<8x8xf32>
    %c68_619 = arith.constant 68 : index
    %1934 = memref.load %arg2[%c68_619] : memref<171xf32, #tpu.memory_space<smem>>
    %1935 = vector.broadcast %1934 : f32 to vector<8x8xf32>
    %1936 = arith.mulf %1935, %1512 : vector<8x8xf32>
    %1937 = arith.addf %1933, %1936 : vector<8x8xf32>
    %c69_620 = arith.constant 69 : index
    %1938 = memref.load %arg2[%c69_620] : memref<171xf32, #tpu.memory_space<smem>>
    %1939 = vector.broadcast %1938 : f32 to vector<8x8xf32>
    %1940 = arith.mulf %1939, %1524 : vector<8x8xf32>
    %1941 = arith.addf %1937, %1940 : vector<8x8xf32>
    %c70_621 = arith.constant 70 : index
    %1942 = memref.load %arg2[%c70_621] : memref<171xf32, #tpu.memory_space<smem>>
    %1943 = vector.broadcast %1942 : f32 to vector<8x8xf32>
    %1944 = arith.mulf %1943, %1536 : vector<8x8xf32>
    %1945 = arith.addf %1941, %1944 : vector<8x8xf32>
    %c71_622 = arith.constant 71 : index
    %1946 = memref.load %arg2[%c71_622] : memref<171xf32, #tpu.memory_space<smem>>
    %1947 = vector.broadcast %1946 : f32 to vector<8x8xf32>
    %1948 = arith.mulf %1947, %1548 : vector<8x8xf32>
    %1949 = arith.addf %1945, %1948 : vector<8x8xf32>
    %cst_623 = arith.constant -1.000000e+01 : f32
    %cst_624 = arith.constant 1.000000e+01 : f32
    %1950 = vector.broadcast %cst_623 : f32 to vector<8x8xf32>
    %1951 = arith.maximumf %1950, %1949 : vector<8x8xf32>
    %1952 = vector.broadcast %cst_624 : f32 to vector<8x8xf32>
    %1953 = arith.minimumf %1952, %1951 : vector<8x8xf32>
    %cst_625 = arith.constant 0.000000e+00 : f32
    %1954 = vector.broadcast %cst_625 : f32 to vector<8x8xf32>
    %1955 = arith.subf %1954, %1953 : vector<8x8xf32>
    %1956 = math.exp %1955 : vector<8x8xf32>
    %cst_626 = arith.constant 5.000000e-01 : f32
    %1957 = vector.broadcast %cst_626 : f32 to vector<8x8xf32>
    %1958 = arith.addf %1554, %1957 : vector<8x8xf32>
    %1959 = arith.subf %1958, %1912 : vector<8x8xf32>
    %cst_627 = arith.constant 5.000000e-01 : f32
    %1960 = vector.broadcast %cst_627 : f32 to vector<8x8xf32>
    %1961 = arith.subf %1554, %1960 : vector<8x8xf32>
    %1962 = arith.subf %1961, %1912 : vector<8x8xf32>
    %1963 = math.absf %1959 : vector<8x8xf32>
    %cst_628 = arith.constant 0.000000e+00 : f32
    %1964 = vector.broadcast %cst_628 : f32 to vector<8x8xf32>
    %1965 = arith.subf %1964, %1963 : vector<8x8xf32>
    %1966 = arith.mulf %1965, %1956 : vector<8x8xf32>
    %1967 = math.exp %1966 : vector<8x8xf32>
    %cst_629 = arith.constant 5.000000e-01 : f32
    %1968 = vector.broadcast %cst_629 : f32 to vector<8x8xf32>
    %1969 = arith.mulf %1968, %1967 : vector<8x8xf32>
    %1970 = math.absf %1962 : vector<8x8xf32>
    %cst_630 = arith.constant 0.000000e+00 : f32
    %1971 = vector.broadcast %cst_630 : f32 to vector<8x8xf32>
    %1972 = arith.subf %1971, %1970 : vector<8x8xf32>
    %1973 = arith.mulf %1972, %1956 : vector<8x8xf32>
    %1974 = math.exp %1973 : vector<8x8xf32>
    %cst_631 = arith.constant 5.000000e-01 : f32
    %1975 = vector.broadcast %cst_631 : f32 to vector<8x8xf32>
    %1976 = arith.mulf %1975, %1974 : vector<8x8xf32>
    %cst_632 = arith.constant 0.000000e+00 : f32
    %1977 = vector.broadcast %cst_632 : f32 to vector<8x8xf32>
    %1978 = arith.cmpf ole, %1959, %1977 : vector<8x8xf32>
    %cst_633 = arith.constant 1.000000e+00 : f32
    %1979 = vector.broadcast %cst_633 : f32 to vector<8x8xf32>
    %1980 = arith.subf %1979, %1969 : vector<8x8xf32>
    %1981 = arith.select %1978, %1969, %1980 : vector<8x8xi1>, vector<8x8xf32>
    %cst_634 = arith.constant 0.000000e+00 : f32
    %1982 = vector.broadcast %cst_634 : f32 to vector<8x8xf32>
    %1983 = arith.cmpf ole, %1962, %1982 : vector<8x8xf32>
    %cst_635 = arith.constant 1.000000e+00 : f32
    %1984 = vector.broadcast %cst_635 : f32 to vector<8x8xf32>
    %1985 = arith.subf %1984, %1976 : vector<8x8xf32>
    %1986 = arith.select %1983, %1976, %1985 : vector<8x8xi1>, vector<8x8xf32>
    %1987 = arith.subf %1981, %1986 : vector<8x8xf32>
    %cst_636 = arith.constant 3.05175781E-5 : f32
    %1988 = vector.broadcast %cst_636 : f32 to vector<8x8xf32>
    %1989 = arith.maximumf %1987, %1988 : vector<8x8xf32>
    %1990 = math.log %1989 : vector<8x8xf32>
    %cst_637 = arith.constant 2.000000e+00 : f32
    %1991 = math.log %cst_637 : f32
    %1992 = vector.broadcast %1991 : f32 to vector<8x8xf32>
    %1993 = arith.divf %1990, %1992 : vector<8x8xf32>
    %cst_638 = arith.constant 0.000000e+00 : f32
    %1994 = vector.broadcast %cst_638 : f32 to vector<8x8xf32>
    %1995 = arith.subf %1994, %1993 : vector<8x8xf32>
    %1996 = arith.addf %1835, %1995 : vector<8x8xf32>
    %1997 = arith.addf %1355, %1996 : vector<8x8xf32>
    %c58_639 = arith.constant 58 : index
    %c0_640 = arith.constant 0 : index
    %c0_641 = arith.constant 0 : index
    %1998 = vector.load %arg1[%c58_639, %c0_640, %c0_641] : memref<77x8x8xf32, #tpu.memory_space<vmem>>, vector<1x8x8xf32>
    %1999 = vector.shape_cast %1998 : vector<1x8x8xf32> to vector<8x8xf32>
    %c155 = arith.constant 155 : index
    %2000 = memref.load %arg2[%c155] : memref<171xf32, #tpu.memory_space<smem>>
    %2001 = vector.broadcast %2000 : f32 to vector<8x8xf32>
    %2002 = arith.mulf %1999, %2001 : vector<8x8xf32>
    %c59_642 = arith.constant 59 : index
    %c0_643 = arith.constant 0 : index
    %c0_644 = arith.constant 0 : index
    %2003 = vector.load %arg1[%c59_642, %c0_643, %c0_644] : memref<77x8x8xf32, #tpu.memory_space<vmem>>, vector<1x8x8xf32>
    %2004 = vector.shape_cast %2003 : vector<1x8x8xf32> to vector<8x8xf32>
    %c156 = arith.constant 156 : index
    %2005 = memref.load %arg2[%c156] : memref<171xf32, #tpu.memory_space<smem>>
    %2006 = vector.broadcast %2005 : f32 to vector<8x8xf32>
    %2007 = arith.mulf %2004, %2006 : vector<8x8xf32>
    %2008 = arith.addf %2002, %2007 : vector<8x8xf32>
    %c60_645 = arith.constant 60 : index
    %c0_646 = arith.constant 0 : index
    %c0_647 = arith.constant 0 : index
    %2009 = vector.load %arg1[%c60_645, %c0_646, %c0_647] : memref<77x8x8xf32, #tpu.memory_space<vmem>>, vector<1x8x8xf32>
    %2010 = vector.shape_cast %2009 : vector<1x8x8xf32> to vector<8x8xf32>
    %c157 = arith.constant 157 : index
    %2011 = memref.load %arg2[%c157] : memref<171xf32, #tpu.memory_space<smem>>
    %2012 = vector.broadcast %2011 : f32 to vector<8x8xf32>
    %2013 = arith.mulf %2010, %2012 : vector<8x8xf32>
    %2014 = arith.addf %2008, %2013 : vector<8x8xf32>
    %c61_648 = arith.constant 61 : index
    %c0_649 = arith.constant 0 : index
    %c0_650 = arith.constant 0 : index
    %2015 = vector.load %arg1[%c61_648, %c0_649, %c0_650] : memref<77x8x8xf32, #tpu.memory_space<vmem>>, vector<1x8x8xf32>
    %2016 = vector.shape_cast %2015 : vector<1x8x8xf32> to vector<8x8xf32>
    %c158 = arith.constant 158 : index
    %2017 = memref.load %arg2[%c158] : memref<171xf32, #tpu.memory_space<smem>>
    %2018 = vector.broadcast %2017 : f32 to vector<8x8xf32>
    %2019 = arith.mulf %2016, %2018 : vector<8x8xf32>
    %2020 = arith.addf %2014, %2019 : vector<8x8xf32>
    %c63_651 = arith.constant 63 : index
    %c0_652 = arith.constant 0 : index
    %c0_653 = arith.constant 0 : index
    %2021 = vector.load %arg1[%c63_651, %c0_652, %c0_653] : memref<77x8x8xf32, #tpu.memory_space<vmem>>, vector<1x8x8xf32>
    %2022 = vector.shape_cast %2021 : vector<1x8x8xf32> to vector<8x8xf32>
    %c159 = arith.constant 159 : index
    %2023 = memref.load %arg2[%c159] : memref<171xf32, #tpu.memory_space<smem>>
    %2024 = vector.broadcast %2023 : f32 to vector<8x8xf32>
    %2025 = arith.mulf %2022, %2024 : vector<8x8xf32>
    %2026 = arith.addf %2020, %2025 : vector<8x8xf32>
    %c64_654 = arith.constant 64 : index
    %c0_655 = arith.constant 0 : index
    %c0_656 = arith.constant 0 : index
    %2027 = vector.load %arg1[%c64_654, %c0_655, %c0_656] : memref<77x8x8xf32, #tpu.memory_space<vmem>>, vector<1x8x8xf32>
    %2028 = vector.shape_cast %2027 : vector<1x8x8xf32> to vector<8x8xf32>
    %c160 = arith.constant 160 : index
    %2029 = memref.load %arg2[%c160] : memref<171xf32, #tpu.memory_space<smem>>
    %2030 = vector.broadcast %2029 : f32 to vector<8x8xf32>
    %2031 = arith.mulf %2028, %2030 : vector<8x8xf32>
    %2032 = arith.addf %2026, %2031 : vector<8x8xf32>
    %c65_657 = arith.constant 65 : index
    %c0_658 = arith.constant 0 : index
    %c0_659 = arith.constant 0 : index
    %2033 = vector.load %arg1[%c65_657, %c0_658, %c0_659] : memref<77x8x8xf32, #tpu.memory_space<vmem>>, vector<1x8x8xf32>
    %2034 = vector.shape_cast %2033 : vector<1x8x8xf32> to vector<8x8xf32>
    %c161 = arith.constant 161 : index
    %2035 = memref.load %arg2[%c161] : memref<171xf32, #tpu.memory_space<smem>>
    %2036 = vector.broadcast %2035 : f32 to vector<8x8xf32>
    %2037 = arith.mulf %2034, %2036 : vector<8x8xf32>
    %2038 = arith.addf %2032, %2037 : vector<8x8xf32>
    %c66_660 = arith.constant 66 : index
    %c0_661 = arith.constant 0 : index
    %c0_662 = arith.constant 0 : index
    %2039 = vector.load %arg1[%c66_660, %c0_661, %c0_662] : memref<77x8x8xf32, #tpu.memory_space<vmem>>, vector<1x8x8xf32>
    %2040 = vector.shape_cast %2039 : vector<1x8x8xf32> to vector<8x8xf32>
    %c162 = arith.constant 162 : index
    %2041 = memref.load %arg2[%c162] : memref<171xf32, #tpu.memory_space<smem>>
    %2042 = vector.broadcast %2041 : f32 to vector<8x8xf32>
    %2043 = arith.mulf %2040, %2042 : vector<8x8xf32>
    %2044 = arith.addf %2038, %2043 : vector<8x8xf32>
    %c68_663 = arith.constant 68 : index
    %c0_664 = arith.constant 0 : index
    %c0_665 = arith.constant 0 : index
    %2045 = vector.load %arg1[%c68_663, %c0_664, %c0_665] : memref<77x8x8xf32, #tpu.memory_space<vmem>>, vector<1x8x8xf32>
    %2046 = vector.shape_cast %2045 : vector<1x8x8xf32> to vector<8x8xf32>
    %c163 = arith.constant 163 : index
    %2047 = memref.load %arg2[%c163] : memref<171xf32, #tpu.memory_space<smem>>
    %2048 = vector.broadcast %2047 : f32 to vector<8x8xf32>
    %2049 = arith.mulf %2046, %2048 : vector<8x8xf32>
    %2050 = arith.addf %2044, %2049 : vector<8x8xf32>
    %c69_666 = arith.constant 69 : index
    %c0_667 = arith.constant 0 : index
    %c0_668 = arith.constant 0 : index
    %2051 = vector.load %arg1[%c69_666, %c0_667, %c0_668] : memref<77x8x8xf32, #tpu.memory_space<vmem>>, vector<1x8x8xf32>
    %2052 = vector.shape_cast %2051 : vector<1x8x8xf32> to vector<8x8xf32>
    %c164 = arith.constant 164 : index
    %2053 = memref.load %arg2[%c164] : memref<171xf32, #tpu.memory_space<smem>>
    %2054 = vector.broadcast %2053 : f32 to vector<8x8xf32>
    %2055 = arith.mulf %2052, %2054 : vector<8x8xf32>
    %2056 = arith.addf %2050, %2055 : vector<8x8xf32>
    %c70_669 = arith.constant 70 : index
    %c0_670 = arith.constant 0 : index
    %c0_671 = arith.constant 0 : index
    %2057 = vector.load %arg1[%c70_669, %c0_670, %c0_671] : memref<77x8x8xf32, #tpu.memory_space<vmem>>, vector<1x8x8xf32>
    %2058 = vector.shape_cast %2057 : vector<1x8x8xf32> to vector<8x8xf32>
    %c165 = arith.constant 165 : index
    %2059 = memref.load %arg2[%c165] : memref<171xf32, #tpu.memory_space<smem>>
    %2060 = vector.broadcast %2059 : f32 to vector<8x8xf32>
    %2061 = arith.mulf %2058, %2060 : vector<8x8xf32>
    %2062 = arith.addf %2056, %2061 : vector<8x8xf32>
    %c71_672 = arith.constant 71 : index
    %c0_673 = arith.constant 0 : index
    %c0_674 = arith.constant 0 : index
    %2063 = vector.load %arg1[%c71_672, %c0_673, %c0_674] : memref<77x8x8xf32, #tpu.memory_space<vmem>>, vector<1x8x8xf32>
    %2064 = vector.shape_cast %2063 : vector<1x8x8xf32> to vector<8x8xf32>
    %c166 = arith.constant 166 : index
    %2065 = memref.load %arg2[%c166] : memref<171xf32, #tpu.memory_space<smem>>
    %2066 = vector.broadcast %2065 : f32 to vector<8x8xf32>
    %2067 = arith.mulf %2064, %2066 : vector<8x8xf32>
    %2068 = arith.addf %2062, %2067 : vector<8x8xf32>
    %c73_675 = arith.constant 73 : index
    %c0_676 = arith.constant 0 : index
    %c0_677 = arith.constant 0 : index
    %2069 = vector.load %arg1[%c73_675, %c0_676, %c0_677] : memref<77x8x8xf32, #tpu.memory_space<vmem>>, vector<1x8x8xf32>
    %2070 = vector.shape_cast %2069 : vector<1x8x8xf32> to vector<8x8xf32>
    %c167 = arith.constant 167 : index
    %2071 = memref.load %arg2[%c167] : memref<171xf32, #tpu.memory_space<smem>>
    %2072 = vector.broadcast %2071 : f32 to vector<8x8xf32>
    %2073 = arith.mulf %2070, %2072 : vector<8x8xf32>
    %2074 = arith.addf %2068, %2073 : vector<8x8xf32>
    %c74_678 = arith.constant 74 : index
    %c0_679 = arith.constant 0 : index
    %c0_680 = arith.constant 0 : index
    %2075 = vector.load %arg1[%c74_678, %c0_679, %c0_680] : memref<77x8x8xf32, #tpu.memory_space<vmem>>, vector<1x8x8xf32>
    %2076 = vector.shape_cast %2075 : vector<1x8x8xf32> to vector<8x8xf32>
    %c168 = arith.constant 168 : index
    %2077 = memref.load %arg2[%c168] : memref<171xf32, #tpu.memory_space<smem>>
    %2078 = vector.broadcast %2077 : f32 to vector<8x8xf32>
    %2079 = arith.mulf %2076, %2078 : vector<8x8xf32>
    %2080 = arith.addf %2074, %2079 : vector<8x8xf32>
    %c75_681 = arith.constant 75 : index
    %c0_682 = arith.constant 0 : index
    %c0_683 = arith.constant 0 : index
    %2081 = vector.load %arg1[%c75_681, %c0_682, %c0_683] : memref<77x8x8xf32, #tpu.memory_space<vmem>>, vector<1x8x8xf32>
    %2082 = vector.shape_cast %2081 : vector<1x8x8xf32> to vector<8x8xf32>
    %c169 = arith.constant 169 : index
    %2083 = memref.load %arg2[%c169] : memref<171xf32, #tpu.memory_space<smem>>
    %2084 = vector.broadcast %2083 : f32 to vector<8x8xf32>
    %2085 = arith.mulf %2082, %2084 : vector<8x8xf32>
    %2086 = arith.addf %2080, %2085 : vector<8x8xf32>
    %c76 = arith.constant 76 : index
    %c0_684 = arith.constant 0 : index
    %c0_685 = arith.constant 0 : index
    %2087 = vector.load %arg1[%c76, %c0_684, %c0_685] : memref<77x8x8xf32, #tpu.memory_space<vmem>>, vector<1x8x8xf32>
    %2088 = vector.shape_cast %2087 : vector<1x8x8xf32> to vector<8x8xf32>
    %c170 = arith.constant 170 : index
    %2089 = memref.load %arg2[%c170] : memref<171xf32, #tpu.memory_space<smem>>
    %2090 = vector.broadcast %2089 : f32 to vector<8x8xf32>
    %2091 = arith.mulf %2088, %2090 : vector<8x8xf32>
    %2092 = arith.addf %2086, %2091 : vector<8x8xf32>
    %c3_686 = arith.constant 3 : index
    %c0_687 = arith.constant 0 : index
    %c0_688 = arith.constant 0 : index
    %2093 = vector.load %arg1[%c3_686, %c0_687, %c0_688] : memref<77x8x8xf32, #tpu.memory_space<vmem>>, vector<1x8x8xf32>
    %2094 = vector.shape_cast %2093 : vector<1x8x8xf32> to vector<8x8xf32>
    %c0_689 = arith.constant 0 : index
    %2095 = memref.load %arg2[%c0_689] : memref<171xf32, #tpu.memory_space<smem>>
    %2096 = vector.broadcast %2095 : f32 to vector<8x8xf32>
    %2097 = arith.mulf %2096, %2094 : vector<8x8xf32>
    %c1_690 = arith.constant 1 : index
    %2098 = memref.load %arg2[%c1_690] : memref<171xf32, #tpu.memory_space<smem>>
    %2099 = vector.broadcast %2098 : f32 to vector<8x8xf32>
    %2100 = arith.mulf %2099, %2092 : vector<8x8xf32>
    %2101 = arith.addf %2097, %2100 : vector<8x8xf32>
    %c16_691 = arith.constant 16 : index
    %2102 = memref.load %arg2[%c16_691] : memref<171xf32, #tpu.memory_space<smem>>
    %2103 = vector.broadcast %2102 : f32 to vector<8x8xf32>
    %2104 = arith.addf %2101, %2103 : vector<8x8xf32>
    %cst_692 = arith.constant 0.000000e+00 : f32
    %2105 = vector.broadcast %cst_692 : f32 to vector<8x8xf32>
    %2106 = arith.maximumf %2104, %2105 : vector<8x8xf32>
    %c2_693 = arith.constant 2 : index
    %2107 = memref.load %arg2[%c2_693] : memref<171xf32, #tpu.memory_space<smem>>
    %2108 = vector.broadcast %2107 : f32 to vector<8x8xf32>
    %2109 = arith.mulf %2108, %2094 : vector<8x8xf32>
    %c3_694 = arith.constant 3 : index
    %2110 = memref.load %arg2[%c3_694] : memref<171xf32, #tpu.memory_space<smem>>
    %2111 = vector.broadcast %2110 : f32 to vector<8x8xf32>
    %2112 = arith.mulf %2111, %2092 : vector<8x8xf32>
    %2113 = arith.addf %2109, %2112 : vector<8x8xf32>
    %c17_695 = arith.constant 17 : index
    %2114 = memref.load %arg2[%c17_695] : memref<171xf32, #tpu.memory_space<smem>>
    %2115 = vector.broadcast %2114 : f32 to vector<8x8xf32>
    %2116 = arith.addf %2113, %2115 : vector<8x8xf32>
    %cst_696 = arith.constant 0.000000e+00 : f32
    %2117 = vector.broadcast %cst_696 : f32 to vector<8x8xf32>
    %2118 = arith.maximumf %2116, %2117 : vector<8x8xf32>
    %c4_697 = arith.constant 4 : index
    %2119 = memref.load %arg2[%c4_697] : memref<171xf32, #tpu.memory_space<smem>>
    %2120 = vector.broadcast %2119 : f32 to vector<8x8xf32>
    %2121 = arith.mulf %2120, %2094 : vector<8x8xf32>
    %c5_698 = arith.constant 5 : index
    %2122 = memref.load %arg2[%c5_698] : memref<171xf32, #tpu.memory_space<smem>>
    %2123 = vector.broadcast %2122 : f32 to vector<8x8xf32>
    %2124 = arith.mulf %2123, %2092 : vector<8x8xf32>
    %2125 = arith.addf %2121, %2124 : vector<8x8xf32>
    %c18_699 = arith.constant 18 : index
    %2126 = memref.load %arg2[%c18_699] : memref<171xf32, #tpu.memory_space<smem>>
    %2127 = vector.broadcast %2126 : f32 to vector<8x8xf32>
    %2128 = arith.addf %2125, %2127 : vector<8x8xf32>
    %cst_700 = arith.constant 0.000000e+00 : f32
    %2129 = vector.broadcast %cst_700 : f32 to vector<8x8xf32>
    %2130 = arith.maximumf %2128, %2129 : vector<8x8xf32>
    %c6_701 = arith.constant 6 : index
    %2131 = memref.load %arg2[%c6_701] : memref<171xf32, #tpu.memory_space<smem>>
    %2132 = vector.broadcast %2131 : f32 to vector<8x8xf32>
    %2133 = arith.mulf %2132, %2094 : vector<8x8xf32>
    %c7_702 = arith.constant 7 : index
    %2134 = memref.load %arg2[%c7_702] : memref<171xf32, #tpu.memory_space<smem>>
    %2135 = vector.broadcast %2134 : f32 to vector<8x8xf32>
    %2136 = arith.mulf %2135, %2092 : vector<8x8xf32>
    %2137 = arith.addf %2133, %2136 : vector<8x8xf32>
    %c19_703 = arith.constant 19 : index
    %2138 = memref.load %arg2[%c19_703] : memref<171xf32, #tpu.memory_space<smem>>
    %2139 = vector.broadcast %2138 : f32 to vector<8x8xf32>
    %2140 = arith.addf %2137, %2139 : vector<8x8xf32>
    %cst_704 = arith.constant 0.000000e+00 : f32
    %2141 = vector.broadcast %cst_704 : f32 to vector<8x8xf32>
    %2142 = arith.maximumf %2140, %2141 : vector<8x8xf32>
    %c8_705 = arith.constant 8 : index
    %2143 = memref.load %arg2[%c8_705] : memref<171xf32, #tpu.memory_space<smem>>
    %2144 = vector.broadcast %2143 : f32 to vector<8x8xf32>
    %2145 = arith.mulf %2144, %2094 : vector<8x8xf32>
    %c9_706 = arith.constant 9 : index
    %2146 = memref.load %arg2[%c9_706] : memref<171xf32, #tpu.memory_space<smem>>
    %2147 = vector.broadcast %2146 : f32 to vector<8x8xf32>
    %2148 = arith.mulf %2147, %2092 : vector<8x8xf32>
    %2149 = arith.addf %2145, %2148 : vector<8x8xf32>
    %c20_707 = arith.constant 20 : index
    %2150 = memref.load %arg2[%c20_707] : memref<171xf32, #tpu.memory_space<smem>>
    %2151 = vector.broadcast %2150 : f32 to vector<8x8xf32>
    %2152 = arith.addf %2149, %2151 : vector<8x8xf32>
    %cst_708 = arith.constant 0.000000e+00 : f32
    %2153 = vector.broadcast %cst_708 : f32 to vector<8x8xf32>
    %2154 = arith.maximumf %2152, %2153 : vector<8x8xf32>
    %c10_709 = arith.constant 10 : index
    %2155 = memref.load %arg2[%c10_709] : memref<171xf32, #tpu.memory_space<smem>>
    %2156 = vector.broadcast %2155 : f32 to vector<8x8xf32>
    %2157 = arith.mulf %2156, %2094 : vector<8x8xf32>
    %c11_710 = arith.constant 11 : index
    %2158 = memref.load %arg2[%c11_710] : memref<171xf32, #tpu.memory_space<smem>>
    %2159 = vector.broadcast %2158 : f32 to vector<8x8xf32>
    %2160 = arith.mulf %2159, %2092 : vector<8x8xf32>
    %2161 = arith.addf %2157, %2160 : vector<8x8xf32>
    %c21_711 = arith.constant 21 : index
    %2162 = memref.load %arg2[%c21_711] : memref<171xf32, #tpu.memory_space<smem>>
    %2163 = vector.broadcast %2162 : f32 to vector<8x8xf32>
    %2164 = arith.addf %2161, %2163 : vector<8x8xf32>
    %cst_712 = arith.constant 0.000000e+00 : f32
    %2165 = vector.broadcast %cst_712 : f32 to vector<8x8xf32>
    %2166 = arith.maximumf %2164, %2165 : vector<8x8xf32>
    %c12_713 = arith.constant 12 : index
    %2167 = memref.load %arg2[%c12_713] : memref<171xf32, #tpu.memory_space<smem>>
    %2168 = vector.broadcast %2167 : f32 to vector<8x8xf32>
    %2169 = arith.mulf %2168, %2094 : vector<8x8xf32>
    %c13_714 = arith.constant 13 : index
    %2170 = memref.load %arg2[%c13_714] : memref<171xf32, #tpu.memory_space<smem>>
    %2171 = vector.broadcast %2170 : f32 to vector<8x8xf32>
    %2172 = arith.mulf %2171, %2092 : vector<8x8xf32>
    %2173 = arith.addf %2169, %2172 : vector<8x8xf32>
    %c22_715 = arith.constant 22 : index
    %2174 = memref.load %arg2[%c22_715] : memref<171xf32, #tpu.memory_space<smem>>
    %2175 = vector.broadcast %2174 : f32 to vector<8x8xf32>
    %2176 = arith.addf %2173, %2175 : vector<8x8xf32>
    %cst_716 = arith.constant 0.000000e+00 : f32
    %2177 = vector.broadcast %cst_716 : f32 to vector<8x8xf32>
    %2178 = arith.maximumf %2176, %2177 : vector<8x8xf32>
    %c14_717 = arith.constant 14 : index
    %2179 = memref.load %arg2[%c14_717] : memref<171xf32, #tpu.memory_space<smem>>
    %2180 = vector.broadcast %2179 : f32 to vector<8x8xf32>
    %2181 = arith.mulf %2180, %2094 : vector<8x8xf32>
    %c15_718 = arith.constant 15 : index
    %2182 = memref.load %arg2[%c15_718] : memref<171xf32, #tpu.memory_space<smem>>
    %2183 = vector.broadcast %2182 : f32 to vector<8x8xf32>
    %2184 = arith.mulf %2183, %2092 : vector<8x8xf32>
    %2185 = arith.addf %2181, %2184 : vector<8x8xf32>
    %c23_719 = arith.constant 23 : index
    %2186 = memref.load %arg2[%c23_719] : memref<171xf32, #tpu.memory_space<smem>>
    %2187 = vector.broadcast %2186 : f32 to vector<8x8xf32>
    %2188 = arith.addf %2185, %2187 : vector<8x8xf32>
    %cst_720 = arith.constant 0.000000e+00 : f32
    %2189 = vector.broadcast %cst_720 : f32 to vector<8x8xf32>
    %2190 = arith.maximumf %2188, %2189 : vector<8x8xf32>
    %c43_721 = arith.constant 43 : index
    %c0_722 = arith.constant 0 : index
    %c0_723 = arith.constant 0 : index
    %2191 = vector.load %arg1[%c43_721, %c0_722, %c0_723] : memref<77x8x8xf32, #tpu.memory_space<vmem>>, vector<1x8x8xf32>
    %2192 = vector.shape_cast %2191 : vector<1x8x8xf32> to vector<8x8xf32>
    %c47_724 = arith.constant 47 : index
    %c0_725 = arith.constant 0 : index
    %c0_726 = arith.constant 0 : index
    %2193 = vector.load %arg1[%c47_724, %c0_725, %c0_726] : memref<77x8x8xf32, #tpu.memory_space<vmem>>, vector<1x8x8xf32>
    %2194 = vector.shape_cast %2193 : vector<1x8x8xf32> to vector<8x8xf32>
    %c51_727 = arith.constant 51 : index
    %c0_728 = arith.constant 0 : index
    %c0_729 = arith.constant 0 : index
    %2195 = vector.load %arg1[%c51_727, %c0_728, %c0_729] : memref<77x8x8xf32, #tpu.memory_space<vmem>>, vector<1x8x8xf32>
    %2196 = vector.shape_cast %2195 : vector<1x8x8xf32> to vector<8x8xf32>
    %c96_730 = arith.constant 96 : index
    %2197 = memref.load %arg2[%c96_730] : memref<171xf32, #tpu.memory_space<smem>>
    %c7_731 = arith.constant 7 : index
    %c0_732 = arith.constant 0 : index
    %c0_733 = arith.constant 0 : index
    %2198 = vector.load %arg1[%c7_731, %c0_732, %c0_733] : memref<77x8x8xf32, #tpu.memory_space<vmem>>, vector<1x8x8xf32>
    %2199 = vector.shape_cast %2198 : vector<1x8x8xf32> to vector<8x8xf32>
    %2200 = vector.broadcast %2197 : f32 to vector<8x8xf32>
    %2201 = arith.addf %2200, %2199 : vector<8x8xf32>
    %c24_734 = arith.constant 24 : index
    %2202 = memref.load %arg2[%c24_734] : memref<171xf32, #tpu.memory_space<smem>>
    %2203 = vector.broadcast %2202 : f32 to vector<8x8xf32>
    %2204 = arith.mulf %2203, %2106 : vector<8x8xf32>
    %2205 = arith.addf %2201, %2204 : vector<8x8xf32>
    %c25_735 = arith.constant 25 : index
    %2206 = memref.load %arg2[%c25_735] : memref<171xf32, #tpu.memory_space<smem>>
    %2207 = vector.broadcast %2206 : f32 to vector<8x8xf32>
    %2208 = arith.mulf %2207, %2118 : vector<8x8xf32>
    %2209 = arith.addf %2205, %2208 : vector<8x8xf32>
    %c26_736 = arith.constant 26 : index
    %2210 = memref.load %arg2[%c26_736] : memref<171xf32, #tpu.memory_space<smem>>
    %2211 = vector.broadcast %2210 : f32 to vector<8x8xf32>
    %2212 = arith.mulf %2211, %2130 : vector<8x8xf32>
    %2213 = arith.addf %2209, %2212 : vector<8x8xf32>
    %c27_737 = arith.constant 27 : index
    %2214 = memref.load %arg2[%c27_737] : memref<171xf32, #tpu.memory_space<smem>>
    %2215 = vector.broadcast %2214 : f32 to vector<8x8xf32>
    %2216 = arith.mulf %2215, %2142 : vector<8x8xf32>
    %2217 = arith.addf %2213, %2216 : vector<8x8xf32>
    %c28_738 = arith.constant 28 : index
    %2218 = memref.load %arg2[%c28_738] : memref<171xf32, #tpu.memory_space<smem>>
    %2219 = vector.broadcast %2218 : f32 to vector<8x8xf32>
    %2220 = arith.mulf %2219, %2154 : vector<8x8xf32>
    %2221 = arith.addf %2217, %2220 : vector<8x8xf32>
    %c29_739 = arith.constant 29 : index
    %2222 = memref.load %arg2[%c29_739] : memref<171xf32, #tpu.memory_space<smem>>
    %2223 = vector.broadcast %2222 : f32 to vector<8x8xf32>
    %2224 = arith.mulf %2223, %2166 : vector<8x8xf32>
    %2225 = arith.addf %2221, %2224 : vector<8x8xf32>
    %c30_740 = arith.constant 30 : index
    %2226 = memref.load %arg2[%c30_740] : memref<171xf32, #tpu.memory_space<smem>>
    %2227 = vector.broadcast %2226 : f32 to vector<8x8xf32>
    %2228 = arith.mulf %2227, %2178 : vector<8x8xf32>
    %2229 = arith.addf %2225, %2228 : vector<8x8xf32>
    %c31_741 = arith.constant 31 : index
    %2230 = memref.load %arg2[%c31_741] : memref<171xf32, #tpu.memory_space<smem>>
    %2231 = vector.broadcast %2230 : f32 to vector<8x8xf32>
    %2232 = arith.mulf %2231, %2190 : vector<8x8xf32>
    %2233 = arith.addf %2229, %2232 : vector<8x8xf32>
    %c99_742 = arith.constant 99 : index
    %2234 = memref.load %arg2[%c99_742] : memref<171xf32, #tpu.memory_space<smem>>
    %c19_743 = arith.constant 19 : index
    %c0_744 = arith.constant 0 : index
    %c0_745 = arith.constant 0 : index
    %2235 = vector.load %arg1[%c19_743, %c0_744, %c0_745] : memref<77x8x8xf32, #tpu.memory_space<vmem>>, vector<1x8x8xf32>
    %2236 = vector.shape_cast %2235 : vector<1x8x8xf32> to vector<8x8xf32>
    %2237 = vector.broadcast %2234 : f32 to vector<8x8xf32>
    %2238 = arith.addf %2237, %2236 : vector<8x8xf32>
    %c48_746 = arith.constant 48 : index
    %2239 = memref.load %arg2[%c48_746] : memref<171xf32, #tpu.memory_space<smem>>
    %2240 = vector.broadcast %2239 : f32 to vector<8x8xf32>
    %2241 = arith.mulf %2240, %2106 : vector<8x8xf32>
    %2242 = arith.addf %2238, %2241 : vector<8x8xf32>
    %c49_747 = arith.constant 49 : index
    %2243 = memref.load %arg2[%c49_747] : memref<171xf32, #tpu.memory_space<smem>>
    %2244 = vector.broadcast %2243 : f32 to vector<8x8xf32>
    %2245 = arith.mulf %2244, %2118 : vector<8x8xf32>
    %2246 = arith.addf %2242, %2245 : vector<8x8xf32>
    %c50_748 = arith.constant 50 : index
    %2247 = memref.load %arg2[%c50_748] : memref<171xf32, #tpu.memory_space<smem>>
    %2248 = vector.broadcast %2247 : f32 to vector<8x8xf32>
    %2249 = arith.mulf %2248, %2130 : vector<8x8xf32>
    %2250 = arith.addf %2246, %2249 : vector<8x8xf32>
    %c51_749 = arith.constant 51 : index
    %2251 = memref.load %arg2[%c51_749] : memref<171xf32, #tpu.memory_space<smem>>
    %2252 = vector.broadcast %2251 : f32 to vector<8x8xf32>
    %2253 = arith.mulf %2252, %2142 : vector<8x8xf32>
    %2254 = arith.addf %2250, %2253 : vector<8x8xf32>
    %c52_750 = arith.constant 52 : index
    %2255 = memref.load %arg2[%c52_750] : memref<171xf32, #tpu.memory_space<smem>>
    %2256 = vector.broadcast %2255 : f32 to vector<8x8xf32>
    %2257 = arith.mulf %2256, %2154 : vector<8x8xf32>
    %2258 = arith.addf %2254, %2257 : vector<8x8xf32>
    %c53_751 = arith.constant 53 : index
    %2259 = memref.load %arg2[%c53_751] : memref<171xf32, #tpu.memory_space<smem>>
    %2260 = vector.broadcast %2259 : f32 to vector<8x8xf32>
    %2261 = arith.mulf %2260, %2166 : vector<8x8xf32>
    %2262 = arith.addf %2258, %2261 : vector<8x8xf32>
    %c54_752 = arith.constant 54 : index
    %2263 = memref.load %arg2[%c54_752] : memref<171xf32, #tpu.memory_space<smem>>
    %2264 = vector.broadcast %2263 : f32 to vector<8x8xf32>
    %2265 = arith.mulf %2264, %2178 : vector<8x8xf32>
    %2266 = arith.addf %2262, %2265 : vector<8x8xf32>
    %c55_753 = arith.constant 55 : index
    %2267 = memref.load %arg2[%c55_753] : memref<171xf32, #tpu.memory_space<smem>>
    %2268 = vector.broadcast %2267 : f32 to vector<8x8xf32>
    %2269 = arith.mulf %2268, %2190 : vector<8x8xf32>
    %2270 = arith.addf %2266, %2269 : vector<8x8xf32>
    %cst_754 = arith.constant -1.000000e+01 : f32
    %cst_755 = arith.constant 1.000000e+01 : f32
    %2271 = vector.broadcast %cst_754 : f32 to vector<8x8xf32>
    %2272 = arith.maximumf %2271, %2270 : vector<8x8xf32>
    %2273 = vector.broadcast %cst_755 : f32 to vector<8x8xf32>
    %2274 = arith.minimumf %2273, %2272 : vector<8x8xf32>
    %cst_756 = arith.constant 0.000000e+00 : f32
    %2275 = vector.broadcast %cst_756 : f32 to vector<8x8xf32>
    %2276 = arith.subf %2275, %2274 : vector<8x8xf32>
    %2277 = math.exp %2276 : vector<8x8xf32>
    %cst_757 = arith.constant 5.000000e-01 : f32
    %2278 = vector.broadcast %cst_757 : f32 to vector<8x8xf32>
    %2279 = arith.addf %2192, %2278 : vector<8x8xf32>
    %2280 = arith.subf %2279, %2233 : vector<8x8xf32>
    %cst_758 = arith.constant 5.000000e-01 : f32
    %2281 = vector.broadcast %cst_758 : f32 to vector<8x8xf32>
    %2282 = arith.subf %2192, %2281 : vector<8x8xf32>
    %2283 = arith.subf %2282, %2233 : vector<8x8xf32>
    %2284 = math.absf %2280 : vector<8x8xf32>
    %cst_759 = arith.constant 0.000000e+00 : f32
    %2285 = vector.broadcast %cst_759 : f32 to vector<8x8xf32>
    %2286 = arith.subf %2285, %2284 : vector<8x8xf32>
    %2287 = arith.mulf %2286, %2277 : vector<8x8xf32>
    %2288 = math.exp %2287 : vector<8x8xf32>
    %cst_760 = arith.constant 5.000000e-01 : f32
    %2289 = vector.broadcast %cst_760 : f32 to vector<8x8xf32>
    %2290 = arith.mulf %2289, %2288 : vector<8x8xf32>
    %2291 = math.absf %2283 : vector<8x8xf32>
    %cst_761 = arith.constant 0.000000e+00 : f32
    %2292 = vector.broadcast %cst_761 : f32 to vector<8x8xf32>
    %2293 = arith.subf %2292, %2291 : vector<8x8xf32>
    %2294 = arith.mulf %2293, %2277 : vector<8x8xf32>
    %2295 = math.exp %2294 : vector<8x8xf32>
    %cst_762 = arith.constant 5.000000e-01 : f32
    %2296 = vector.broadcast %cst_762 : f32 to vector<8x8xf32>
    %2297 = arith.mulf %2296, %2295 : vector<8x8xf32>
    %cst_763 = arith.constant 0.000000e+00 : f32
    %2298 = vector.broadcast %cst_763 : f32 to vector<8x8xf32>
    %2299 = arith.cmpf ole, %2280, %2298 : vector<8x8xf32>
    %cst_764 = arith.constant 1.000000e+00 : f32
    %2300 = vector.broadcast %cst_764 : f32 to vector<8x8xf32>
    %2301 = arith.subf %2300, %2290 : vector<8x8xf32>
    %2302 = arith.select %2299, %2290, %2301 : vector<8x8xi1>, vector<8x8xf32>
    %cst_765 = arith.constant 0.000000e+00 : f32
    %2303 = vector.broadcast %cst_765 : f32 to vector<8x8xf32>
    %2304 = arith.cmpf ole, %2283, %2303 : vector<8x8xf32>
    %cst_766 = arith.constant 1.000000e+00 : f32
    %2305 = vector.broadcast %cst_766 : f32 to vector<8x8xf32>
    %2306 = arith.subf %2305, %2297 : vector<8x8xf32>
    %2307 = arith.select %2304, %2297, %2306 : vector<8x8xi1>, vector<8x8xf32>
    %2308 = arith.subf %2302, %2307 : vector<8x8xf32>
    %cst_767 = arith.constant 3.05175781E-5 : f32
    %2309 = vector.broadcast %cst_767 : f32 to vector<8x8xf32>
    %2310 = arith.maximumf %2308, %2309 : vector<8x8xf32>
    %2311 = math.log %2310 : vector<8x8xf32>
    %cst_768 = arith.constant 2.000000e+00 : f32
    %2312 = math.log %cst_768 : f32
    %2313 = vector.broadcast %2312 : f32 to vector<8x8xf32>
    %2314 = arith.divf %2311, %2313 : vector<8x8xf32>
    %cst_769 = arith.constant 0.000000e+00 : f32
    %2315 = vector.broadcast %cst_769 : f32 to vector<8x8xf32>
    %2316 = arith.subf %2315, %2314 : vector<8x8xf32>
    %c97_770 = arith.constant 97 : index
    %2317 = memref.load %arg2[%c97_770] : memref<171xf32, #tpu.memory_space<smem>>
    %c11_771 = arith.constant 11 : index
    %c0_772 = arith.constant 0 : index
    %c0_773 = arith.constant 0 : index
    %2318 = vector.load %arg1[%c11_771, %c0_772, %c0_773] : memref<77x8x8xf32, #tpu.memory_space<vmem>>, vector<1x8x8xf32>
    %2319 = vector.shape_cast %2318 : vector<1x8x8xf32> to vector<8x8xf32>
    %2320 = vector.broadcast %2317 : f32 to vector<8x8xf32>
    %2321 = arith.addf %2320, %2319 : vector<8x8xf32>
    %c32_774 = arith.constant 32 : index
    %2322 = memref.load %arg2[%c32_774] : memref<171xf32, #tpu.memory_space<smem>>
    %2323 = vector.broadcast %2322 : f32 to vector<8x8xf32>
    %2324 = arith.mulf %2323, %2106 : vector<8x8xf32>
    %2325 = arith.addf %2321, %2324 : vector<8x8xf32>
    %c33_775 = arith.constant 33 : index
    %2326 = memref.load %arg2[%c33_775] : memref<171xf32, #tpu.memory_space<smem>>
    %2327 = vector.broadcast %2326 : f32 to vector<8x8xf32>
    %2328 = arith.mulf %2327, %2118 : vector<8x8xf32>
    %2329 = arith.addf %2325, %2328 : vector<8x8xf32>
    %c34_776 = arith.constant 34 : index
    %2330 = memref.load %arg2[%c34_776] : memref<171xf32, #tpu.memory_space<smem>>
    %2331 = vector.broadcast %2330 : f32 to vector<8x8xf32>
    %2332 = arith.mulf %2331, %2130 : vector<8x8xf32>
    %2333 = arith.addf %2329, %2332 : vector<8x8xf32>
    %c35_777 = arith.constant 35 : index
    %2334 = memref.load %arg2[%c35_777] : memref<171xf32, #tpu.memory_space<smem>>
    %2335 = vector.broadcast %2334 : f32 to vector<8x8xf32>
    %2336 = arith.mulf %2335, %2142 : vector<8x8xf32>
    %2337 = arith.addf %2333, %2336 : vector<8x8xf32>
    %c36_778 = arith.constant 36 : index
    %2338 = memref.load %arg2[%c36_778] : memref<171xf32, #tpu.memory_space<smem>>
    %2339 = vector.broadcast %2338 : f32 to vector<8x8xf32>
    %2340 = arith.mulf %2339, %2154 : vector<8x8xf32>
    %2341 = arith.addf %2337, %2340 : vector<8x8xf32>
    %c37_779 = arith.constant 37 : index
    %2342 = memref.load %arg2[%c37_779] : memref<171xf32, #tpu.memory_space<smem>>
    %2343 = vector.broadcast %2342 : f32 to vector<8x8xf32>
    %2344 = arith.mulf %2343, %2166 : vector<8x8xf32>
    %2345 = arith.addf %2341, %2344 : vector<8x8xf32>
    %c38_780 = arith.constant 38 : index
    %2346 = memref.load %arg2[%c38_780] : memref<171xf32, #tpu.memory_space<smem>>
    %2347 = vector.broadcast %2346 : f32 to vector<8x8xf32>
    %2348 = arith.mulf %2347, %2178 : vector<8x8xf32>
    %2349 = arith.addf %2345, %2348 : vector<8x8xf32>
    %c39_781 = arith.constant 39 : index
    %2350 = memref.load %arg2[%c39_781] : memref<171xf32, #tpu.memory_space<smem>>
    %2351 = vector.broadcast %2350 : f32 to vector<8x8xf32>
    %2352 = arith.mulf %2351, %2190 : vector<8x8xf32>
    %2353 = arith.addf %2349, %2352 : vector<8x8xf32>
    %c103_782 = arith.constant 103 : index
    %2354 = memref.load %arg2[%c103_782] : memref<171xf32, #tpu.memory_space<smem>>
    %c35_783 = arith.constant 35 : index
    %c0_784 = arith.constant 0 : index
    %c0_785 = arith.constant 0 : index
    %2355 = vector.load %arg1[%c35_783, %c0_784, %c0_785] : memref<77x8x8xf32, #tpu.memory_space<vmem>>, vector<1x8x8xf32>
    %2356 = vector.shape_cast %2355 : vector<1x8x8xf32> to vector<8x8xf32>
    %2357 = vector.broadcast %2354 : f32 to vector<8x8xf32>
    %2358 = arith.addf %2357, %2356 : vector<8x8xf32>
    %c80_786 = arith.constant 80 : index
    %2359 = memref.load %arg2[%c80_786] : memref<171xf32, #tpu.memory_space<smem>>
    %2360 = vector.broadcast %2359 : f32 to vector<8x8xf32>
    %2361 = arith.mulf %2360, %2106 : vector<8x8xf32>
    %2362 = arith.addf %2358, %2361 : vector<8x8xf32>
    %c81_787 = arith.constant 81 : index
    %2363 = memref.load %arg2[%c81_787] : memref<171xf32, #tpu.memory_space<smem>>
    %2364 = vector.broadcast %2363 : f32 to vector<8x8xf32>
    %2365 = arith.mulf %2364, %2118 : vector<8x8xf32>
    %2366 = arith.addf %2362, %2365 : vector<8x8xf32>
    %c82_788 = arith.constant 82 : index
    %2367 = memref.load %arg2[%c82_788] : memref<171xf32, #tpu.memory_space<smem>>
    %2368 = vector.broadcast %2367 : f32 to vector<8x8xf32>
    %2369 = arith.mulf %2368, %2130 : vector<8x8xf32>
    %2370 = arith.addf %2366, %2369 : vector<8x8xf32>
    %c83_789 = arith.constant 83 : index
    %2371 = memref.load %arg2[%c83_789] : memref<171xf32, #tpu.memory_space<smem>>
    %2372 = vector.broadcast %2371 : f32 to vector<8x8xf32>
    %2373 = arith.mulf %2372, %2142 : vector<8x8xf32>
    %2374 = arith.addf %2370, %2373 : vector<8x8xf32>
    %c84_790 = arith.constant 84 : index
    %2375 = memref.load %arg2[%c84_790] : memref<171xf32, #tpu.memory_space<smem>>
    %2376 = vector.broadcast %2375 : f32 to vector<8x8xf32>
    %2377 = arith.mulf %2376, %2154 : vector<8x8xf32>
    %2378 = arith.addf %2374, %2377 : vector<8x8xf32>
    %c85_791 = arith.constant 85 : index
    %2379 = memref.load %arg2[%c85_791] : memref<171xf32, #tpu.memory_space<smem>>
    %2380 = vector.broadcast %2379 : f32 to vector<8x8xf32>
    %2381 = arith.mulf %2380, %2166 : vector<8x8xf32>
    %2382 = arith.addf %2378, %2381 : vector<8x8xf32>
    %c86_792 = arith.constant 86 : index
    %2383 = memref.load %arg2[%c86_792] : memref<171xf32, #tpu.memory_space<smem>>
    %2384 = vector.broadcast %2383 : f32 to vector<8x8xf32>
    %2385 = arith.mulf %2384, %2178 : vector<8x8xf32>
    %2386 = arith.addf %2382, %2385 : vector<8x8xf32>
    %c87_793 = arith.constant 87 : index
    %2387 = memref.load %arg2[%c87_793] : memref<171xf32, #tpu.memory_space<smem>>
    %2388 = vector.broadcast %2387 : f32 to vector<8x8xf32>
    %2389 = arith.mulf %2388, %2190 : vector<8x8xf32>
    %2390 = arith.addf %2386, %2389 : vector<8x8xf32>
    %2391 = arith.subf %2192, %2233 : vector<8x8xf32>
    %2392 = arith.mulf %2390, %2391 : vector<8x8xf32>
    %2393 = arith.addf %2353, %2392 : vector<8x8xf32>
    %c100_794 = arith.constant 100 : index
    %2394 = memref.load %arg2[%c100_794] : memref<171xf32, #tpu.memory_space<smem>>
    %c23_795 = arith.constant 23 : index
    %c0_796 = arith.constant 0 : index
    %c0_797 = arith.constant 0 : index
    %2395 = vector.load %arg1[%c23_795, %c0_796, %c0_797] : memref<77x8x8xf32, #tpu.memory_space<vmem>>, vector<1x8x8xf32>
    %2396 = vector.shape_cast %2395 : vector<1x8x8xf32> to vector<8x8xf32>
    %2397 = vector.broadcast %2394 : f32 to vector<8x8xf32>
    %2398 = arith.addf %2397, %2396 : vector<8x8xf32>
    %c56_798 = arith.constant 56 : index
    %2399 = memref.load %arg2[%c56_798] : memref<171xf32, #tpu.memory_space<smem>>
    %2400 = vector.broadcast %2399 : f32 to vector<8x8xf32>
    %2401 = arith.mulf %2400, %2106 : vector<8x8xf32>
    %2402 = arith.addf %2398, %2401 : vector<8x8xf32>
    %c57_799 = arith.constant 57 : index
    %2403 = memref.load %arg2[%c57_799] : memref<171xf32, #tpu.memory_space<smem>>
    %2404 = vector.broadcast %2403 : f32 to vector<8x8xf32>
    %2405 = arith.mulf %2404, %2118 : vector<8x8xf32>
    %2406 = arith.addf %2402, %2405 : vector<8x8xf32>
    %c58_800 = arith.constant 58 : index
    %2407 = memref.load %arg2[%c58_800] : memref<171xf32, #tpu.memory_space<smem>>
    %2408 = vector.broadcast %2407 : f32 to vector<8x8xf32>
    %2409 = arith.mulf %2408, %2130 : vector<8x8xf32>
    %2410 = arith.addf %2406, %2409 : vector<8x8xf32>
    %c59_801 = arith.constant 59 : index
    %2411 = memref.load %arg2[%c59_801] : memref<171xf32, #tpu.memory_space<smem>>
    %2412 = vector.broadcast %2411 : f32 to vector<8x8xf32>
    %2413 = arith.mulf %2412, %2142 : vector<8x8xf32>
    %2414 = arith.addf %2410, %2413 : vector<8x8xf32>
    %c60_802 = arith.constant 60 : index
    %2415 = memref.load %arg2[%c60_802] : memref<171xf32, #tpu.memory_space<smem>>
    %2416 = vector.broadcast %2415 : f32 to vector<8x8xf32>
    %2417 = arith.mulf %2416, %2154 : vector<8x8xf32>
    %2418 = arith.addf %2414, %2417 : vector<8x8xf32>
    %c61_803 = arith.constant 61 : index
    %2419 = memref.load %arg2[%c61_803] : memref<171xf32, #tpu.memory_space<smem>>
    %2420 = vector.broadcast %2419 : f32 to vector<8x8xf32>
    %2421 = arith.mulf %2420, %2166 : vector<8x8xf32>
    %2422 = arith.addf %2418, %2421 : vector<8x8xf32>
    %c62_804 = arith.constant 62 : index
    %2423 = memref.load %arg2[%c62_804] : memref<171xf32, #tpu.memory_space<smem>>
    %2424 = vector.broadcast %2423 : f32 to vector<8x8xf32>
    %2425 = arith.mulf %2424, %2178 : vector<8x8xf32>
    %2426 = arith.addf %2422, %2425 : vector<8x8xf32>
    %c63_805 = arith.constant 63 : index
    %2427 = memref.load %arg2[%c63_805] : memref<171xf32, #tpu.memory_space<smem>>
    %2428 = vector.broadcast %2427 : f32 to vector<8x8xf32>
    %2429 = arith.mulf %2428, %2190 : vector<8x8xf32>
    %2430 = arith.addf %2426, %2429 : vector<8x8xf32>
    %cst_806 = arith.constant -1.000000e+01 : f32
    %cst_807 = arith.constant 1.000000e+01 : f32
    %2431 = vector.broadcast %cst_806 : f32 to vector<8x8xf32>
    %2432 = arith.maximumf %2431, %2430 : vector<8x8xf32>
    %2433 = vector.broadcast %cst_807 : f32 to vector<8x8xf32>
    %2434 = arith.minimumf %2433, %2432 : vector<8x8xf32>
    %cst_808 = arith.constant 0.000000e+00 : f32
    %2435 = vector.broadcast %cst_808 : f32 to vector<8x8xf32>
    %2436 = arith.subf %2435, %2434 : vector<8x8xf32>
    %2437 = math.exp %2436 : vector<8x8xf32>
    %cst_809 = arith.constant 5.000000e-01 : f32
    %2438 = vector.broadcast %cst_809 : f32 to vector<8x8xf32>
    %2439 = arith.addf %2194, %2438 : vector<8x8xf32>
    %2440 = arith.subf %2439, %2393 : vector<8x8xf32>
    %cst_810 = arith.constant 5.000000e-01 : f32
    %2441 = vector.broadcast %cst_810 : f32 to vector<8x8xf32>
    %2442 = arith.subf %2194, %2441 : vector<8x8xf32>
    %2443 = arith.subf %2442, %2393 : vector<8x8xf32>
    %2444 = math.absf %2440 : vector<8x8xf32>
    %cst_811 = arith.constant 0.000000e+00 : f32
    %2445 = vector.broadcast %cst_811 : f32 to vector<8x8xf32>
    %2446 = arith.subf %2445, %2444 : vector<8x8xf32>
    %2447 = arith.mulf %2446, %2437 : vector<8x8xf32>
    %2448 = math.exp %2447 : vector<8x8xf32>
    %cst_812 = arith.constant 5.000000e-01 : f32
    %2449 = vector.broadcast %cst_812 : f32 to vector<8x8xf32>
    %2450 = arith.mulf %2449, %2448 : vector<8x8xf32>
    %2451 = math.absf %2443 : vector<8x8xf32>
    %cst_813 = arith.constant 0.000000e+00 : f32
    %2452 = vector.broadcast %cst_813 : f32 to vector<8x8xf32>
    %2453 = arith.subf %2452, %2451 : vector<8x8xf32>
    %2454 = arith.mulf %2453, %2437 : vector<8x8xf32>
    %2455 = math.exp %2454 : vector<8x8xf32>
    %cst_814 = arith.constant 5.000000e-01 : f32
    %2456 = vector.broadcast %cst_814 : f32 to vector<8x8xf32>
    %2457 = arith.mulf %2456, %2455 : vector<8x8xf32>
    %cst_815 = arith.constant 0.000000e+00 : f32
    %2458 = vector.broadcast %cst_815 : f32 to vector<8x8xf32>
    %2459 = arith.cmpf ole, %2440, %2458 : vector<8x8xf32>
    %cst_816 = arith.constant 1.000000e+00 : f32
    %2460 = vector.broadcast %cst_816 : f32 to vector<8x8xf32>
    %2461 = arith.subf %2460, %2450 : vector<8x8xf32>
    %2462 = arith.select %2459, %2450, %2461 : vector<8x8xi1>, vector<8x8xf32>
    %cst_817 = arith.constant 0.000000e+00 : f32
    %2463 = vector.broadcast %cst_817 : f32 to vector<8x8xf32>
    %2464 = arith.cmpf ole, %2443, %2463 : vector<8x8xf32>
    %cst_818 = arith.constant 1.000000e+00 : f32
    %2465 = vector.broadcast %cst_818 : f32 to vector<8x8xf32>
    %2466 = arith.subf %2465, %2457 : vector<8x8xf32>
    %2467 = arith.select %2464, %2457, %2466 : vector<8x8xi1>, vector<8x8xf32>
    %2468 = arith.subf %2462, %2467 : vector<8x8xf32>
    %cst_819 = arith.constant 3.05175781E-5 : f32
    %2469 = vector.broadcast %cst_819 : f32 to vector<8x8xf32>
    %2470 = arith.maximumf %2468, %2469 : vector<8x8xf32>
    %2471 = math.log %2470 : vector<8x8xf32>
    %cst_820 = arith.constant 2.000000e+00 : f32
    %2472 = math.log %cst_820 : f32
    %2473 = vector.broadcast %2472 : f32 to vector<8x8xf32>
    %2474 = arith.divf %2471, %2473 : vector<8x8xf32>
    %cst_821 = arith.constant 0.000000e+00 : f32
    %2475 = vector.broadcast %cst_821 : f32 to vector<8x8xf32>
    %2476 = arith.subf %2475, %2474 : vector<8x8xf32>
    %2477 = arith.addf %2316, %2476 : vector<8x8xf32>
    %c98_822 = arith.constant 98 : index
    %2478 = memref.load %arg2[%c98_822] : memref<171xf32, #tpu.memory_space<smem>>
    %c15_823 = arith.constant 15 : index
    %c0_824 = arith.constant 0 : index
    %c0_825 = arith.constant 0 : index
    %2479 = vector.load %arg1[%c15_823, %c0_824, %c0_825] : memref<77x8x8xf32, #tpu.memory_space<vmem>>, vector<1x8x8xf32>
    %2480 = vector.shape_cast %2479 : vector<1x8x8xf32> to vector<8x8xf32>
    %2481 = vector.broadcast %2478 : f32 to vector<8x8xf32>
    %2482 = arith.addf %2481, %2480 : vector<8x8xf32>
    %c40_826 = arith.constant 40 : index
    %2483 = memref.load %arg2[%c40_826] : memref<171xf32, #tpu.memory_space<smem>>
    %2484 = vector.broadcast %2483 : f32 to vector<8x8xf32>
    %2485 = arith.mulf %2484, %2106 : vector<8x8xf32>
    %2486 = arith.addf %2482, %2485 : vector<8x8xf32>
    %c41_827 = arith.constant 41 : index
    %2487 = memref.load %arg2[%c41_827] : memref<171xf32, #tpu.memory_space<smem>>
    %2488 = vector.broadcast %2487 : f32 to vector<8x8xf32>
    %2489 = arith.mulf %2488, %2118 : vector<8x8xf32>
    %2490 = arith.addf %2486, %2489 : vector<8x8xf32>
    %c42_828 = arith.constant 42 : index
    %2491 = memref.load %arg2[%c42_828] : memref<171xf32, #tpu.memory_space<smem>>
    %2492 = vector.broadcast %2491 : f32 to vector<8x8xf32>
    %2493 = arith.mulf %2492, %2130 : vector<8x8xf32>
    %2494 = arith.addf %2490, %2493 : vector<8x8xf32>
    %c43_829 = arith.constant 43 : index
    %2495 = memref.load %arg2[%c43_829] : memref<171xf32, #tpu.memory_space<smem>>
    %2496 = vector.broadcast %2495 : f32 to vector<8x8xf32>
    %2497 = arith.mulf %2496, %2142 : vector<8x8xf32>
    %2498 = arith.addf %2494, %2497 : vector<8x8xf32>
    %c44_830 = arith.constant 44 : index
    %2499 = memref.load %arg2[%c44_830] : memref<171xf32, #tpu.memory_space<smem>>
    %2500 = vector.broadcast %2499 : f32 to vector<8x8xf32>
    %2501 = arith.mulf %2500, %2154 : vector<8x8xf32>
    %2502 = arith.addf %2498, %2501 : vector<8x8xf32>
    %c45_831 = arith.constant 45 : index
    %2503 = memref.load %arg2[%c45_831] : memref<171xf32, #tpu.memory_space<smem>>
    %2504 = vector.broadcast %2503 : f32 to vector<8x8xf32>
    %2505 = arith.mulf %2504, %2166 : vector<8x8xf32>
    %2506 = arith.addf %2502, %2505 : vector<8x8xf32>
    %c46_832 = arith.constant 46 : index
    %2507 = memref.load %arg2[%c46_832] : memref<171xf32, #tpu.memory_space<smem>>
    %2508 = vector.broadcast %2507 : f32 to vector<8x8xf32>
    %2509 = arith.mulf %2508, %2178 : vector<8x8xf32>
    %2510 = arith.addf %2506, %2509 : vector<8x8xf32>
    %c47_833 = arith.constant 47 : index
    %2511 = memref.load %arg2[%c47_833] : memref<171xf32, #tpu.memory_space<smem>>
    %2512 = vector.broadcast %2511 : f32 to vector<8x8xf32>
    %2513 = arith.mulf %2512, %2190 : vector<8x8xf32>
    %2514 = arith.addf %2510, %2513 : vector<8x8xf32>
    %c104_834 = arith.constant 104 : index
    %2515 = memref.load %arg2[%c104_834] : memref<171xf32, #tpu.memory_space<smem>>
    %c39_835 = arith.constant 39 : index
    %c0_836 = arith.constant 0 : index
    %c0_837 = arith.constant 0 : index
    %2516 = vector.load %arg1[%c39_835, %c0_836, %c0_837] : memref<77x8x8xf32, #tpu.memory_space<vmem>>, vector<1x8x8xf32>
    %2517 = vector.shape_cast %2516 : vector<1x8x8xf32> to vector<8x8xf32>
    %2518 = vector.broadcast %2515 : f32 to vector<8x8xf32>
    %2519 = arith.addf %2518, %2517 : vector<8x8xf32>
    %c88_838 = arith.constant 88 : index
    %2520 = memref.load %arg2[%c88_838] : memref<171xf32, #tpu.memory_space<smem>>
    %2521 = vector.broadcast %2520 : f32 to vector<8x8xf32>
    %2522 = arith.mulf %2521, %2106 : vector<8x8xf32>
    %2523 = arith.addf %2519, %2522 : vector<8x8xf32>
    %c89_839 = arith.constant 89 : index
    %2524 = memref.load %arg2[%c89_839] : memref<171xf32, #tpu.memory_space<smem>>
    %2525 = vector.broadcast %2524 : f32 to vector<8x8xf32>
    %2526 = arith.mulf %2525, %2118 : vector<8x8xf32>
    %2527 = arith.addf %2523, %2526 : vector<8x8xf32>
    %c90_840 = arith.constant 90 : index
    %2528 = memref.load %arg2[%c90_840] : memref<171xf32, #tpu.memory_space<smem>>
    %2529 = vector.broadcast %2528 : f32 to vector<8x8xf32>
    %2530 = arith.mulf %2529, %2130 : vector<8x8xf32>
    %2531 = arith.addf %2527, %2530 : vector<8x8xf32>
    %c91_841 = arith.constant 91 : index
    %2532 = memref.load %arg2[%c91_841] : memref<171xf32, #tpu.memory_space<smem>>
    %2533 = vector.broadcast %2532 : f32 to vector<8x8xf32>
    %2534 = arith.mulf %2533, %2142 : vector<8x8xf32>
    %2535 = arith.addf %2531, %2534 : vector<8x8xf32>
    %c92_842 = arith.constant 92 : index
    %2536 = memref.load %arg2[%c92_842] : memref<171xf32, #tpu.memory_space<smem>>
    %2537 = vector.broadcast %2536 : f32 to vector<8x8xf32>
    %2538 = arith.mulf %2537, %2154 : vector<8x8xf32>
    %2539 = arith.addf %2535, %2538 : vector<8x8xf32>
    %c93_843 = arith.constant 93 : index
    %2540 = memref.load %arg2[%c93_843] : memref<171xf32, #tpu.memory_space<smem>>
    %2541 = vector.broadcast %2540 : f32 to vector<8x8xf32>
    %2542 = arith.mulf %2541, %2166 : vector<8x8xf32>
    %2543 = arith.addf %2539, %2542 : vector<8x8xf32>
    %c94_844 = arith.constant 94 : index
    %2544 = memref.load %arg2[%c94_844] : memref<171xf32, #tpu.memory_space<smem>>
    %2545 = vector.broadcast %2544 : f32 to vector<8x8xf32>
    %2546 = arith.mulf %2545, %2178 : vector<8x8xf32>
    %2547 = arith.addf %2543, %2546 : vector<8x8xf32>
    %c95_845 = arith.constant 95 : index
    %2548 = memref.load %arg2[%c95_845] : memref<171xf32, #tpu.memory_space<smem>>
    %2549 = vector.broadcast %2548 : f32 to vector<8x8xf32>
    %2550 = arith.mulf %2549, %2190 : vector<8x8xf32>
    %2551 = arith.addf %2547, %2550 : vector<8x8xf32>
    %2552 = arith.subf %2194, %2393 : vector<8x8xf32>
    %2553 = arith.mulf %2551, %2552 : vector<8x8xf32>
    %2554 = arith.addf %2514, %2553 : vector<8x8xf32>
    %c101_846 = arith.constant 101 : index
    %2555 = memref.load %arg2[%c101_846] : memref<171xf32, #tpu.memory_space<smem>>
    %c27_847 = arith.constant 27 : index
    %c0_848 = arith.constant 0 : index
    %c0_849 = arith.constant 0 : index
    %2556 = vector.load %arg1[%c27_847, %c0_848, %c0_849] : memref<77x8x8xf32, #tpu.memory_space<vmem>>, vector<1x8x8xf32>
    %2557 = vector.shape_cast %2556 : vector<1x8x8xf32> to vector<8x8xf32>
    %2558 = vector.broadcast %2555 : f32 to vector<8x8xf32>
    %2559 = arith.addf %2558, %2557 : vector<8x8xf32>
    %c64_850 = arith.constant 64 : index
    %2560 = memref.load %arg2[%c64_850] : memref<171xf32, #tpu.memory_space<smem>>
    %2561 = vector.broadcast %2560 : f32 to vector<8x8xf32>
    %2562 = arith.mulf %2561, %2106 : vector<8x8xf32>
    %2563 = arith.addf %2559, %2562 : vector<8x8xf32>
    %c65_851 = arith.constant 65 : index
    %2564 = memref.load %arg2[%c65_851] : memref<171xf32, #tpu.memory_space<smem>>
    %2565 = vector.broadcast %2564 : f32 to vector<8x8xf32>
    %2566 = arith.mulf %2565, %2118 : vector<8x8xf32>
    %2567 = arith.addf %2563, %2566 : vector<8x8xf32>
    %c66_852 = arith.constant 66 : index
    %2568 = memref.load %arg2[%c66_852] : memref<171xf32, #tpu.memory_space<smem>>
    %2569 = vector.broadcast %2568 : f32 to vector<8x8xf32>
    %2570 = arith.mulf %2569, %2130 : vector<8x8xf32>
    %2571 = arith.addf %2567, %2570 : vector<8x8xf32>
    %c67_853 = arith.constant 67 : index
    %2572 = memref.load %arg2[%c67_853] : memref<171xf32, #tpu.memory_space<smem>>
    %2573 = vector.broadcast %2572 : f32 to vector<8x8xf32>
    %2574 = arith.mulf %2573, %2142 : vector<8x8xf32>
    %2575 = arith.addf %2571, %2574 : vector<8x8xf32>
    %c68_854 = arith.constant 68 : index
    %2576 = memref.load %arg2[%c68_854] : memref<171xf32, #tpu.memory_space<smem>>
    %2577 = vector.broadcast %2576 : f32 to vector<8x8xf32>
    %2578 = arith.mulf %2577, %2154 : vector<8x8xf32>
    %2579 = arith.addf %2575, %2578 : vector<8x8xf32>
    %c69_855 = arith.constant 69 : index
    %2580 = memref.load %arg2[%c69_855] : memref<171xf32, #tpu.memory_space<smem>>
    %2581 = vector.broadcast %2580 : f32 to vector<8x8xf32>
    %2582 = arith.mulf %2581, %2166 : vector<8x8xf32>
    %2583 = arith.addf %2579, %2582 : vector<8x8xf32>
    %c70_856 = arith.constant 70 : index
    %2584 = memref.load %arg2[%c70_856] : memref<171xf32, #tpu.memory_space<smem>>
    %2585 = vector.broadcast %2584 : f32 to vector<8x8xf32>
    %2586 = arith.mulf %2585, %2178 : vector<8x8xf32>
    %2587 = arith.addf %2583, %2586 : vector<8x8xf32>
    %c71_857 = arith.constant 71 : index
    %2588 = memref.load %arg2[%c71_857] : memref<171xf32, #tpu.memory_space<smem>>
    %2589 = vector.broadcast %2588 : f32 to vector<8x8xf32>
    %2590 = arith.mulf %2589, %2190 : vector<8x8xf32>
    %2591 = arith.addf %2587, %2590 : vector<8x8xf32>
    %cst_858 = arith.constant -1.000000e+01 : f32
    %cst_859 = arith.constant 1.000000e+01 : f32
    %2592 = vector.broadcast %cst_858 : f32 to vector<8x8xf32>
    %2593 = arith.maximumf %2592, %2591 : vector<8x8xf32>
    %2594 = vector.broadcast %cst_859 : f32 to vector<8x8xf32>
    %2595 = arith.minimumf %2594, %2593 : vector<8x8xf32>
    %cst_860 = arith.constant 0.000000e+00 : f32
    %2596 = vector.broadcast %cst_860 : f32 to vector<8x8xf32>
    %2597 = arith.subf %2596, %2595 : vector<8x8xf32>
    %2598 = math.exp %2597 : vector<8x8xf32>
    %cst_861 = arith.constant 5.000000e-01 : f32
    %2599 = vector.broadcast %cst_861 : f32 to vector<8x8xf32>
    %2600 = arith.addf %2196, %2599 : vector<8x8xf32>
    %2601 = arith.subf %2600, %2554 : vector<8x8xf32>
    %cst_862 = arith.constant 5.000000e-01 : f32
    %2602 = vector.broadcast %cst_862 : f32 to vector<8x8xf32>
    %2603 = arith.subf %2196, %2602 : vector<8x8xf32>
    %2604 = arith.subf %2603, %2554 : vector<8x8xf32>
    %2605 = math.absf %2601 : vector<8x8xf32>
    %cst_863 = arith.constant 0.000000e+00 : f32
    %2606 = vector.broadcast %cst_863 : f32 to vector<8x8xf32>
    %2607 = arith.subf %2606, %2605 : vector<8x8xf32>
    %2608 = arith.mulf %2607, %2598 : vector<8x8xf32>
    %2609 = math.exp %2608 : vector<8x8xf32>
    %cst_864 = arith.constant 5.000000e-01 : f32
    %2610 = vector.broadcast %cst_864 : f32 to vector<8x8xf32>
    %2611 = arith.mulf %2610, %2609 : vector<8x8xf32>
    %2612 = math.absf %2604 : vector<8x8xf32>
    %cst_865 = arith.constant 0.000000e+00 : f32
    %2613 = vector.broadcast %cst_865 : f32 to vector<8x8xf32>
    %2614 = arith.subf %2613, %2612 : vector<8x8xf32>
    %2615 = arith.mulf %2614, %2598 : vector<8x8xf32>
    %2616 = math.exp %2615 : vector<8x8xf32>
    %cst_866 = arith.constant 5.000000e-01 : f32
    %2617 = vector.broadcast %cst_866 : f32 to vector<8x8xf32>
    %2618 = arith.mulf %2617, %2616 : vector<8x8xf32>
    %cst_867 = arith.constant 0.000000e+00 : f32
    %2619 = vector.broadcast %cst_867 : f32 to vector<8x8xf32>
    %2620 = arith.cmpf ole, %2601, %2619 : vector<8x8xf32>
    %cst_868 = arith.constant 1.000000e+00 : f32
    %2621 = vector.broadcast %cst_868 : f32 to vector<8x8xf32>
    %2622 = arith.subf %2621, %2611 : vector<8x8xf32>
    %2623 = arith.select %2620, %2611, %2622 : vector<8x8xi1>, vector<8x8xf32>
    %cst_869 = arith.constant 0.000000e+00 : f32
    %2624 = vector.broadcast %cst_869 : f32 to vector<8x8xf32>
    %2625 = arith.cmpf ole, %2604, %2624 : vector<8x8xf32>
    %cst_870 = arith.constant 1.000000e+00 : f32
    %2626 = vector.broadcast %cst_870 : f32 to vector<8x8xf32>
    %2627 = arith.subf %2626, %2618 : vector<8x8xf32>
    %2628 = arith.select %2625, %2618, %2627 : vector<8x8xi1>, vector<8x8xf32>
    %2629 = arith.subf %2623, %2628 : vector<8x8xf32>
    %cst_871 = arith.constant 3.05175781E-5 : f32
    %2630 = vector.broadcast %cst_871 : f32 to vector<8x8xf32>
    %2631 = arith.maximumf %2629, %2630 : vector<8x8xf32>
    %2632 = math.log %2631 : vector<8x8xf32>
    %cst_872 = arith.constant 2.000000e+00 : f32
    %2633 = math.log %cst_872 : f32
    %2634 = vector.broadcast %2633 : f32 to vector<8x8xf32>
    %2635 = arith.divf %2632, %2634 : vector<8x8xf32>
    %cst_873 = arith.constant 0.000000e+00 : f32
    %2636 = vector.broadcast %cst_873 : f32 to vector<8x8xf32>
    %2637 = arith.subf %2636, %2635 : vector<8x8xf32>
    %2638 = arith.addf %2477, %2637 : vector<8x8xf32>
    %2639 = arith.addf %1997, %2638 : vector<8x8xf32>
    %2640 = vector.shape_cast %2639 : vector<8x8xf32> to vector<1x8x8xf32>
    %cst_874 = arith.constant dense<0.000000e+00> : vector<1xf32>
    %2641 = vector.multi_reduction <add>, %2640, %cst_874 [1, 2] : vector<1x8x8xf32> to vector<1xf32>
    %2642 = vector.shape_cast %2641 : vector<1xf32> to vector<1x1x1xf32>
    %2643 = vector.extract %2642[0, 0, 0] : f32 from vector<1x1x1xf32>
    %2644 = tpu.iota {dimensions = array<i32: 1>} : vector<1x2xi32>
    %c0_i32 = arith.constant 0 : i32
    %2645 = vector.broadcast %c0_i32 : i32 to vector<1x2xi32>
    %2646 = arith.cmpi eq, %2644, %2645 : vector<1x2xi32>
    %2647 = vector.broadcast %72 : f32 to vector<1x2xf32>
    %2648 = vector.broadcast %2643 : f32 to vector<1x2xf32>
    %2649 = arith.select %2646, %2647, %2648 : vector<1x2xi1>, vector<1x2xf32>
    %c0_875 = arith.constant 0 : index
    %c0_876 = arith.constant 0 : index
    %2650 = vector.load %arg3[%c0_875, %c0_876] : memref<1x2xf32, #tpu.memory_space<vmem>>, vector<1x2xf32>
    tpu.vector_store %arg3[%c0_875, %c0_876], %2649 {strides = array<i32>} : memref<1x2xf32, #tpu.memory_space<vmem>>, vector<1x2xf32>,
    return
  }
}

</mosaic_0001>

<bundles_post_ra>
// kernel: overfitter_forward.1
= control target key start
LH: loop header
LB: loop body
LE: loop exit
PB: predicated region body
PF: predicated region fallthrough
CT: control target
= control target key end

     0   :  { %8 = vsyncpa [#allocation3], 0  ;;  %s5205_s0 = inlined_call_operand.vmem [shape: f32[20,320], index: 0, kind: input, shape index: {}]   ;;  %s5206_s1 = inlined_call_operand.vmem [shape: f32[77,8,8], index: 1, kind: input, shape index: {}]   ;;  %s5207_s2 = inlined_call_operand.vmem [shape: f32[171], index: 2, kind: input, shape index: {}]   ;;  %s5208_s3 = inlined_call_operand.vmem [shape: f32[1,2], index: 3, kind: output, shape index: {}]  }
   0x1   :  { %s19_s14 = sshll.u32 %s5207_s2, 4  ;;  %s20_s14 = int_to_ptr.vmem [resolvable:$true] %s19_s14 }
   0x2   :  { %s2932_s15 = scalar_lea.vmem %s20_s14, 32  ;;  %p2937_p1 = scmp.lt.s32.totalorder %s20_s14, %s20_s14 }
   0x3   :  { %p2933_p0 = scmp.ne.s32.totalorder %s20_s14, %s2932_s15  ;;  %p2938_p2 = scmp.lt.s32.totalorder %s2932_s15, %s2932_s15 }
   0x5   :  { %p2939_p3 = por %p2938_p2, %p2937_p1 }
   0x7   :  { %p2940_p4 = pnand %p2939_p3, %p2933_p0 }
   0x9   :  { %2943 = shalt.err (!%p2940_p4)
}
   0xa   :  { %s2946_s16 = smov [#allocation2]  }
   0xb   :  { %22 = dma.vmem_to_smem %s20_s14, 32, %s2946_s16, [#allocation3]  }
   0xc   :  { %2944 = dma.done.wait [#allocation3], 32  }
   0xd   :  { %2945 = vsyncadd [#allocation3], 4294967264 }
   0xe   :  { %26 = sfence }
   0xf   :  { %v28_v0 = vld [vmem:[%s5205_s0 + $0x8] sm:$0xf]  ;;  %vm36_vm0 = vcmask 1043456   ;;  %v27_v1 = vld [vmem:[%s5205_s0] sm:$0xf]  ;;  %v2947_v2 = vmov 0.0  }
  0x10   :  { %2455 = vmatprep.subr.msk.mxu0 %vm36_vm0, %v28_v0  ;;  %120 = vmatprep.mubr.f32.mxu0 %v2947_v2  ;;  %v29_v3 = vld [vmem:[%s5205_s0 + $0x10] sm:$0xf]  ;;  %v30_v4 = vld [vmem:[%s5205_s0] sm:$0xf0]  ;;  %v31_v5 = vld [vmem:[%s5205_s0 + $0x18] sm:$0xff]  ;;  %vm42_vm1 = vcmask 31744  }
  0x11   :  { %2456 = vmatpush1.msk.msra.mxu0 %vm36_vm0, %v27_v1  ;;  %2744 = vmatprep.subr.msk.mxu1 %vm36_vm0, %v29_v3  ;;  %v32_v6 = vld [vmem:[%s5205_s0 + $0x30] sm:$0xf]  ;;  %v37_v7 = vrot.slane %v30_v4, 4  ;;  %v38_v8 = vrot.slane %v31_v5, 4  ;;  %s2948_s28 = smov 124   ;;  %v2949_v12 = vmov 20  }
  0x12   :  { %2745 = vmatpush3.msk.msra.mxu1 %vm36_vm0, %v29_v3  ;;  %v40_v9 = vrot.slane %v32_v6, 4  ;;  %2788 = vset.pattern.permute.xlu1 %v2949_v12  ;;  %s2950_s29 = smov 107   ;;  %vm234_vm2 = vcmask 130048   ;;  %s2479_s30 = sld [smem:[#allocation2 + $0x6b]]  ;;  %v2478_v61 = vld [vmem:[%s5206_s1 + $0x1a0] sm:$0xff]  ;;  %v2480_v63 = vld [vmem:[%s5206_s1 + $0x1a8] sm:$0xff] }
  0x13   :  { %v39_v10 = vsel %vm36_vm0, %v37_v7, %v38_v8  ;;  %2789 = vset.pattern.permute.xlu0 %v2949_v12  ;;  %215 = vperm.xlu1 %2788, %v30_v4   ;;  %s2481_s4 = sld [smem:[#allocation2 + $0x6c]]  ;;  %s2483_s5 = sld [smem:[#allocation2 + $0x6d]]  ;;  %v2484_v7 = vld [vmem:[%s5206_s1 + $0x1b8] sm:$0xff] }
  0x14   :  { %v41_v11 = vsel %vm36_vm0, %v38_v8, %v40_v9  ;;  %2457 = vmatmul.mubr.msk.f32.vlgmr.msra.gmra.mrb[0].mxu0 %vm42_vm1, %v39_v10  ;;  %2746 = vmatprep.mubr.msk.f32.mxu1 %vm42_vm1, %v39_v10  ;;  %s2485_s6 = sld [smem:[#allocation2 + $0x6e]]  ;;  %s2487_s11 = sld [smem:[#allocation2 + $0x6f]] }
  0x15   :  { %2747 = vmatmul.mubr.msk.f32.vlgmr.msra.gmra.mrb[0].mxu1 %vm42_vm1, %v41_v11  ;;  %126 = vmatprep.mubr.f32.mxu0 %v2947_v2  ;;  %s2489_s14 = sld [smem:[#allocation2 + $0x70]]  ;;  %s2491_s17 = sld [smem:[#allocation2 + $0x71]] }
  0x16   :  { %223 = vrot.lane.b32.xlu0 %v39_v10, %s2948_s28  ;;  %303 = vmatprep.mubr.f32.mxu1 %v2947_v2  ;;  %s2493_s2 = sld [smem:[#allocation2 + $0x72]]  ;;  %s2495_s22 = sld [smem:[#allocation2 + $0x73]] }
  0x17   :  { %218 = vperm.xlu1 %2788, %v31_v5   ;;  %s2622_s23 = sld [smem:[#allocation2 + $0x7b]]  ;;  %s2623_s24 = sld [smem:[#allocation2 + $0x7c]] }
  0x18   :  { %2458 = vmatmul.mubr.msk.f32.gmra.mrb[2].mxu0 %vm42_vm1, %v41_v11  ;;  %v710_v62 = vstv %s2479_s30  ;;  %s2497_s27 = sld [smem:[#allocation2 + $0x74]]  ;;  %s2624_s30 = sld [smem:[#allocation2 + $0x7d]] }
  0x19   :  { %v715_v0 = vstv %s2481_s4  ;;  %v711_v1 = vmul.f32 %v2478_v61, %v710_v62  ;;  %v721_v4 = vstv %s2483_s5  ;;  %s2499_s4 = sld [smem:[#allocation2 + $0x75]]  ;;  %s2626_s7 = sld [smem:[#allocation2 + $0x7e]] }
  0x1a   :  { %225 = vrot.lane.b32.xlu0 %v41_v11, %s2948_s28  ;;  %v716_v3 = vmul.f32 %v2480_v63, %v715_v0  ;;  %v727_v8 = vstv %s2485_s6  ;;  %v733_v12 = vstv %s2487_s11  ;;  %s2501_s8 = sld [smem:[#allocation2 + $0x76]]  ;;  %s2627_s11 = sld [smem:[#allocation2 + $0x7f]] }
  0x1b   :  { %397 = vrot.lane.b32.xlu1 %v39_v10, %s2950_s29  ;;  %v728_v10 = vmul.f32 %v2484_v7, %v727_v8  ;;  %s2503_s12 = sld [smem:[#allocation2 + $0x77]]  ;;  %s2505_s18 = sld [smem:[#allocation2 + $0x78]] }
  0x1c   :  { %v717_v5 = vadd.f32 %v716_v3, %v711_v1  ;;  %s2629_s20 = sld [smem:[#allocation2 + $0x81]]  ;;  %s2509_s25 = sld [smem:[#allocation2 + $0x7a]] }
  0x1d   :  { %s2507_s21 = sld [smem:[#allocation2 + $0x79]]  ;;  %s2632_s28 = sld [smem:[#allocation2 + $0x83]] }
  0x1e   :  { %221 = vperm.xlu0 %2789, %v32_v6   ;;  %s803_s5 = sld [smem:[#allocation2]]  ;;  %s2510_s6 = sld [smem:[#allocation2 + $0x1]] }
  0x1f   :  { %399 = vrot.lane.b32.xlu1 %v41_v11, %s2950_s29  ;;  %v3029_v11 = vld [vmem:[%s5206_s1 + $0x1c8] sm:$0xff]  ;;  %s3095_s13 = sld [smem:[#allocation2 + $0x85]]  ;;  %s3098_s16 = sld [smem:[#allocation2 + $0x86]] }
  0x20   :  { %s2516_s15 = sld [smem:[#allocation2 + $0x5]]  ;;  %s3136_s26 = sld [smem:[#allocation2 + $0x8c]] }
  0x21   :  { %v787_v62 = vstv %s2505_s18  ;;  %s3156_s29 = sld [smem:[#allocation2 + $0xa]]  ;;  %s3178_s9 = sld [smem:[#allocation2 + $0x89]] }
  0x22   :  { %s3189_s10 = sld [smem:[#allocation2 + $0x63]]  ;;  %s3220_s18 = sld [smem:[#allocation2 + $0x15]] }
  0x23   :  { %s3222_s19 = sld [smem:[#allocation2 + $0x31]] }
  0x88   :  { %v224_v13 = vpop.permute.xlu0 %223 }
  0x89   :  { %2753 = vmatprep.mubr.msk.f32.mxu0 %vm234_vm2, %v224_v13 }
  0x8c   :  { %v226_v29 = vpop.permute.xlu0 %225 }
  0x92   :  { %v216_v30 = vpop.permute.xlu1 %215 }
  0x93   :  { %v227_v36 = vrot.slane %v216_v30, 4 }
  0x96   :  { %v219_v31 = vpop.permute.xlu1 %218 }
  0x97   :  { %v228_v34 = vrot.slane %v219_v31, 4  ;;  %v1301_v31 = vstv %s2622_s23  ;;  %s3124_s23 = sld [smem:[#allocation2 + $0x8]] }
  0x99   :  { %v229_v38 = vsel %vm36_vm0, %v227_v36, %v228_v34 }
  0x9a   :  { %v398_v32 = vpop.permute.xlu1 %397 }
  0x9d   :  { %v222_v33 = vpop.permute.xlu0 %221 }
  0x9e   :  { %v230_v35 = vrot.slane %v222_v33, 4  ;;  %v400_v54 = vpop.permute.xlu1 %399  ;;  %v763_v33 = vstv %s2497_s27  ;;  %s3142_s27 = sld [smem:[#allocation2 + $0x12]] }
  0xa0   :  { %v231_v37 = vsel %vm36_vm0, %v228_v34, %v230_v35  ;;  %v3050_v34 = vld [vmem:[%s5206_s1 + $0x1f8] sm:$0xff]  ;;  %v1302_v35 = vmul.f32 %v2480_v63, %v1301_v31  ;;  %v3075_v63 = vld [vmem:[%s5206_s1 + $0x220] sm:$0xff]  ;;  %vm691_vm0 = vcmask 1040384  }
  0xe7   :  { %v122_v14 = vpop.f32.mrb[0].mxu0 }
  0xe8   :  { %v124_v15 = vpop.f32.mrb[1].mxu0  ;;  %v2748_v16 = vpop.f32.mrb[0].mxu1  ;;  %v208_v21 = vmax.f32 %v122_v14, 0.0  ;;  %v734_v14 = vmul.f32 %v3029_v11, %v733_v12 }
  0xe9   :  { %v213_v17 = vmax.f32 %v2748_v16, 0.0  ;;  %v199_v18 = vpop.f32.mrb[1].mxu1  ;;  %v209_v25 = vmax.f32 %v124_v15, 0.0  ;;  %v3035_v15 = vld [vmem:[%s5206_s1 + $0x1d0] sm:$0xff]  ;;  %v739_v16 = vstv %s2489_s14  ;;  %s2515_s14 = sld [smem:[#allocation2 + $0x4]] }
  0xea   :  { %v210_v19 = vmax.f32 %v199_v18, 0.0  ;;  %v740_v18 = vmul.f32 %v3035_v15, %v739_v16  ;;  %v3092_v16 = vld [vmem:[%s5206_s1 + $0x230] sm:$0xff] }
  0xeb   :  { %v128_v20 = vpop.f32.mrb[2].mxu0 }
  0xec   :  { %v2767_v22 = vpack.c.bf16 %v213_v17, %v210_v19  ;;  %v211_v23 = vmax.f32 %v128_v20, 0.0  ;;  %v130_v24 = vpop.f32.mrb[3].mxu0  ;;  %v2490_v19 = vld [vmem:[%s5206_s1 + $0x1d8] sm:$0xff]  ;;  %v745_v20 = vstv %s2491_s17  ;;  %s2628_s17 = sld [smem:[#allocation2 + $0x80]] }
  0xed   :  { %v212_v26 = vmax.f32 %v130_v24, 0.0  ;;  %v751_v24 = vstv %s2493_s2  ;;  %s2511_s2 = sld [smem:[#allocation2 + $0x10]] }
  0xee   :  { %v2765_v27 = vpack.c.bf16 %v211_v23, %v208_v21  ;;  %2768 = vmatprep.subr.bf16.mxu0 %v2767_v22  ;;  %v2492_v23 = vld [vmem:[%s5206_s1 + $0x1e0] sm:$0xff] }
  0xef   :  { %v2763_v28 = vpack.c.bf16 %v212_v26, %v209_v25  ;;  %2770 = vmatpush3.bf16.msra.mxu0 %v2767_v22  ;;  %v746_v22 = vmul.f32 %v2490_v19, %v745_v20  ;;  %v752_v26 = vmul.f32 %v2492_v23, %v751_v24 }
  0xf1   :  { %2764 = vmatprep.subr.bf16.mxu1 %v2763_v28  ;;  %v2494_v28 = vld [vmem:[%s5206_s1 + $0x1f0] sm:$0xff] }
  0xf2   :  { %2766 = vmatpush1.bf16.msra.mxu1 %v2765_v27  ;;  %2754 = vmatmul.mubr.msk.f32.vlgmr.msra.gmra.mrb[4].mxu0 %vm234_vm2, %v226_v29  ;;  %v757_v27 = vstv %s2495_s22  ;;  %v1322_v61 = vstv %s2628_s17  ;;  %s3103_s17 = sld [smem:[#allocation2 + $0x8b]]  ;;  %s3118_s22 = sld [smem:[#allocation2 + $0x7]] }
  0xf3   :  { %469 = vmatprep.mubr.f32.mxu0 %v2947_v2  ;;  %v758_v30 = vmul.f32 %v2494_v28, %v757_v27  ;;  %v1323_v1 = vmul.f32 %v2490_v19, %v1322_v61  ;;  %v3110_v27 = vstv %s803_s5  ;;  %v3112_v28 = vstv %s2510_s6  ;;  %s3164_s5 = sld [smem:[#allocation2 + $0x18]]  ;;  %s3331_s6 = sld [smem:[#allocation2 + $0x39]] }
  0xf4   :  { %5428 = vst [vmem:[#allocation5_spill] sm:$0xff] %v3110_v27  ;;  %5429 = vst [vmem:[#allocation6_spill] sm:$0xff] %v3112_v28  ;;  %v3201_v61 = vstv %s3142_s27  ;;  %s3297_s27 = sld [smem:[#allocation2 + $0x1b]] }
  0xf5   :  { %2462 = vmatmul.mubr.msk.f32.vlgmr.msra.gmra.mrb[2].mxu1 %vm234_vm2, %v224_v13  ;;  %5440 = vst [vmem:[#allocation17_spill] sm:$0xff] %v3201_v61 }
  0xf6   :  { %309 = vmatprep.mubr.f32.mxu1 %v2947_v2 }
  0xf9   :  { %2463 = vmatmul.mubr.msk.f32.gmra.mrb[4].mxu1 %vm234_vm2, %v226_v29 }
  0xfa   :  { %2760 = vmatprep.mubr.msk.f32.mxu1 %vm234_vm2, %v398_v32 }
 0x1c5   :  { %v2755_v39 = vpop.f32.mrb[4].mxu0 }
 0x1c6   :  { %v388_v40 = vadd.f32 %v2755_v39, %v231_v37  ;;  %v382_v41 = vpop.f32.mrb[5].mxu0  ;;  %v1308_v39 = vstv %s2624_s30  ;;  %s3158_s30 = sld [smem:[#allocation2 + $0xb]] }
 0x1c7   :  { %v383_v42 = vadd.f32 %v382_v41, %v229_v38  ;;  %v3056_v41 = vld [vmem:[%s5206_s1 + $0x200] sm:$0xff] }
 0x1c8   :  { %v396_v43 = vmax.f32 %v388_v40, 0.0  ;;  %v305_v44 = vpop.f32.mrb[2].mxu1  ;;  %v769_v40 = vstv %s2499_s4  ;;  %s3084_s4 = sld [smem:[#allocation2 + $0x84]] }
 0x1c9   :  { %v393_v45 = vmax.f32 %v383_v42, 0.0  ;;  %v306_v46 = vadd.f32 %v305_v44, %v229_v38  ;;  %v307_v47 = vpop.f32.mrb[3].mxu1 }
 0x1ca   :  { %v308_v48 = vadd.f32 %v307_v47, %v229_v38  ;;  %v764_v38 = vmul.f32 %v3050_v34, %v763_v33  ;;  %v1314_v47 = vstv %s2626_s7  ;;  %s3340_s7 = sld [smem:[#allocation2 + $0x1d]] }
 0x1cb   :  { %v2775_v49 = vpack.c.bf16 %v396_v43, %v393_v45  ;;  %v391_v55 = vmax.f32 %v306_v46, 0.0  ;;  %v1309_v43 = vmul.f32 %v2484_v7, %v1308_v39  ;;  %v770_v45 = vmul.f32 %v3056_v41, %v769_v40  ;;  %v2625_v46 = vld [vmem:[%s5206_s1 + $0x1c0] sm:$0xff] }
 0x1cc   :  { %v311_v50 = vpop.f32.mrb[4].mxu1  ;;  %v392_v57 = vmax.f32 %v308_v48, 0.0  ;;  %v775_v48 = vstv %s2501_s8  ;;  %s3176_s8 = sld [smem:[#allocation2 + $0x13]] }
 0x1cd   :  { %v312_v51 = vadd.f32 %v311_v50, %v231_v37  ;;  %v313_v52 = vpop.f32.mrb[5].mxu1  ;;  %2776 = vmatprep.subr.bf16.mxu1 %v2775_v49 }
 0x1ce   :  { %v314_v53 = vadd.f32 %v313_v52, %v231_v37  ;;  %2778 = vmatpush3.bf16.msra.mxu1 %v2775_v49  ;;  %v3065_v49 = vld [vmem:[%s5206_s1 + $0x208] sm:$0xff] }
 0x1cf   :  { %v394_v56 = vmax.f32 %v312_v51, 0.0  ;;  %v1315_v51 = vmul.f32 %v2625_v46, %v1314_v47  ;;  %v3160_v46 = vstv %s2511_s2  ;;  %v2635_v47 = vld [vmem:[%s5206_s1 + $0x210] sm:$0xff]  ;;  %s3418_s2 = sld [smem:[#allocation2 + $0x3b]] }
 0x1d0   :  { %v395_v58 = vmax.f32 %v314_v53, 0.0  ;;  %v776_v53 = vmul.f32 %v3065_v49, %v775_v48  ;;  %5434 = vst [vmem:[#allocation11_spill] sm:$0xff] %v3160_v46  ;;  %v1680_v48 = vstv %s3103_s17  ;;  %s3218_s17 = sld [smem:[#allocation2 + $0xf]] }
 0x1d1   :  { %v2773_v59 = vpack.c.bf16 %v394_v56, %v391_v55  ;;  %2761 = vmatmul.mubr.msk.f32.vlgmr.msra.gmra.mrb[6].mxu1 %vm234_vm2, %v400_v54  ;;  %v781_v55 = vstv %s2503_s12  ;;  %v2502_v56 = vld [vmem:[%s5206_s1 + $0x218] sm:$0xff]  ;;  %s2513_s12 = sld [smem:[#allocation2 + $0x3]] }
 0x1d2   :  { %v2771_v60 = vpack.c.bf16 %v395_v58, %v392_v57 }
 0x1d4   :  { %2772 = vmatprep.subr.bf16.mxu0 %v2771_v60  ;;  %v782_v60 = vmul.f32 %v2502_v56, %v781_v55 }
 0x1d5   :  { %2774 = vmatpush1.bf16.msra.mxu0 %v2773_v59 }
 0x1d8   :  { %2466 = vmatmul.mubr.msk.f32.vlgmr.msra.gmra.mrb[6].mxu0 %vm234_vm2, %v398_v32  ;;  %v1304_v32 = vstv %s2623_s24  ;;  %s2631_s24 = sld [smem:[#allocation2 + $0x82]] }
 0x1d9   :  { %475 = vmatprep.mubr.f32.mxu0 %v2947_v2  ;;  %v2482_v2 = vld [vmem:[%s5206_s1 + $0x1b0] sm:$0xff] }
 0x1da   :  { %v722_v6 = vmul.f32 %v2482_v2, %v721_v4  ;;  %v1305_v36 = vmul.f32 %v2482_v2, %v1304_v32  ;;  %v788_v2 = vmul.f32 %v3075_v63, %v787_v62  ;;  %v1326_v4 = vstv %s2629_s20  ;;  %s3114_s20 = sld [smem:[#allocation2 + $0x11]] }
 0x1db   :  { %v1327_v8 = vmul.f32 %v2492_v23, %v1326_v4 }
 0x1dc   :  { %2467 = vmatmul.mubr.msk.f32.gmra.mrb[8].mxu0 %vm234_vm2, %v400_v54  ;;  %v723_v9 = vadd.f32 %v722_v6, %v717_v5  ;;  %v1306_v42 = vadd.f32 %v1305_v36, %v1302_v35  ;;  %v1318_v54 = vstv %s2627_s11  ;;  %v793_v5 = vstv %s2507_s21  ;;  %v3081_v6 = vld [vmem:[%s5206_s1 + $0x228] sm:$0xff]  ;;  %s2512_s11 = sld [smem:[#allocation2 + $0x2]]  ;;  %s3116_s21 = sld [smem:[#allocation2 + $0x6]] }
 0x1dd   :  { %v1319_v58 = vmul.f32 %v3035_v15, %v1318_v54  ;;  %v1344_v35 = vstv %s3095_s13  ;;  %v3138_v36 = vstv %s2515_s14  ;;  %v3184_v54 = vstv %s3124_s23  ;;  %s3196_s13 = sld [smem:[#allocation2 + $0xc]]  ;;  %s3207_s14 = sld [smem:[#allocation2 + $0xd]] }
 0x1de   :  { %v729_v13 = vadd.f32 %v728_v10, %v723_v9  ;;  %v1310_v50 = vadd.f32 %v1309_v43, %v1306_v42  ;;  %v794_v10 = vmul.f32 %v3081_v6, %v793_v5  ;;  %v1332_v12 = vstv %s2631_s24  ;;  %s3126_s24 = sld [smem:[#allocation2 + $0x9]]  ;;  %5432 = vst [vmem:[#allocation9_spill] sm:$0xff] %v3138_v36  ;;  %5438 = vst [vmem:[#allocation15_spill] sm:$0xff] %v3184_v54 }
 0x1df   :  { %v1350_v42 = vstv %s3098_s16  ;;  %s3216_s16 = sld [smem:[#allocation2 + $0xe]]  ;;  %vm695_vm2 = vcmask 516096  }
 0x1e0   :  { %v735_v17 = vadd.f32 %v734_v14, %v729_v13  ;;  %v1316_v57 = vadd.f32 %v1315_v51, %v1310_v50  ;;  %v799_v13 = vstv %s2509_s25  ;;  %v2630_v14 = vld [vmem:[%s5206_s1 + $0x1e8] sm:$0xff]  ;;  %s3134_s25 = sld [smem:[#allocation2 + $0x87]]  ;;  %v3174_v51 = vstv %s3118_s22  ;;  %s3254_s22 = sld [smem:[#allocation2 + $0x8d]] }
 0x1e1   :  { %v800_v20 = vmul.f32 %v3092_v16, %v799_v13  ;;  %5436 = vst [vmem:[#allocation13_spill] sm:$0xff] %v3174_v51  ;;  %v3240_v13 = vstv %s3158_s30  ;;  %s3312_s30 = sld [smem:[#allocation2 + $0x38]] }
 0x1e2   :  { %v741_v21 = vadd.f32 %v740_v18, %v735_v17  ;;  %v1320_v0 = vadd.f32 %v1319_v58, %v1316_v57  ;;  %v1333_v18 = vmul.f32 %v2630_v14, %v1332_v12  ;;  %v3171_v50 = vstv %s3116_s21  ;;  %5442 = vst [vmem:[#allocation19_spill] sm:$0xff] %v3240_v13  ;;  %s3251_s21 = sld [smem:[#allocation2 + $0x1a]] }
 0x1e3   :  { %5435 = vst [vmem:[#allocation12_spill] sm:$0xff] %v3171_v50  ;;  %v3237_v12 = vstv %s3156_s29  ;;  %s3307_s29 = sld [smem:[#allocation2 + $0x17]] }
 0x1e4   :  { %v747_v25 = vadd.f32 %v746_v22, %v741_v21  ;;  %v1324_v7 = vadd.f32 %v1323_v1, %v1320_v0  ;;  %v1336_v21 = vstv %s2632_s28  ;;  %s3150_s28 = sld [smem:[#allocation2 + $0x88]]  ;;  %v3187_v55 = vstv %s3126_s24  ;;  %5441 = vst [vmem:[#allocation18_spill] sm:$0xff] %v3237_v12  ;;  %s4230_s24 = sld [smem:[#allocation2 + $0x97]] }
 0x1e5   :  { %v1337_v23 = vmul.f32 %v3050_v34, %v1336_v21  ;;  %5439 = vst [vmem:[#allocation16_spill] sm:$0xff] %v3187_v55  ;;  %v1362_v21 = vstv %s3178_s9  ;;  %s3347_s9 = sld [smem:[#allocation2 + $0x67]] }
 0x1e6   :  { %v753_v29 = vadd.f32 %v752_v26, %v747_v25  ;;  %v1328_v17 = vadd.f32 %v1327_v8, %v1324_v7  ;;  %v1340_v25 = vstv %s3084_s4  ;;  %v3108_v26 = vld [vmem:[%s5206_s1] sm:$0xff]  ;;  %s3162_s4 = sld [smem:[#allocation2 + $0x60]]  ;;  %v3228_v7 = vmul.f32 %v3029_v11, %v1680_v48 }
 0x1e7   :  { %v1341_v32 = vmul.f32 %v3056_v41, %v1340_v25  ;;  %v805_v33 = vmul.f32 %v3110_v27, %v3108_v26  ;;  %v1345_v41 = vmul.f32 %v3065_v49, %v1344_v35  ;;  %v838_v62 = vmul.f32 %v3171_v50, %v3108_v26  ;;  %v2537_v11 = vld [vmem:[%s5206_s1 + $0x20] sm:$0xff] }
 0x1e8   :  { %v759_v37 = vadd.f32 %v758_v30, %v753_v29  ;;  %v1334_v22 = vadd.f32 %v1333_v18, %v1328_v17  ;;  %v3120_v29 = vstv %s2512_s11  ;;  %v3122_v30 = vstv %s2513_s12  ;;  %s3191_s11 = sld [smem:[#allocation2 + $0x30]]  ;;  %s3194_s12 = sld [smem:[#allocation2 + $0x14]]  ;;  %v2547_v25 = vld [vmem:[%s5206_s1 + $0x80] sm:$0xff] }
 0x1e9   :  { %5430 = vst [vmem:[#allocation7_spill] sm:$0xff] %v3120_v29  ;;  %5431 = vst [vmem:[#allocation8_spill] sm:$0xff] %v3122_v30 }
 0x1ea   :  { %v765_v44 = vadd.f32 %v764_v38, %v759_v37  ;;  %v1338_v31 = vadd.f32 %v1337_v23, %v1334_v22  ;;  %v3140_v37 = vstv %s2516_s15  ;;  %v816_v38 = vmul.f32 %v3120_v29, %v3108_v26  ;;  %s3209_s15 = sld [smem:[#allocation2 + $0x19]] }
 0x1eb   :  { %5433 = vst [vmem:[#allocation10_spill] sm:$0xff] %v3140_v37  ;;  %v1358_v17 = vstv %s3150_s28  ;;  %v860_v22 = vmul.f32 %v3237_v12, %v3108_v26  ;;  %s3299_s28 = sld [smem:[#allocation2 + $0x64]] }
 0x1ec   :  { %v771_v52 = vadd.f32 %v770_v45, %v765_v44  ;;  %v1342_v40 = vadd.f32 %v1341_v32, %v1338_v31  ;;  %v827_v44 = vmul.f32 %v3138_v36, %v3108_v26  ;;  %v3270_v31 = vstv %s3189_s10  ;;  %s3349_s10 = sld [smem:[#allocation2 + $0x50]] }
 0x1ed   :  { %5446 = vst [vmem:[#allocation23_spill] sm:$0xff] %v3270_v31 }
 0x1ee   :  { %v777_v59 = vadd.f32 %v776_v53, %v771_v52  ;;  %v1351_v52 = vmul.f32 %v2635_v47, %v1350_v42  ;;  %v3181_v53 = vstv %s3114_s20  ;;  %v1346_v56 = vadd.f32 %v1345_v41, %v1342_v40  ;;  %s3430_s20 = sld [smem:[#allocation2 + $0x36]] }
 0x1ef   :  { %5437 = vst [vmem:[#allocation14_spill] sm:$0xff] %v3181_v53  ;;  %v3273_v32 = vstv %s3191_s11  ;;  %v3289_v40 = vstv %s3196_s13  ;;  %v3292_v41 = vstv %s3207_s14  ;;  %s3363_s11 = sld [smem:[#allocation2 + $0x61]]  ;;  %s3558_s13 = sld [smem:[#allocation2 + $0x3f]] }
 0x1f0   :  { %v783_v3 = vadd.f32 %v782_v60, %v777_v59  ;;  %v1354_v59 = vstv %s3134_s25  ;;  %v1683_v60 = vstv %s3136_s26  ;;  %v3224_v4 = vadd.f32 %v1351_v52, %v1346_v56  ;;  %5447 = vst [vmem:[#allocation24_spill] sm:$0xff] %v3273_v32  ;;  %s3275_s25 = sld [smem:[#allocation2 + $0x32]]  ;;  %s3282_s26 = sld [smem:[#allocation2 + $0x16]]  ;;  %5449 = vst [vmem:[#allocation26_spill] sm:$0xff] %v3289_v40 }
 0x1f1   :  { %v1355_v5 = vmul.f32 %v3075_v63, %v1354_v59  ;;  %v3231_v8 = vmul.f32 %v3035_v15, %v1683_v60  ;;  %v3246_v63 = vstv %s3162_s4  ;;  %v3249_v15 = vstv %s3164_s5  ;;  %5450 = vst [vmem:[#allocation27_spill] sm:$0xff] %v3292_v41  ;;  %s3321_s4 = sld [smem:[#allocation2 + $0x33]]  ;;  %s3329_s5 = sld [smem:[#allocation2 + $0x1c]] }
 0x1f2   :  { %v789_v9 = vadd.f32 %v788_v2, %v783_v3  ;;  %v849_v3 = vmul.f32 %v3184_v54, %v3108_v26  ;;  %5443 = vst [vmem:[#allocation20_spill] sm:$0xff] %v3246_v63  ;;  %5444 = vst [vmem:[#allocation21_spill] sm:$0xff] %v3249_v15  ;;  %v901_v35 = vadd.f32 %v2537_v11, %v3246_v63  ;;  %v3295_v42 = vstv %s3209_s15  ;;  %s3377_s15 = sld [smem:[#allocation2 + $0x3a]]  ;;  %s3560_s14 = sld [smem:[#allocation2 + $0x68]] }
 0x1f3   :  { %5451 = vst [vmem:[#allocation28_spill] sm:$0xff] %v3295_v42  ;;  %v3316_v52 = vstv %s3220_s18  ;;  %v3319_v56 = vstv %s3222_s19  ;;  %s3405_s18 = sld [smem:[#allocation2 + $0x21]]  ;;  %s3413_s19 = sld [smem:[#allocation2 + $0x1e]] }
 0x1f4   :  { %v795_v19 = vadd.f32 %v794_v10, %v789_v9  ;;  %5454 = vst [vmem:[#allocation31_spill] sm:$0xff] %v3316_v52  ;;  %5455 = vst [vmem:[#allocation32_spill] sm:$0xff] %v3319_v56 }
 0x1f6   :  { %v3100_v24 = vadd.f32 %v800_v20, %v795_v19  ;;  %v3259_v19 = vstv %s3176_s8  ;;  %s3342_s8 = sld [smem:[#allocation2 + $0x34]] }
 0x1f7   :  { %5445 = vst [vmem:[#allocation22_spill] sm:$0xff] %v3259_v19 }
 0x1f8   :  { %v808_v34 = vmul.f32 %v3112_v28, %v3100_v24  ;;  %v819_v39 = vmul.f32 %v3122_v30, %v3100_v24  ;;  %v830_v45 = vmul.f32 %v3140_v37, %v3100_v24  ;;  %v841_v0 = vmul.f32 %v3174_v51, %v3100_v24 }
 0x1f9   :  { %v852_v2 = vmul.f32 %v3187_v55, %v3100_v24  ;;  %v863_v23 = vmul.f32 %v3240_v13, %v3100_v24 }
 0x1fa   :  { %v809_v43 = vadd.f32 %v808_v34, %v805_v33  ;;  %v820_v49 = vadd.f32 %v819_v39, %v816_v38  ;;  %v831_v58 = vadd.f32 %v830_v45, %v827_v44  ;;  %v842_v14 = vadd.f32 %v841_v0, %v838_v62 }
 0x1fb   :  { %v853_v20 = vadd.f32 %v852_v2, %v849_v3  ;;  %v3280_v34 = vstv %s3194_s12  ;;  %v3305_v44 = vstv %s3218_s17  ;;  %v938_v45 = vadd.f32 %v2547_v25, %v3270_v31  ;;  %s3365_s12 = sld [smem:[#allocation2 + $0x20]]  ;;  %s3395_s17 = sld [smem:[#allocation2 + $0x51]] }
 0x1fc   :  { %v812_v57 = vadd.f32 %v3160_v46, %v809_v43  ;;  %v823_v1 = vadd.f32 %v3181_v53, %v820_v49  ;;  %v834_v10 = vadd.f32 %v3201_v61, %v831_v58  ;;  %5448 = vst [vmem:[#allocation25_spill] sm:$0xff] %v3280_v34  ;;  %v845_v39 = vadd.f32 %v3259_v19, %v842_v14 }
 0x1fd   :  { %v3302_v43 = vstv %s3216_s16  ;;  %5453 = vst [vmem:[#allocation30_spill] sm:$0xff] %v3305_v44  ;;  %v856_v48 = vadd.f32 %v3280_v34, %v853_v20  ;;  %v864_v49 = vadd.f32 %v863_v23, %v860_v22  ;;  %v874_v58 = vmul.f32 %v3292_v41, %v3100_v24  ;;  %v2579_v23 = vld [vmem:[%s5206_s1 + $0xa0] sm:$0xff]  ;;  %s3385_s16 = sld [smem:[#allocation2 + $0x35]] }
 0x1fe   :  { %v3233_v9 = vmax.f32 %v812_v57, 0.0  ;;  %v3256_v18 = vmax.f32 %v823_v1, 0.0  ;;  %v3277_v33 = vmax.f32 %v834_v10, 0.0  ;;  %5452 = vst [vmem:[#allocation29_spill] sm:$0xff] %v3302_v43  ;;  %v871_v57 = vmul.f32 %v3289_v40, %v3108_v26 }
 0x1ff   :  { %v882_v62 = vmul.f32 %v3302_v43, %v3108_v26  ;;  %v885_v0 = vmul.f32 %v3305_v44, %v3100_v24  ;;  %v3338_v1 = vstv %s3251_s21  ;;  %v3352_v26 = vadd.f32 %v1355_v5, %v3224_v4  ;;  %s3432_s21 = sld [smem:[#allocation2 + $0x22]] }
 0x200   :  { %v904_v38 = vmul.f32 %v3249_v15, %v3233_v9  ;;  %v941_v47 = vmul.f32 %v3273_v32, %v3233_v9  ;;  %v908_v60 = vmul.f32 %v3295_v42, %v3256_v18  ;;  %5456 = vst [vmem:[#allocation33_spill] sm:$0xff] %v3338_v1  ;;  %v945_v10 = vmul.f32 %v3319_v56, %v3256_v18 }
 0x201   :  { %v3355_v24 = vmul.f32 %v3081_v6, %v1358_v17  ;;  %v3357_v14 = vmax.f32 %v845_v39, 0.0  ;;  %v867_v11 = vadd.f32 %v3316_v52, %v864_v49  ;;  %v3361_v20 = vstv %s3275_s25  ;;  %s3445_s25 = sld [smem:[#allocation2 + $0x52]] }
 0x202   :  { %v905_v59 = vadd.f32 %v904_v38, %v901_v35  ;;  %v942_v2 = vadd.f32 %v941_v47, %v938_v45  ;;  %5457 = vst [vmem:[#allocation34_spill] sm:$0xff] %v3361_v20  ;;  %v3368_v22 = vmul.f32 %v3092_v16, %v1362_v21  ;;  %v3370_v4 = vmax.f32 %v856_v48, 0.0 }
 0x203   :  { %v875_v6 = vadd.f32 %v874_v58, %v871_v57  ;;  %v912_v17 = vmul.f32 %v3338_v1, %v3277_v33  ;;  %v3380_v25 = vstv %s3282_s26  ;;  %v886_v35 = vadd.f32 %v885_v0, %v882_v62  ;;  %s3447_s26 = sld [smem:[#allocation2 + $0x1f]] }
 0x204   :  { %v909_v5 = vadd.f32 %v908_v60, %v905_v59  ;;  %5458 = vst [vmem:[#allocation35_spill] sm:$0xff] %v3380_v25  ;;  %v3383_v16 = vstv %s3297_s27  ;;  %v3388_v21 = vstv %s3299_s28  ;;  %v3391_v38 = vstv %s3307_s29  ;;  %s3464_s29 = sld [smem:[#allocation2 + $0x37]]  ;;  %s3637_s28 = sld [smem:[#allocation2 + $0x29]] }
 0x205   :  { %5459 = vst [vmem:[#allocation36_spill] sm:$0xff] %v3383_v16  ;;  %5460 = vst [vmem:[#allocation37_spill] sm:$0xff] %v3388_v21  ;;  %v946_v39 = vadd.f32 %v945_v10, %v942_v2  ;;  %v949_v45 = vmul.f32 %v3361_v20, %v3277_v33  ;;  %v3398_v47 = vstv %s3312_s30  ;;  %v3400_v48 = vmax.f32 %v867_v11, 0.0  ;;  %s3469_s30 = sld [smem:[#allocation2 + $0x3c]]  ;;  %s3635_s27 = sld [smem:[#allocation2 + $0x57]] }
 0x206   :  { %5461 = vst [vmem:[#allocation38_spill] sm:$0xff] %v3391_v38  ;;  %5462 = vst [vmem:[#allocation39_spill] sm:$0xff] %v3398_v47  ;;  %v3403_v49 = vstv %s3321_s4  ;;  %v1085_v57 = vadd.f32 %v2579_v23, %v3388_v21  ;;  %v1088_v58 = vmul.f32 %v3398_v47, %v3233_v9  ;;  %v878_v59 = vadd.f32 %v3380_v25, %v875_v6  ;;  %v2569_v23 = vld [vmem:[%s5206_s1 + $0x100] sm:$0xff]  ;;  %s3482_s4 = sld [smem:[#allocation2 + $0x23]] }
 0x207   :  { %5463 = vst [vmem:[#allocation40_spill] sm:$0xff] %v3403_v49  ;;  %v913_v60 = vadd.f32 %v912_v17, %v909_v5  ;;  %v916_v62 = vmul.f32 %v3383_v16, %v3357_v14  ;;  %v3416_v0 = vstv %s3331_s6  ;;  %v889_v2 = vadd.f32 %v3391_v38, %v886_v35  ;;  %s3496_s6 = sld [smem:[#allocation2 + $0x8a]] }
 0x208   :  { %5464 = vst [vmem:[#allocation41_spill] sm:$0xff] %v3416_v0  ;;  %v3422_v10 = vstv %s3329_s5  ;;  %v3425_v11 = vstv %s3340_s7  ;;  %v3428_v6 = vstv %s3342_s8  ;;  %v950_v5 = vadd.f32 %v949_v45, %v946_v39  ;;  %v2559_v39 = vld [vmem:[%s5206_s1 + $0x40] sm:$0xff]  ;;  %s3487_s5 = sld [smem:[#allocation2 + $0x53]]  ;;  %s3506_s7 = sld [smem:[#allocation2 + $0x3d]] }
 0x209   :  { %5465 = vst [vmem:[#allocation42_spill] sm:$0xff] %v3422_v10  ;;  %5466 = vst [vmem:[#allocation43_spill] sm:$0xff] %v3425_v11  ;;  %v953_v17 = vmul.f32 %v3403_v49, %v3357_v14  ;;  %v3440_v35 = vstv %s3347_s9  ;;  %v3443_v3 = vstv %s3349_s10  ;;  %v3453_v45 = vstv %s3363_s11  ;;  %s3514_s8 = sld [smem:[#allocation2 + $0x24]]  ;;  %s3520_s9 = sld [smem:[#allocation2 + $0x25]] }
 0x20a   :  { %5467 = vst [vmem:[#allocation44_spill] sm:$0xff] %v3428_v6  ;;  %5468 = vst [vmem:[#allocation45_spill] sm:$0xff] %v3440_v35  ;;  %v3456_v47 = vstv %s3365_s12  ;;  %v1089_v21 = vadd.f32 %v1088_v58, %v1085_v57  ;;  %v1092_v38 = vmul.f32 %v3416_v0, %v3256_v18  ;;  %v3460_v25 = vmax.f32 %v878_v59, 0.0  ;;  %s3525_s10 = sld [smem:[#allocation2 + $0x54]]  ;;  %s3533_s11 = sld [smem:[#allocation2 + $0x3e]] }
 0x20b   :  { %5469 = vst [vmem:[#allocation46_spill] sm:$0xff] %v3443_v3  ;;  %5470 = vst [vmem:[#allocation47_spill] sm:$0xff] %v3453_v45  ;;  %v917_v49 = vadd.f32 %v916_v62, %v913_v60  ;;  %v920_v16 = vmul.f32 %v3422_v10, %v3370_v4  ;;  %v3467_v44 = vstv %s3377_s15  ;;  %v957_v57 = vmul.f32 %v3428_v6, %v3370_v4  ;;  %s3550_s12 = sld [smem:[#allocation2 + $0x55]]  ;;  %s3564_s15 = sld [smem:[#allocation2 + $0x58]] }
 0x20c   :  { %5471 = vst [vmem:[#allocation48_spill] sm:$0xff] %v3456_v47  ;;  %5472 = vst [vmem:[#allocation49_spill] sm:$0xff] %v3467_v44  ;;  %v3474_v58 = vstv %s3385_s16  ;;  %v1045_v59 = vadd.f32 %v2569_v23, %v3440_v35  ;;  %v1048_v60 = vmul.f32 %v3443_v3, %v3233_v9  ;;  %v954_v62 = vadd.f32 %v953_v17, %v950_v5  ;;  %s3566_s16 = sld [smem:[#allocation2 + $0x65]] }
 0x20d   :  { %5473 = vst [vmem:[#allocation50_spill] sm:$0xff] %v3474_v58  ;;  %v1008_v0 = vadd.f32 %v2559_v39, %v3453_v45  ;;  %v1011_v10 = vmul.f32 %v3456_v47, %v3233_v9  ;;  %v3485_v6 = vstv %s3395_s17  ;;  %v924_v23 = vmul.f32 %v3425_v11, %v3400_v48  ;;  %s3575_s17 = sld [smem:[#allocation2 + $0x56]] }
 0x20e   :  { %5474 = vst [vmem:[#allocation51_spill] sm:$0xff] %v3485_v6  ;;  %v3492_v35 = vstv %s3405_s18  ;;  %v1093_v3 = vadd.f32 %v1092_v38, %v1089_v21  ;;  %v1096_v5 = vmul.f32 %v3467_v44, %v3277_v33  ;;  %v921_v17 = vadd.f32 %v920_v16, %v917_v49  ;;  %s3580_s18 = sld [smem:[#allocation2 + $0x40]] }
 0x20f   :  { %5475 = vst [vmem:[#allocation52_spill] sm:$0xff] %v3492_v35  ;;  %v3499_v39 = vstv %s3413_s19  ;;  %v961_v47 = vmul.f32 %v3474_v58, %v3400_v48  ;;  %v3504_v45 = vstv %s3418_s2  ;;  %v3509_v11 = vstv %s3430_s20  ;;  %s3589_s19 = sld [smem:[#allocation2 + $0x41]]  ;;  %s3597_s2 = sld [smem:[#allocation2 + $0x62]] }
 0x210   :  { %5476 = vst [vmem:[#allocation53_spill] sm:$0xff] %v3499_v39  ;;  %5477 = vst [vmem:[#allocation54_spill] sm:$0xff] %v3504_v45  ;;  %v3512_v52 = vstv %s3432_s21  ;;  %v1049_v21 = vadd.f32 %v1048_v60, %v1045_v59  ;;  %v1052_v16 = vmul.f32 %v3485_v6, %v3256_v18  ;;  %v958_v38 = vadd.f32 %v957_v57, %v954_v62  ;;  %s3599_s20 = sld [smem:[#allocation2 + $0x28]]  ;;  %s3606_s21 = sld [smem:[#allocation2 + $0x59]] }
 0x211   :  { %5478 = vst [vmem:[#allocation55_spill] sm:$0xff] %v3509_v11  ;;  %5479 = vst [vmem:[#allocation56_spill] sm:$0xff] %v3512_v52  ;;  %v1012_v49 = vadd.f32 %v1011_v10, %v1008_v0  ;;  %v1015_v44 = vmul.f32 %v3492_v35, %v3256_v18  ;;  %v3523_v58 = vstv %s3445_s25  ;;  %v3527_v20 = vmax.f32 %v889_v2, 0.0  ;;  %s3619_s25 = sld [smem:[#allocation2 + $0x26]] }
 0x212   :  { %5480 = vst [vmem:[#allocation57_spill] sm:$0xff] %v3523_v58  ;;  %v928_v59 = vmul.f32 %v3499_v39, %v3460_v25  ;;  %v1097_v60 = vadd.f32 %v1096_v5, %v1093_v3  ;;  %v1100_v0 = vmul.f32 %v3504_v45, %v3357_v14  ;;  %v925_v10 = vadd.f32 %v924_v23, %v921_v17 }
 0x213   :  { %v3536_v57 = vstv %s3447_s26  ;;  %v3539_v62 = vstv %s3464_s29  ;;  %v3542_v6 = vstv %s3469_s30  ;;  %v965_v2 = vmul.f32 %v3509_v11, %v3460_v25  ;;  %s3621_s26 = sld [smem:[#allocation2 + $0x42]]  ;;  %s3820_s30 = sld [smem:[#allocation2 + $0x5f]] }
 0x214   :  { %5481 = vst [vmem:[#allocation58_spill] sm:$0xff] %v3536_v57  ;;  %5482 = vst [vmem:[#allocation59_spill] sm:$0xff] %v3539_v62  ;;  %v1019_v39 = vmul.f32 %v3512_v52, %v3277_v33  ;;  %v1053_v3 = vadd.f32 %v1052_v16, %v1049_v21  ;;  %v1056_v5 = vmul.f32 %v3523_v58, %v3277_v33  ;;  %v3553_v45 = vstv %s3482_s4  ;;  %s3842_s4 = sld [smem:[#allocation2 + $0x2f]] }
 0x215   :  { %5483 = vst [vmem:[#allocation60_spill] sm:$0xff] %v3542_v6  ;;  %v962_v23 = vadd.f32 %v961_v47, %v958_v38  ;;  %v1016_v17 = vadd.f32 %v1015_v44, %v1012_v49  ;;  %5484 = vst [vmem:[#allocation61_spill] sm:$0xff] %v3553_v45  ;;  %v3556_v35 = vstv %s3487_s5  ;;  %v1101_v11 = vadd.f32 %v1100_v0, %v1097_v60  ;;  %s3853_s5 = sld [smem:[#allocation2 + $0x8e]] }
 0x216   :  { %5485 = vst [vmem:[#allocation62_spill] sm:$0xff] %v3556_v35  ;;  %v1104_v21 = vmul.f32 %v3542_v6, %v3370_v4  ;;  %v1360_v44 = vadd.f32 %v3355_v24, %v3352_v26  ;;  %v1368_v47 = vstv %s3496_s6  ;;  %v929_v16 = vadd.f32 %v928_v59, %v925_v10  ;;  %s3656_s6 = sld [smem:[#allocation2 + $0x5a]] }
 0x217   :  { %v932_v38 = vmul.f32 %v3536_v57, %v3527_v20  ;;  %v969_v49 = vmul.f32 %v3539_v62, %v3527_v20  ;;  %v3578_v60 = vstv %s3506_s7  ;;  %v1023_v0 = vmul.f32 %v3553_v45, %v3357_v14  ;;  %s3661_s7 = sld [smem:[#allocation2 + $0x27]] }
 0x218   :  { %5486 = vst [vmem:[#allocation63_spill] sm:$0xff] %v3578_v60  ;;  %v3585_v26 = vstv %s3514_s8  ;;  %v1057_v24 = vadd.f32 %v1056_v5, %v1053_v3  ;;  %v1060_v59 = vmul.f32 %v3556_v35, %v3357_v14  ;;  %v966_v10 = vadd.f32 %v965_v2, %v962_v23  ;;  %s3672_s8 = sld [smem:[#allocation2 + $0x43]] }
 0x219   :  { %5487 = vst [vmem:[#allocation64_spill] sm:$0xff] %v3585_v26  ;;  %v1020_v6 = vadd.f32 %v1019_v39, %v1016_v17  ;;  %v3592_v58 = vstv %s3520_s9  ;;  %v3595_v62 = vstv %s3525_s10  ;;  %v1105_v57 = vadd.f32 %v1104_v21, %v1101_v11  ;;  %v2640_v39 = vld [vmem:[%s5206_s1 + $0x238] sm:$0xff]  ;;  %s3687_s9 = sld [smem:[#allocation2 + $0x2a]]  ;;  %s4296_s10 = sld [smem:[#allocation2 + $0x99]] }
 0x21a   :  { %5488 = vst [vmem:[#allocation65_spill] sm:$0xff] %v3592_v58  ;;  %5489 = vst [vmem:[#allocation66_spill] sm:$0xff] %v3595_v62  ;;  %v1108_v3 = vmul.f32 %v3578_v60, %v3400_v48  ;;  %v3604_v5 = vstv %s3533_s11  ;;  %v3613_v2 = vadd.f32 %v3231_v8, %v3228_v7  ;;  %v3615_v23 = vadd.f32 %v932_v38, %v929_v16  ;;  %v2601_v60 = vld [vmem:[%s5206_s1 + $0x120] sm:$0xff]  ;;  %s4318_s11 = sld [smem:[#allocation2 + $0x9a]] }
 0x21b   :  { %5490 = vst [vmem:[#allocation67_spill] sm:$0xff] %v3604_v5  ;;  %v1027_v11 = vmul.f32 %v3585_v26, %v3370_v4  ;;  %v3624_v17 = vadd.f32 %v3368_v22, %v1360_v44  ;;  %v3626_v21 = vmul.f32 %v2640_v39, %v1368_v47  ;;  %v1031_v7 = vmul.f32 %v3592_v58, %v3400_v48  ;;  %v2611_v22 = vld [vmem:[%s5206_s1 + $0xc0] sm:$0xff] }
 0x21c   :  { %v1061_v8 = vadd.f32 %v1060_v59, %v1057_v24  ;;  %v1064_v16 = vmul.f32 %v3595_v62, %v3370_v4  ;;  %v3633_v38 = vstv %s3550_s12  ;;  %v970_v44 = vadd.f32 %v969_v49, %v966_v10  ;;  %s3698_s12 = sld [smem:[#allocation2 + $0x5b]] }
 0x21d   :  { %5491 = vst [vmem:[#allocation68_spill] sm:$0xff] %v3633_v38  ;;  %v1024_v47 = vadd.f32 %v1023_v0, %v1020_v6  ;;  %v1112_v24 = vmul.f32 %v3604_v5, %v3460_v25  ;;  %v3645_v59 = vstv %s3558_s13  ;;  %v1109_v39 = vadd.f32 %v1108_v3, %v1105_v57  ;;  %s3708_s13 = sld [smem:[#allocation2 + $0x44]] }
 0x21e   :  { %5492 = vst [vmem:[#allocation69_spill] sm:$0xff] %v3645_v59  ;;  %v3651_v62 = vstv %s3560_s14  ;;  %v3654_v35 = vstv %s3564_s15  ;;  %v3659_v6 = vstv %s3566_s16  ;;  %v1068_v49 = vmul.f32 %v3633_v38, %v3400_v48  ;;  %s3718_s14 = sld [smem:[#allocation2 + $0x2b]]  ;;  %s3728_s15 = sld [smem:[#allocation2 + $0x5c]] }
 0x21f   :  { %5493 = vst [vmem:[#allocation70_spill] sm:$0xff] %v3651_v62  ;;  %5494 = vst [vmem:[#allocation71_spill] sm:$0xff] %v3654_v35  ;;  %v3666_v57 = vstv %s3575_s17  ;;  %v1233_v0 = vadd.f32 %v2611_v22, %v3659_v6  ;;  %v3670_v10 = vstv %s3580_s18  ;;  %v1065_v3 = vadd.f32 %v1064_v16, %v1061_v8  ;;  %s3740_s16 = sld [smem:[#allocation2 + $0x45]]  ;;  %s3746_s17 = sld [smem:[#allocation2 + $0x2c]] }
 0x220   :  { %5495 = vst [vmem:[#allocation72_spill] sm:$0xff] %v3659_v6  ;;  %5496 = vst [vmem:[#allocation73_spill] sm:$0xff] %v3666_v57  ;;  %v1116_v5 = vmul.f32 %v3645_v59, %v3527_v20  ;;  %v1236_v58 = vmul.f32 %v3670_v10, %v3233_v9  ;;  %v3679_v26 = vstv %s3589_s19  ;;  %v3682_v38 = vstv %s3597_s2  ;;  %s3759_s2 = sld [smem:[#allocation2 + $0x5d]]  ;;  %s3973_s19 = sld [smem:[#allocation2 + $0x91]] }
 0x221   :  { %5497 = vst [vmem:[#allocation74_spill] sm:$0xff] %v3670_v10  ;;  %5498 = vst [vmem:[#allocation75_spill] sm:$0xff] %v3679_v26  ;;  %v3685_v45 = vstv %s3599_s20  ;;  %v1193_v22 = vadd.f32 %v2601_v60, %v3651_v62  ;;  %v1196_v8 = vmul.f32 %v3654_v35, %v3233_v9  ;;  %v1113_v16 = vadd.f32 %v1112_v24, %v1109_v39  ;;  %v2591_v10 = vld [vmem:[%s5206_s1 + $0x60] sm:$0xff]  ;;  %s3768_s20 = sld [smem:[#allocation2 + $0x46]] }
 0x222   :  { %5499 = vst [vmem:[#allocation76_spill] sm:$0xff] %v3682_v38  ;;  %5500 = vst [vmem:[#allocation77_spill] sm:$0xff] %v3685_v45  ;;  %v3696_v6 = vstv %s3606_s21  ;;  %v1237_v59 = vadd.f32 %v1236_v58, %v1233_v0  ;;  %v1240_v52 = vmul.f32 %v3679_v26, %v3256_v18  ;;  %v2556_v43 = vclamps-f32 %v970_v44, 10.0  ;;  %s3778_s21 = sld [smem:[#allocation2 + $0x2d]] }
 0x223   :  { %5501 = vst [vmem:[#allocation78_spill] sm:$0xff] %v3696_v6  ;;  %v1028_v60 = vadd.f32 %v1027_v11, %v1024_v47  ;;  %v3703_v62 = vstv %s3619_s25  ;;  %v3706_v1 = vstv %s3621_s26  ;;  %v1069_v24 = vadd.f32 %v1068_v49, %v1065_v3  ;;  %s3792_s25 = sld [smem:[#allocation2 + $0x5e]]  ;;  %s3799_s26 = sld [smem:[#allocation2 + $0x47]] }
 0x224   :  { %5502 = vst [vmem:[#allocation79_spill] sm:$0xff] %v3703_v62  ;;  %5503 = vst [vmem:[#allocation80_spill] sm:$0xff] %v3706_v1  ;;  %v1072_v39 = vmul.f32 %v3666_v57, %v3460_v25  ;;  %v3713_v35 = vstv %s3635_s27  ;;  %v3716_v58 = vstv %s3637_s28  ;;  %v1156_v11 = vadd.f32 %v2591_v10, %v3682_v38  ;;  %s3806_s27 = sld [smem:[#allocation2 + $0x2e]] }
 0x225   :  { %5504 = vst [vmem:[#allocation81_spill] sm:$0xff] %v3713_v35  ;;  %5505 = vst [vmem:[#allocation82_spill] sm:$0xff] %v3716_v58  ;;  %v1159_v44 = vmul.f32 %v3685_v45, %v3233_v9  ;;  %v1197_v47 = vadd.f32 %v1196_v8, %v1193_v22  ;;  %v1200_v49 = vmul.f32 %v3696_v6, %v3256_v18  ;;  %v3726_v3 = vstv %s3656_s6 }
 0x226   :  { %v1117_v0 = vadd.f32 %v1116_v5, %v1113_v16  ;;  %5506 = vst [vmem:[#allocation83_spill] sm:$0xff] %v3726_v3  ;;  %v1241_v26 = vadd.f32 %v1240_v52, %v1237_v59  ;;  %v1244_v57 = vmul.f32 %v3706_v1, %v3277_v33  ;;  %v1032_v41 = vadd.f32 %v1031_v7, %v1028_v60  ;;  %v2533_v7 = vld [vmem:[%s5206_s1 + $0x140] sm:$0xff] }
 0x227   :  { %v1035_v10 = vmul.f32 %v3703_v62, %v3460_v25  ;;  %v3735_v9 = vstv %s3661_s7  ;;  %v3738_v22 = vstv %s3672_s8  ;;  %v973_v5 = vsub.f32 0.0, %v2556_v43  ;;  %s4085_s8 = sld [smem:[#allocation2 + $0x6a]] }
 0x228   :  { %5507 = vst [vmem:[#allocation84_spill] sm:$0xff] %v3735_v9  ;;  %5508 = vst [vmem:[#allocation85_spill] sm:$0xff] %v3738_v22  ;;  %v1073_v8 = vadd.f32 %v1072_v39, %v1069_v24  ;;  %v1076_v52 = vmul.f32 %v3713_v35, %v3527_v20  ;;  %v1163_v59 = vmul.f32 %v3716_v58, %v3256_v18  ;;  %v3752_v60 = vstv %s3687_s9  ;;  %s4108_s9 = sld [smem:[#allocation2 + $0x93]] }
 0x229   :  { %v1160_v16 = vadd.f32 %v1159_v44, %v1156_v11  ;;  %5509 = vst [vmem:[#allocation86_spill] sm:$0xff] %v3752_v60  ;;  %v1201_v1 = vadd.f32 %v1200_v49, %v1197_v47  ;;  %v1204_v43 = vmul.f32 %v3726_v3, %v3277_v33  ;;  %v2588_v24 = vclamps-f32 %v1117_v0, 10.0 }
 0x22a   :  { %v3757_v39 = vstv %s3698_s12  ;;  %v1245_v18 = vadd.f32 %v1244_v57, %v1241_v26  ;;  %v1248_v6 = vmul.f32 %v3738_v22, %v3357_v14  ;;  %v1036_v58 = vadd.f32 %v1035_v10, %v1032_v41  ;;  %v3783_v41 = vld [vmem:[%s5206_s1 + $0x8] sm:$0xff] }
 0x22b   :  { %5510 = vst [vmem:[#allocation87_spill] sm:$0xff] %v3757_v39  ;;  %v1039_v11 = vmul.f32 %v3735_v9, %v3527_v20  ;;  %v3766_v44 = vstv %s3708_s13  ;;  %v3772_v47 = vadd.f32 %v3626_v21, %v3624_v17  ;;  %v974_v49 = vmul.f32 1.442695, %v973_v5  ;;  %s3937_s13 = sld [smem:[#allocation2 + $0x8f]] }
 0x22c   :  { %5511 = vst [vmem:[#allocation88_spill] sm:$0xff] %v3766_v44  ;;  %v1077_v0 = vadd.f32 %v1076_v52, %v1073_v8  ;;  %v1078_v26 = vsub.f32 %v2533_v7, %v3615_v23  ;;  %v3776_v57 = vstv %s3718_s14  ;;  %v1164_v10 = vadd.f32 %v1163_v59, %v1160_v16  ;;  %s4131_s14 = sld [smem:[#allocation2 + $0x94]] }
 0x22d   :  { %5512 = vst [vmem:[#allocation89_spill] sm:$0xff] %v3776_v57  ;;  %v1167_v22 = vmul.f32 %v3752_v60, %v3277_v33  ;;  %v1205_v17 = vadd.f32 %v1204_v43, %v1201_v1  ;;  %v1208_v21 = vmul.f32 %v3757_v39, %v3357_v14  ;;  %v1120_v5 = vsub.f32 0.0, %v2588_v24 }
 0x22e   :  { %v3790_v8 = vstv %s3728_s15  ;;  %v1249_v52 = vadd.f32 %v1248_v6, %v1245_v18  ;;  %v1252_v3 = vmul.f32 %v3766_v44, %v3370_v4  ;;  %v976_v45 = vadd.f32 0.5, %v2533_v7  ;;  %s4663_s15 = sld [smem:[#allocation2 + $0x9f]] }
 0x22f   :  { %5513 = vst [vmem:[#allocation90_spill] sm:$0xff] %v3790_v8  ;;  %v2557_v59 = vadd.f32 -0.5, %v2533_v7  ;;  %v3797_v16 = vstv %s3740_s16  ;;  %v1373_v33 = vmul.f32 %v3783_v41, %v3110_v27  ;;  %2790 = vpow2.f32 %v974_v49  ;;  %v3815_v49 = vld [vmem:[%s5206_s1 + $0x160] sm:$0xff]  ;;  %s3956_s16 = sld [smem:[#allocation2 + $0x90]] }
 0x230   :  { %5514 = vst [vmem:[#allocation91_spill] sm:$0xff] %v3797_v16  ;;  %v1040_v1 = vadd.f32 %v1039_v11, %v1036_v58  ;;  %v1079_v43 = vmul.f32 %v1078_v26, %v1077_v0  ;;  %v3804_v24 = vstv %s3746_s17  ;;  %v1168_v6 = vadd.f32 %v1167_v22, %v1164_v10  ;;  %s4681_s17 = sld [smem:[#allocation2 + $0xa0]] }
 0x231   :  { %5515 = vst [vmem:[#allocation92_spill] sm:$0xff] %v3804_v24  ;;  %v1171_v18 = vmul.f32 %v3776_v57, %v3357_v14  ;;  %v1209_v7 = vadd.f32 %v1208_v21, %v1205_v17  ;;  %v1212_v44 = vmul.f32 %v3790_v8, %v3370_v4  ;;  %v1121_v58 = vmul.f32 1.442695, %v1120_v5 }
 0x232   :  { %v3818_v11 = vstv %s3759_s2  ;;  %v1253_v0 = vadd.f32 %v1252_v3, %v1249_v52  ;;  %v1256_v14 = vmul.f32 %v3797_v16, %v3400_v48  ;;  %v3825_v22 = vsub.f32 %v976_v45, %v3615_v23  ;;  %s3984_s2 = sld [smem:[#allocation2 + $0x92]] }
 0x233   :  { %5516 = vst [vmem:[#allocation93_spill] sm:$0xff] %v3818_v11  ;;  %v1123_v26 = vadd.f32 0.5, %v3815_v49  ;;  %v3829_v10 = vstv %s3768_s20  ;;  %v1374_v17 = vmul.f32 %v3772_v47, %v3112_v28  ;;  %v3834_v21 = vsub.f32 %v2557_v59, %v3615_v23  ;;  %s4204_s20 = sld [smem:[#allocation2 + $0x96]] }
 0x234   :  { %5517 = vst [vmem:[#allocation94_spill] sm:$0xff] %v3829_v10  ;;  %v2589_v3 = vadd.f32 -0.5, %v3815_v49  ;;  %v1175_v5 = vmul.f32 %v3804_v24, %v3370_v4  ;;  %v3840_v52 = vstv %s3778_s21  ;;  %v3844_v45 = vadd.f32 %v1079_v43, %v1040_v1  ;;  %s4692_s21 = sld [smem:[#allocation2 + $0xa1]] }
 0x235   :  { %5518 = vst [vmem:[#allocation95_spill] sm:$0xff] %v3840_v52  ;;  %v1172_v27 = vadd.f32 %v1171_v18, %v1168_v6  ;;  %v1213_v16 = vadd.f32 %v1212_v44, %v1209_v7  ;;  %v1216_v28 = vmul.f32 %v3818_v11, %v3400_v48  ;;  %2792 = vpow2.f32 %v1121_v58 }
 0x236   :  { %v3849_v23 = vstv %s3792_s25  ;;  %v1257_v59 = vadd.f32 %v1256_v14, %v1253_v0  ;;  %v1260_v8 = vmul.f32 %v3829_v10, %v3460_v25  ;;  %v980_v4 = vand.u32 2147483647, %v3825_v22  ;;  %s4702_s25 = sld [smem:[#allocation2 + $0xa2]] }
 0x237   :  { %5519 = vst [vmem:[#allocation96_spill] sm:$0xff] %v3849_v23  ;;  %v3857_v1 = vsub.f32 %v1123_v26, %v3844_v45  ;;  %v3860_v43 = vstv %s3799_s26  ;;  %v1375_v44 = vadd.f32 %v1374_v17, %v1373_v33  ;;  %v1179_v6 = vmul.f32 %v3840_v52, %v3400_v48  ;;  %s4713_s26 = sld [smem:[#allocation2 + $0xa3]] }
 0x238   :  { %5520 = vst [vmem:[#allocation97_spill] sm:$0xff] %v3860_v43  ;;  %v3865_v18 = vstv %s3806_s27  ;;  %v1378_v7 = vmul.f32 %v3783_v41, %v3120_v29  ;;  %v1379_v58 = vmul.f32 %v3772_v47, %v3122_v30  ;;  %v3872_v0 = vsub.f32 %v2589_v3, %v3844_v45 }
 0x239   :  { %5521 = vst [vmem:[#allocation98_spill] sm:$0xff] %v3865_v18  ;;  %v1176_v14 = vadd.f32 %v1175_v5, %v1172_v27  ;;  %v1217_v26 = vadd.f32 %v1216_v28, %v1213_v16  ;;  %v1220_v33 = vmul.f32 %v3849_v23, %v3460_v25  ;;  %v2791_v17 = vpop.eup %2790  ;;  %v986_v48 = vand.u32 2147483647, %v3834_v21 }
 0x23a   :  { %v3878_v10 = vstv %s3820_s30  ;;  %v1261_v11 = vadd.f32 %v1260_v8, %v1257_v59  ;;  %v1264_v29 = vmul.f32 %v3860_v43, %v3527_v20  ;;  %v981_v39 = vsub.f32 0.0, %v980_v4 }
 0x23b   :  { %5522 = vst [vmem:[#allocation99_spill] sm:$0xff] %v3878_v10  ;;  %v1127_v3 = vand.u32 2147483647, %v3857_v1  ;;  %v1183_v27 = vmul.f32 %v3865_v18, %v3460_v25  ;;  %v1376_v28 = vadd.f32 %v1375_v44, %v3160_v46  ;;  %v3887_v16 = vstv %s3842_s4  ;;  %v2910_v44 = vld [vmem:[%s5206_s1 + $0x1d8] sm:$0xff]  ;;  %s4257_s4 = sld [smem:[#allocation2 + $0x98]] }
 0x23c   :  { %v1380_v5 = vadd.f32 %v1379_v58, %v1378_v7  ;;  %v1383_v30 = vmul.f32 %v3783_v41, %v3138_v36  ;;  %v1384_v8 = vmul.f32 %v3772_v47, %v3140_v37  ;;  %v1133_v59 = vand.u32 2147483647, %v3872_v0 }
 0x23d   :  { %v1180_v4 = vadd.f32 %v1179_v6, %v1176_v14  ;;  %v1221_v43 = vadd.f32 %v1220_v33, %v1217_v26  ;;  %v1224_v23 = vmul.f32 %v3878_v10, %v3527_v20  ;;  %v987_v52 = vsub.f32 0.0, %v986_v48 }
 0x23e   :  { %v1265_v25 = vadd.f32 %v1264_v29, %v1261_v11  ;;  %v5523_v7 = vstv %s3254_s22  ;;  %v1691_v46 = vstv %s3853_s5  ;;  %v982_v36 = vmul.f32 %v2791_v17, %v981_v39  ;;  %s4083_s22 = sld [smem:[#allocation2 + $0x69]]  ;;  %s4736_s5 = sld [smem:[#allocation2 + $0xa5]] }
 0x23f   :  { %v1688_v58 = vmul.f32 %v2910_v44, %v5523_v7  ;;  %v1128_v18 = vsub.f32 0.0, %v1127_v3  ;;  %v1388_v37 = vmul.f32 %v3783_v41, %v3171_v50  ;;  %v1389_v6 = vmul.f32 %v3772_v47, %v3174_v51  ;;  %v2793_v14 = vpop.eup %2792  ;;  %v2646_v3 = vld [vmem:[%s5206_s1 + $0x28] sm:$0xff] }
 0x240   :  { %v1187_v26 = vmul.f32 %v3887_v16, %v3527_v20  ;;  %v3908_v29 = vmax.f32 %v1376_v28, 0.0  ;;  %v1381_v11 = vadd.f32 %v1380_v5, %v3181_v53  ;;  %v1385_v33 = vadd.f32 %v1384_v8, %v1383_v30  ;;  %v2911_v20 = vld [vmem:[%s5206_s1 + $0x1e0] sm:$0xff] }
 0x241   :  { %v1134_v48 = vsub.f32 0.0, %v1133_v59  ;;  %v1184_v44 = vadd.f32 %v1183_v27, %v1180_v4  ;;  %v1225_v7 = vadd.f32 %v1224_v23, %v1221_v43  ;;  %v1226_v39 = vsub.f32 %v3815_v49, %v3844_v45  ;;  %v2535_v8 = vld [vmem:[%s5206_s1 + $0x180] sm:$0xff] }
 0x242   :  { %v988_v51 = vmul.f32 %v2791_v17, %v987_v52  ;;  %v2620_v50 = vclamps-f32 %v1265_v25, 10.0  ;;  %v3917_v10 = vadd.f32 %v1688_v58, %v3613_v2  ;;  %v3922_v30 = vmul.f32 %v2911_v20, %v1691_v46  ;;  %v2647_v52 = vld [vmem:[%s5206_s1 + $0x88] sm:$0xff] }
 0x243   :  { %v1129_v27 = vmul.f32 %v2793_v14, %v1128_v18  ;;  %v1390_v23 = vadd.f32 %v1389_v6, %v1388_v37  ;;  %v1393_v49 = vmul.f32 %v3783_v41, %v3184_v54  ;;  %v1394_v45 = vmul.f32 %v3772_v47, %v3187_v55 }
 0x244   :  { %v3931_v2 = vmax.f32 %v1381_v11, 0.0  ;;  %v1386_v43 = vadd.f32 %v1385_v33, %v3201_v61  ;;  %v1421_v17 = vadd.f32 %v2646_v3, %v3246_v63  ;;  %v1422_v46 = vmul.f32 %v3908_v29, %v3249_v15 }
 0x245   :  { %v983_v37 = vmul.f32 1.442695, %v982_v36  ;;  %v1135_v18 = vmul.f32 %v2793_v14, %v1134_v48  ;;  %v1188_v28 = vadd.f32 %v1187_v26, %v1184_v44  ;;  %v1227_v5 = vmul.f32 %v1226_v39, %v1225_v7 }
 0x246   :  { %v989_v59 = vmul.f32 1.442695, %v988_v51  ;;  %v1268_v4 = vsub.f32 0.0, %v2620_v50  ;;  %v1440_v25 = vadd.f32 %v2647_v52, %v3270_v31  ;;  %v1441_v58 = vmul.f32 %v3908_v29, %v3273_v32 }
 0x247   :  { %v1130_v6 = vmul.f32 1.442695, %v1129_v27  ;;  %v1395_v11 = vadd.f32 %v1394_v45, %v1393_v49  ;;  %v1398_v36 = vmul.f32 %v3783_v41, %v3237_v12  ;;  %v1399_v14 = vmul.f32 %v3772_v47, %v3240_v13  ;;  %v5524_v45 = vld [vmem:[#allocation27_spill] sm:$0xff]  ;;  %v5544_v12 = vld [vmem:[#allocation53_spill] sm:$0xff] }
 0x248   :  { %v3949_v26 = vmax.f32 %v1386_v43, 0.0  ;;  %v1391_v33 = vadd.f32 %v1390_v23, %v3259_v19  ;;  %v1423_v48 = vadd.f32 %v1422_v46, %v1421_v17  ;;  %v1424_v50 = vmul.f32 %v3931_v2, %v3295_v42  ;;  %v5525_v46 = vld [vmem:[#allocation33_spill] sm:$0xff] }
 0x249   :  { %2794 = vpow2.f32 %v983_v37  ;;  %v1136_v51 = vmul.f32 1.442695, %v1135_v18  ;;  %v1228_v44 = vadd.f32 %v1227_v5, %v1188_v28  ;;  %v1271_v7 = vadd.f32 0.5, %v2535_v8  ;;  %v2650_v5 = vld [vmem:[%s5206_s1 + $0x48] sm:$0xff] }
 0x24a   :  { %2796 = vpow2.f32 %v989_v59  ;;  %v1269_v39 = vmul.f32 1.442695, %v1268_v4  ;;  %v1442_v3 = vadd.f32 %v1441_v58, %v1440_v25  ;;  %v1443_v20 = vmul.f32 %v3931_v2, %v3319_v56  ;;  %v5526_v4 = vld [vmem:[#allocation29_spill] sm:$0xff] }
 0x24b   :  { %v1396_v27 = vadd.f32 %v1395_v11, %v3280_v34  ;;  %v1400_v23 = vadd.f32 %v1399_v14, %v1398_v36  ;;  %v1403_v49 = vmul.f32 %v3783_v41, %v3289_v40  ;;  %v1404_v52 = vmul.f32 %v3772_v47, %v5524_v45  ;;  %v5528_v14 = vld [vmem:[#allocation31_spill] sm:$0xff] }
 0x24c   :  { %2798 = vpow2.f32 %v1130_v6  ;;  %v3963_v43 = vmax.f32 %v1391_v33, 0.0  ;;  %v1425_v17 = vadd.f32 %v1424_v50, %v1423_v48  ;;  %v1426_v37 = vmul.f32 %v3949_v26, %v5525_v46  ;;  %v5527_v6 = vld [vmem:[#allocation34_spill] sm:$0xff] }
 0x24d   :  { %2800 = vpow2.f32 %v1136_v51  ;;  %v3967_v18 = vsub.f32 %v1271_v7, %v1228_v44  ;;  %v2621_v28 = vadd.f32 -0.5, %v2535_v8  ;;  %v1695_v59 = vstv %s3937_s13  ;;  %v5529_v48 = vld [vmem:[#allocation30_spill] sm:$0xff]  ;;  %v5530_v7 = vld [vmem:[#allocation36_spill] sm:$0xff]  ;;  %s4772_s13 = sld [smem:[#allocation2 + $0xa8]] }
 0x24e   :  { %2802 = vpow2.f32 %v1269_v39  ;;  %v1408_v25 = vmul.f32 %v3783_v41, %v5526_v4  ;;  %v1444_v58 = vadd.f32 %v1443_v20, %v1442_v3  ;;  %v1445_v11 = vmul.f32 %v3949_v26, %v5527_v6  ;;  %v5531_v41 = vld [vmem:[#allocation47_spill] sm:$0xff]  ;;  %v5532_v20 = vld [vmem:[#allocation48_spill] sm:$0xff]  ;;  %v5535_v46 = vld [vmem:[#allocation42_spill] sm:$0xff] }
 0x24f   :  { %v3979_v36 = vmax.f32 %v1396_v27, 0.0  ;;  %v1401_v8 = vadd.f32 %v1400_v23, %v5528_v14  ;;  %v1405_v33 = vadd.f32 %v1404_v52, %v1403_v49  ;;  %v1409_v50 = vmul.f32 %v3772_v47, %v5529_v48  ;;  %v2912_v23 = vld [vmem:[%s5206_s1 + $0x1f0] sm:$0xff] }
 0x250   :  { %v1427_v51 = vadd.f32 %v1426_v37, %v1425_v17  ;;  %v1428_v39 = vmul.f32 %v3963_v43, %v5530_v7  ;;  %v1492_v3 = vadd.f32 %v2650_v5, %v5531_v41  ;;  %v1493_v4 = vmul.f32 %v3908_v29, %v5532_v20  ;;  %v5533_v17 = vld [vmem:[#allocation40_spill] sm:$0xff]  ;;  %v5534_v48 = vld [vmem:[#allocation35_spill] sm:$0xff] }
 0x251   :  { %v1693_v27 = vadd.f32 %v3922_v30, %v3917_v10  ;;  %v1696_v49 = vmul.f32 %v2912_v23, %v1695_v59  ;;  %v3996_v47 = vsub.f32 %v2621_v28, %v1228_v44  ;;  %v1446_v52 = vadd.f32 %v1445_v11, %v1444_v58  ;;  %v5536_v59 = vld [vmem:[#allocation52_spill] sm:$0xff]  ;;  %v4012_v11 = vld [vmem:[%s5205_s0 + $0x8] sm:$0xf] }
 0x252   :  { %v1447_v37 = vmul.f32 %v3963_v43, %v5533_v17  ;;  %v1699_v7 = vstv %s3956_s16  ;;  %v1275_v41 = vand.u32 2147483647, %v3967_v18  ;;  %v4002_v20 = vmax.f32 %v1401_v8, 0.0 }
 0x253   :  { %v2795_v5 = vpop.eup %2794  ;;  %v1406_v10 = vadd.f32 %v1405_v33, %v5534_v48  ;;  %v1410_v30 = vadd.f32 %v1409_v50, %v1408_v25  ;;  %v1429_v6 = vadd.f32 %v1428_v39, %v1427_v51  ;;  %v1430_v44 = vmul.f32 %v3979_v36, %v5535_v46  ;;  %v2914_v25 = vld [vmem:[%s5206_s1 + $0x1f8] sm:$0xff] }
 0x254   :  { %v2797_v14 = vpop.eup %2796  ;;  %v1494_v28 = vadd.f32 %v1493_v4, %v1492_v3  ;;  %v1495_v58 = vmul.f32 %v3931_v2, %v5536_v59  ;;  %v4015_v8 = vadd.f32 0.5, %v4012_v11  ;;  %v4017_v33 = vadd.f32 %v1696_v49, %v1693_v27  ;;  %v5537_v59 = vld [vmem:[#allocation44_spill] sm:$0xff]  ;;  %v5538_v27 = vld [vmem:[#allocation38_spill] sm:$0xff] }
 0x255   :  { %v4022_v50 = vmul.f32 %v2914_v25, %v1699_v7  ;;  %v1703_v4 = vstv %s3973_s19  ;;  %v985_v39 = vmul.f32 0.5, %v2795_v5  ;;  %v1281_v3 = vand.u32 2147483647, %v3996_v47  ;;  %v5539_v7 = vld [vmem:[#allocation43_spill] sm:$0xff]  ;;  %v5540_v5 = vld [vmem:[#allocation56_spill] sm:$0xff] }
 0x256   :  { %v2799_v51 = vpop.eup %2798  ;;  %v1448_v23 = vadd.f32 %v1447_v37, %v1446_v52  ;;  %v1449_v46 = vmul.f32 %v3979_v36, %v5537_v59  ;;  %v1276_v17 = vsub.f32 0.0, %v1275_v41  ;;  %v4028_v34 = vmax.f32 %v1406_v10, 0.0  ;;  %v2651_v52 = vld [vmem:[%s5206_s1 + $0x108] sm:$0xff] }
 0x257   :  { %v2801_v48 = vpop.eup %2800  ;;  %v1411_v49 = vadd.f32 %v1410_v30, %v5538_v27  ;;  %v1431_v56 = vadd.f32 %v1430_v44, %v1429_v6  ;;  %v1432_v25 = vmul.f32 %v4002_v20, %v5539_v7  ;;  %v1496_v42 = vadd.f32 %v1495_v58, %v1494_v28  ;;  %v2915_v6 = vld [vmem:[%s5206_s1 + $0x200] sm:$0xff]  ;;  %v5541_v28 = vld [vmem:[#allocation50_spill] sm:$0xff] }
 0x258   :  { %v2803_v40 = vpop.eup %2802  ;;  %v1497_v19 = vmul.f32 %v3949_v26, %v5540_v5  ;;  %v991_v37 = vmul.f32 0.5, %v2797_v14  ;;  %vm992_vm3 = vcmp.le.f32.partialorder %v3825_v22, 0.0  ;;  %vm995_vm4 = vcmp.le.f32.partialorder %v3834_v21, 0.0  ;;  %v5542_v14 = vld [vmem:[#allocation45_spill] sm:$0xff]  ;;  %v5543_v27 = vld [vmem:[#allocation46_spill] sm:$0xff] }
 0x259   :  { %v4044_v41 = vmul.f32 %v2915_v6, %v1703_v4  ;;  %v993_v10 = vsub.f32 1.0, %v985_v39  ;;  %v1282_v30 = vsub.f32 0.0, %v1281_v3  ;;  %v1450_v44 = vadd.f32 %v1449_v46, %v1448_v23  ;;  %v5545_v6 = vld [vmem:[#allocation61_spill] sm:$0xff]  ;;  %v4074_v22 = vld [vmem:[%s5206_s1 + $0x148] sm:$0xff] }
 0x25a   :  { %v1451_v58 = vmul.f32 %v4002_v20, %v5541_v28  ;;  %v1277_v45 = vmul.f32 %v2803_v40, %v1276_v17  ;;  %v4048_v5 = vmax.f32 %v1411_v49, 0.0  ;;  %v1511_v7 = vadd.f32 %v2651_v52, %v5542_v14  ;;  %v5546_v52 = vld [vmem:[#allocation55_spill] sm:$0xff]  ;;  %v5549_v14 = vld [vmem:[#allocation64_spill] sm:$0xff]  ;;  %v2652_v21 = vld [vmem:[%s5206_s1 + $0xa8] sm:$0xff] }
 0x25b   :  { %v1512_v59 = vmul.f32 %v3908_v29, %v5543_v27  ;;  %v1433_v13 = vadd.f32 %v1432_v25, %v1431_v56  ;;  %v1434_v32 = vmul.f32 %v4028_v34, %v5544_v12  ;;  %v1498_v4 = vadd.f32 %v1497_v19, %v1496_v42  ;;  %v5547_v42 = vld [vmem:[#allocation51_spill] sm:$0xff] }
 0x25c   :  { %v1499_v3 = vmul.f32 %v3963_v43, %v5545_v6  ;;  %v996_v46 = vsub.f32 1.0, %v991_v37  ;;  %v1132_v23 = vmul.f32 0.5, %v2799_v51  ;;  %v1138_v31 = vmul.f32 0.5, %v2801_v48  ;;  %v5548_v51 = vld [vmem:[#allocation58_spill] sm:$0xff] }
 0x25d   :  { %vm1139_vm5 = vcmp.le.f32.partialorder %v3857_v1, 0.0  ;;  %vm1142_vm6 = vcmp.le.f32.partialorder %v3872_v0, 0.0  ;;  %v1283_v17 = vmul.f32 %v2803_v40, %v1282_v30  ;;  %v1452_v49 = vadd.f32 %v1451_v58, %v1450_v44 }
 0x25e   :  { %v1453_v28 = vmul.f32 %v4028_v34, %v5546_v52  ;;  %v994_v56 = vsel %vm992_vm3, %v985_v39, %v993_v10  ;;  %v1278_v25 = vmul.f32 1.442695, %v1277_v45  ;;  %v1513_v19 = vadd.f32 %v1512_v59, %v1511_v7  ;;  %v5550_v45 = vld [vmem:[#allocation59_spill] sm:$0xff]  ;;  %v5551_v10 = vld [vmem:[#allocation57_spill] sm:$0xff] }
 0x25f   :  { %v1514_v6 = vmul.f32 %v3931_v2, %v5547_v42  ;;  %v1435_v12 = vadd.f32 %v1434_v32, %v1433_v13  ;;  %v1436_v48 = vmul.f32 %v4048_v5, %v5548_v51  ;;  %v1500_v27 = vadd.f32 %v1499_v3, %v1498_v4  ;;  %v5554_v51 = vld [vmem:[#allocation39_spill] sm:$0xff] }
 0x260   :  { %v1501_v40 = vmul.f32 %v3979_v36, %v5549_v14  ;;  %v997_v30 = vsel %vm995_vm4, %v991_v37, %v996_v46  ;;  %v1140_v44 = vsub.f32 1.0, %v1132_v23  ;;  %v1143_v58 = vsub.f32 1.0, %v1138_v31 }
 0x261   :  { %v1455_v13 = vmul.f32 %v4048_v5, %v5550_v45  ;;  %v1284_v32 = vmul.f32 1.442695, %v1283_v17  ;;  %v1454_v59 = vadd.f32 %v1453_v28, %v1452_v49  ;;  %v1462_v39 = vadd.f32 0.5, %v4074_v22  ;;  %v5552_v49 = vld [vmem:[#allocation65_spill] sm:$0xff] }
 0x262   :  { %v2649_v7 = vadd.f32 -0.5, %v4074_v22  ;;  %2804 = vpow2.f32 %v1278_v25  ;;  %v1515_v37 = vadd.f32 %v1514_v6, %v1513_v19  ;;  %v1516_v4 = vmul.f32 %v3949_v26, %v5551_v10  ;;  %v5553_v6 = vld [vmem:[#allocation37_spill] sm:$0xff] }
 0x263   :  { %v1701_v28 = vadd.f32 %v4022_v50, %v4017_v33  ;;  %v998_v3 = vsub.f32 %v994_v56, %v997_v30  ;;  %v4091_v46 = vadd.f32 %v1436_v48, %v1435_v12  ;;  %v1502_v17 = vadd.f32 %v1501_v40, %v1500_v27 }
 0x264   :  { %v1503_v14 = vmul.f32 %v4002_v20, %v5552_v49  ;;  %v1141_v45 = vsel %vm1139_vm5, %v1132_v23, %v1140_v44  ;;  %v1144_v25 = vsel %vm1142_vm6, %v1138_v31, %v1143_v58  ;;  %v1533_v19 = vadd.f32 %v2652_v21, %v5553_v6  ;;  %v2916_v31 = vld [vmem:[%s5205_s0] sm:$0xf]  ;;  %v5557_v23 = vld [vmem:[#allocation62_spill] sm:$0xff] }
 0x265   :  { %v1534_v52 = vmul.f32 %v3908_v29, %v5554_v51  ;;  %2806 = vpow2.f32 %v1284_v32  ;;  %v1456_v33 = vadd.f32 %v1455_v13, %v1454_v59  ;;  %v4103_v12 = vsub.f32 %v1462_v39, %v4091_v46  ;;  %v5559_v39 = vld [vmem:[#allocation41_spill] sm:$0xff] }
 0x266   :  { %v4106_v50 = vsub.f32 %v2649_v7, %v4091_v46  ;;  %v4111_v1 = vadd.f32 -0.5, %v4012_v11  ;;  %v4116_v0 = vadd.f32 0.5, %v2916_v31  ;;  %v1517_v27 = vadd.f32 %v1516_v4, %v1515_v37  ;;  %v2917_v11 = vld [vmem:[%s5206_s1 + $0x208] sm:$0xff] }
 0x267   :  { %5555 = vst [vmem:[#allocation100_spill] sm:$0xff] %v4103_v12  ;;  %v1518_v56 = vmul.f32 %v3963_v43, %v5557_v23  ;;  %v4120_v48 = vadd.f32 -0.5, %v2916_v31  ;;  %v1504_v40 = vadd.f32 %v1503_v14, %v1502_v17  ;;  %v1505_v30 = vmul.f32 %v4028_v34, %v3703_v62 }
 0x268   :  { %5556 = vst [vmem:[#allocation101_spill] sm:$0xff] %v4106_v50  ;;  %v5558_v44 = vstv %s3984_s2  ;;  %v999_v13 = vmax.f32 %v998_v3, 3.0517578e-05  ;;  %v1145_v32 = vsub.f32 %v1141_v45, %v1144_v25  ;;  %v1535_v59 = vadd.f32 %v1534_v52, %v1533_v19  ;;  %v5560_v45 = vld [vmem:[#allocation66_spill] sm:$0xff]  ;;  %v2918_v19 = vld [vmem:[%s5205_s0 + $0x10] sm:$0xf]  ;;  %s4164_s0 = sld [smem:[#allocation2 + $0x95]] }
 0x269   :  { %v1708_v58 = vmul.f32 %v2917_v11, %v5558_v44  ;;  %v1536_v7 = vmul.f32 %v3931_v2, %v5559_v39  ;;  %v2648_v21 = vclamps-f32 %v1456_v33, 10.0  ;;  %v1466_v14 = vand.u32 2147483647, %v4103_v12 }
 0x26a   :  { %v1472_v37 = vand.u32 2147483647, %v4106_v50  ;;  %v1705_v4 = vadd.f32 %v4044_v41, %v1701_v28  ;;  %v4137_v31 = vstv %s4083_s22  ;;  %v4140_v62 = vstv %s4085_s8  ;;  %s4744_s22 = sld [smem:[#allocation2 + $0xa6]] }
 0x26b   :  { %v1519_v3 = vadd.f32 %v1518_v56, %v1517_v27  ;;  %v1520_v52 = vmul.f32 %v3979_v36, %v5560_v45  ;;  %v4149_v33 = vadd.f32 0.5, %v2918_v19  ;;  %v4151_v11 = vadd.f32 -0.5, %v2918_v19 }
 0x26c   :  { %v1506_v41 = vadd.f32 %v1505_v30, %v1504_v40  ;;  %v1507_v28 = vmul.f32 %v4048_v5, %v3735_v9  ;;  %v2805_v44 = vpop.eup %2804  ;;  %2808 = vlog2.f32 %v999_v13  ;;  %v4155_v27 = vmax.f32 %v1145_v32, 3.0517578e-05  ;;  %v5563_v30 = vld [vmem:[#allocation68_spill] sm:$0xff]  ;;  %v5564_v9 = vld [vmem:[#allocation73_spill] sm:$0xff] }
 0x26d   :  { %v1537_v56 = vadd.f32 %v1536_v7, %v1535_v59  ;;  %v1459_v12 = vsub.f32 0.0, %v2648_v21  ;;  %v4159_v49 = vsub.f32 0.0, %v1466_v14  ;;  %v4161_v45 = vsub.f32 0.0, %v1472_v37  ;;  %v5565_v37 = vld [vmem:[#allocation54_spill] sm:$0xff]  ;;  %v5567_v14 = vld [vmem:[#allocation63_spill] sm:$0xff] }
 0x26e   :  { %5561 = vst [vmem:[#allocation102_spill] sm:$0xff] %v4155_v27  ;;  %v1711_v23 = vstv %s4108_s9  ;;  %v1521_v40 = vadd.f32 %v1520_v52, %v1519_v3  ;;  %v1522_v19 = vmul.f32 %v4002_v20, %v5563_v30  ;;  %v1524_v13 = vmul.f32 %v4028_v34, %v5564_v9  ;;  %v5566_v27 = vld [vmem:[#allocation60_spill] sm:$0xff]  ;;  %s4624_s9 = sld [smem:[#allocation2 + $0x9b]] }
 0x26f   :  { %v4172_v32 = vmul.f32 %v4048_v5, %v3713_v35  ;;  %v2807_v59 = vpop.eup %2806  ;;  %v4174_v7 = vmul.f32 0.5, %v2805_v44  ;;  %v4176_v21 = vadd.f32 %v1507_v28, %v1506_v41  ;;  %v1540_v3 = vmul.f32 %v3963_v43, %v5565_v37  ;;  %v2655_v35 = vld [vmem:[%s5206_s1 + $0x68] sm:$0xff]  ;;  %v2919_v41 = vld [vmem:[%s5206_s1 + $0x218] sm:$0xff]  ;;  %v5568_v37 = vld [vmem:[#allocation67_spill] sm:$0xff] }
 0x270   :  { %v1542_v9 = vmul.f32 %v3979_v36, %v5566_v27  ;;  %v1709_v30 = vadd.f32 %v1708_v58, %v1705_v4  ;;  %v1712_v28 = vmul.f32 %v2919_v41, %v1711_v23  ;;  %v1460_v10 = vmul.f32 1.442695, %v1459_v12  ;;  %v5569_v4 = vld [vmem:[#allocation69_spill] sm:$0xff] }
 0x271   :  { %v4198_v39 = vmul.f32 0.5, %v2807_v59  ;;  %v1523_v58 = vadd.f32 %v1522_v19, %v1521_v40  ;;  %v4202_v51 = vmul.f32 %v4048_v5, %v5569_v4  ;;  %vm1287_vm7 = vcmp.le.f32.partialorder %v3967_v18, 0.0 }
 0x272   :  { %v1288_v41 = vsub.f32 1.0, %v4174_v7  ;;  %vm1290_vm8 = vcmp.le.f32.partialorder %v3996_v47, 0.0  ;;  %v1586_v59 = vadd.f32 %v2655_v35, %v3682_v38  ;;  %v1719_v35 = vstv %s4164_s0 }
 0x273   :  { %2810 = vpow2.f32 %v1460_v10  ;;  %v2657_v10 = vld [vmem:[%s5206_s1 + $0xc8] sm:$0xff] }
 0x276   :  { %v4222_v38 = vpop.eup %2808 }
 0x277   :  { %5572 = vst [vmem:[#allocation104_spill] sm:$0xff] %v4222_v38 }
 0x2a4   :  { %v2762_v17 = vpop.f32.mrb[6].mxu1 }
 0x2a5   :  { %v4144_v25 = vpop.f32.mrb[7].mxu1  ;;  %v5562_v17 = vld [vmem:[#allocation49_spill] sm:$0xff] }
 0x2a6   :  { %v1538_v50 = vmul.f32 %v3949_v26, %v5562_v17  ;;  %v1544_v17 = vmul.f32 %v4002_v20, %v5567_v14  ;;  %v1713_v14 = vadd.f32 %v1712_v28, %v1709_v30 }
 0x2a8   :  { %v1539_v52 = vadd.f32 %v1538_v50, %v1537_v56  ;;  %v4194_v50 = vmul.f32 %v4028_v34, %v5568_v37  ;;  %v1715_v56 = vstv %s4131_s14  ;;  %v5570_v37 = vld [vmem:[#allocation77_spill] sm:$0xff]  ;;  %s4651_s14 = sld [smem:[#allocation2 + $0x9e]] }
 0x2a9   :  { %v1587_v40 = vmul.f32 %v3908_v29, %v5570_v37  ;;  %v4276_v37 = vld [vmem:[%s5206_s1 + $0x230] sm:$0xff] }
 0x2aa   :  { %v1541_v4 = vadd.f32 %v1540_v3, %v1539_v52  ;;  %v1525_v52 = vadd.f32 %v1524_v13, %v1523_v58  ;;  %5579 = vst [vmem:[#allocation106_spill] sm:$0xff] %v4276_v37 }
 0x2ab   :  { %v471_v44 = vpop.f32.mrb[6].mxu0  ;;  %v1588_v38 = vadd.f32 %v1587_v40, %v1586_v59  ;;  %v5575_v59 = vld [vmem:[#allocation70_spill] sm:$0xff] }
 0x2ac   :  { %v556_v27 = vadd.f32 %v4137_v31, %v471_v44  ;;  %v561_v12 = vadd.f32 %v4140_v62, %v471_v44  ;;  %v473_v23 = vpop.f32.mrb[7].mxu0  ;;  %v4216_v44 = vld [vmem:[%s5206_s1 + $0x220] sm:$0xff] }
 0x2ad   :  { %5571 = vst [vmem:[#allocation103_spill] sm:$0xff] %v4216_v44  ;;  %v1716_v6 = vmul.f32 %v4216_v44, %v1715_v56  ;;  %v557_v15 = vadd.f32 %v4137_v31, %v473_v23  ;;  %v562_v63 = vadd.f32 %v4140_v62, %v473_v23  ;;  %v5573_v44 = vld [vmem:[#allocation82_spill] sm:$0xff]  ;;  %v1543_v23 = vadd.f32 %v1542_v9, %v1541_v4 }
 0x2ae   :  { %v585_v19 = vrot.slane %v556_v27, 5  ;;  %v2472_v42 = vclamps-f32 %v561_v12, 10.0  ;;  %v1291_v4 = vsub.f32 1.0, %v4198_v39 }
 0x2af   :  { %v477_v55 = vpop.f32.mrb[8].mxu0  ;;  %v2473_v56 = vclamps-f32 %v562_v63, 10.0  ;;  %v586_v12 = vrot.slane %v557_v15, 5  ;;  %v4243_v63 = vld [vmem:[%s5206_s1 + $0x228] sm:$0xff] }
 0x2b0   :  { %v4225_v27 = vsub.f32 %v4116_v0, %v585_v19  ;;  %v4228_v30 = vsub.f32 %v4120_v48, %v585_v19  ;;  %v478_v3 = vpop.f32.mrb[9].mxu0  ;;  %v570_v28 = vsub.f32 0.0, %v2472_v42  ;;  %v1589_v55 = vmul.f32 %v3931_v2, %v5573_v44  ;;  %v2656_v0 = vld [vmem:[%s5206_s1 + $0x128] sm:$0xff]  ;;  %5574 = vst [vmem:[#allocation105_spill] sm:$0xff] %v4243_v63 }
 0x2b1   :  { %v1717_v48 = vadd.f32 %v1716_v6, %v1713_v14  ;;  %v1720_v15 = vmul.f32 %v4243_v63, %v1719_v35  ;;  %v571_v13 = vsub.f32 0.0, %v2473_v56  ;;  %v4247_v58 = vsub.f32 %v4015_v8, %v586_v12  ;;  %v5576_v6 = vld [vmem:[#allocation71_spill] sm:$0xff]  ;;  %v4262_v8 = vld [vmem:[%s5206_s1 + $0x168] sm:$0xff]  ;;  %v5577_v3 = vld [vmem:[#allocation72_spill] sm:$0xff] }
 0x2b2   :  { %v573_v42 = vmul.f32 1.442695, %v570_v28  ;;  %v4250_v9 = vsub.f32 %v4111_v1, %v586_v12  ;;  %v1605_v40 = vadd.f32 %v2656_v0, %v5575_v59  ;;  %v1606_v14 = vmul.f32 %v3908_v29, %v5576_v6  ;;  %v5578_v28 = vld [vmem:[#allocation74_spill] sm:$0xff]  ;;  %v5589_v6 = vld [vmem:[#allocation85_spill] sm:$0xff] }
 0x2b3   :  { %v1723_v19 = vstv %s4204_s20  ;;  %v575_v35 = vmul.f32 1.442695, %v571_v13  ;;  %v1627_v1 = vadd.f32 %v2657_v10, %v5577_v3  ;;  %v1628_v56 = vmul.f32 %v3908_v29, %v5578_v28 }
 0x2b4   :  { %2812 = vpow2.f32 %v573_v42  ;;  %v1527_v12 = vadd.f32 %v4172_v32, %v1525_v52  ;;  %v4269_v0 = vadd.f32 0.5, %v4262_v8  ;;  %v1590_v63 = vadd.f32 %v1589_v55, %v1588_v38  ;;  %v2672_v32 = vld [vmem:[%s5206_s1 + $0x240] sm:$0xff] }
 0x2b5   :  { %v1591_v42 = vmul.f32 %v3949_v26, %v3752_v60  ;;  %2814 = vpow2.f32 %v575_v35  ;;  %v1545_v13 = vadd.f32 %v1544_v17, %v1543_v23  ;;  %v1721_v44 = vadd.f32 %v1720_v15, %v1717_v48  ;;  %v5580_v23 = vld [vmem:[#allocation78_spill] sm:$0xff] }
 0x2b6   :  { %v1724_v10 = vmul.f32 %v4276_v37, %v1723_v19  ;;  %v4282_v29 = vsel %vm1287_vm7, %v4174_v7, %v1288_v41  ;;  %v4287_v38 = vsel %vm1290_vm8, %v4198_v39, %v1291_v4  ;;  %v4290_v17 = vadd.f32 -0.5, %v4262_v8  ;;  %v5581_v41 = vld [vmem:[#allocation75_spill] sm:$0xff]  ;;  %v2811_v39 = vpop.eup %2810  ;;  %v4327_v37 = vld [vmem:[%s5206_s1 + $0x248] sm:$0xff] }
 0x2b7   :  { %v1729_v52 = vstv %s4230_s24  ;;  %v1607_v55 = vadd.f32 %v1606_v14, %v1605_v40  ;;  %v1608_v18 = vmul.f32 %v3931_v2, %v5580_v23  ;;  %v1629_v7 = vadd.f32 %v1628_v56, %v1627_v1  ;;  %v5583_v14 = vld [vmem:[#allocation95_spill] sm:$0xff]  ;;  %5585 = vst [vmem:[#allocation107_spill] sm:$0xff] %v4327_v37 }
 0x2b8   :  { %v1630_v47 = vmul.f32 %v3931_v2, %v5581_v41  ;;  %v5582_v48 = vsub.f32 %v4074_v22, %v4091_v46  ;;  %v1593_v4 = vmul.f32 %v3963_v43, %v3776_v57  ;;  %v4311_v40 = vmul.f32 %v3979_v36, %v3804_v24  ;;  %v5588_v57 = vld [vmem:[#allocation90_spill] sm:$0xff] }
 0x2b9   :  { %v4315_v19 = vmul.f32 %v4002_v20, %v5583_v14  ;;  %v1547_v35 = vadd.f32 %v4194_v50, %v1545_v13  ;;  %v1592_v2 = vadd.f32 %v1591_v42, %v1590_v63  ;;  %v1725_v1 = vadd.f32 %v1724_v10, %v1721_v44  ;;  %v5586_v42 = vld [vmem:[#allocation80_spill] sm:$0xff] }
 0x2ba   :  { %v4305_v15 = vmul.f32 %v5582_v48, %v1527_v12  ;;  %v1730_v56 = vmul.f32 %v2672_v32, %v1729_v52  ;;  %v600_v22 = vand.u32 2147483647, %v4225_v27  ;;  %v627_v46 = vand.u32 2147483647, %v4228_v30  ;;  %v5584_v12 = vld [vmem:[#allocation83_spill] sm:$0xff] }
 0x2bb   :  { %v1610_v48 = vmul.f32 %v3949_v26, %v5584_v12  ;;  %v1735_v14 = vstv %s4257_s4  ;;  %v601_v50 = vand.u32 2147483647, %v4247_v58  ;;  %v1609_v63 = vadd.f32 %v1608_v18, %v1607_v55  ;;  %v5587_v52 = vld [vmem:[#allocation87_spill] sm:$0xff]  ;;  %s4726_s4 = sld [smem:[#allocation2 + $0xa4]] }
 0x2bc   :  { %v1631_v44 = vadd.f32 %v1630_v47, %v1629_v7  ;;  %v1632_v13 = vmul.f32 %v3949_v26, %v5586_v42  ;;  %v628_v10 = vand.u32 2147483647, %v4250_v9  ;;  %v1468_v32 = vmul.f32 %v2811_v39, %v4159_v49  ;;  %v4344_v49 = vld [vmem:[%s5206_s1 + $0x250] sm:$0xff] }
 0x2bd   :  { %v1612_v24 = vmul.f32 %v3963_v43, %v5587_v52  ;;  %v1614_v60 = vmul.f32 %v3979_v36, %v5588_v57  ;;  %v1549_v12 = vadd.f32 %v4202_v51, %v1547_v35  ;;  %v1594_v28 = vadd.f32 %v1593_v4, %v1592_v2 }
 0x2be   :  { %v2813_v41 = vpop.eup %2812  ;;  %v1731_v55 = vadd.f32 %v1730_v56, %v1725_v1  ;;  %v1736_v18 = vmul.f32 %v4327_v37, %v1735_v14  ;;  %v603_v7 = vsub.f32 0.0, %v600_v22  ;;  %v630_v26 = vsub.f32 0.0, %v627_v46 }
 0x2bf   :  { %v609_v47 = vrot.slane %v2813_v41, 6  ;;  %v1741_v42 = vstv %s4296_s10  ;;  %v2815_v52 = vpop.eup %2814  ;;  %v604_v3 = vsub.f32 0.0, %v601_v50  ;;  %v1611_v57 = vadd.f32 %v1610_v48, %v1609_v63  ;;  %v4354_v48 = vld [vmem:[%s5206_s1 + $0x258] sm:$0xff]  ;;  %s4626_s10 = sld [smem:[#allocation2 + $0x9c]] }
 0x2c0   :  { %v1633_v23 = vadd.f32 %v1632_v13, %v1631_v44  ;;  %v1634_v51 = vmul.f32 %v3963_v43, %v5589_v6  ;;  %v610_v14 = vrot.slane %v2815_v52, 6  ;;  %v631_v2 = vsub.f32 0.0, %v628_v10  ;;  %v5590_v44 = vld [vmem:[#allocation88_spill] sm:$0xff] }
 0x2c1   :  { %v615_v4 = vmul.f32 %v609_v47, %v603_v7  ;;  %v633_v35 = vmul.f32 %v630_v26, %v609_v47  ;;  %v2653_v41 = vclamps-f32 %v1549_v12, 10.0  ;;  %v1737_v1 = vadd.f32 %v1736_v18, %v1731_v55 }
 0x2c2   :  { %v1742_v56 = vmul.f32 %v4344_v49, %v1741_v42  ;;  %v1747_v22 = vstv %s4318_s11  ;;  %v616_v59 = vmul.f32 %v610_v14, %v604_v3  ;;  %v634_v54 = vmul.f32 %v631_v2, %v610_v14  ;;  %v5598_v14 = vld [vmem:[#allocation94_spill] sm:$0xff]  ;;  %s4636_s11 = sld [smem:[#allocation2 + $0x9d]] }
 0x2c3   :  { %v618_v46 = vmul.f32 1.442695, %v615_v4  ;;  %v636_v37 = vmul.f32 1.442695, %v633_v35  ;;  %v1469_v50 = vmul.f32 1.442695, %v1468_v32  ;;  %v1474_v43 = vmul.f32 %v2811_v39, %v4161_v45 }
 0x2c4   :  { %v1613_v63 = vadd.f32 %v1612_v24, %v1611_v57  ;;  %v1636_v12 = vmul.f32 %v3979_v36, %v5590_v44  ;;  %v620_v13 = vmul.f32 1.442695, %v616_v59  ;;  %v638_v42 = vmul.f32 1.442695, %v634_v54  ;;  %v5591_v45 = vld [vmem:[#allocation93_spill] sm:$0xff] }
 0x2c5   :  { %2816 = vpow2.f32 %v618_v46  ;;  %v1635_v10 = vadd.f32 %v1634_v51, %v1633_v23  ;;  %v563_v3 = vadd.f32 %v4140_v62, %v4144_v25  ;;  %v1743_v52 = vadd.f32 %v1742_v56, %v1737_v1  ;;  %v5594_v23 = vld [vmem:[#allocation91_spill] sm:$0xff]  ;;  %v5599_v1 = vld [vmem:[#allocation5_spill] sm:$0xff] }
 0x2c6   :  { %2818 = vpow2.f32 %v636_v37  ;;  %v1748_v55 = vmul.f32 %v4354_v48, %v1747_v22  ;;  %v4364_v32 = vadd.f32 %v4305_v15, %v4176_v21  ;;  %v1552_v57 = vsub.f32 0.0, %v2653_v41 }
 0x2c7   :  { %2820 = vpow2.f32 %v620_v13  ;;  %v1596_v24 = vadd.f32 %v4311_v40, %v1594_v28  ;;  %v1293_v54 = vsub.f32 %v4282_v29, %v4287_v38  ;;  %v1615_v36 = vadd.f32 %v1614_v60, %v1613_v63  ;;  %v5595_v40 = vld [vmem:[#allocation98_spill] sm:$0xff] }
 0x2c8   :  { %2822 = vpow2.f32 %v638_v42  ;;  %v1616_v62 = vmul.f32 %v4002_v20, %v5591_v45  ;;  %v4373_v37 = vsub.f32 %v4269_v0, %v4364_v32  ;;  %v4377_v59 = vsub.f32 %v4290_v17, %v4364_v32  ;;  %v4393_v17 = vld [vmem:[%s5206_s1 + $0x10] sm:$0xff] }
 0x2c9   :  { %v1637_v21 = vadd.f32 %v1636_v12, %v1635_v10  ;;  %v1638_v28 = vmul.f32 %v4002_v20, %v5594_v23  ;;  %v2474_v39 = vclamps-f32 %v563_v3, 10.0  ;;  %2824 = vpow2.f32 %v1469_v50  ;;  %v5601_v50 = vld [vmem:[#allocation99_spill] sm:$0xff]  ;;  %v5602_v10 = vld [vmem:[#allocation97_spill] sm:$0xff] }
 0x2ca   :  { %5592 = vst [vmem:[#allocation85_spill] sm:$0xff] %v4373_v37  ;;  %5593 = vst [vmem:[#allocation88_spill] sm:$0xff] %v4377_v59  ;;  %v1475_v15 = vmul.f32 1.442695, %v1474_v43  ;;  %v4381_v29 = vadd.f32 %v1748_v55, %v1743_v52  ;;  %v1553_v60 = vmul.f32 1.442695, %v1552_v57  ;;  %v1598_v38 = vadd.f32 %v4315_v19, %v1596_v24 }
 0x2cb   :  { %v1599_v0 = vmul.f32 %v4028_v34, %v5595_v40  ;;  %v4388_v18 = vmul.f32 %v4048_v5, %v3887_v16  ;;  %v4397_v20 = vadd.f32 %v4137_v31, %v4144_v25  ;;  %v4399_v7 = vmax.f32 %v1293_v54, 3.0517578e-05  ;;  %v5597_v19 = vld [vmem:[#allocation96_spill] sm:$0xff]  ;;  %v5600_v25 = vld [vmem:[#allocation6_spill] sm:$0xff]  ;;  %v5603_v24 = vld [vmem:[#allocation7_spill] sm:$0xff] }
 0x2cc   :  { %v1617_v47 = vadd.f32 %v1616_v62, %v1615_v36  ;;  %v1618_v26 = vmul.f32 %v4028_v34, %v5597_v19  ;;  %v1559_v51 = vand.u32 2147483647, %v4373_v37  ;;  %v1565_v4 = vand.u32 2147483647, %v4377_v59  ;;  %v5604_v36 = vld [vmem:[#allocation8_spill] sm:$0xff] }
 0x2cd   :  { %5596 = vst [vmem:[#allocation93_spill] sm:$0xff] %v4399_v7  ;;  %v1639_v35 = vadd.f32 %v1638_v28, %v1637_v21  ;;  %v1640_v2 = vmul.f32 %v4028_v34, %v5598_v14  ;;  %v572_v41 = vsub.f32 0.0, %v2474_v39  ;;  %2826 = vpow2.f32 %v1475_v15 }
 0x2ce   :  { %v1752_v31 = vmul.f32 %v4393_v17, %v5599_v1  ;;  %v1753_v56 = vmul.f32 %v4381_v29, %v5600_v25  ;;  %2828 = vpow2.f32 %v1553_v60  ;;  %v1600_v46 = vadd.f32 %v1599_v0, %v1598_v38  ;;  %v5643_v25 = vld [vmem:[#allocation42_spill] sm:$0xff] }
 0x2cf   :  { %v2817_v22 = vpop.eup %2816  ;;  %v1620_v43 = vmul.f32 %v4048_v5, %v5601_v50  ;;  %v1622_v63 = vsub.f32 %v4262_v8, %v4364_v32  ;;  %v587_v34 = vrot.slane %v4397_v20, 5  ;;  %v1619_v42 = vadd.f32 %v1618_v26, %v1617_v47  ;;  %v5605_v20 = vld [vmem:[#allocation9_spill] sm:$0xff] }
 0x2d0   :  { %v2819_v12 = vpop.eup %2818  ;;  %v624_v13 = vmul.f32 0.5, %v2817_v22  ;;  %v1642_v3 = vmul.f32 %v4048_v5, %v5602_v10  ;;  %v1641_v57 = vadd.f32 %v1640_v2, %v1639_v35  ;;  %v1757_v54 = vmul.f32 %v4393_v17, %v5603_v24 }
 0x2d1   :  { %v2821_v52 = vpop.eup %2820  ;;  %v642_v55 = vmul.f32 0.5, %v2819_v12  ;;  %v1758_v62 = vmul.f32 %v4381_v29, %v5604_v36  ;;  %v577_v28 = vmul.f32 1.442695, %v572_v41  ;;  %v1754_v39 = vadd.f32 %v1753_v56, %v1752_v31  ;;  %v5606_v41 = vld [vmem:[#allocation10_spill] sm:$0xff]  ;;  %v5607_v56 = vld [vmem:[#allocation11_spill] sm:$0xff] }
 0x2d2   :  { %v2823_v21 = vpop.eup %2822  ;;  %v648_v8 = vsub.f32 1.0, %v624_v13  ;;  %v625_v32 = vmul.f32 0.5, %v2821_v52  ;;  %vm645_vm9 = vcmp.le.f32.partialorder %v4225_v27, 0.0  ;;  %vm654_vm10 = vcmp.le.f32.partialorder %v4228_v30, 0.0  ;;  %v2645_v12 = vld [vmem:[%s5206_s1 + $0x188] sm:$0xff] }
 0x2d3   :  { %v657_v15 = vsub.f32 1.0, %v642_v55  ;;  %v643_v5 = vmul.f32 0.5, %v2823_v21  ;;  %v2825_v60 = vpop.eup %2824  ;;  %vm646_vm11 = vcmp.le.f32.partialorder %v4247_v58, 0.0  ;;  %v1762_v47 = vmul.f32 %v4393_v17, %v5605_v20  ;;  %v5664_v20 = vld [vmem:[#allocation77_spill] sm:$0xff] }
 0x2d4   :  { %v4424_v38 = vsel %vm645_vm9, %v624_v13, %v648_v8  ;;  %v649_v0 = vsub.f32 1.0, %v625_v32  ;;  %v1759_v2 = vadd.f32 %v1758_v62, %v1757_v54  ;;  %v1763_v27 = vmul.f32 %v4381_v29, %v5606_v41  ;;  %v5612_v62 = vld [vmem:[#allocation16_spill] sm:$0xff] }
 0x2d5   :  { %v4429_v26 = vsel %vm654_vm10, %v642_v55, %v657_v15  ;;  %v658_v35 = vsub.f32 1.0, %v643_v5  ;;  %vm655_vm12 = vcmp.le.f32.partialorder %v4250_v9, 0.0  ;;  %v1755_v58 = vadd.f32 %v1754_v39, %v5607_v56 }
 0x2d6   :  { %v4435_v31 = vsel %vm646_vm11, %v625_v32, %v649_v0  ;;  %2830 = vpow2.f32 %v577_v28  ;;  %v4444_v13 = vmul.f32 0.5, %v2825_v60  ;;  %v1621_v52 = vadd.f32 %v1620_v43, %v1619_v42  ;;  %v5608_v43 = vld [vmem:[#allocation12_spill] sm:$0xff] }
 0x2d7   :  { %v4439_v22 = vsel %vm655_vm12, %v643_v5, %v658_v35  ;;  %v2827_v55 = vpop.eup %2826  ;;  %v4447_v54 = vsub.f32 %v4149_v33, %v587_v34  ;;  %v1560_v9 = vsub.f32 0.0, %v1559_v51  ;;  %v1643_v21 = vadd.f32 %v1642_v3, %v1641_v57  ;;  %v5609_v33 = vld [vmem:[#allocation13_spill] sm:$0xff] }
 0x2d8   :  { %v2829_v8 = vpop.eup %2828  ;;  %v1566_v28 = vsub.f32 0.0, %v1565_v4  ;;  %v1602_v32 = vadd.f32 %v4388_v18, %v1600_v46  ;;  %v1760_v39 = vadd.f32 %v1759_v2, %v3181_v53  ;;  %v1764_v15 = vadd.f32 %v1763_v27, %v1762_v47  ;;  %v2684_v18 = vld [vmem:[%s5206_s1 + $0x30] sm:$0xff] }
 0x2d9   :  { %v1649_v5 = vadd.f32 0.5, %v2645_v12  ;;  %v4453_v60 = vmax.f32 %v1755_v58, 0.0  ;;  %v1767_v42 = vmul.f32 %v4393_v17, %v5608_v43  ;;  %v1768_v0 = vmul.f32 %v4381_v29, %v5609_v33  ;;  %v2685_v27 = vld [vmem:[%s5206_s1 + $0x90] sm:$0xff] }
 0x2da   :  { %v4459_v35 = vmul.f32 0.5, %v2827_v55  ;;  %v1623_v3 = vmul.f32 %v1622_v63, %v1621_v52  ;;  %v2659_v4 = vadd.f32 -0.5, %v2645_v12  ;;  %v4466_v46 = vsub.f32 %v4151_v11, %v587_v34  ;;  %v5611_v12 = vld [vmem:[#allocation15_spill] sm:$0xff]  ;;  %v5613_v34 = vld [vmem:[#allocation20_spill] sm:$0xff] }
 0x2db   :  { %v602_v57 = vand.u32 2147483647, %v4447_v54  ;;  %v1561_v47 = vmul.f32 %v2829_v8, %v1560_v9  ;;  %v2658_v2 = vclamps-f32 %v1643_v21, 10.0  ;;  %v1567_v58 = vmul.f32 %v2829_v8, %v1566_v28  ;;  %v5614_v9 = vld [vmem:[#allocation21_spill] sm:$0xff]  ;;  %v5615_v8 = vld [vmem:[#allocation23_spill] sm:$0xff] }
 0x2dc   :  { %5610 = vst [vmem:[#allocation91_spill] sm:$0xff] %v4459_v35  ;;  %v4472_v55 = vmax.f32 %v1760_v39, 0.0  ;;  %v1765_v63 = vadd.f32 %v1764_v15, %v3201_v61  ;;  %v1772_v52 = vmul.f32 %v4393_v17, %v5611_v12  ;;  %v1769_v51 = vadd.f32 %v1768_v0, %v1767_v42  ;;  %v5616_v39 = vld [vmem:[#allocation24_spill] sm:$0xff]  ;;  %v5650_v12 = vld [vmem:[#allocation54_spill] sm:$0xff] }
 0x2dd   :  { %v1773_v11 = vmul.f32 %v4381_v29, %v5612_v62  ;;  %v1800_v30 = vadd.f32 %v2684_v18, %v5613_v34  ;;  %v1801_v21 = vmul.f32 %v4453_v60, %v5614_v9  ;;  %v1624_v59 = vadd.f32 %v1623_v3, %v1602_v32  ;;  %v5617_v18 = vld [vmem:[#allocation18_spill] sm:$0xff]  ;;  %v5618_v34 = vld [vmem:[#allocation19_spill] sm:$0xff] }
 0x2de   :  { %v1819_v28 = vadd.f32 %v2685_v27, %v5615_v8  ;;  %v1820_v15 = vmul.f32 %v4453_v60, %v5616_v39  ;;  %v605_v37 = vsub.f32 0.0, %v602_v57  ;;  %v629_v61 = vand.u32 2147483647, %v4466_v46  ;;  %v5619_v3 = vld [vmem:[#allocation22_spill] sm:$0xff]  ;;  %v5620_v39 = vld [vmem:[#allocation28_spill] sm:$0xff] }
 0x2df   :  { %v1562_v42 = vmul.f32 1.442695, %v1561_v47  ;;  %v1646_v0 = vsub.f32 0.0, %v2658_v2  ;;  %v1568_v56 = vmul.f32 1.442695, %v1567_v58  ;;  %v4487_v62 = vmax.f32 %v1765_v63, 0.0 }
 0x2e0   :  { %v2831_v53 = vpop.eup %2830  ;;  %v1777_v9 = vmul.f32 %v4393_v17, %v5617_v18  ;;  %v1778_v32 = vmul.f32 %v4381_v29, %v5618_v34  ;;  %v1770_v27 = vadd.f32 %v1769_v51, %v5619_v3  ;;  %v1774_v7 = vadd.f32 %v1773_v11, %v1772_v52  ;;  %v5623_v58 = vld [vmem:[#allocation32_spill] sm:$0xff]  ;;  %v5624_v51 = vld [vmem:[#allocation26_spill] sm:$0xff]  ;;  %v5625_v52 = vld [vmem:[#allocation27_spill] sm:$0xff] }
 0x2e1   :  { %v1802_v35 = vadd.f32 %v1801_v21, %v1800_v30  ;;  %v1803_v57 = vmul.f32 %v4472_v55, %v5620_v39  ;;  %v4496_v8 = vsub.f32 %v1649_v5, %v1624_v59  ;;  %v4498_v47 = vsub.f32 %v2659_v4, %v1624_v59  ;;  %v2689_v59 = vld [vmem:[%s5206_s1 + $0x110] sm:$0xff]  ;;  %v5626_v4 = vld [vmem:[#allocation25_spill] sm:$0xff] }
 0x2e2   :  { %v1821_v2 = vadd.f32 %v1820_v15, %v1819_v28  ;;  %v1822_v63 = vmul.f32 %v4472_v55, %v5623_v58  ;;  %v611_v33 = vrot.slane %v2831_v53, 6  ;;  %v632_v18 = vsub.f32 0.0, %v629_v61  ;;  %v5627_v61 = vld [vmem:[#allocation33_spill] sm:$0xff] }
 0x2e3   :  { %5621 = vst [vmem:[#allocation98_spill] sm:$0xff] %v4496_v8  ;;  %5622 = vst [vmem:[#allocation96_spill] sm:$0xff] %v4498_v47  ;;  %2832 = vpow2.f32 %v1562_v42  ;;  %v1647_v41 = vmul.f32 1.442695, %v1646_v0  ;;  %v1779_v34 = vadd.f32 %v1778_v32, %v1777_v9  ;;  %v1782_v30 = vmul.f32 %v4393_v17, %v5624_v51  ;;  %v5628_v42 = vld [vmem:[#allocation34_spill] sm:$0xff]  ;;  %v5629_v58 = vld [vmem:[#allocation45_spill] sm:$0xff] }
 0x2e4   :  { %2834 = vpow2.f32 %v1568_v56  ;;  %v1783_v11 = vmul.f32 %v4381_v29, %v5625_v52  ;;  %v4509_v5 = vmax.f32 %v1770_v27, 0.0  ;;  %v1775_v21 = vadd.f32 %v1774_v7, %v5626_v4  ;;  %v2688_v27 = vld [vmem:[%s5206_s1 + $0x50] sm:$0xff]  ;;  %v5632_v4 = vld [vmem:[#allocation29_spill] sm:$0xff] }
 0x2e5   :  { %v1804_v53 = vadd.f32 %v1803_v57, %v1802_v35  ;;  %v1805_v28 = vmul.f32 %v4487_v62, %v5627_v61  ;;  %v1653_v56 = vand.u32 2147483647, %v4496_v8  ;;  %v1659_v9 = vand.u32 2147483647, %v4498_v47  ;;  %v5630_v35 = vld [vmem:[#allocation46_spill] sm:$0xff]  ;;  %v5631_v61 = vld [vmem:[#allocation31_spill] sm:$0xff] }
 0x2e6   :  { %v1823_v15 = vadd.f32 %v1822_v63, %v1821_v2  ;;  %v1824_v0 = vmul.f32 %v4487_v62, %v5628_v42  ;;  %v617_v32 = vmul.f32 %v611_v33, %v605_v37  ;;  %2836 = vpow2.f32 %v1647_v41  ;;  %v5633_v63 = vld [vmem:[#allocation30_spill] sm:$0xff]  ;;  %v2690_v37 = vld [vmem:[%s5206_s1 + $0xb0] sm:$0xff]  ;;  %v5639_v52 = vld [vmem:[#allocation37_spill] sm:$0xff] }
 0x2e7   :  { %v1890_v7 = vadd.f32 %v2689_v59, %v5629_v58  ;;  %v1891_v57 = vmul.f32 %v4453_v60, %v5630_v35  ;;  %v1780_v39 = vadd.f32 %v1779_v34, %v5631_v61  ;;  %v1784_v8 = vadd.f32 %v1783_v11, %v1782_v30  ;;  %v5634_v59 = vld [vmem:[#allocation36_spill] sm:$0xff]  ;;  %v5636_v11 = vld [vmem:[#allocation47_spill] sm:$0xff] }
 0x2e8   :  { %v1787_v2 = vmul.f32 %v4393_v17, %v5632_v4  ;;  %v1788_v47 = vmul.f32 %v4381_v29, %v5633_v63  ;;  %v4532_v41 = vmax.f32 %v1775_v21, 0.0  ;;  %v1806_v42 = vadd.f32 %v1805_v28, %v1804_v53  ;;  %v5635_v35 = vld [vmem:[#allocation40_spill] sm:$0xff]  ;;  %v5638_v29 = vld [vmem:[#allocation51_spill] sm:$0xff]  ;;  %v5641_v28 = vld [vmem:[#allocation41_spill] sm:$0xff] }
 0x2e9   :  { %v1807_v58 = vmul.f32 %v4509_v5, %v5634_v59  ;;  %v1826_v34 = vmul.f32 %v4509_v5, %v5635_v35  ;;  %v1825_v30 = vadd.f32 %v1824_v0, %v1823_v15  ;;  %v1871_v61 = vadd.f32 %v2688_v27, %v5636_v11  ;;  %v5637_v17 = vld [vmem:[#allocation48_spill] sm:$0xff]  ;;  %v5640_v51 = vld [vmem:[#allocation39_spill] sm:$0xff] }
 0x2ea   :  { %v1872_v4 = vmul.f32 %v4453_v60, %v5637_v17  ;;  %v1893_v63 = vmul.f32 %v4472_v55, %v5638_v29  ;;  %v1892_v3 = vadd.f32 %v1891_v57, %v1890_v7  ;;  %v1912_v21 = vadd.f32 %v2690_v37, %v5639_v52  ;;  %v5642_v15 = vld [vmem:[#allocation35_spill] sm:$0xff]  ;;  %v5644_v37 = vld [vmem:[#allocation49_spill] sm:$0xff] }
 0x2eb   :  { %v1913_v53 = vmul.f32 %v4453_v60, %v5640_v51  ;;  %v1915_v59 = vmul.f32 %v4472_v55, %v5641_v28  ;;  %v635_v36 = vmul.f32 %v632_v18, %v611_v33  ;;  %v4548_v35 = vmax.f32 %v1780_v39, 0.0  ;;  %v5646_v28 = vld [vmem:[#allocation44_spill] sm:$0xff] }
 0x2ec   :  { %v1785_v0 = vadd.f32 %v1784_v8, %v5642_v15  ;;  %v1789_v27 = vadd.f32 %v1788_v47, %v1787_v2  ;;  %v1808_v17 = vadd.f32 %v1807_v58, %v1806_v42  ;;  %v1809_v7 = vmul.f32 %v4532_v41, %v5643_v25  ;;  %v5647_v18 = vld [vmem:[#allocation52_spill] sm:$0xff]  ;;  %v5648_v58 = vld [vmem:[#allocation57_spill] sm:$0xff]  ;;  %v5649_v15 = vld [vmem:[#allocation38_spill] sm:$0xff] }
 0x2ed   :  { %v4551_v11 = vpop.eup %2832  ;;  %v1914_v57 = vadd.f32 %v1913_v53, %v1912_v21  ;;  %v1917_v29 = vmul.f32 %v4487_v62, %v5644_v37  ;;  %v1827_v52 = vadd.f32 %v1826_v34, %v1825_v30  ;;  %v1828_v33 = vmul.f32 %v4532_v41, %v5646_v28 }
 0x2ee   :  { %v4557_v51 = vpop.eup %2834  ;;  %v1873_v39 = vadd.f32 %v1872_v4, %v1871_v61  ;;  %v1874_v8 = vmul.f32 %v4472_v55, %v5647_v18  ;;  %v622_v47 = vmul.f32 1.442695, %v617_v32  ;;  %v1894_v2 = vadd.f32 %v1893_v63, %v1892_v3  ;;  %v5651_v61 = vld [vmem:[#allocation43_spill] sm:$0xff]  ;;  %v5652_v63 = vld [vmem:[#allocation50_spill] sm:$0xff] }
 0x2ef   :  { %5645 = vst [vmem:[#allocation94_spill] sm:$0xff] %v4557_v51  ;;  %v1895_v42 = vmul.f32 %v4487_v62, %v5648_v58  ;;  %v1916_v25 = vadd.f32 %v1915_v59, %v1914_v57  ;;  %v640_v21 = vmul.f32 1.442695, %v635_v36  ;;  %v1654_v53 = vsub.f32 0.0, %v1653_v56  ;;  %v5653_v36 = vld [vmem:[#allocation56_spill] sm:$0xff] }
 0x2f0   :  { %v1790_v37 = vadd.f32 %v1789_v27, %v5649_v15  ;;  %v1919_v34 = vmul.f32 %v4509_v5, %v5650_v12  ;;  %v2837_v30 = vpop.eup %2836  ;;  %v4568_v51 = vmax.f32 %v1785_v0, 0.0  ;;  %v1810_v4 = vadd.f32 %v1809_v7, %v1808_v17  ;;  %v5654_v12 = vld [vmem:[#allocation62_spill] sm:$0xff]  ;;  %v2694_v17 = vld [vmem:[%s5206_s1 + $0x130] sm:$0xff]  ;;  %v5663_v15 = vld [vmem:[#allocation76_spill] sm:$0xff] }
 0x2f1   :  { %v1811_v28 = vmul.f32 %v4548_v35, %v5651_v61  ;;  %v1918_v32 = vadd.f32 %v1917_v29, %v1916_v25  ;;  %v1829_v3 = vadd.f32 %v1828_v33, %v1827_v52  ;;  %v1830_v58 = vmul.f32 %v4548_v35, %v5652_v63  ;;  %v5655_v29 = vld [vmem:[#allocation60_spill] sm:$0xff]  ;;  %v5660_v63 = vld [vmem:[#allocation71_spill] sm:$0xff] }
 0x2f2   :  { %v1875_v59 = vadd.f32 %v1874_v8, %v1873_v39  ;;  %v1876_v56 = vmul.f32 %v4487_v62, %v5653_v36  ;;  %2838 = vpow2.f32 %v622_v47  ;;  %v1660_v27 = vsub.f32 0.0, %v1659_v9  ;;  %v5656_v39 = vld [vmem:[#allocation53_spill] sm:$0xff]  ;;  %v5657_v9 = vld [vmem:[#allocation55_spill] sm:$0xff]  ;;  %v5661_v36 = vld [vmem:[#allocation66_spill] sm:$0xff] }
 0x2f3   :  { %v1896_v57 = vadd.f32 %v1895_v42, %v1894_v2  ;;  %v1897_v0 = vmul.f32 %v4509_v5, %v5654_v12  ;;  %2840 = vpow2.f32 %v640_v21  ;;  %v4581_v25 = vmax.f32 %v1790_v37, 0.0  ;;  %v5658_v2 = vld [vmem:[#allocation61_spill] sm:$0xff]  ;;  %v2693_v21 = vld [vmem:[%s5206_s1 + $0x70] sm:$0xff] }
 0x2f4   :  { %v1920_v52 = vadd.f32 %v1919_v34, %v1918_v32  ;;  %v1921_v7 = vmul.f32 %v4532_v41, %v5655_v29  ;;  %v1812_v33 = vadd.f32 %v1811_v28, %v1810_v4  ;;  %v1813_v8 = vmul.f32 %v4568_v51, %v5656_v39  ;;  %v5659_v34 = vld [vmem:[#allocation70_spill] sm:$0xff]  ;;  %v5662_v61 = vld [vmem:[#allocation63_spill] sm:$0xff] }
 0x2f5   :  { %v1832_v47 = vmul.f32 %v4568_v51, %v5657_v9  ;;  %v1878_v42 = vmul.f32 %v4509_v5, %v5658_v2  ;;  %v1831_v37 = vadd.f32 %v1830_v58, %v1829_v3  ;;  %v1877_v12 = vadd.f32 %v1876_v56, %v1875_v59  ;;  %v2695_v3 = vld [vmem:[%s5206_s1 + $0xd0] sm:$0xff]  ;;  %v5665_v59 = vld [vmem:[#allocation58_spill] sm:$0xff] }
 0x2f6   :  { %v1984_v32 = vadd.f32 %v2694_v17, %v5659_v34  ;;  %v1985_v28 = vmul.f32 %v4453_v60, %v5660_v63  ;;  %v1655_v4 = vmul.f32 %v2837_v30, %v1654_v53  ;;  %v1661_v29 = vmul.f32 %v2837_v30, %v1660_v27  ;;  %v5666_v30 = vld [vmem:[#allocation59_spill] sm:$0xff]  ;;  %v5670_v34 = vld [vmem:[#allocation72_spill] sm:$0xff] }
 0x2f7   :  { %v1898_v39 = vadd.f32 %v1897_v0, %v1896_v57  ;;  %v1899_v9 = vmul.f32 %v4532_v41, %v5661_v36  ;;  %v1922_v18 = vadd.f32 %v1921_v7, %v1920_v52  ;;  %v1923_v2 = vmul.f32 %v4548_v35, %v5662_v61  ;;  %v5667_v57 = vld [vmem:[#allocation78_spill] sm:$0xff]  ;;  %v5669_v61 = vld [vmem:[#allocation68_spill] sm:$0xff] }
 0x2f8   :  { %v1965_v43 = vadd.f32 %v2693_v21, %v5663_v15  ;;  %v1966_v58 = vmul.f32 %v4453_v60, %v5664_v20  ;;  %v1815_v53 = vmul.f32 %v4581_v25, %v5665_v59  ;;  %v1834_v56 = vmul.f32 %v4581_v25, %v5666_v30  ;;  %v5668_v21 = vld [vmem:[#allocation64_spill] sm:$0xff]  ;;  %v5671_v59 = vld [vmem:[#allocation74_spill] sm:$0xff] }
 0x2f9   :  { %v1986_v27 = vadd.f32 %v1985_v28, %v1984_v32  ;;  %v1987_v0 = vmul.f32 %v4472_v55, %v5667_v57  ;;  %v1814_v17 = vadd.f32 %v1813_v8, %v1812_v33  ;;  %v1833_v52 = vadd.f32 %v1832_v47, %v1831_v37  ;;  %v5672_v32 = vld [vmem:[#allocation67_spill] sm:$0xff]  ;;  %v5673_v33 = vld [vmem:[#allocation82_spill] sm:$0xff] }
 0x2fa   :  { %v1879_v7 = vadd.f32 %v1878_v42, %v1877_v12  ;;  %v1880_v63 = vmul.f32 %v4532_v41, %v5668_v21  ;;  %v1900_v20 = vadd.f32 %v1899_v9, %v1898_v39  ;;  %v1901_v36 = vmul.f32 %v4548_v35, %v5669_v61 }
 0x2fb   :  { %v2006_v15 = vadd.f32 %v2695_v3, %v5670_v34  ;;  %v2007_v24 = vmul.f32 %v4453_v60, %v5671_v59  ;;  %v1924_v30 = vadd.f32 %v1923_v2, %v1922_v18  ;;  %v1925_v28 = vmul.f32 %v4568_v51, %v5672_v32  ;;  %v5674_v60 = vld [vmem:[#allocation83_spill] sm:$0xff] }
 0x2fc   :  { %v1967_v57 = vadd.f32 %v1966_v58, %v1965_v43  ;;  %v1968_v12 = vmul.f32 %v4472_v55, %v5673_v33  ;;  %v4628_v39 = vpop.eup %2838  ;;  %v4630_v8 = vmul.f32 1.442695, %v1655_v4  ;;  %v4632_v9 = vmul.f32 1.442695, %v1661_v29  ;;  %v5675_v58 = vld [vmem:[#allocation65_spill] sm:$0xff]  ;;  %v4645_v4 = vld [vmem:[%s5206_s1 + $0x150] sm:$0xff] }
 0x2fd   :  { %v1988_v47 = vadd.f32 %v1987_v0, %v1986_v27  ;;  %v1989_v18 = vmul.f32 %v4487_v62, %v5674_v60  ;;  %v2841_v43 = vpop.eup %2840  ;;  %v4638_v2 = vadd.f32 %v1815_v53, %v1814_v17  ;;  %v1835_v42 = vadd.f32 %v1834_v56, %v1833_v52  ;;  %v5676_v27 = vld [vmem:[#allocation73_spill] sm:$0xff]  ;;  %v5677_v60 = vld [vmem:[#allocation75_spill] sm:$0xff]  ;;  %v5679_v52 = vld [vmem:[#allocation86_spill] sm:$0xff] }
 0x2fe   :  { %v1881_v37 = vadd.f32 %v1880_v63, %v1879_v7  ;;  %v1882_v3 = vmul.f32 %v4548_v35, %v5675_v58  ;;  %v1902_v29 = vadd.f32 %v1901_v36, %v1900_v20  ;;  %v1903_v0 = vmul.f32 %v4568_v51, %v5676_v27  ;;  %v5678_v63 = vld [vmem:[#allocation69_spill] sm:$0xff]  ;;  %v5680_v32 = vld [vmem:[#allocation79_spill] sm:$0xff]  ;;  %v5681_v36 = vld [vmem:[#allocation84_spill] sm:$0xff] }
 0x2ff   :  { %v2008_v59 = vadd.f32 %v2007_v24, %v2006_v15  ;;  %v2009_v33 = vmul.f32 %v4472_v55, %v5677_v60  ;;  %v1926_v53 = vadd.f32 %v1925_v28, %v1924_v30  ;;  %v1927_v56 = vmul.f32 %v4581_v25, %v5678_v63  ;;  %v5682_v27 = vld [vmem:[#allocation87_spill] sm:$0xff]  ;;  %v5683_v28 = vld [vmem:[#allocation81_spill] sm:$0xff]  ;;  %v5686_v58 = vld [vmem:[#allocation90_spill] sm:$0xff] }
 0x300   :  { %v1969_v17 = vadd.f32 %v1968_v12, %v1967_v57  ;;  %v1970_v7 = vmul.f32 %v4487_v62, %v5679_v52  ;;  %v1884_v20 = vmul.f32 %v4568_v51, %v5680_v32  ;;  %v1886_v24 = vmul.f32 %v4581_v25, %v5681_v36  ;;  %v5684_v52 = vld [vmem:[#allocation89_spill] sm:$0xff] }
 0x301   :  { %v1990_v15 = vadd.f32 %v1989_v18, %v1988_v47  ;;  %v1991_v55 = vmul.f32 %v4509_v5, %v5682_v27  ;;  %v2686_v30 = vclamps-f32 %v1835_v42, 10.0  ;;  %v1883_v57 = vadd.f32 %v1882_v3, %v1881_v37  ;;  %v5685_v18 = vld [vmem:[#allocation80_spill] sm:$0xff] }
 0x302   :  { %v1905_v12 = vmul.f32 %v4581_v25, %v5683_v28  ;;  %v1907_v60 = vsub.f32 %v4645_v4, %v4638_v2  ;;  %v1904_v63 = vadd.f32 %v1903_v0, %v1902_v29  ;;  %v1972_v36 = vmul.f32 %v4509_v5, %v5684_v52  ;;  %v2923_v28 = vld [vmem:[%s5206_s1 + $0x1d0] sm:$0xff] }
 0x303   :  { %v2010_v47 = vadd.f32 %v2009_v33, %v2008_v59  ;;  %v2011_v27 = vmul.f32 %v4487_v62, %v5685_v18  ;;  %v1928_v32 = vadd.f32 %v1927_v56, %v1926_v53  ;;  %v1971_v61 = vadd.f32 %v1970_v7, %v1969_v17  ;;  %v2924_v62 = vld [vmem:[%s5206_s1 + $0x1d8] sm:$0xff]  ;;  %v2925_v56 = vld [vmem:[%s5206_s1 + $0x1e0] sm:$0xff] }
 0x304   :  { %v1993_v42 = vmul.f32 %v4532_v41, %v5686_v58  ;;  %v2059_v37 = vstv %s4624_s9  ;;  %v1992_v3 = vadd.f32 %v1991_v55, %v1990_v15  ;;  %v2062_v0 = vstv %s4626_s10  ;;  %s4762_s10 = sld [smem:[#allocation2 + $0xa7]] }
 0x305   :  { %v2060_v29 = vmul.f32 %v2923_v28, %v2059_v37  ;;  %v2066_v21 = vstv %s4636_s11  ;;  %v1838_v59 = vsub.f32 0.0, %v2686_v30  ;;  %v1885_v33 = vadd.f32 %v1884_v20, %v1883_v57  ;;  %v5687_v30 = vld [vmem:[#allocation92_spill] sm:$0xff] }
 0x306   :  { %v2063_v53 = vmul.f32 %v2924_v62, %v2062_v0  ;;  %v2067_v17 = vmul.f32 %v2925_v56, %v2066_v21  ;;  %v1906_v7 = vadd.f32 %v1905_v12, %v1904_v63  ;;  %v2012_v15 = vadd.f32 %v2011_v27, %v2010_v47  ;;  %v2926_v0 = vld [vmem:[%s5206_s1 + $0x1e8] sm:$0xff] }
 0x307   :  { %v2013_v55 = vmul.f32 %v4509_v5, %v5589_v6  ;;  %v2070_v28 = vstv %s4651_s14  ;;  %v2691_v20 = vclamps-f32 %v1928_v32, 10.0  ;;  %v1974_v57 = vmul.f32 %v4532_v41, %v5687_v30  ;;  %s4782_s14 = sld [smem:[#allocation2 + $0xa9]] }
 0x308   :  { %v2064_v37 = vadd.f32 %v2063_v53, %v2060_v29  ;;  %v2071_v62 = vmul.f32 %v2926_v0, %v2070_v28  ;;  %v1973_v18 = vadd.f32 %v1972_v36, %v1971_v61  ;;  %v1994_v21 = vadd.f32 %v1993_v42, %v1992_v3  ;;  %v5688_v53 = vld [vmem:[#allocation95_spill] sm:$0xff] }
 0x309   :  { %v1995_v27 = vmul.f32 %v4548_v35, %v5591_v45  ;;  %v2074_v63 = vstv %s4663_s15  ;;  %v4705_v5 = vmul.f32 0.5, %v4628_v39  ;;  %v4707_v32 = vmul.f32 0.5, %v2841_v43  ;;  %v2927_v39 = vld [vmem:[%s5206_s1 + $0x1f8] sm:$0xff]  ;;  %s4790_s15 = sld [smem:[#allocation2 + $0xaa]] }
 0x30a   :  { %v1839_v12 = vmul.f32 1.442695, %v1838_v59  ;;  %v2068_v47 = vadd.f32 %v2067_v17, %v2064_v37  ;;  %v1887_v29 = vadd.f32 %v1886_v24, %v1885_v33  ;;  %v1976_v56 = vmul.f32 %v4548_v35, %v5688_v53  ;;  %v4721_v24 = vld [vmem:[%s5206_s1 + $0x170] sm:$0xff] }
 0x30b   :  { %v2014_v61 = vadd.f32 %v2013_v55, %v2012_v15  ;;  %v2015_v36 = vmul.f32 %v4532_v41, %v5590_v44  ;;  %v1908_v42 = vmul.f32 %v1907_v60, %v1906_v7  ;;  %v1931_v3 = vsub.f32 0.0, %v2691_v20 }
 0x30c   :  { %v2072_v28 = vadd.f32 %v2071_v62, %v2068_v47  ;;  %v2075_v43 = vmul.f32 %v2927_v39, %v2074_v63  ;;  %v1975_v59 = vadd.f32 %v1974_v57, %v1973_v18  ;;  %v1996_v33 = vadd.f32 %v1995_v27, %v1994_v21  ;;  %v2928_v21 = vld [vmem:[%s5206_s1 + $0x200] sm:$0xff] }
 0x30d   :  { %v1997_v41 = vmul.f32 %v4568_v51, %v5597_v19  ;;  %v2078_v17 = vstv %s4681_s17  ;;  %2842 = vpow2.f32 %v1839_v12  ;;  %v1841_v60 = vadd.f32 0.5, %v4645_v4 }
 0x30e   :  { %v2687_v7 = vadd.f32 -0.5, %v4645_v4  ;;  %v1934_v15 = vadd.f32 0.5, %v4721_v24  ;;  %v1978_v55 = vmul.f32 %v4568_v51, %v5595_v40  ;;  %v2016_v20 = vadd.f32 %v2015_v36, %v2014_v61  ;;  %v2929_v36 = vld [vmem:[%s5206_s1 + $0x208] sm:$0xff] }
 0x30f   :  { %v2017_v18 = vmul.f32 %v4548_v35, %v5594_v23  ;;  %v2082_v57 = vstv %s4692_s21  ;;  %v1909_v37 = vadd.f32 %v1908_v42, %v1887_v29  ;;  %v1932_v0 = vmul.f32 1.442695, %v1931_v3 }
 0x310   :  { %v2076_v62 = vadd.f32 %v2075_v43, %v2072_v28  ;;  %v2079_v4 = vmul.f32 %v2928_v21, %v2078_v17  ;;  %v1977_v27 = vadd.f32 %v1976_v56, %v1975_v59  ;;  %v1998_v63 = vadd.f32 %v1997_v41, %v1996_v33  ;;  %v2930_v59 = vld [vmem:[%s5206_s1 + $0x210] sm:$0xff] }
 0x311   :  { %v1999_v12 = vmul.f32 %v4581_v25, %v5601_v50  ;;  %v2086_v47 = vstv %s4702_s25  ;;  %v4747_v35 = vsub.f32 %v1841_v60, %v4638_v2  ;;  %v4750_v29 = vsub.f32 %v2687_v7, %v4638_v2 }
 0x312   :  { %v2692_v61 = vadd.f32 -0.5, %v4721_v24  ;;  %v2083_v56 = vmul.f32 %v2929_v36, %v2082_v57  ;;  %vm647_vm13 = vcmp.le.f32.partialorder %v4447_v54, 0.0  ;;  %v1980_v42 = vmul.f32 %v4581_v25, %v3887_v16  ;;  %v5695_v36 = vld [vmem:[#allocation100_spill] sm:$0xff] }
 0x313   :  { %5689 = vst [vmem:[#allocation5_spill] sm:$0xff] %v4747_v35  ;;  %5690 = vst [vmem:[#allocation99_spill] sm:$0xff] %v4750_v29  ;;  %v2018_v3 = vadd.f32 %v2017_v18, %v2016_v20  ;;  %v2019_v28 = vmul.f32 %v4568_v51, %v5598_v14  ;;  %v2090_v39 = vstv %s4713_s26  ;;  %2844 = vpow2.f32 %v1932_v0  ;;  %v5692_v18 = vld [vmem:[#allocation103_spill] sm:$0xff] }
 0x314   :  { %v4764_v2 = vsub.f32 %v1934_v15, %v1909_v37  ;;  %v2080_v43 = vadd.f32 %v2079_v4, %v2076_v62  ;;  %v2087_v33 = vmul.f32 %v2930_v59, %v2086_v47  ;;  %vm656_vm14 = vcmp.le.f32.partialorder %v4466_v46, 0.0 }
 0x315   :  { %v1979_v41 = vadd.f32 %v1978_v55, %v1977_v27  ;;  %v2000_v17 = vadd.f32 %v1999_v12, %v1998_v63  ;;  %v2001_v60 = vsub.f32 %v4721_v24, %v1909_v37  ;;  %v2094_v51 = vstv %s4726_s4  ;;  %v5694_v12 = vld [vmem:[#allocation105_spill] sm:$0xff] }
 0x316   :  { %5691 = vst [vmem:[#allocation72_spill] sm:$0xff] %v4764_v2  ;;  %v1845_v7 = vand.u32 2147483647, %v4747_v35  ;;  %v1851_v15 = vand.u32 2147483647, %v4750_v29  ;;  %v2084_v20 = vadd.f32 %v2083_v56, %v2080_v43  ;;  %v2091_v57 = vmul.f32 %v5692_v18, %v2090_v39  ;;  %v5696_v43 = vld [vmem:[#allocation106_spill] sm:$0xff] }
 0x317   :  { %v4777_v0 = vsub.f32 %v2692_v61, %v1909_v37  ;;  %v2020_v62 = vadd.f32 %v2019_v28, %v2018_v3  ;;  %v2021_v55 = vmul.f32 %v4581_v25, %v5602_v10  ;;  %v2098_v21 = vstv %s4736_s5  ;;  %v2843_v24 = vpop.eup %2842  ;;  %v2683_v3 = vld [vmem:[%s5206_s1 + $0x190] sm:$0xff]  ;;  %v5742_v35 = vld [vmem:[#allocation36_spill] sm:$0xff]  ;;  %v5763_v10 = vld [vmem:[#allocation62_spill] sm:$0xff] }
 0x318   :  { %v650_v4 = vsub.f32 1.0, %v4705_v5  ;;  %v1938_v27 = vand.u32 2147483647, %v4764_v2  ;;  %v2088_v63 = vadd.f32 %v2087_v33, %v2084_v20  ;;  %v2095_v47 = vmul.f32 %v5694_v12, %v2094_v51  ;;  %v2931_v20 = vld [vmem:[%s5206_s1 + $0x238] sm:$0xff] }
 0x319   :  { %5693 = vst [vmem:[#allocation89_spill] sm:$0xff] %v4777_v0  ;;  %vm1478_vm15 = vcmp.le.f32.partialorder %v5695_v36, 0.0  ;;  %2846 = vpow2.f32 %v4630_v8  ;;  %v1981_v37 = vadd.f32 %v1980_v42, %v1979_v41  ;;  %v2002_v61 = vmul.f32 %v2001_v60, %v2000_v17 }
 0x31a   :  { %v2102_v56 = vstv %s4744_s22  ;;  %v659_v25 = vsub.f32 1.0, %v4707_v32  ;;  %v1846_v28 = vsub.f32 0.0, %v1845_v7  ;;  %v2092_v39 = vadd.f32 %v2091_v57, %v2088_v63 }
 0x31b   :  { %v2099_v59 = vmul.f32 %v5696_v43, %v2098_v21  ;;  %v1852_v33 = vsub.f32 0.0, %v1851_v15  ;;  %v1944_v51 = vand.u32 2147483647, %v4777_v0  ;;  %v2022_v8 = vadd.f32 %v2021_v55, %v2020_v62  ;;  %v5697_v55 = vld [vmem:[#allocation107_spill] sm:$0xff] }
 0x31c   :  { %v2106_v42 = vstv %s4762_s10  ;;  %v653_v41 = vsel %vm647_vm13, %v4705_v5, %v650_v4  ;;  %v1939_v17 = vsub.f32 0.0, %v1938_v27  ;;  %v2096_v60 = vadd.f32 %v2095_v47, %v2092_v39 }
 0x31d   :  { %v2103_v7 = vmul.f32 %v2931_v20, %v2102_v56  ;;  %v2003_v18 = vadd.f32 %v2002_v61, %v1981_v37  ;;  %v2028_v57 = vadd.f32 0.5, %v2683_v3  ;;  %v2697_v21 = vadd.f32 -0.5, %v2683_v3  ;;  %v2845_v63 = vpop.eup %2844 }
 0x31e   :  { %v2110_v15 = vstv %s4772_s13  ;;  %v662_v62 = vsel %vm656_vm14, %v4707_v32, %v659_v25  ;;  %v1847_v54 = vmul.f32 %v2843_v24, %v1846_v28  ;;  %v2100_v5 = vadd.f32 %v2099_v59, %v2096_v60 }
 0x31f   :  { %v2107_v4 = vmul.f32 %v5697_v55, %v2106_v42  ;;  %v1853_v27 = vmul.f32 %v2843_v24, %v1852_v33  ;;  %v1945_v12 = vsub.f32 0.0, %v1944_v51  ;;  %v2696_v47 = vclamps-f32 %v2022_v8, 10.0  ;;  %v2713_v24 = vld [vmem:[%s5206_s1 + $0x260] sm:$0xff] }
 0x320   :  { %v2114_v39 = vstv %s4782_s14  ;;  %v5698_v37 = vsub.f32 %v4424_v38, %v4429_v26  ;;  %v5699_v56 = vsub.f32 %v4435_v31, %v4439_v22  ;;  %v2104_v43 = vadd.f32 %v2103_v7, %v2100_v5  ;;  %v5707_v5 = vld [vmem:[#allocation9_spill] sm:$0xff] }
 0x321   :  { %v2111_v46 = vmul.f32 %v4344_v49, %v2110_v15  ;;  %v1940_v32 = vmul.f32 %v2845_v63, %v1939_v17  ;;  %v4818_v25 = vsub.f32 %v2028_v57, %v2003_v18  ;;  %v4820_v28 = vsub.f32 %v2697_v21, %v2003_v18 }
 0x322   :  { %v666_v61 = vmax.f32 %v5698_v37, 0.00024414063  ;;  %v667_v3 = vmax.f32 %v5699_v56, 0.00024414063  ;;  %v2120_v59 = vstv %s4790_s15  ;;  %v665_v33 = vsub.f32 %v653_v41, %v662_v62  ;;  %v5706_v62 = vld [vmem:[#allocation7_spill] sm:$0xff]  ;;  %v5710_v37 = vld [vmem:[#allocation6_spill] sm:$0xff]  ;;  %v5711_v56 = vld [vmem:[#allocation8_spill] sm:$0xff] }
 0x323   :  { %5700 = vst [vmem:[#allocation90_spill] sm:$0xff] %v4818_v25  ;;  %5701 = vst [vmem:[#allocation92_spill] sm:$0xff] %v4820_v28  ;;  %v1848_v38 = vmul.f32 1.442695, %v1847_v54  ;;  %v2108_v26 = vadd.f32 %v2107_v4, %v2104_v43  ;;  %v2115_v51 = vmul.f32 %v4354_v48, %v2114_v39  ;;  %v4827_v31 = vpop.eup %2846  ;;  %2848 = vpow2.f32 %v4632_v9  ;;  %v2715_v48 = vld [vmem:[%s5206_s1 + $0x18] sm:$0xff]  ;;  %v5712_v43 = vld [vmem:[#allocation10_spill] sm:$0xff] }
 0x324   :  { %5702 = vst [vmem:[#allocation95_spill] sm:$0xff] %v4827_v31  ;;  %v1854_v49 = vmul.f32 1.442695, %v1853_v27  ;;  %v1946_v22 = vmul.f32 %v2845_v63, %v1945_v12  ;;  %v2025_v8 = vsub.f32 0.0, %v2696_v47  ;;  %2850 = vlog2.f32 %v666_v61  ;;  %v5708_v4 = vld [vmem:[#allocation12_spill] sm:$0xff] }
 0x325   :  { %v5703_v42 = vsub.f32 1.0, %v4444_v13  ;;  %v2112_v41 = vadd.f32 %v2111_v46, %v2108_v26  ;;  %v2121_v60 = vmul.f32 %v2713_v24, %v2120_v59  ;;  %2852 = vlog2.f32 %v667_v3  ;;  %v5713_v46 = vld [vmem:[#allocation13_spill] sm:$0xff]  ;;  %v5714_v24 = vld [vmem:[#allocation16_spill] sm:$0xff]  ;;  %v5716_v26 = vld [vmem:[#allocation19_spill] sm:$0xff] }
 0x326   :  { %v1941_v20 = vmul.f32 1.442695, %v1940_v32  ;;  %v2032_v9 = vand.u32 2147483647, %v4818_v25  ;;  %v2038_v7 = vand.u32 2147483647, %v4820_v28  ;;  %2854 = vpow2.f32 %v1848_v38 }
 0x327   :  { %v4835_v17 = vsel %vm1478_vm15, %v4444_v13, %v5703_v42  ;;  %v4842_v18 = vmax.f32 %v665_v33, 0.00024414063  ;;  %v4845_v57 = vmul.f32 0.5, %v4551_v11  ;;  %v2116_v13 = vadd.f32 %v2115_v51, %v2112_v41  ;;  %v5709_v11 = vld [vmem:[#allocation15_spill] sm:$0xff]  ;;  %v5715_v33 = vld [vmem:[#allocation18_spill] sm:$0xff]  ;;  %v2719_v41 = vld [vmem:[%s5206_s1 + $0x38] sm:$0xff] }
 0x328   :  { %5704 = vst [vmem:[#allocation103_spill] sm:$0xff] %v4835_v17  ;;  %2856 = vpow2.f32 %v1854_v49  ;;  %v1947_v36 = vmul.f32 1.442695, %v1946_v22  ;;  %v2026_v21 = vmul.f32 1.442695, %v2025_v8  ;;  %v2125_v15 = vmul.f32 %v2715_v48, %v5599_v1  ;;  %v5738_v28 = vld [vmem:[#allocation33_spill] sm:$0xff] }
 0x329   :  { %5705 = vst [vmem:[#allocation105_spill] sm:$0xff] %v4845_v57  ;;  %v2122_v63 = vadd.f32 %v2121_v60, %v2116_v13  ;;  %v2130_v54 = vmul.f32 %v2715_v48, %v5706_v62  ;;  %v2135_v55 = vmul.f32 %v2715_v48, %v5707_v5  ;;  %v2140_v27 = vmul.f32 %v2715_v48, %v5708_v4  ;;  %v2720_v60 = vld [vmem:[%s5206_s1 + $0x98] sm:$0xff] }
 0x32a   :  { %2858 = vpow2.f32 %v1941_v20  ;;  %v4851_v12 = vsub.f32 0.0, %v2032_v9  ;;  %v4853_v47 = vsub.f32 0.0, %v2038_v7  ;;  %v2145_v39 = vmul.f32 %v2715_v48, %v5709_v11  ;;  %v5718_v7 = vld [vmem:[#allocation26_spill] sm:$0xff]  ;;  %v5753_v17 = vld [vmem:[#allocation56_spill] sm:$0xff] }
 0x32b   :  { %v2126_v61 = vmul.f32 %v2122_v63, %v5710_v37  ;;  %v2131_v3 = vmul.f32 %v2122_v63, %v5711_v56  ;;  %v2136_v1 = vmul.f32 %v2122_v63, %v5712_v43  ;;  %v2141_v32 = vmul.f32 %v2122_v63, %v5713_v46  ;;  %v5723_v37 = vld [vmem:[#allocation22_spill] sm:$0xff]  ;;  %v2723_v56 = vld [vmem:[%s5206_s1 + $0x58] sm:$0xff] }
 0x32c   :  { %2860 = vpow2.f32 %v2026_v21  ;;  %v2146_v59 = vmul.f32 %v2122_v63, %v5714_v24  ;;  %v2150_v38 = vmul.f32 %v2715_v48, %v5715_v33  ;;  %v2151_v51 = vmul.f32 %v2122_v63, %v5716_v26  ;;  %v5719_v21 = vld [vmem:[#allocation27_spill] sm:$0xff]  ;;  %v5762_v31 = vld [vmem:[#allocation64_spill] sm:$0xff] }
 0x32d   :  { %v2127_v49 = vadd.f32 %v2126_v61, %v2125_v15  ;;  %v2132_v22 = vadd.f32 %v2131_v3, %v2130_v54  ;;  %v2137_v8 = vadd.f32 %v2136_v1, %v2135_v55  ;;  %v2142_v42 = vadd.f32 %v2141_v32, %v2140_v27  ;;  %v4869_v20 = vpop.eup %2848  ;;  %v5720_v54 = vld [vmem:[#allocation11_spill] sm:$0xff]  ;;  %v5721_v55 = vld [vmem:[#allocation14_spill] sm:$0xff]  ;;  %v5722_v27 = vld [vmem:[#allocation17_spill] sm:$0xff] }
 0x32e   :  { %5717 = vst [vmem:[#allocation100_spill] sm:$0xff] %v4869_v20  ;;  %2862 = vpow2.f32 %v1947_v36  ;;  %v2147_v9 = vadd.f32 %v2146_v59, %v2145_v39  ;;  %v2155_v13 = vmul.f32 %v2715_v48, %v5718_v7  ;;  %v2156_v62 = vmul.f32 %v2122_v63, %v5719_v21  ;;  %v2851_v15 = vpop.eup %2850  ;;  %v5724_v39 = vld [vmem:[#allocation29_spill] sm:$0xff]  ;;  %v5725_v1 = vld [vmem:[#allocation20_spill] sm:$0xff]  ;;  %v5726_v32 = vld [vmem:[#allocation23_spill] sm:$0xff] }
 0x32f   :  { %v2128_v5 = vadd.f32 %v2127_v49, %v5720_v54  ;;  %v2133_v4 = vadd.f32 %v2132_v22, %v5721_v55  ;;  %v2138_v11 = vadd.f32 %v2137_v8, %v5722_v27  ;;  %v2143_v61 = vadd.f32 %v2142_v42, %v5723_v37  ;;  %v2853_v3 = vpop.eup %2852  ;;  %v2724_v59 = vld [vmem:[%s5206_s1 + $0x118] sm:$0xff]  ;;  %v5728_v8 = vld [vmem:[#allocation25_spill] sm:$0xff]  ;;  %v5761_v20 = vld [vmem:[#allocation55_spill] sm:$0xff] }
 0x330   :  { %v2152_v36 = vadd.f32 %v2151_v51, %v2150_v38  ;;  %v2160_v43 = vmul.f32 %v2715_v48, %v5724_v39  ;;  %v2173_v46 = vadd.f32 %v2719_v41, %v5725_v1  ;;  %v2192_v24 = vadd.f32 %v2720_v60, %v5726_v32  ;;  %v4886_v33 = vpop.eup %2854  ;;  %v4898_v48 = vld [vmem:[%s5206_s1 + $0x158] sm:$0xff]  ;;  %v5730_v41 = vld [vmem:[#allocation30_spill] sm:$0xff]  ;;  %v5733_v37 = vld [vmem:[#allocation45_spill] sm:$0xff] }
 0x331   :  { %5727 = vst [vmem:[#allocation106_spill] sm:$0xff] %v4886_v33  ;;  %v4888_v26 = vmax.f32 %v2128_v5, 0.0  ;;  %v4890_v49 = vmax.f32 %v2133_v4, 0.0  ;;  %v4892_v22 = vmax.f32 %v2138_v11, 0.0  ;;  %v2148_v38 = vadd.f32 %v2147_v9, %v5728_v8  ;;  %v2725_v51 = vld [vmem:[%s5206_s1 + $0xb8] sm:$0xff]  ;;  %v5731_v9 = vld [vmem:[#allocation47_spill] sm:$0xff] }
 0x332   :  { %v4903_v42 = vpop.eup %2856  ;;  %v2161_v60 = vmul.f32 %v2122_v63, %v5730_v41  ;;  %v4907_v7 = vadd.f32 0.5, %v4898_v48  ;;  %v4910_v21 = vadd.f32 -0.5, %v4898_v48  ;;  %v2244_v54 = vadd.f32 %v2723_v56, %v5731_v9  ;;  %v2730_v5 = vld [vmem:[%s5206_s1 + $0xd8] sm:$0xff]  ;;  %v5732_v63 = vld [vmem:[#allocation21_spill] sm:$0xff] }
 0x333   :  { %5729 = vst [vmem:[#allocation107_spill] sm:$0xff] %v4903_v42  ;;  %v4916_v55 = vmax.f32 %v2143_v61, 0.0  ;;  %v2157_v4 = vadd.f32 %v2156_v62, %v2155_v13  ;;  %v4921_v27 = vld [vmem:[%s5206_s1 + $0x178] sm:$0xff]  ;;  %v2174_v11 = vmul.f32 %v4888_v26, %v5732_v63  ;;  %v2263_v39 = vadd.f32 %v2724_v59, %v5733_v37  ;;  %v5735_v13 = vld [vmem:[#allocation31_spill] sm:$0xff]  ;;  %v5737_v41 = vld [vmem:[#allocation37_spill] sm:$0xff] }
 0x334   :  { %v2728_v56 = vld [vmem:[%s5206_s1 + $0x78] sm:$0xff]  ;;  %v4932_v1 = vpop.eup %2858  ;;  %v2153_v62 = vadd.f32 %v2152_v36, %v5735_v13  ;;  %v4938_v9 = vadd.f32 %v2725_v51, %v5737_v41  ;;  %v4941_v59 = vadd.f32 0.5, %v4921_v27  ;;  %v4943_v63 = vmax.f32 %v2148_v38, 0.0  ;;  %v5740_v51 = vld [vmem:[#allocation70_spill] sm:$0xff]  ;;  %v5741_v38 = vld [vmem:[#allocation35_spill] sm:$0xff] }
 0x335   :  { %v2729_v61 = vld [vmem:[%s5206_s1 + $0x138] sm:$0xff]  ;;  %5734 = vst [vmem:[#allocation7_spill] sm:$0xff] %v4932_v1  ;;  %v2175_v37 = vadd.f32 %v2174_v11, %v2173_v46  ;;  %v2178_v25 = vmul.f32 %v4892_v22, %v5738_v28  ;;  %v4948_v0 = vadd.f32 -0.5, %v4921_v27  ;;  %v2162_v36 = vadd.f32 %v2161_v60, %v2160_v43 }
 0x336   :  { %v5736_v32 = vld [vmem:[#allocation28_spill] sm:$0xff]  ;;  %v4950_v2 = vpop.eup %2860  ;;  %v4956_v41 = vadd.f32 %v2729_v61, %v5740_v51  ;;  %v4959_v29 = vadd.f32 %v2730_v5, %v5670_v34  ;;  %v2158_v46 = vadd.f32 %v2157_v4, %v5741_v38  ;;  %v2180_v28 = vmul.f32 %v4916_v55, %v5742_v35  ;;  %v5746_v5 = vld [vmem:[#allocation42_spill] sm:$0xff] }
 0x337   :  { %v2176_v8 = vmul.f32 %v4890_v49, %v5736_v32  ;;  %v5739_v13 = vld [vmem:[#allocation76_spill] sm:$0xff]  ;;  %v4968_v43 = vmax.f32 %v2153_v62, 0.0  ;;  %v670_v61 = vmul.f32 0.6931472, %v2851_v15  ;;  %2864 = vlog2.f32 %v4842_v18 }
 0x338   :  { %v4953_v32 = vadd.f32 %v2728_v56, %v5739_v13  ;;  %v5743_v1 = vld [vmem:[#allocation24_spill] sm:$0xff]  ;;  %v4966_v33 = vpop.eup %2862  ;;  %v2182_v4 = vmul.f32 %v4943_v63, %v5746_v5  ;;  %v5748_v13 = vld [vmem:[#allocation38_spill] sm:$0xff]  ;;  %v4982_v15 = vmax.f32 %v2158_v46, 0.0 }
 0x339   :  { %v2177_v11 = vadd.f32 %v2176_v8, %v2175_v37  ;;  %v2193_v42 = vmul.f32 %v4888_v26, %v5743_v1  ;;  %5744 = vst [vmem:[#allocation9_spill] sm:$0xff] %v4966_v33  ;;  %v5745_v60 = vld [vmem:[#allocation32_spill] sm:$0xff]  ;;  %v5747_v37 = vld [vmem:[#allocation34_spill] sm:$0xff]  ;;  %v2034_v1 = vmul.f32 %v4950_v2, %v4851_v12  ;;  %v2163_v62 = vadd.f32 %v2162_v36, %v5748_v13 }
 0x33a   :  { %v2195_v56 = vmul.f32 %v4890_v49, %v5745_v60  ;;  %v2197_v35 = vmul.f32 %v4892_v22, %v5747_v37  ;;  %v5749_v51 = vld [vmem:[#allocation48_spill] sm:$0xff]  ;;  %v672_v60 = vmul.f32 0.6931472, %v2853_v3  ;;  %v2249_v36 = vmul.f32 %v4892_v22, %v5753_v17 }
 0x33b   :  { %v2179_v34 = vadd.f32 %v2178_v25, %v2177_v11  ;;  %v2194_v8 = vadd.f32 %v2193_v42, %v2192_v24  ;;  %v2245_v38 = vmul.f32 %v4888_v26, %v5749_v51  ;;  %v5750_v11 = vld [vmem:[#allocation40_spill] sm:$0xff]  ;;  %v5751_v24 = vld [vmem:[#allocation43_spill] sm:$0xff] }
 0x33c   :  { %v2199_v5 = vmul.f32 %v4916_v55, %v5750_v11  ;;  %v2184_v42 = vmul.f32 %v4968_v43, %v5751_v24  ;;  %v5752_v33 = vld [vmem:[#allocation52_spill] sm:$0xff] }
 0x33d   :  { %v2181_v18 = vadd.f32 %v2180_v28, %v2179_v34  ;;  %v2196_v25 = vadd.f32 %v2195_v56, %v2194_v8  ;;  %v2246_v37 = vadd.f32 %v2245_v38, %v2244_v54  ;;  %v2247_v12 = vmul.f32 %v4890_v49, %v5752_v33  ;;  %v5754_v3 = vld [vmem:[#allocation44_spill] sm:$0xff]  ;;  %v5755_v8 = vld [vmem:[#allocation61_spill] sm:$0xff]  ;;  %v5756_v54 = vld [vmem:[#allocation46_spill] sm:$0xff] }
 0x33e   :  { %v2201_v46 = vmul.f32 %v4943_v63, %v5754_v3  ;;  %v4994_v28 = vmul.f32 1.442695, %v670_v61  ;;  %v4996_v56 = vmax.f32 %v2163_v62, 0.0  ;;  %v2251_v11 = vmul.f32 %v4916_v55, %v5755_v8  ;;  %v5757_v33 = vld [vmem:[#allocation53_spill] sm:$0xff] }
 0x33f   :  { %v2183_v13 = vadd.f32 %v2182_v4, %v2181_v18  ;;  %v2198_v51 = vadd.f32 %v2197_v35, %v2196_v25  ;;  %v2248_v34 = vadd.f32 %v2247_v12, %v2246_v37  ;;  %v2264_v38 = vmul.f32 %v4888_v26, %v5756_v54  ;;  %v5758_v4 = vld [vmem:[#allocation50_spill] sm:$0xff]  ;;  %v5759_v18 = vld [vmem:[#allocation51_spill] sm:$0xff]  ;;  %v5760_v37 = vld [vmem:[#allocation57_spill] sm:$0xff] }
 0x340   :  { %v2186_v24 = vmul.f32 %v4982_v15, %v5757_v33  ;;  %v2203_v35 = vmul.f32 %v4968_v43, %v5758_v4  ;;  %v2266_v61 = vmul.f32 %v4890_v49, %v5759_v18  ;;  %v2268_v12 = vmul.f32 %v4892_v22, %v5760_v37  ;;  %v5769_v37 = vld [vmem:[#allocation65_spill] sm:$0xff] }
 0x341   :  { %v2200_v17 = vadd.f32 %v2199_v5, %v2198_v51  ;;  %v2185_v25 = vadd.f32 %v2184_v42, %v2183_v13  ;;  %v2250_v62 = vadd.f32 %v2249_v36, %v2248_v34  ;;  %v2265_v3 = vadd.f32 %v2264_v38, %v2263_v39  ;;  %v5014_v51 = vpop.eup %2864  ;;  %v5764_v36 = vld [vmem:[#allocation39_spill] sm:$0xff]  ;;  %v5765_v13 = vld [vmem:[#allocation58_spill] sm:$0xff] }
 0x342   :  { %v2205_v54 = vmul.f32 %v4982_v15, %v5761_v20  ;;  %v2253_v33 = vmul.f32 %v4943_v63, %v5762_v31  ;;  %v677_v5 = vmul.f32 1.442695, %v672_v60  ;;  %v2270_v42 = vmul.f32 %v4916_v55, %v5763_v10  ;;  %v5766_v38 = vld [vmem:[#allocation59_spill] sm:$0xff] }
 0x343   :  { %v2202_v8 = vadd.f32 %v2201_v46, %v2200_v17  ;;  %v2252_v4 = vadd.f32 %v2251_v11, %v2250_v62  ;;  %v2267_v57 = vadd.f32 %v2266_v61, %v2265_v3  ;;  %v2286_v39 = vmul.f32 %v4888_v26, %v5764_v36  ;;  %v5767_v17 = vld [vmem:[#allocation41_spill] sm:$0xff]  ;;  %v5768_v11 = vld [vmem:[#allocation66_spill] sm:$0xff] }
 0x344   :  { %v2188_v46 = vmul.f32 %v4996_v56, %v5765_v13  ;;  %v2207_v20 = vmul.f32 %v4996_v56, %v5766_v38  ;;  %v2288_v31 = vmul.f32 %v4890_v49, %v5767_v17  ;;  %v2187_v60 = vadd.f32 %v2186_v24, %v2185_v25  ;;  %v5771_v17 = vld [vmem:[#allocation68_spill] sm:$0xff] }
 0x345   :  { %v2204_v34 = vadd.f32 %v2203_v35, %v2202_v8  ;;  %v2269_v18 = vadd.f32 %v2268_v12, %v2267_v57  ;;  %v2272_v61 = vmul.f32 %v4943_v63, %v5768_v11  ;;  %v2287_v10 = vadd.f32 %v2286_v39, %v4938_v9  ;;  %v5770_v8 = vld [vmem:[#allocation49_spill] sm:$0xff]  ;;  %v5772_v9 = vld [vmem:[#allocation54_spill] sm:$0xff] }
 0x346   :  { %v2040_v62 = vmul.f32 %v4950_v2, %v4853_v47  ;;  %v2255_v35 = vmul.f32 %v4968_v43, %v5769_v37  ;;  %v2290_v36 = vmul.f32 %v4892_v22, %v5770_v8  ;;  %v2254_v13 = vadd.f32 %v2253_v33, %v2252_v4  ;;  %v5774_v4 = vld [vmem:[#allocation79_spill] sm:$0xff] }
 0x347   :  { %v2206_v3 = vadd.f32 %v2205_v54, %v2204_v34  ;;  %v2271_v38 = vadd.f32 %v2270_v42, %v2269_v18  ;;  %v2274_v57 = vmul.f32 %v4968_v43, %v5771_v17  ;;  %v2289_v24 = vadd.f32 %v2288_v31, %v2287_v10  ;;  %v5773_v34 = vld [vmem:[#allocation73_spill] sm:$0xff]  ;;  %v5775_v18 = vld [vmem:[#allocation84_spill] sm:$0xff] }
 0x348   :  { %v5037_v25 = vmul.f32 1.442695, %v2034_v1  ;;  %v2292_v39 = vmul.f32 %v4916_v55, %v5772_v9  ;;  %v679_v2 = vsub.f32 0.0, %v4994_v28  ;;  %v2189_v47 = vadd.f32 %v2188_v46, %v2187_v60  ;;  %v5777_v28 = vld [vmem:[#allocation60_spill] sm:$0xff] }
 0x349   :  { %v2208_v12 = vadd.f32 %v2207_v20, %v2206_v3  ;;  %v2273_v54 = vadd.f32 %v2272_v61, %v2271_v38  ;;  %v2276_v11 = vmul.f32 %v4982_v15, %v5773_v34  ;;  %v680_v37 = vsub.f32 0.0, %v677_v5  ;;  %v5776_v3 = vld [vmem:[#allocation81_spill] sm:$0xff]  ;;  %v5778_v38 = vld [vmem:[#allocation63_spill] sm:$0xff] }
 0x34a   :  { %v2257_v42 = vmul.f32 %v4982_v15, %v5774_v4  ;;  %v2259_v1 = vmul.f32 %v4996_v56, %v5775_v18  ;;  %v2291_v31 = vadd.f32 %v2290_v36, %v2289_v24  ;;  %v2256_v20 = vadd.f32 %v2255_v35, %v2254_v13  ;;  %v5779_v13 = vld [vmem:[#allocation77_spill] sm:$0xff] }
 0x34b   :  { %v2721_v33 = vclamps-f32 %v2208_v12, 10.0  ;;  %v2275_v10 = vadd.f32 %v2274_v57, %v2273_v54  ;;  %v2278_v8 = vmul.f32 %v4996_v56, %v5776_v3  ;;  %v2294_v46 = vmul.f32 %v4943_v63, %v5777_v28  ;;  %v5780_v54 = vld [vmem:[#allocation67_spill] sm:$0xff] }
 0x34c   :  { %v5053_v61 = vsub.f32 %v4907_v7, %v2189_v47  ;;  %v2293_v5 = vadd.f32 %v2292_v39, %v2291_v31  ;;  %v2296_v17 = vmul.f32 %v4968_v43, %v5778_v38  ;;  %v5058_v12 = vsub.f32 %v4910_v21, %v2189_v47  ;;  %v5781_v7 = vld [vmem:[#allocation82_spill] sm:$0xff] }
 0x34d   :  { %v2211_v60 = vsub.f32 0.0, %v2721_v33  ;;  %v2277_v36 = vadd.f32 %v2276_v11, %v2275_v10  ;;  %v2280_v35 = vsub.f32 %v4898_v48, %v2189_v47  ;;  %v2339_v57 = vmul.f32 %v4888_v26, %v5779_v13  ;;  %v5782_v21 = vld [vmem:[#allocation86_spill] sm:$0xff]  ;;  %v5783_v47 = vld [vmem:[#allocation69_spill] sm:$0xff] }
 0x34e   :  { %v2295_v9 = vadd.f32 %v2294_v46, %v2293_v5  ;;  %v2298_v34 = vmul.f32 %v4982_v15, %v5780_v54  ;;  %v2341_v39 = vmul.f32 %v4890_v49, %v5781_v7  ;;  %v2258_v33 = vadd.f32 %v2257_v42, %v2256_v20  ;;  %v5784_v20 = vld [vmem:[#allocation71_spill] sm:$0xff] }
 0x34f   :  { %v2212_v24 = vmul.f32 1.442695, %v2211_v60  ;;  %v2279_v4 = vadd.f32 %v2278_v8, %v2277_v36  ;;  %v2340_v18 = vadd.f32 %v2339_v57, %v4953_v32  ;;  %v2343_v11 = vmul.f32 %v4892_v22, %v5782_v21  ;;  %v5785_v8 = vld [vmem:[#allocation78_spill] sm:$0xff]  ;;  %v5787_v54 = vld [vmem:[#allocation87_spill] sm:$0xff] }
 0x350   :  { %v2297_v48 = vadd.f32 %v2296_v17, %v2295_v9  ;;  %v2300_v31 = vmul.f32 %v4996_v56, %v5783_v47  ;;  %v685_v10 = vrot.slane %v679_v2, 3  ;;  %v2218_v3 = vand.u32 2147483647, %v5053_v61 }
 0x351   :  { %2866 = vpow2.f32 %v2212_v24  ;;  %v2342_v28 = vadd.f32 %v2341_v39, %v2340_v18  ;;  %v686_v46 = vrot.slane %v680_v37, 3  ;;  %v2345_v42 = vmul.f32 %v4916_v55, %v5684_v52  ;;  %v5786_v24 = vld [vmem:[#allocation83_spill] sm:$0xff] }
 0x352   :  { %v2299_v60 = vadd.f32 %v2298_v34, %v2297_v48  ;;  %v2358_v32 = vmul.f32 %v4888_v26, %v5784_v20  ;;  %v2360_v5 = vmul.f32 %v4890_v49, %v5785_v8  ;;  %v2224_v38 = vand.u32 2147483647, %v5058_v12 }
 0x353   :  { %v2260_v17 = vadd.f32 %v2259_v1, %v2258_v33  ;;  %v2281_v36 = vmul.f32 %v2280_v35, %v2279_v4  ;;  %v2344_v2 = vadd.f32 %v2343_v11, %v2342_v28  ;;  %v5080_v13 = vmul.f32 1.442695, %v2040_v62  ;;  %v5788_v33 = vld [vmem:[#allocation74_spill] sm:$0xff] }
 0x354   :  { %v2301_v57 = vadd.f32 %v2300_v31, %v2299_v60  ;;  %v2359_v37 = vadd.f32 %v2358_v32, %v4956_v41  ;;  %v2362_v9 = vmul.f32 %v4892_v22, %v5786_v24  ;;  %v2347_v52 = vmul.f32 %v4943_v63, %v5687_v30  ;;  %v5789_v31 = vld [vmem:[#allocation101_spill] sm:$0xff] }
 0x355   :  { %v2364_v34 = vmul.f32 %v4916_v55, %v5787_v54  ;;  %v674_v7 = vmul.f32 0.6931472, %v5014_v51  ;;  %v692_v1 = vsel %vm691_vm0, %v685_v10, 0.0  ;;  %v2346_v39 = vadd.f32 %v2345_v42, %v2344_v2 }
 0x356   :  { %v2726_v35 = vclamps-f32 %v2301_v57, 10.0  ;;  %v2361_v62 = vadd.f32 %v2360_v5, %v2359_v37  ;;  %v2380_v4 = vmul.f32 %v4888_v26, %v5788_v33  ;;  %v2219_v41 = vsub.f32 0.0, %v2218_v3  ;;  %v5790_v3 = vld [vmem:[#allocation75_spill] sm:$0xff]  ;;  %v5793_v33 = vld [vmem:[#allocation97_spill] sm:$0xff] }
 0x357   :  { %v2225_v18 = vsub.f32 0.0, %v2224_v38  ;;  %v5093_v21 = vadd.f32 %v2281_v36, %v2260_v17  ;;  %v693_v11 = vsel %vm691_vm0, %v686_v46, 0.0  ;;  %v2366_v47 = vmul.f32 %v4943_v63, %v5686_v58  ;;  %v5791_v46 = vld [vmem:[#allocation80_spill] sm:$0xff] }
 0x358   :  { %v2304_v30 = vsub.f32 0.0, %v2726_v35  ;;  %v2363_v48 = vadd.f32 %v2362_v9, %v2361_v62  ;;  %v2381_v51 = vadd.f32 %v2380_v4, %v4959_v29  ;;  %vm1481_vm1 = vcmp.le.f32.partialorder %v5789_v31, 0.0  ;;  %v5794_v4 = vld [vmem:[#allocation91_spill] sm:$0xff] }
 0x359   :  { %v5102_v10 = vsub.f32 %v4941_v59, %v5093_v21  ;;  %v2349_v26 = vmul.f32 %v4968_v43, %v5688_v53  ;;  %v2382_v28 = vmul.f32 %v4890_v49, %v5790_v3  ;;  %v2384_v60 = vmul.f32 %v4892_v22, %v5791_v46  ;;  %v2718_v46 = vld [vmem:[%s5206_s1 + $0x198] sm:$0xff] }
 0x35a   :  { %v2305_v58 = vmul.f32 1.442695, %v2304_v30  ;;  %v2348_v20 = vadd.f32 %v2347_v52, %v2346_v39  ;;  %v2365_v29 = vadd.f32 %v2364_v34, %v2363_v48  ;;  %v2368_v32 = vmul.f32 %v4968_v43, %v5591_v45 }
 0x35b   :  { %v2867_v42 = vpop.eup %2866  ;;  %v5114_v59 = vsub.f32 %v4948_v0, %v5093_v21  ;;  %v2351_v53 = vmul.f32 %v4982_v15, %v5595_v40  ;;  %v2383_v8 = vadd.f32 %v2382_v28, %v2381_v51  ;;  %v2386_v49 = vmul.f32 %v4916_v55, %v5589_v6  ;;  %v5792_v6 = vld [vmem:[#allocation85_spill] sm:$0xff]  ;;  %v5798_v51 = vld [vmem:[#allocation95_spill] sm:$0xff]  ;;  %v5799_v28 = vld [vmem:[#allocation100_spill] sm:$0xff] }
 0x35c   :  { %2868 = vpow2.f32 %v2305_v58  ;;  %v2367_v22 = vadd.f32 %v2366_v47, %v2365_v29  ;;  %v2370_v5 = vmul.f32 %v4982_v15, %v5597_v19  ;;  %v2372_v38 = vmul.f32 %v4996_v56, %v5601_v50  ;;  %v5800_v58 = vld [vmem:[#allocation103_spill] sm:$0xff]  ;;  %v5801_v29 = vld [vmem:[#allocation88_spill] sm:$0xff] }
 0x35d   :  { %v2220_v45 = vmul.f32 %v2867_v42, %v2219_v41  ;;  %v2311_v17 = vand.u32 2147483647, %v5102_v10  ;;  %v2385_v0 = vadd.f32 %v2384_v60, %v2383_v8  ;;  %v2388_v36 = vmul.f32 %v4943_v63, %v5590_v44  ;;  %v5803_v8 = vld [vmem:[#allocation96_spill] sm:$0xff] }
 0x35e   :  { %v2226_v40 = vmul.f32 %v2867_v42, %v2225_v18  ;;  %v2350_v2 = vadd.f32 %v2349_v26, %v2348_v20  ;;  %v2369_v57 = vadd.f32 %v2368_v32, %v2367_v22  ;;  %v678_v37 = vmul.f32 1.442695, %v674_v7  ;;  %v5796_v18 = vld [vmem:[#allocation94_spill] sm:$0xff] }
 0x35f   :  { %vm1571_vm3 = vcmp.le.f32.partialorder %v5792_v6, 0.0  ;;  %v2317_v55 = vand.u32 2147483647, %v5114_v59  ;;  %v2387_v24 = vadd.f32 %v2386_v49, %v2385_v0  ;;  %v2390_v19 = vmul.f32 %v4968_v43, %v5594_v23 }
 0x360   :  { %v694_v50 = vadd.f32 %v693_v11, %v692_v1  ;;  %2870 = vpow2.f32 %v5037_v25  ;;  %v2353_v9 = vmul.f32 %v4996_v56, %v3887_v16  ;;  %v2371_v52 = vadd.f32 %v2370_v5, %v2369_v57 }
 0x361   :  { %v681_v44 = vsub.f32 0.0, %v678_v37  ;;  %v2221_v63 = vmul.f32 1.442695, %v2220_v45  ;;  %v2374_v54 = vsub.f32 %v4921_v27, %v5093_v21  ;;  %v2389_v34 = vadd.f32 %v2388_v36, %v2387_v24 }
 0x362   :  { %v2392_v7 = vmul.f32 %v4982_v15, %v5598_v14  ;;  %v2227_v35 = vmul.f32 1.442695, %v2226_v40  ;;  %v2352_v39 = vadd.f32 %v2351_v53, %v2350_v2  ;;  %v2373_v62 = vadd.f32 %v2372_v38, %v2371_v52  ;;  %v5797_v15 = vld [vmem:[#allocation105_spill] sm:$0xff]  ;;  %v5802_v53 = vld [vmem:[#allocation98_spill] sm:$0xff]  ;;  %v5807_v52 = vld [vmem:[#allocation7_spill] sm:$0xff] }
 0x363   :  { %v687_v23 = vrot.slane %v681_v44, 3  ;;  %v2312_v43 = vsub.f32 0.0, %v2311_v17  ;;  %v2318_v1 = vsub.f32 0.0, %v2317_v55  ;;  %v2391_v25 = vadd.f32 %v2390_v19, %v2389_v34  ;;  %v5804_v55 = vld [vmem:[#allocation106_spill] sm:$0xff]  ;;  %v5805_v19 = vld [vmem:[#allocation107_spill] sm:$0xff]  ;;  %v5808_v44 = vld [vmem:[#allocation9_spill] sm:$0xff] }
 0x364   :  { %v2394_v16 = vmul.f32 %v4996_v56, %v5793_v33  ;;  %v5795_v41 = vsub.f32 1.0, %v5794_v4  ;;  %v1570_v21 = vmul.f32 0.5, %v5796_v18  ;;  %2872 = vpow2.f32 %v5080_v13  ;;  %v5812_v18 = vld [vmem:[#allocation72_spill] sm:$0xff] }
 0x365   :  { %v696_v14 = vsel %vm695_vm2, %v687_v23, 0.0  ;;  %v1572_v11 = vsub.f32 1.0, %v5797_v15  ;;  %2874 = vpow2.f32 %v2221_v63  ;;  %v2393_v30 = vadd.f32 %v2392_v7, %v2391_v25  ;;  %v5809_v7 = vld [vmem:[#allocation93_spill] sm:$0xff] }
 0x366   :  { %v1483_v27 = vsel %vm1481_vm1, %v5794_v4, %v5795_v41  ;;  %v697_v48 = vadd.f32 %v696_v14, %v694_v50  ;;  %v2869_v47 = vpop.eup %2868  ;;  %v1658_v56 = vmul.f32 0.5, %v5798_v51  ;;  %2876 = vpow2.f32 %v2227_v35  ;;  %v5811_v41 = vld [vmem:[#allocation99_spill] sm:$0xff] }
 0x367   :  { %v2354_v26 = vadd.f32 %v2353_v9, %v2352_v39  ;;  %v2375_v3 = vmul.f32 %v2374_v54, %v2373_v62  ;;  %v1664_v31 = vmul.f32 0.5, %v5799_v28  ;;  %v2313_v13 = vmul.f32 %v2869_v47, %v2312_v43  ;;  %v5806_v9 = vld [vmem:[#allocation102_spill] sm:$0xff] }
 0x368   :  { %v2319_v60 = vmul.f32 %v2869_v47, %v2318_v1  ;;  %v2395_v42 = vadd.f32 %v2394_v16, %v2393_v30  ;;  %698 = vadd.xlane.f32.xlu0 %v697_v48  ;;  %v1484_v20 = vsub.f32 %v5800_v58, %v1483_v27  ;;  %vm1574_vm4 = vcmp.le.f32.partialorder %v5801_v29, 0.0  ;;  %v5810_v16 = vld [vmem:[#allocation5_spill] sm:$0xff] }
 0x369   :  { %v1575_v32 = vsub.f32 1.0, %v1570_v21  ;;  %vm1665_vm5 = vcmp.le.f32.partialorder %v5802_v53, 0.0  ;;  %vm1668_vm6 = vcmp.le.f32.partialorder %v5803_v8, 0.0  ;;  %v2314_v49 = vmul.f32 1.442695, %v2313_v13 }
 0x36a   :  { %v2320_v22 = vmul.f32 1.442695, %v2319_v60  ;;  %v2731_v5 = vclamps-f32 %v2395_v42, 10.0  ;;  %v2871_v38 = vpop.eup %2870  ;;  %v1573_v45 = vsel %vm1571_vm3, %v5797_v15, %v1572_v11  ;;  %v2376_v17 = vadd.f32 %v2375_v3, %v2354_v26  ;;  %v5813_v11 = vld [vmem:[#allocation89_spill] sm:$0xff] }
 0x36b   :  { %v2401_v0 = vadd.f32 0.5, %v2718_v46  ;;  %v2732_v36 = vadd.f32 -0.5, %v2718_v46  ;;  %v1666_v40 = vsub.f32 1.0, %v1658_v56  ;;  %v1669_v2 = vsub.f32 1.0, %v1664_v31  ;;  %v5814_v46 = vld [vmem:[#allocation90_spill] sm:$0xff] }
 0x36c   :  { %2878 = vpow2.f32 %v2314_v49  ;;  %v2398_v57 = vsub.f32 0.0, %v2731_v5  ;;  %v1576_v37 = vsel %vm1574_vm4, %v1570_v21, %v1575_v32  ;;  %v1850_v24 = vmul.f32 0.5, %v5804_v55 }
 0x36d   :  { %v1856_v50 = vmul.f32 0.5, %v5805_v19  ;;  %2880 = vpow2.f32 %v2320_v22  ;;  %v1943_v6 = vmul.f32 0.5, %v5807_v52  ;;  %v1949_v63 = vmul.f32 0.5, %v5808_v44 }
 0x36e   :  { %2882 = vlog2.f32 %v5806_v9  ;;  %v2399_v54 = vmul.f32 1.442695, %v2398_v57  ;;  %v2873_v34 = vpop.eup %2872  ;;  %v1485_v35 = vmax.f32 %v1484_v20, 3.0517578e-05  ;;  %v5169_v39 = vsub.f32 %v2401_v0, %v2376_v17  ;;  %v5815_v20 = vld [vmem:[#allocation92_spill] sm:$0xff] }
 0x36f   :  { %2884 = vlog2.f32 %v5809_v7  ;;  %v5171_v62 = vsub.f32 %v2732_v36, %v2376_v17  ;;  %v2875_v23 = vpop.eup %2874  ;;  %v1577_v43 = vsub.f32 %v1573_v45, %v1576_v37  ;;  %v1667_v1 = vsel %vm1665_vm5, %v1658_v56, %v1666_v40 }
 0x370   :  { %v1670_v25 = vsel %vm1668_vm6, %v1664_v31, %v1669_v2  ;;  %2886 = vpow2.f32 %v2399_v54  ;;  %v2877_v33 = vpop.eup %2876  ;;  %vm1857_vm7 = vcmp.le.f32.partialorder %v5810_v16, 0.0  ;;  %v1858_v4 = vsub.f32 1.0, %v1850_v24 }
 0x371   :  { %vm1860_vm8 = vcmp.le.f32.partialorder %v5811_v41, 0.0  ;;  %v1861_v27 = vsub.f32 1.0, %v1856_v50  ;;  %vm1950_vm9 = vcmp.le.f32.partialorder %v5812_v18, 0.0  ;;  %v1951_v21 = vsub.f32 1.0, %v1943_v6 }
 0x372   :  { %v1954_v14 = vsub.f32 1.0, %v1949_v63  ;;  %v2037_v15 = vmul.f32 0.5, %v2871_v38  ;;  %vm1953_vm10 = vcmp.le.f32.partialorder %v5813_v11, 0.0  ;;  %v2043_v30 = vmul.f32 0.5, %v2873_v34 }
 0x373   :  { %v2405_v48 = vand.u32 2147483647, %v5169_v39  ;;  %v2411_v47 = vand.u32 2147483647, %v5171_v62  ;;  %2888 = vlog2.f32 %v1485_v35  ;;  %v1578_v51 = vmax.f32 %v1577_v43, 3.0517578e-05 }
 0x374   :  { %v2223_v56 = vmul.f32 0.5, %v2875_v23  ;;  %v2229_v26 = vmul.f32 0.5, %v2877_v33  ;;  %v1671_v3 = vsub.f32 %v1667_v1, %v1670_v25  ;;  %v1859_v28 = vsel %vm1857_vm7, %v1850_v24, %v1858_v4  ;;  %v5816_v33 = vld [vmem:[#allocation104_spill] sm:$0xff] }
 0x375   :  { %v1862_v31 = vsel %vm1860_vm8, %v1856_v50, %v1861_v27  ;;  %vm2044_vm11 = vcmp.le.f32.partialorder %v5814_v46, 0.0  ;;  %v1952_v60 = vsel %vm1950_vm9, %v1943_v6, %v1951_v21  ;;  %v1955_v42 = vsel %vm1953_vm10, %v1949_v63, %v1954_v14 }
 0x376   :  { %v2879_v13 = vpop.eup %2878  ;;  %v2045_v58 = vsub.f32 1.0, %v2037_v15  ;;  %vm2047_vm12 = vcmp.le.f32.partialorder %v5815_v20, 0.0  ;;  %v2048_v32 = vsub.f32 1.0, %v2043_v30  ;;  %v2406_v8 = vsub.f32 0.0, %v2405_v48 }
 0x377   :  { %v2881_v29 = vpop.eup %2880  ;;  %v2316_v53 = vmul.f32 0.5, %v2879_v13  ;;  %v2412_v49 = vsub.f32 0.0, %v2411_v47  ;;  %v1863_v5 = vsub.f32 %v1859_v28, %v1862_v31  ;;  %v2231_v38 = vsub.f32 1.0, %v2223_v56 }
 0x378   :  { %v2883_v22 = vpop.eup %2882  ;;  %v2234_v45 = vsub.f32 1.0, %v2229_v26  ;;  %v2322_v17 = vmul.f32 0.5, %v2881_v29  ;;  %v1672_v36 = vmax.f32 %v1671_v3, 3.0517578e-05  ;;  %vm2230_vm13 = vcmp.le.f32.partialorder %v5053_v61, 0.0 }
 0x379   :  { %v2885_v0 = vpop.eup %2884  ;;  %vm2233_vm14 = vcmp.le.f32.partialorder %v5058_v12, 0.0  ;;  %v2324_v40 = vsub.f32 1.0, %v2316_v53  ;;  %v1956_v57 = vsub.f32 %v1952_v60, %v1955_v42  ;;  %vm2323_vm15 = vcmp.le.f32.partialorder %v5102_v10, 0.0 }
 0x37a   :  { %v2887_v2 = vpop.eup %2886  ;;  %vm2326_vm0 = vcmp.le.f32.partialorder %v5114_v59, 0.0  ;;  %v2327_v37 = vsub.f32 1.0, %v2322_v17  ;;  %v2046_v55 = vsel %vm2044_vm11, %v2037_v15, %v2045_v58  ;;  %v2049_v24 = vsel %vm2047_vm12, %v2043_v30, %v2048_v32 }
 0x37b   :  { %v2407_v19 = vmul.f32 %v2887_v2, %v2406_v8  ;;  %v2413_v50 = vmul.f32 %v2887_v2, %v2412_v49  ;;  %2890 = vlog2.f32 %v1578_v51  ;;  %v1864_v61 = vmax.f32 %v1863_v5, 3.0517578e-05 }
 0x37c   :  { %v2232_v9 = vsel %vm2230_vm13, %v2223_v56, %v2231_v38  ;;  %v2235_v12 = vsel %vm2233_vm14, %v2229_v26, %v2234_v45  ;;  %v2325_v52 = vsel %vm2323_vm15, %v2316_v53, %v2324_v40  ;;  %v2328_v6 = vsel %vm2326_vm0, %v2322_v17, %v2327_v37 }
 0x37d   :  { %v2408_v44 = vmul.f32 1.442695, %v2407_v19  ;;  %v2414_v63 = vmul.f32 1.442695, %v2413_v50  ;;  %v2889_v10 = vpop.eup %2888  ;;  %2892 = vlog2.f32 %v1672_v36  ;;  %v1957_v59 = vmax.f32 %v1956_v57, 3.0517578e-05 }
 0x37e   :  { %v2050_v54 = vsub.f32 %v2046_v55, %v2049_v24  ;;  %v2236_v34 = vsub.f32 %v2232_v9, %v2235_v12  ;;  %v2329_v7 = vsub.f32 %v2325_v52, %v2328_v6  ;;  %v1001_v16 = vmul.f32 0.6931472, %v5816_v33 }
 0x37f   :  { %2894 = vpow2.f32 %v2408_v44  ;;  %v1148_v41 = vmul.f32 0.6931472, %v2883_v22  ;;  %v1487_v18 = vmul.f32 0.6931472, %v2889_v10  ;;  %vm2417_vm1 = vcmp.le.f32.partialorder %v5169_v39, 0.0 }
 0x380   :  { %2896 = vpow2.f32 %v2414_v63  ;;  %v2051_v35 = vmax.f32 %v2050_v54, 3.0517578e-05  ;;  %v2237_v23 = vmax.f32 %v2236_v34, 3.0517578e-05  ;;  %v2330_v43 = vmax.f32 %v2329_v7, 3.0517578e-05 }
 0x381   :  { %2898 = vlog2.f32 %v1864_v61  ;;  %v1002_v48 = vmul.f32 1.442695, %v1001_v16  ;;  %vm2420_vm2 = vcmp.le.f32.partialorder %v5171_v62, 0.0  ;;  %v1149_v51 = vmul.f32 1.442695, %v1148_v41 }
 0x382   :  { %2900 = vlog2.f32 %v1957_v59  ;;  %v1296_v56 = vmul.f32 0.6931472, %v2885_v0  ;;  %v1488_v3 = vmul.f32 1.442695, %v1487_v18  ;;  %vm2431_vm3 = vcmask 64512  }
 0x383   :  { %2902 = vlog2.f32 %v2051_v35  ;;  %v1003_v32 = vsub.f32 0.0, %v1002_v48  ;;  %v1150_v39 = vsub.f32 0.0, %v1149_v51  ;;  %vm2448_vm5 = vcmask 8192  }
 0x384   :  { %2904 = vlog2.f32 %v2237_v23  ;;  %v1297_v53 = vmul.f32 1.442695, %v1296_v56  ;;  %v1489_v49 = vsub.f32 0.0, %v1488_v3 }
 0x385   :  { %v2891_v1 = vpop.eup %2890  ;;  %2906 = vlog2.f32 %v2330_v43  ;;  %v1151_v40 = vadd.f32 %v1150_v39, %v1003_v32 }
 0x386   :  { %v1580_v21 = vmul.f32 0.6931472, %v2891_v1  ;;  %v1298_v2 = vsub.f32 0.0, %v1297_v53 }
 0x387   :  { %v2893_v25 = vpop.eup %2892 }
 0x388   :  { %v1581_v28 = vmul.f32 1.442695, %v1580_v21  ;;  %v1674_v31 = vmul.f32 0.6931472, %v2893_v25  ;;  %v1299_v9 = vadd.f32 %v1298_v2, %v1151_v40 }
 0x389   :  { %v2895_v4 = vpop.eup %2894 }
 0x38a   :  { %v2897_v27 = vpop.eup %2896  ;;  %v2410_v14 = vmul.f32 0.5, %v2895_v4  ;;  %v1582_v22 = vsub.f32 0.0, %v1581_v28  ;;  %v1675_v62 = vmul.f32 1.442695, %v1674_v31 }
 0x38b   :  { %v2899_v15 = vpop.eup %2898  ;;  %v2416_v11 = vmul.f32 0.5, %v2897_v27 }
 0x38c   :  { %v2901_v30 = vpop.eup %2900  ;;  %v2418_v47 = vsub.f32 1.0, %v2410_v14  ;;  %v1866_v13 = vmul.f32 0.6931472, %v2899_v15  ;;  %v1583_v57 = vadd.f32 %v1582_v22, %v1489_v49  ;;  %v1676_v37 = vsub.f32 0.0, %v1675_v62 }
 0x38d   :  { %v2421_v26 = vsub.f32 1.0, %v2416_v11  ;;  %v1959_v60 = vmul.f32 0.6931472, %v2901_v30  ;;  %v2903_v58 = vpop.eup %2902 }
 0x38e   :  { %v2419_v46 = vsel %vm2417_vm1, %v2410_v14, %v2418_v47  ;;  %v2905_v29 = vpop.eup %2904  ;;  %v1867_v38 = vmul.f32 1.442695, %v1866_v13  ;;  %v2053_v17 = vmul.f32 0.6931472, %v2903_v58  ;;  %v1677_v12 = vadd.f32 %v1676_v37, %v1583_v57 }
 0x38f   :  { %v2422_v42 = vsel %vm2420_vm2, %v2416_v11, %v2421_v26  ;;  %v2907_v8 = vpop.eup %2906  ;;  %v1960_v45 = vmul.f32 1.442695, %v1959_v60  ;;  %v2239_v0 = vmul.f32 0.6931472, %v2905_v29  ;;  %v2442_v26 = vlaneseq }
 0x390   :  { %v2423_v20 = vsub.f32 %v2419_v46, %v2422_v42  ;;  %v2332_v36 = vmul.f32 0.6931472, %v2907_v8  ;;  %v1868_v55 = vsub.f32 0.0, %v1867_v38  ;;  %v2054_v19 = vmul.f32 1.442695, %v2053_v17 }
 0x391   :  { %v1961_v24 = vsub.f32 0.0, %v1960_v45  ;;  %v2240_v50 = vmul.f32 1.442695, %v2239_v0  ;;  %v1678_v59 = vadd.f32 %v1677_v12, %v1299_v9  ;;  %v2443_v3 = vand.u32 127, %v2442_v26 }
 0x392   :  { %v2424_v5 = vmax.f32 %v2423_v20, 3.0517578e-05  ;;  %v2333_v61 = vmul.f32 1.442695, %v2332_v36  ;;  %v2055_v6 = vsub.f32 0.0, %v2054_v19 }
 0x393   :  { %v1962_v52 = vadd.f32 %v1961_v24, %v1868_v55  ;;  %v2241_v44 = vsub.f32 0.0, %v2240_v50  ;;  %vm2444_vm4 = vcmp.eq.s32.totalorder %v2443_v3, 0 }
 0x394   :  { %2908 = vlog2.f32 %v2424_v5  ;;  %v2334_v63 = vsub.f32 0.0, %v2333_v61 }
 0x395   :  { %v2056_v54 = vadd.f32 %v2055_v6, %v1962_v52 }
 0x396   :  { %v2335_v7 = vadd.f32 %v2334_v63, %v2241_v44 }
 0x397   :  { %v2057_v23 = vadd.f32 %v2056_v54, %v1678_v59 }
 0x39e   :  { %v2909_v10 = vpop.eup %2908 }
 0x39f   :  { %v2426_v34 = vmul.f32 0.6931472, %v2909_v10 }
 0x3a1   :  { %v2427_v35 = vmul.f32 1.442695, %v2426_v34 }
 0x3a3   :  { %v2428_v43 = vsub.f32 0.0, %v2427_v35 }
 0x3a5   :  { %v2429_v1 = vadd.f32 %v2428_v43, %v2335_v7 }
 0x3a7   :  { %v2430_v25 = vadd.f32 %v2429_v1, %v2057_v23 }
 0x3a9   :  { %v2432_v33 = vsel %vm2431_vm3, %v2430_v25, 0.0 }
 0x3aa   :  { %2433 = vadd.xlane.f32.xlu1 %v2432_v33 }
 0x3f5   :  { %v699_v16 = vpop.xlane.xlu0 %698 }
 0x3f6   :  { %v700_v4 = vrot.slane %v699_v16, 4 }
 0x3f8   :  { %v701_v41 = vadd.f32 %v700_v4, %v699_v16 }
 0x3fa   :  { %v702_v27 = vrot.slane %v701_v41, 2 }
 0x3fc   :  { %v703_v18 = vadd.f32 %v702_v27, %v701_v41 }
 0x3fe   :  { %v704_v21 = vrot.slane %v703_v18, 1 }
 0x400   :  { %v705_v14 = vadd.f32 %v704_v21, %v703_v18 }
 0x402   :  { %2779 = vpush %v705_v14 }
 0x433   :  { %s2780_s1 = spop %2779 }
 0x434   :  { %v2445_v28 = vstv %s2780_s1 }
 0x437   :  { %v2434_v15 = vpop.xlane.xlu1 %2433 }
 0x438   :  { %v2435_v11 = vrot.slane %v2434_v15, 4 }
 0x43a   :  { %v2436_v30 = vadd.f32 %v2435_v11, %v2434_v15 }
 0x43c   :  { %v2437_v48 = vrot.slane %v2436_v30, 2 }
 0x43e   :  { %v2438_v47 = vadd.f32 %v2437_v48, %v2436_v30 }
 0x440   :  { %v2439_v51 = vrot.slane %v2438_v47, 1 }
 0x442   :  { %v2440_v56 = vadd.f32 %v2439_v51, %v2438_v47 }
 0x444   :  { %2781 = vpush %v2440_v56 }
 0x475   :  { %s2782_s0 = spop %2781 }
 0x476   :  { %v2446_v31 = vstv %s2782_s0 }
 0x477   :  { %v2447_v46 = vsel %vm2444_vm4, %v2445_v28, %v2446_v31 }
 0x478   :  { %2449 = vst.msk [vmem:[%s5208_s3] sm:$0x1] %vm2448_vm5, %v2447_v46 }
 0x479   :  { %2454 = vsyncpa [#allocation3], 1 }

</bundles_post_ra>
